<compile_context>
chip_gen: v6e
topology: v6e:2x2x1
jax: 0.10.0
libtpu: 0.0.40
codegen_flags: <defaults>
</compile_context>

<pallas_src>
import jax
import jax.numpy as jnp
from jax.experimental import pallas as pl
from jax.experimental.pallas import tpu as pltpu

C = 256          # channel count hard-coded by the PyTorch module
EPS = 1e-5       # nn.BatchNorm2d default
_TAPS = [(dy, dx) for dy in range(3) for dx in range(3)]   # 3x3 taps, row-major


# ---------------------------------------------------------------------------
# In-kernel helpers
# ---------------------------------------------------------------------------
def _store_padded(xpad_ref, interior_bf16):
    """Write the (H, W, C) interior into the (H+2, W+2, C) bf16 scratch and
    (re)zero only the 1-pixel halo border (the interior is always fully
    overwritten, and re-zeroing every step keeps the kernel correct under a
    megacore split of the grid axis)."""
    hp2, wp2, cc = xpad_ref.shape
    h, w = hp2 - 2, wp2 - 2
    zrow = jnp.zeros((1, wp2, cc), jnp.bfloat16)
    zcol = jnp.zeros((h, 1, cc), jnp.bfloat16)
    xpad_ref[0:1, :, :] = zrow                       # top halo row
    xpad_ref[h + 1:h + 2, :, :] = zrow               # bottom halo row
    xpad_ref[1:h + 1, 0:1, :] = zcol                 # left halo column
    xpad_ref[1:h + 1, w + 1:w + 2, :] = zcol         # right halo column
    xpad_ref[1:h + 1, 1:w + 1, :] = interior_bf16    # interior


def _conv3x3_taps(xpad_ref, w_ref):
    """3x3 'same' convolution as 9 accumulating MXU matmuls (no im2col buffer).

    xpad_ref : (H+2, W+2, C) bf16, zero halo border.
    w_ref    : (9*C, C) bf16, rows ordered (kh, kw, cin).
    returns  : (H*W, C) f32.
    """
    hp2, wp2, cc = xpad_ref.shape
    h, w = hp2 - 2, wp2 - 2
    m = h * w
    acc = jnp.zeros((m, cc), jnp.float32)
    for t, (dy, dx) in enumerate(_TAPS):
        # TODO(synk): dx in {1,2} slices are sublane-unaligned; a pltpu.roll
        # based W-shift (XLU slot) would relieve the load/store slots at
        # large H*W.
        tap = xpad_ref[dy:dy + h, dx:dx + w, :].reshape(m, cc)
        acc = acc + jnp.dot(tap, w_ref[t * cc:(t + 1) * cc, :],
                            preferred_element_type=jnp.float32)
    return acc


def _partial_bn_stats(y, stats_ref):
    """Per-sample two-pass statistics: row 0 = sum, row 1 = centered sum-sq."""
    m = y.shape[0]
    s = jnp.sum(y, axis=0, keepdims=True)               # (1, C)
    cent = y - s * (1.0 / m)
    m2 = jnp.sum(cent * cent, axis=0, keepdims=True)    # (1, C)
    stats_ref[0, 0:1, :] = s
    stats_ref[0, 1:2, :] = m2


# ---------------------------------------------------------------------------
# Kernels (grid over the batch dimension; block leading dim is 1)
# ---------------------------------------------------------------------------
def _conv1_kernel(x_ref, w_ref, y_ref, stats_ref, xpad_ref):
    # x_ref: (1,H,W,C) f32 | w_ref: (9C,C) bf16 | y_ref: (1,H*W,C) f32
    # stats_ref: (1,2,C) f32 | xpad_ref: (H+2,W+2,C) bf16 scratch
    _store_padded(xpad_ref, x_ref[0].astype(jnp.bfloat16))
    y = _conv3x3_taps(xpad_ref, w_ref)
    y_ref[0] = y
    _partial_bn_stats(y, stats_ref)


def _bn_relu_conv2_kernel(y1_ref, scale_ref, shift_ref, w_ref,
                          y2_ref, stats_ref, xpad_ref):
    # Folded BN1 affine + ReLU, then conv2 and its per-sample partial stats.
    hp2, wp2, cc = xpad_ref.shape
    h, w = hp2 - 2, wp2 - 2
    a = jnp.maximum(y1_ref[0] * scale_ref[...] + shift_ref[...], 0.0)  # (HW,C) f32
    _store_padded(xpad_ref, a.reshape(h, w, cc).astype(jnp.bfloat16))
    y = _conv3x3_taps(xpad_ref, w_ref)
    y2_ref[0] = y
    _partial_bn_stats(y, stats_ref)


def _bn2_residual_kernel(y2_ref, x_ref, scale_ref, shift_ref, out_ref):
    # Folded BN2 affine + residual add.
    out_ref[0] = y2_ref[0] * scale_ref[...] + shift_ref[...] + x_ref[0]


# ---------------------------------------------------------------------------
# XLA glue: combine per-sample stats -> folded BN affine (scale, shift)
# ---------------------------------------------------------------------------
def _finalize_bn(stats, gamma, beta, count_per_sample):
    """Chan's parallel combination of per-sample (sum, centered sum-sq) into the
    batch mean / biased variance, folded with gamma/beta into y*scale + shift."""
    n = stats.shape[0]
    total = n * count_per_sample
    s = stats[:, 0, :]                                   # (N, C) per-sample sums
    m2 = stats[:, 1, :]                                  # (N, C) centered sum-sq
    mean = jnp.sum(s, axis=0, keepdims=True) / total     # (1, C)
    mean_n = s / count_per_sample
    m2_total = (jnp.sum(m2, axis=0, keepdims=True)
                + count_per_sample * jnp.sum((mean_n - mean) ** 2,
                                             axis=0, keepdims=True))
    var = m2_total / total                               # biased, training-mode BN
    scale = gamma * jax.lax.rsqrt(var + EPS)             # (1, C)
    shift = beta - mean * scale
    return scale, shift


# ---------------------------------------------------------------------------
# Forward pass
# ---------------------------------------------------------------------------
def res_block_forward_nhwc(x, params):
    """x: (N, H, W, C) f32 NHWC. params: pre-packed via pack_params."""
    n, h, w, cc = x.shape
    assert cc == C
    m = h * w
    # TODO(synk): per-step VMEM is O(H*W*C); for very large images add an
    # H-band grid axis with a 1-row halo (manual DMA) on top of the batch axis.
    # TODO(synk): BatchNorm running_mean/running_var buffer updates (training
    # side effect that does not change the returned tensor) are not produced.

    act4 = pl.BlockSpec((1, h, w, cc), lambda i: (i, 0, 0, 0))
    act3 = pl.BlockSpec((1, m, cc), lambda i: (i, 0, 0))
    stat = pl.BlockSpec((1, 2, cc), lambda i: (i, 0, 0))
    wspec = pl.BlockSpec((9 * cc, cc), lambda i: (0, 0))     # resident weights
    vec = pl.BlockSpec((1, cc), lambda i: (0, 0))            # resident scale/shift
    cparams = pltpu.CompilerParams(
        dimension_semantics=("parallel",),                   # both TCs on v7x
        vmem_limit_bytes=32 * 1024 * 1024)
    xpad = pltpu.VMEM((h + 2, w + 2, cc), jnp.bfloat16)

    # --- pass 1: conv1 + per-sample BN1 partial statistics ------------------
    y1, stats1 = pl.pallas_call(
        _conv1_kernel,
        grid=(n,),
        in_specs=[act4, wspec],
        out_specs=(act3, stat),
        out_shape=(jax.ShapeDtypeStruct((n, m, cc), jnp.float32),
                   jax.ShapeDtypeStruct((n, 2, cc), jnp.float32)),
        scratch_shapes=[xpad],
        compiler_params=cparams,
    )(x, params["w1"])
    scale1, shift1 = _finalize_bn(stats1, params["g1"], params["be1"], m)

    # --- pass 2: BN1 affine + ReLU + conv2 + per-sample BN2 partial stats ---
    y2, stats2 = pl.pallas_call(
        _bn_relu_conv2_kernel,
        grid=(n,),
        in_specs=[act3, vec, vec, wspec],
        out_specs=(act3, stat),
        out_shape=(jax.ShapeDtypeStruct((n, m, cc), jnp.float32),
                   jax.ShapeDtypeStruct((n, 2, cc), jnp.float32)),
        scratch_shapes=[xpad],
        compiler_params=cparams,
    )(y1, scale1, shift1, params["w2"])
    scale2, shift2 = _finalize_bn(stats2, params["g2"], params["be2"], m)

    # --- pass 3: BN2 affine + residual add -----------------------------------
    out = pl.pallas_call(
        _bn2_residual_kernel,
        grid=(n,),
        in_specs=[act3, act3, vec, vec],
        out_specs=act3,
        out_shape=jax.ShapeDtypeStruct((n, m, cc), jnp.float32),
        compiler_params=cparams,
    )(y2, x.reshape(n, m, cc), scale2, shift2)

    return out.reshape(n, h, w, cc)


def pack_params(w1_oihw, w2_oihw, g1, be1, g2, be2):
    """One-time weight packing, hoisted out of the forward (perf review).
    Conv biases are intentionally absent: training-mode BatchNorm subtracts the
    batch mean, which cancels a conv bias exactly, so the block output is
    unchanged.  (Eval-mode / running-stats BN would need them back.)"""
    def pack_w(w):   # (Cout, Cin, 3, 3) -> (kh, kw, Cin, Cout) -> (9*Cin, Cout)
        return (jnp.transpose(w, (2, 3, 1, 0))
                .reshape(9 * C, C).astype(jnp.bfloat16))
    return {
        "w1": pack_w(w1_oihw), "w2": pack_w(w2_oihw),
        "g1": g1.reshape(1, C).astype(jnp.float32),
        "be1": be1.reshape(1, C).astype(jnp.float32),
        "g2": g2.reshape(1, C).astype(jnp.float32),
        "be2": be2.reshape(1, C).astype(jnp.float32),
    }


def res_block_forward(x_nchw, params):
    """PyTorch-interface wrapper (NCHW in / NCHW out).
    TODO(synk): keep activations NHWC across the surrounding model so these two
    transposes (a full HBM round-trip each) disappear."""
    x = jnp.transpose(x_nchw, (0, 2, 3, 1)).astype(jnp.float32)   # NCHW -> NHWC
    out = res_block_forward_nhwc(x, params)
    return jnp.transpose(out, (0, 3, 1, 2))                       # NHWC -> NCHW


# ---------------------------------------------------------------------------
# Pure-JAX reference (PyTorch training-mode semantics, with conv biases)
# ---------------------------------------------------------------------------
def _reference(x_nchw, params, conv_dtype=jnp.float32):
    def conv(x, w_oihw, b):
        y = jax.lax.conv_general_dilated(
            x.astype(conv_dtype), w_oihw.astype(conv_dtype),
            window_strides=(1, 1), padding=((1, 1), (1, 1)),
            dimension_numbers=("NCHW", "OIHW", "NCHW"),
            preferred_element_type=jnp.float32)
        return y + b[None, :, None, None]

    def bn(x, g, b):
        mean = jnp.mean(x, axis=(0, 2, 3), keepdims=True)
        var = jnp.var(x, axis=(0, 2, 3), keepdims=True)
        xn = (x - mean) * jax.lax.rsqrt(var + EPS)
        return xn * g[None, :, None, None] + b[None, :, None, None]

    y = conv(x_nchw, params["w1_oihw"], params["b1"])
    y = jax.nn.relu(bn(y, params["g1"], params["be1"]))
    y = conv(y, params["w2_oihw"], params["b2"])
    y = bn(y, params["g2"], params["be2"])
    return y + x_nchw


if __name__ == "__main__":
    key = jax.random.PRNGKey(0)
    k_x, k_w1, k_b1, k_w2, k_b2 = jax.random.split(key, 5)

    N, H, W = 2, 8, 8
    x = jax.random.normal(k_x, (N, C, H, W), dtype=jnp.float32)

    fan_in = 9 * C
    std = 1.0 / jnp.sqrt(jnp.float32(fan_in))
    w1_oihw = jax.random.normal(k_w1, (C, C, 3, 3), dtype=jnp.float32) * std
    w2_oihw = jax.random.normal(k_w2, (C, C, 3, 3), dtype=jnp.float32) * std
    b1 = jax.random.normal(k_b1, (C,), dtype=jnp.float32) * std
    b2 = jax.random.normal(k_b2, (C,), dtype=jnp.float32) * std
    g1 = jnp.ones((C,), jnp.float32); be1 = jnp.zeros((C,), jnp.float32)
    g2 = jnp.ones((C,), jnp.float32); be2 = jnp.zeros((C,), jnp.float32)

    params = pack_params(w1_oihw, w2_oihw, g1, be1, g2, be2)
    ref_params = {"w1_oihw": w1_oihw, "w2_oihw": w2_oihw, "b1": b1, "b2": b2,
                  "g1": g1, "be1": be1, "g2": g2, "be2": be2}

    out = jax.block_until_ready(jax.jit(res_block_forward)(x, params))
    assert out.shape == (N, C, H, W) and out.dtype == jnp.float32

    # 1) Kernel-logic check: reference with matching bf16 conv-operand
    #    precision (f32 accumulation) must agree tightly.
    ref_bf16 = jax.block_until_ready(_reference(x, ref_params, jnp.bfloat16))
    err_bf16 = float(jnp.max(jnp.abs(out - ref_bf16)))
    assert jnp.allclose(out, ref_bf16, rtol=2e-3, atol=2e-3), err_bf16

    # 2) Module-fidelity check: pure-f32 reference of the PyTorch module,
    #    looser tolerance to allow for the bf16 matmul operands.
    ref_f32 = jax.block_until_ready(_reference(x, ref_params, jnp.float32))
    err_f32 = float(jnp.max(jnp.abs(out - ref_f32)))
    assert jnp.allclose(out, ref_f32, rtol=2e-2, atol=8e-2), err_f32

    print("KERNEL_OK")
</pallas_src>

<mosaic_0001>
module attributes {stable_mosaic.version = 11 : i64} {
  func.func @_conv1_kernel(%arg0: i32, %arg1: memref<1x8x8x256xf32, #tpu.memory_space<vmem>>, %arg2: memref<2304x256xbf16, #tpu.memory_space<vmem>>, %arg3: memref<1x64x256xf32, #tpu.memory_space<vmem>>, %arg4: memref<1x2x256xf32, #tpu.memory_space<vmem>>, %arg5: memref<10x10x256xbf16, #tpu.memory_space<vmem>>) attributes {dimension_semantics = [#tpu.dimension_semantics<parallel>], iteration_bounds = array<i64: 2>, scalar_prefetch = 0 : i64, scratch_operands = 1 : i64, tpu.core_type = #tpu.core_type<tc>, window_params = [{transform_indices = @transform_0, window_bounds = array<i64: 1, 8, 8, 256>}, {pipeline_mode = #tpu.pipeline_mode<synchronous>, transform_indices = @transform_1, window_bounds = array<i64: 2304, 256>}, {transform_indices = @transform_2, window_bounds = array<i64: 1, 64, 256>}, {transform_indices = @transform_3, window_bounds = array<i64: 1, 2, 256>}]} {
    %c0 = arith.constant 0 : index
    %c0_0 = arith.constant 0 : index
    %c0_1 = arith.constant 0 : index
    %c0_2 = arith.constant 0 : index
    %0 = vector.load %arg1[%c0, %c0_0, %c0_1, %c0_2] : memref<1x8x8x256xf32, #tpu.memory_space<vmem>>, vector<1x8x8x256xf32>
    %1 = vector.shape_cast %0 : vector<1x8x8x256xf32> to vector<8x8x256xf32>
    %2 = arith.truncf %1 : vector<8x8x256xf32> to vector<8x8x256xbf16>
    %cst = arith.constant 0.000000e+00 : bf16
    %3 = vector.broadcast %cst : bf16 to vector<1x10x256xbf16>
    %cst_3 = arith.constant 0.000000e+00 : bf16
    %4 = vector.broadcast %cst_3 : bf16 to vector<8x1x256xbf16>
    %c0_4 = arith.constant 0 : index
    %c0_5 = arith.constant 0 : index
    %c0_6 = arith.constant 0 : index
    %5 = vector.load %arg5[%c0_4, %c0_5, %c0_6] : memref<10x10x256xbf16, #tpu.memory_space<vmem>>, vector<1x10x256xbf16>
    tpu.vector_store %arg5[%c0_4, %c0_5, %c0_6], %3 {strides = array<i32>} : memref<10x10x256xbf16, #tpu.memory_space<vmem>>, vector<1x10x256xbf16>,
    %c9 = arith.constant 9 : index
    %c0_7 = arith.constant 0 : index
    %c0_8 = arith.constant 0 : index
    %6 = vector.load %arg5[%c9, %c0_7, %c0_8] : memref<10x10x256xbf16, #tpu.memory_space<vmem>>, vector<1x10x256xbf16>
    tpu.vector_store %arg5[%c9, %c0_7, %c0_8], %3 {strides = array<i32>} : memref<10x10x256xbf16, #tpu.memory_space<vmem>>, vector<1x10x256xbf16>,
    %c1 = arith.constant 1 : index
    %c0_9 = arith.constant 0 : index
    %c0_10 = arith.constant 0 : index
    %7 = vector.load %arg5[%c1, %c0_9, %c0_10] : memref<10x10x256xbf16, #tpu.memory_space<vmem>>, vector<8x1x256xbf16>
    tpu.vector_store %arg5[%c1, %c0_9, %c0_10], %4 {strides = array<i32>} : memref<10x10x256xbf16, #tpu.memory_space<vmem>>, vector<8x1x256xbf16>,
    %c1_11 = arith.constant 1 : index
    %c9_12 = arith.constant 9 : index
    %c0_13 = arith.constant 0 : index
    %8 = vector.load %arg5[%c1_11, %c9_12, %c0_13] : memref<10x10x256xbf16, #tpu.memory_space<vmem>>, vector<8x1x256xbf16>
    tpu.vector_store %arg5[%c1_11, %c9_12, %c0_13], %4 {strides = array<i32>} : memref<10x10x256xbf16, #tpu.memory_space<vmem>>, vector<8x1x256xbf16>,
    %c1_14 = arith.constant 1 : index
    %c1_15 = arith.constant 1 : index
    %c0_16 = arith.constant 0 : index
    %9 = vector.load %arg5[%c1_14, %c1_15, %c0_16] : memref<10x10x256xbf16, #tpu.memory_space<vmem>>, vector<8x8x256xbf16>
    tpu.vector_store %arg5[%c1_14, %c1_15, %c0_16], %2 {strides = array<i32>} : memref<10x10x256xbf16, #tpu.memory_space<vmem>>, vector<8x8x256xbf16>,
    %cst_17 = arith.constant 0.000000e+00 : f32
    %10 = vector.broadcast %cst_17 : f32 to vector<64x256xf32>
    %c0_18 = arith.constant 0 : index
    %c0_19 = arith.constant 0 : index
    %c0_20 = arith.constant 0 : index
    %11 = vector.load %arg5[%c0_18, %c0_19, %c0_20] : memref<10x10x256xbf16, #tpu.memory_space<vmem>>, vector<8x8x256xbf16>
    %12 = vector.shape_cast %11 : vector<8x8x256xbf16> to vector<64x256xbf16>
    %c0_21 = arith.constant 0 : index
    %c0_22 = arith.constant 0 : index
    %13 = vector.load %arg2[%c0_21, %c0_22] : memref<2304x256xbf16, #tpu.memory_space<vmem>>, vector<256x256xbf16>
    %cst_23 = arith.constant dense<0.000000e+00> : vector<64x256xf32>
    %14 = tpu.matmul %12, %13, %cst_23 {dimension_numbers = #tpu.dot_dimension_numbers<[1], [0], [0], [1], [0, 0, 1, 1], [], []>} : vector<64x256xbf16>, vector<256x256xbf16>, vector<64x256xf32> -> vector<64x256xf32>
    %15 = arith.addf %10, %14 : vector<64x256xf32>
    %c0_24 = arith.constant 0 : index
    %c1_25 = arith.constant 1 : index
    %c0_26 = arith.constant 0 : index
    %16 = vector.load %arg5[%c0_24, %c1_25, %c0_26] : memref<10x10x256xbf16, #tpu.memory_space<vmem>>, vector<8x8x256xbf16>
    %17 = vector.shape_cast %16 : vector<8x8x256xbf16> to vector<64x256xbf16>
    %c256 = arith.constant 256 : index
    %c0_27 = arith.constant 0 : index
    %18 = vector.load %arg2[%c256, %c0_27] : memref<2304x256xbf16, #tpu.memory_space<vmem>>, vector<256x256xbf16>
    %cst_28 = arith.constant dense<0.000000e+00> : vector<64x256xf32>
    %19 = tpu.matmul %17, %18, %cst_28 {dimension_numbers = #tpu.dot_dimension_numbers<[1], [0], [0], [1], [0, 0, 1, 1], [], []>} : vector<64x256xbf16>, vector<256x256xbf16>, vector<64x256xf32> -> vector<64x256xf32>
    %20 = arith.addf %15, %19 : vector<64x256xf32>
    %c0_29 = arith.constant 0 : index
    %c2 = arith.constant 2 : index
    %c0_30 = arith.constant 0 : index
    %21 = vector.load %arg5[%c0_29, %c2, %c0_30] : memref<10x10x256xbf16, #tpu.memory_space<vmem>>, vector<8x8x256xbf16>
    %22 = vector.shape_cast %21 : vector<8x8x256xbf16> to vector<64x256xbf16>
    %c512 = arith.constant 512 : index
    %c0_31 = arith.constant 0 : index
    %23 = vector.load %arg2[%c512, %c0_31] : memref<2304x256xbf16, #tpu.memory_space<vmem>>, vector<256x256xbf16>
    %cst_32 = arith.constant dense<0.000000e+00> : vector<64x256xf32>
    %24 = tpu.matmul %22, %23, %cst_32 {dimension_numbers = #tpu.dot_dimension_numbers<[1], [0], [0], [1], [0, 0, 1, 1], [], []>} : vector<64x256xbf16>, vector<256x256xbf16>, vector<64x256xf32> -> vector<64x256xf32>
    %25 = arith.addf %20, %24 : vector<64x256xf32>
    %c1_33 = arith.constant 1 : index
    %c0_34 = arith.constant 0 : index
    %c0_35 = arith.constant 0 : index
    %26 = vector.load %arg5[%c1_33, %c0_34, %c0_35] : memref<10x10x256xbf16, #tpu.memory_space<vmem>>, vector<8x8x256xbf16>
    %27 = vector.shape_cast %26 : vector<8x8x256xbf16> to vector<64x256xbf16>
    %c768 = arith.constant 768 : index
    %c0_36 = arith.constant 0 : index
    %28 = vector.load %arg2[%c768, %c0_36] : memref<2304x256xbf16, #tpu.memory_space<vmem>>, vector<256x256xbf16>
    %cst_37 = arith.constant dense<0.000000e+00> : vector<64x256xf32>
    %29 = tpu.matmul %27, %28, %cst_37 {dimension_numbers = #tpu.dot_dimension_numbers<[1], [0], [0], [1], [0, 0, 1, 1], [], []>} : vector<64x256xbf16>, vector<256x256xbf16>, vector<64x256xf32> -> vector<64x256xf32>
    %30 = arith.addf %25, %29 : vector<64x256xf32>
    %c1_38 = arith.constant 1 : index
    %c1_39 = arith.constant 1 : index
    %c0_40 = arith.constant 0 : index
    %31 = vector.load %arg5[%c1_38, %c1_39, %c0_40] : memref<10x10x256xbf16, #tpu.memory_space<vmem>>, vector<8x8x256xbf16>
    %32 = vector.shape_cast %31 : vector<8x8x256xbf16> to vector<64x256xbf16>
    %c1024 = arith.constant 1024 : index
    %c0_41 = arith.constant 0 : index
    %33 = vector.load %arg2[%c1024, %c0_41] : memref<2304x256xbf16, #tpu.memory_space<vmem>>, vector<256x256xbf16>
    %cst_42 = arith.constant dense<0.000000e+00> : vector<64x256xf32>
    %34 = tpu.matmul %32, %33, %cst_42 {dimension_numbers = #tpu.dot_dimension_numbers<[1], [0], [0], [1], [0, 0, 1, 1], [], []>} : vector<64x256xbf16>, vector<256x256xbf16>, vector<64x256xf32> -> vector<64x256xf32>
    %35 = arith.addf %30, %34 : vector<64x256xf32>
    %c1_43 = arith.constant 1 : index
    %c2_44 = arith.constant 2 : index
    %c0_45 = arith.constant 0 : index
    %36 = vector.load %arg5[%c1_43, %c2_44, %c0_45] : memref<10x10x256xbf16, #tpu.memory_space<vmem>>, vector<8x8x256xbf16>
    %37 = vector.shape_cast %36 : vector<8x8x256xbf16> to vector<64x256xbf16>
    %c1280 = arith.constant 1280 : index
    %c0_46 = arith.constant 0 : index
    %38 = vector.load %arg2[%c1280, %c0_46] : memref<2304x256xbf16, #tpu.memory_space<vmem>>, vector<256x256xbf16>
    %cst_47 = arith.constant dense<0.000000e+00> : vector<64x256xf32>
    %39 = tpu.matmul %37, %38, %cst_47 {dimension_numbers = #tpu.dot_dimension_numbers<[1], [0], [0], [1], [0, 0, 1, 1], [], []>} : vector<64x256xbf16>, vector<256x256xbf16>, vector<64x256xf32> -> vector<64x256xf32>
    %40 = arith.addf %35, %39 : vector<64x256xf32>
    %c2_48 = arith.constant 2 : index
    %c0_49 = arith.constant 0 : index
    %c0_50 = arith.constant 0 : index
    %41 = vector.load %arg5[%c2_48, %c0_49, %c0_50] : memref<10x10x256xbf16, #tpu.memory_space<vmem>>, vector<8x8x256xbf16>
    %42 = vector.shape_cast %41 : vector<8x8x256xbf16> to vector<64x256xbf16>
    %c1536 = arith.constant 1536 : index
    %c0_51 = arith.constant 0 : index
    %43 = vector.load %arg2[%c1536, %c0_51] : memref<2304x256xbf16, #tpu.memory_space<vmem>>, vector<256x256xbf16>
    %cst_52 = arith.constant dense<0.000000e+00> : vector<64x256xf32>
    %44 = tpu.matmul %42, %43, %cst_52 {dimension_numbers = #tpu.dot_dimension_numbers<[1], [0], [0], [1], [0, 0, 1, 1], [], []>} : vector<64x256xbf16>, vector<256x256xbf16>, vector<64x256xf32> -> vector<64x256xf32>
    %45 = arith.addf %40, %44 : vector<64x256xf32>
    %c2_53 = arith.constant 2 : index
    %c1_54 = arith.constant 1 : index
    %c0_55 = arith.constant 0 : index
    %46 = vector.load %arg5[%c2_53, %c1_54, %c0_55] : memref<10x10x256xbf16, #tpu.memory_space<vmem>>, vector<8x8x256xbf16>
    %47 = vector.shape_cast %46 : vector<8x8x256xbf16> to vector<64x256xbf16>
    %c1792 = arith.constant 1792 : index
    %c0_56 = arith.constant 0 : index
    %48 = vector.load %arg2[%c1792, %c0_56] : memref<2304x256xbf16, #tpu.memory_space<vmem>>, vector<256x256xbf16>
    %cst_57 = arith.constant dense<0.000000e+00> : vector<64x256xf32>
    %49 = tpu.matmul %47, %48, %cst_57 {dimension_numbers = #tpu.dot_dimension_numbers<[1], [0], [0], [1], [0, 0, 1, 1], [], []>} : vector<64x256xbf16>, vector<256x256xbf16>, vector<64x256xf32> -> vector<64x256xf32>
    %50 = arith.addf %45, %49 : vector<64x256xf32>
    %c2_58 = arith.constant 2 : index
    %c2_59 = arith.constant 2 : index
    %c0_60 = arith.constant 0 : index
    %51 = vector.load %arg5[%c2_58, %c2_59, %c0_60] : memref<10x10x256xbf16, #tpu.memory_space<vmem>>, vector<8x8x256xbf16>
    %52 = vector.shape_cast %51 : vector<8x8x256xbf16> to vector<64x256xbf16>
    %c2048 = arith.constant 2048 : index
    %c0_61 = arith.constant 0 : index
    %53 = vector.load %arg2[%c2048, %c0_61] : memref<2304x256xbf16, #tpu.memory_space<vmem>>, vector<256x256xbf16>
    %cst_62 = arith.constant dense<0.000000e+00> : vector<64x256xf32>
    %54 = tpu.matmul %52, %53, %cst_62 {dimension_numbers = #tpu.dot_dimension_numbers<[1], [0], [0], [1], [0, 0, 1, 1], [], []>} : vector<64x256xbf16>, vector<256x256xbf16>, vector<64x256xf32> -> vector<64x256xf32>
    %55 = arith.addf %50, %54 : vector<64x256xf32>
    %c0_63 = arith.constant 0 : index
    %c0_64 = arith.constant 0 : index
    %c0_65 = arith.constant 0 : index
    %56 = vector.load %arg3[%c0_63, %c0_64, %c0_65] : memref<1x64x256xf32, #tpu.memory_space<vmem>>, vector<1x64x256xf32>
    %57 = vector.shape_cast %56 : vector<1x64x256xf32> to vector<64x256xf32>
    %58 = vector.shape_cast %55 : vector<64x256xf32> to vector<1x64x256xf32>
    tpu.vector_store %arg3[%c0_63, %c0_64, %c0_65], %58 {strides = array<i32>} : memref<1x64x256xf32, #tpu.memory_space<vmem>>, vector<1x64x256xf32>,
    %cst_66 = arith.constant dense<0.000000e+00> : vector<256xf32>
    %59 = vector.multi_reduction <add>, %55, %cst_66 [0] : vector<64x256xf32> to vector<256xf32>
    %60 = vector.shape_cast %59 : vector<256xf32> to vector<1x256xf32>
    %cst_67 = arith.constant 1.562500e-02 : f32
    %61 = vector.broadcast %cst_67 : f32 to vector<1x256xf32>
    %62 = arith.mulf %60, %61 : vector<1x256xf32>
    %63 = vector.broadcast %62 : vector<1x256xf32> to vector<64x256xf32>
    %64 = arith.subf %55, %63 : vector<64x256xf32>
    %65 = arith.mulf %64, %64 : vector<64x256xf32>
    %cst_68 = arith.constant dense<0.000000e+00> : vector<256xf32>
    %66 = vector.multi_reduction <add>, %65, %cst_68 [0] : vector<64x256xf32> to vector<256xf32>
    %67 = vector.shape_cast %66 : vector<256xf32> to vector<1x256xf32>
    %c0_69 = arith.constant 0 : index
    %c0_70 = arith.constant 0 : index
    %c0_71 = arith.constant 0 : index
    %68 = vector.load %arg4[%c0_69, %c0_70, %c0_71] : memref<1x2x256xf32, #tpu.memory_space<vmem>>, vector<1x1x256xf32>
    %69 = vector.shape_cast %68 : vector<1x1x256xf32> to vector<1x256xf32>
    %70 = vector.shape_cast %60 : vector<1x256xf32> to vector<1x1x256xf32>
    tpu.vector_store %arg4[%c0_69, %c0_70, %c0_71], %70 {strides = array<i32>} : memref<1x2x256xf32, #tpu.memory_space<vmem>>, vector<1x1x256xf32>,
    %c0_72 = arith.constant 0 : index
    %c1_73 = arith.constant 1 : index
    %c0_74 = arith.constant 0 : index
    %71 = vector.load %arg4[%c0_72, %c1_73, %c0_74] : memref<1x2x256xf32, #tpu.memory_space<vmem>>, vector<1x1x256xf32>
    %72 = vector.shape_cast %71 : vector<1x1x256xf32> to vector<1x256xf32>
    %73 = vector.shape_cast %67 : vector<1x256xf32> to vector<1x1x256xf32>
    tpu.vector_store %arg4[%c0_72, %c1_73, %c0_74], %73 {strides = array<i32>} : memref<1x2x256xf32, #tpu.memory_space<vmem>>, vector<1x1x256xf32>,
    return
  }
  func.func @transform_0(%arg0: i32) -> (i32, i32, i32, i32) {
    %c0_i32 = arith.constant 0 : i32
    %c0_i32_0 = arith.constant 0 : i32
    %c0_i32_1 = arith.constant 0 : i32
    %c0_i32_2 = arith.constant 0 : i32
    return %arg0, %c0_i32, %c0_i32_0, %c0_i32_1 : i32, i32, i32, i32
  }
  func.func @transform_1(%arg0: i32) -> (i32, i32) {
    %c0_i32 = arith.constant 0 : i32
    %c0_i32_0 = arith.constant 0 : i32
    %c0_i32_1 = arith.constant 0 : i32
    return %c0_i32, %c0_i32_0 : i32, i32
  }
  func.func @transform_2(%arg0: i32) -> (i32, i32, i32) {
    %c0_i32 = arith.constant 0 : i32
    %c0_i32_0 = arith.constant 0 : i32
    %c0_i32_1 = arith.constant 0 : i32
    return %arg0, %c0_i32, %c0_i32_0 : i32, i32, i32
  }
  func.func @transform_3(%arg0: i32) -> (i32, i32, i32) {
    %c0_i32 = arith.constant 0 : i32
    %c0_i32_0 = arith.constant 0 : i32
    %c0_i32_1 = arith.constant 0 : i32
    return %arg0, %c0_i32, %c0_i32_0 : i32, i32, i32
  }
}

module attributes {stable_mosaic.version = 11 : i64} {
  func.func @_bn2_residual_kernel(%arg0: i32, %arg1: memref<1x64x256xf32, #tpu.memory_space<vmem>>, %arg2: memref<1x64x256xf32, #tpu.memory_space<vmem>>, %arg3: memref<1x256xf32, #tpu.memory_space<vmem>>, %arg4: memref<1x256xf32, #tpu.memory_space<vmem>>, %arg5: memref<1x64x256xf32, #tpu.memory_space<vmem>>) attributes {dimension_semantics = [#tpu.dimension_semantics<parallel>], iteration_bounds = array<i64: 2>, scalar_prefetch = 0 : i64, scratch_operands = 0 : i64, tpu.core_type = #tpu.core_type<tc>, window_params = [{transform_indices = @transform_0, window_bounds = array<i64: 1, 64, 256>}, {transform_indices = @transform_1, window_bounds = array<i64: 1, 64, 256>}, {pipeline_mode = #tpu.pipeline_mode<synchronous>, transform_indices = @transform_2, window_bounds = array<i64: 1, 256>}, {pipeline_mode = #tpu.pipeline_mode<synchronous>, transform_indices = @transform_3, window_bounds = array<i64: 1, 256>}, {transform_indices = @transform_4, window_bounds = array<i64: 1, 64, 256>}]} {
    %c0 = arith.constant 0 : index
    %c0_0 = arith.constant 0 : index
    %c0_1 = arith.constant 0 : index
    %0 = vector.load %arg1[%c0, %c0_0, %c0_1] : memref<1x64x256xf32, #tpu.memory_space<vmem>>, vector<1x64x256xf32>
    %1 = vector.shape_cast %0 : vector<1x64x256xf32> to vector<64x256xf32>
    %c0_2 = arith.constant 0 : index
    %c0_3 = arith.constant 0 : index
    %2 = vector.load %arg3[%c0_2, %c0_3] : memref<1x256xf32, #tpu.memory_space<vmem>>, vector<1x256xf32>
    %3 = vector.broadcast %2 : vector<1x256xf32> to vector<64x256xf32>
    %4 = arith.mulf %1, %3 : vector<64x256xf32>
    %c0_4 = arith.constant 0 : index
    %c0_5 = arith.constant 0 : index
    %5 = vector.load %arg4[%c0_4, %c0_5] : memref<1x256xf32, #tpu.memory_space<vmem>>, vector<1x256xf32>
    %6 = vector.broadcast %5 : vector<1x256xf32> to vector<64x256xf32>
    %7 = arith.addf %4, %6 : vector<64x256xf32>
    %c0_6 = arith.constant 0 : index
    %c0_7 = arith.constant 0 : index
    %c0_8 = arith.constant 0 : index
    %8 = vector.load %arg2[%c0_6, %c0_7, %c0_8] : memref<1x64x256xf32, #tpu.memory_space<vmem>>, vector<1x64x256xf32>
    %9 = vector.shape_cast %8 : vector<1x64x256xf32> to vector<64x256xf32>
    %10 = arith.addf %7, %9 : vector<64x256xf32>
    %c0_9 = arith.constant 0 : index
    %c0_10 = arith.constant 0 : index
    %c0_11 = arith.constant 0 : index
    %11 = vector.load %arg5[%c0_9, %c0_10, %c0_11] : memref<1x64x256xf32, #tpu.memory_space<vmem>>, vector<1x64x256xf32>
    %12 = vector.shape_cast %11 : vector<1x64x256xf32> to vector<64x256xf32>
    %13 = vector.shape_cast %10 : vector<64x256xf32> to vector<1x64x256xf32>
    tpu.vector_store %arg5[%c0_9, %c0_10, %c0_11], %13 {strides = array<i32>} : memref<1x64x256xf32, #tpu.memory_space<vmem>>, vector<1x64x256xf32>,
    return
  }
  func.func @transform_0(%arg0: i32) -> (i32, i32, i32) {
    %c0_i32 = arith.constant 0 : i32
    %c0_i32_0 = arith.constant 0 : i32
    %c0_i32_1 = arith.constant 0 : i32
    return %arg0, %c0_i32, %c0_i32_0 : i32, i32, i32
  }
  func.func @transform_1(%arg0: i32) -> (i32, i32, i32) {
    %c0_i32 = arith.constant 0 : i32
    %c0_i32_0 = arith.constant 0 : i32
    %c0_i32_1 = arith.constant 0 : i32
    return %arg0, %c0_i32, %c0_i32_0 : i32, i32, i32
  }
  func.func @transform_2(%arg0: i32) -> (i32, i32) {
    %c0_i32 = arith.constant 0 : i32
    %c0_i32_0 = arith.constant 0 : i32
    %c0_i32_1 = arith.constant 0 : i32
    return %c0_i32, %c0_i32_0 : i32, i32
  }
  func.func @transform_3(%arg0: i32) -> (i32, i32) {
    %c0_i32 = arith.constant 0 : i32
    %c0_i32_0 = arith.constant 0 : i32
    %c0_i32_1 = arith.constant 0 : i32
    return %c0_i32, %c0_i32_0 : i32, i32
  }
  func.func @transform_4(%arg0: i32) -> (i32, i32, i32) {
    %c0_i32 = arith.constant 0 : i32
    %c0_i32_0 = arith.constant 0 : i32
    %c0_i32_1 = arith.constant 0 : i32
    return %arg0, %c0_i32, %c0_i32_0 : i32, i32, i32
  }
}

module attributes {stable_mosaic.version = 11 : i64} {
  func.func @_bn_relu_conv2_kernel(%arg0: i32, %arg1: memref<1x64x256xf32, #tpu.memory_space<vmem>>, %arg2: memref<1x256xf32, #tpu.memory_space<vmem>>, %arg3: memref<1x256xf32, #tpu.memory_space<vmem>>, %arg4: memref<2304x256xbf16, #tpu.memory_space<vmem>>, %arg5: memref<1x64x256xf32, #tpu.memory_space<vmem>>, %arg6: memref<1x2x256xf32, #tpu.memory_space<vmem>>, %arg7: memref<10x10x256xbf16, #tpu.memory_space<vmem>>) attributes {dimension_semantics = [#tpu.dimension_semantics<parallel>], iteration_bounds = array<i64: 2>, scalar_prefetch = 0 : i64, scratch_operands = 1 : i64, tpu.core_type = #tpu.core_type<tc>, window_params = [{transform_indices = @transform_0, window_bounds = array<i64: 1, 64, 256>}, {pipeline_mode = #tpu.pipeline_mode<synchronous>, transform_indices = @transform_1, window_bounds = array<i64: 1, 256>}, {pipeline_mode = #tpu.pipeline_mode<synchronous>, transform_indices = @transform_2, window_bounds = array<i64: 1, 256>}, {pipeline_mode = #tpu.pipeline_mode<synchronous>, transform_indices = @transform_3, window_bounds = array<i64: 2304, 256>}, {transform_indices = @transform_4, window_bounds = array<i64: 1, 64, 256>}, {transform_indices = @transform_5, window_bounds = array<i64: 1, 2, 256>}]} {
    %c0 = arith.constant 0 : index
    %c0_0 = arith.constant 0 : index
    %c0_1 = arith.constant 0 : index
    %0 = vector.load %arg1[%c0, %c0_0, %c0_1] : memref<1x64x256xf32, #tpu.memory_space<vmem>>, vector<1x64x256xf32>
    %1 = vector.shape_cast %0 : vector<1x64x256xf32> to vector<64x256xf32>
    %c0_2 = arith.constant 0 : index
    %c0_3 = arith.constant 0 : index
    %2 = vector.load %arg2[%c0_2, %c0_3] : memref<1x256xf32, #tpu.memory_space<vmem>>, vector<1x256xf32>
    %3 = vector.broadcast %2 : vector<1x256xf32> to vector<64x256xf32>
    %4 = arith.mulf %1, %3 : vector<64x256xf32>
    %c0_4 = arith.constant 0 : index
    %c0_5 = arith.constant 0 : index
    %5 = vector.load %arg3[%c0_4, %c0_5] : memref<1x256xf32, #tpu.memory_space<vmem>>, vector<1x256xf32>
    %6 = vector.broadcast %5 : vector<1x256xf32> to vector<64x256xf32>
    %7 = arith.addf %4, %6 : vector<64x256xf32>
    %cst = arith.constant 0.000000e+00 : f32
    %8 = vector.broadcast %cst : f32 to vector<64x256xf32>
    %9 = arith.maximumf %7, %8 : vector<64x256xf32>
    %10 = vector.shape_cast %9 : vector<64x256xf32> to vector<8x8x256xf32>
    %11 = arith.truncf %10 : vector<8x8x256xf32> to vector<8x8x256xbf16>
    %cst_6 = arith.constant 0.000000e+00 : bf16
    %12 = vector.broadcast %cst_6 : bf16 to vector<1x10x256xbf16>
    %cst_7 = arith.constant 0.000000e+00 : bf16
    %13 = vector.broadcast %cst_7 : bf16 to vector<8x1x256xbf16>
    %c0_8 = arith.constant 0 : index
    %c0_9 = arith.constant 0 : index
    %c0_10 = arith.constant 0 : index
    %14 = vector.load %arg7[%c0_8, %c0_9, %c0_10] : memref<10x10x256xbf16, #tpu.memory_space<vmem>>, vector<1x10x256xbf16>
    tpu.vector_store %arg7[%c0_8, %c0_9, %c0_10], %12 {strides = array<i32>} : memref<10x10x256xbf16, #tpu.memory_space<vmem>>, vector<1x10x256xbf16>,
    %c9 = arith.constant 9 : index
    %c0_11 = arith.constant 0 : index
    %c0_12 = arith.constant 0 : index
    %15 = vector.load %arg7[%c9, %c0_11, %c0_12] : memref<10x10x256xbf16, #tpu.memory_space<vmem>>, vector<1x10x256xbf16>
    tpu.vector_store %arg7[%c9, %c0_11, %c0_12], %12 {strides = array<i32>} : memref<10x10x256xbf16, #tpu.memory_space<vmem>>, vector<1x10x256xbf16>,
    %c1 = arith.constant 1 : index
    %c0_13 = arith.constant 0 : index
    %c0_14 = arith.constant 0 : index
    %16 = vector.load %arg7[%c1, %c0_13, %c0_14] : memref<10x10x256xbf16, #tpu.memory_space<vmem>>, vector<8x1x256xbf16>
    tpu.vector_store %arg7[%c1, %c0_13, %c0_14], %13 {strides = array<i32>} : memref<10x10x256xbf16, #tpu.memory_space<vmem>>, vector<8x1x256xbf16>,
    %c1_15 = arith.constant 1 : index
    %c9_16 = arith.constant 9 : index
    %c0_17 = arith.constant 0 : index
    %17 = vector.load %arg7[%c1_15, %c9_16, %c0_17] : memref<10x10x256xbf16, #tpu.memory_space<vmem>>, vector<8x1x256xbf16>
    tpu.vector_store %arg7[%c1_15, %c9_16, %c0_17], %13 {strides = array<i32>} : memref<10x10x256xbf16, #tpu.memory_space<vmem>>, vector<8x1x256xbf16>,
    %c1_18 = arith.constant 1 : index
    %c1_19 = arith.constant 1 : index
    %c0_20 = arith.constant 0 : index
    %18 = vector.load %arg7[%c1_18, %c1_19, %c0_20] : memref<10x10x256xbf16, #tpu.memory_space<vmem>>, vector<8x8x256xbf16>
    tpu.vector_store %arg7[%c1_18, %c1_19, %c0_20], %11 {strides = array<i32>} : memref<10x10x256xbf16, #tpu.memory_space<vmem>>, vector<8x8x256xbf16>,
    %cst_21 = arith.constant 0.000000e+00 : f32
    %19 = vector.broadcast %cst_21 : f32 to vector<64x256xf32>
    %c0_22 = arith.constant 0 : index
    %c0_23 = arith.constant 0 : index
    %c0_24 = arith.constant 0 : index
    %20 = vector.load %arg7[%c0_22, %c0_23, %c0_24] : memref<10x10x256xbf16, #tpu.memory_space<vmem>>, vector<8x8x256xbf16>
    %21 = vector.shape_cast %20 : vector<8x8x256xbf16> to vector<64x256xbf16>
    %c0_25 = arith.constant 0 : index
    %c0_26 = arith.constant 0 : index
    %22 = vector.load %arg4[%c0_25, %c0_26] : memref<2304x256xbf16, #tpu.memory_space<vmem>>, vector<256x256xbf16>
    %cst_27 = arith.constant dense<0.000000e+00> : vector<64x256xf32>
    %23 = tpu.matmul %21, %22, %cst_27 {dimension_numbers = #tpu.dot_dimension_numbers<[1], [0], [0], [1], [0, 0, 1, 1], [], []>} : vector<64x256xbf16>, vector<256x256xbf16>, vector<64x256xf32> -> vector<64x256xf32>
    %24 = arith.addf %19, %23 : vector<64x256xf32>
    %c0_28 = arith.constant 0 : index
    %c1_29 = arith.constant 1 : index
    %c0_30 = arith.constant 0 : index
    %25 = vector.load %arg7[%c0_28, %c1_29, %c0_30] : memref<10x10x256xbf16, #tpu.memory_space<vmem>>, vector<8x8x256xbf16>
    %26 = vector.shape_cast %25 : vector<8x8x256xbf16> to vector<64x256xbf16>
    %c256 = arith.constant 256 : index
    %c0_31 = arith.constant 0 : index
    %27 = vector.load %arg4[%c256, %c0_31] : memref<2304x256xbf16, #tpu.memory_space<vmem>>, vector<256x256xbf16>
    %cst_32 = arith.constant dense<0.000000e+00> : vector<64x256xf32>
    %28 = tpu.matmul %26, %27, %cst_32 {dimension_numbers = #tpu.dot_dimension_numbers<[1], [0], [0], [1], [0, 0, 1, 1], [], []>} : vector<64x256xbf16>, vector<256x256xbf16>, vector<64x256xf32> -> vector<64x256xf32>
    %29 = arith.addf %24, %28 : vector<64x256xf32>
    %c0_33 = arith.constant 0 : index
    %c2 = arith.constant 2 : index
    %c0_34 = arith.constant 0 : index
    %30 = vector.load %arg7[%c0_33, %c2, %c0_34] : memref<10x10x256xbf16, #tpu.memory_space<vmem>>, vector<8x8x256xbf16>
    %31 = vector.shape_cast %30 : vector<8x8x256xbf16> to vector<64x256xbf16>
    %c512 = arith.constant 512 : index
    %c0_35 = arith.constant 0 : index
    %32 = vector.load %arg4[%c512, %c0_35] : memref<2304x256xbf16, #tpu.memory_space<vmem>>, vector<256x256xbf16>
    %cst_36 = arith.constant dense<0.000000e+00> : vector<64x256xf32>
    %33 = tpu.matmul %31, %32, %cst_36 {dimension_numbers = #tpu.dot_dimension_numbers<[1], [0], [0], [1], [0, 0, 1, 1], [], []>} : vector<64x256xbf16>, vector<256x256xbf16>, vector<64x256xf32> -> vector<64x256xf32>
    %34 = arith.addf %29, %33 : vector<64x256xf32>
    %c1_37 = arith.constant 1 : index
    %c0_38 = arith.constant 0 : index
    %c0_39 = arith.constant 0 : index
    %35 = vector.load %arg7[%c1_37, %c0_38, %c0_39] : memref<10x10x256xbf16, #tpu.memory_space<vmem>>, vector<8x8x256xbf16>
    %36 = vector.shape_cast %35 : vector<8x8x256xbf16> to vector<64x256xbf16>
    %c768 = arith.constant 768 : index
    %c0_40 = arith.constant 0 : index
    %37 = vector.load %arg4[%c768, %c0_40] : memref<2304x256xbf16, #tpu.memory_space<vmem>>, vector<256x256xbf16>
    %cst_41 = arith.constant dense<0.000000e+00> : vector<64x256xf32>
    %38 = tpu.matmul %36, %37, %cst_41 {dimension_numbers = #tpu.dot_dimension_numbers<[1], [0], [0], [1], [0, 0, 1, 1], [], []>} : vector<64x256xbf16>, vector<256x256xbf16>, vector<64x256xf32> -> vector<64x256xf32>
    %39 = arith.addf %34, %38 : vector<64x256xf32>
    %c1_42 = arith.constant 1 : index
    %c1_43 = arith.constant 1 : index
    %c0_44 = arith.constant 0 : index
    %40 = vector.load %arg7[%c1_42, %c1_43, %c0_44] : memref<10x10x256xbf16, #tpu.memory_space<vmem>>, vector<8x8x256xbf16>
    %41 = vector.shape_cast %40 : vector<8x8x256xbf16> to vector<64x256xbf16>
    %c1024 = arith.constant 1024 : index
    %c0_45 = arith.constant 0 : index
    %42 = vector.load %arg4[%c1024, %c0_45] : memref<2304x256xbf16, #tpu.memory_space<vmem>>, vector<256x256xbf16>
    %cst_46 = arith.constant dense<0.000000e+00> : vector<64x256xf32>
    %43 = tpu.matmul %41, %42, %cst_46 {dimension_numbers = #tpu.dot_dimension_numbers<[1], [0], [0], [1], [0, 0, 1, 1], [], []>} : vector<64x256xbf16>, vector<256x256xbf16>, vector<64x256xf32> -> vector<64x256xf32>
    %44 = arith.addf %39, %43 : vector<64x256xf32>
    %c1_47 = arith.constant 1 : index
    %c2_48 = arith.constant 2 : index
    %c0_49 = arith.constant 0 : index
    %45 = vector.load %arg7[%c1_47, %c2_48, %c0_49] : memref<10x10x256xbf16, #tpu.memory_space<vmem>>, vector<8x8x256xbf16>
    %46 = vector.shape_cast %45 : vector<8x8x256xbf16> to vector<64x256xbf16>
    %c1280 = arith.constant 1280 : index
    %c0_50 = arith.constant 0 : index
    %47 = vector.load %arg4[%c1280, %c0_50] : memref<2304x256xbf16, #tpu.memory_space<vmem>>, vector<256x256xbf16>
    %cst_51 = arith.constant dense<0.000000e+00> : vector<64x256xf32>
    %48 = tpu.matmul %46, %47, %cst_51 {dimension_numbers = #tpu.dot_dimension_numbers<[1], [0], [0], [1], [0, 0, 1, 1], [], []>} : vector<64x256xbf16>, vector<256x256xbf16>, vector<64x256xf32> -> vector<64x256xf32>
    %49 = arith.addf %44, %48 : vector<64x256xf32>
    %c2_52 = arith.constant 2 : index
    %c0_53 = arith.constant 0 : index
    %c0_54 = arith.constant 0 : index
    %50 = vector.load %arg7[%c2_52, %c0_53, %c0_54] : memref<10x10x256xbf16, #tpu.memory_space<vmem>>, vector<8x8x256xbf16>
    %51 = vector.shape_cast %50 : vector<8x8x256xbf16> to vector<64x256xbf16>
    %c1536 = arith.constant 1536 : index
    %c0_55 = arith.constant 0 : index
    %52 = vector.load %arg4[%c1536, %c0_55] : memref<2304x256xbf16, #tpu.memory_space<vmem>>, vector<256x256xbf16>
    %cst_56 = arith.constant dense<0.000000e+00> : vector<64x256xf32>
    %53 = tpu.matmul %51, %52, %cst_56 {dimension_numbers = #tpu.dot_dimension_numbers<[1], [0], [0], [1], [0, 0, 1, 1], [], []>} : vector<64x256xbf16>, vector<256x256xbf16>, vector<64x256xf32> -> vector<64x256xf32>
    %54 = arith.addf %49, %53 : vector<64x256xf32>
    %c2_57 = arith.constant 2 : index
    %c1_58 = arith.constant 1 : index
    %c0_59 = arith.constant 0 : index
    %55 = vector.load %arg7[%c2_57, %c1_58, %c0_59] : memref<10x10x256xbf16, #tpu.memory_space<vmem>>, vector<8x8x256xbf16>
    %56 = vector.shape_cast %55 : vector<8x8x256xbf16> to vector<64x256xbf16>
    %c1792 = arith.constant 1792 : index
    %c0_60 = arith.constant 0 : index
    %57 = vector.load %arg4[%c1792, %c0_60] : memref<2304x256xbf16, #tpu.memory_space<vmem>>, vector<256x256xbf16>
    %cst_61 = arith.constant dense<0.000000e+00> : vector<64x256xf32>
    %58 = tpu.matmul %56, %57, %cst_61 {dimension_numbers = #tpu.dot_dimension_numbers<[1], [0], [0], [1], [0, 0, 1, 1], [], []>} : vector<64x256xbf16>, vector<256x256xbf16>, vector<64x256xf32> -> vector<64x256xf32>
    %59 = arith.addf %54, %58 : vector<64x256xf32>
    %c2_62 = arith.constant 2 : index
    %c2_63 = arith.constant 2 : index
    %c0_64 = arith.constant 0 : index
    %60 = vector.load %arg7[%c2_62, %c2_63, %c0_64] : memref<10x10x256xbf16, #tpu.memory_space<vmem>>, vector<8x8x256xbf16>
    %61 = vector.shape_cast %60 : vector<8x8x256xbf16> to vector<64x256xbf16>
    %c2048 = arith.constant 2048 : index
    %c0_65 = arith.constant 0 : index
    %62 = vector.load %arg4[%c2048, %c0_65] : memref<2304x256xbf16, #tpu.memory_space<vmem>>, vector<256x256xbf16>
    %cst_66 = arith.constant dense<0.000000e+00> : vector<64x256xf32>
    %63 = tpu.matmul %61, %62, %cst_66 {dimension_numbers = #tpu.dot_dimension_numbers<[1], [0], [0], [1], [0, 0, 1, 1], [], []>} : vector<64x256xbf16>, vector<256x256xbf16>, vector<64x256xf32> -> vector<64x256xf32>
    %64 = arith.addf %59, %63 : vector<64x256xf32>
    %c0_67 = arith.constant 0 : index
    %c0_68 = arith.constant 0 : index
    %c0_69 = arith.constant 0 : index
    %65 = vector.load %arg5[%c0_67, %c0_68, %c0_69] : memref<1x64x256xf32, #tpu.memory_space<vmem>>, vector<1x64x256xf32>
    %66 = vector.shape_cast %65 : vector<1x64x256xf32> to vector<64x256xf32>
    %67 = vector.shape_cast %64 : vector<64x256xf32> to vector<1x64x256xf32>
    tpu.vector_store %arg5[%c0_67, %c0_68, %c0_69], %67 {strides = array<i32>} : memref<1x64x256xf32, #tpu.memory_space<vmem>>, vector<1x64x256xf32>,
    %cst_70 = arith.constant dense<0.000000e+00> : vector<256xf32>
    %68 = vector.multi_reduction <add>, %64, %cst_70 [0] : vector<64x256xf32> to vector<256xf32>
    %69 = vector.shape_cast %68 : vector<256xf32> to vector<1x256xf32>
    %cst_71 = arith.constant 1.562500e-02 : f32
    %70 = vector.broadcast %cst_71 : f32 to vector<1x256xf32>
    %71 = arith.mulf %69, %70 : vector<1x256xf32>
    %72 = vector.broadcast %71 : vector<1x256xf32> to vector<64x256xf32>
    %73 = arith.subf %64, %72 : vector<64x256xf32>
    %74 = arith.mulf %73, %73 : vector<64x256xf32>
    %cst_72 = arith.constant dense<0.000000e+00> : vector<256xf32>
    %75 = vector.multi_reduction <add>, %74, %cst_72 [0] : vector<64x256xf32> to vector<256xf32>
    %76 = vector.shape_cast %75 : vector<256xf32> to vector<1x256xf32>
    %c0_73 = arith.constant 0 : index
    %c0_74 = arith.constant 0 : index
    %c0_75 = arith.constant 0 : index
    %77 = vector.load %arg6[%c0_73, %c0_74, %c0_75] : memref<1x2x256xf32, #tpu.memory_space<vmem>>, vector<1x1x256xf32>
    %78 = vector.shape_cast %77 : vector<1x1x256xf32> to vector<1x256xf32>
    %79 = vector.shape_cast %69 : vector<1x256xf32> to vector<1x1x256xf32>
    tpu.vector_store %arg6[%c0_73, %c0_74, %c0_75], %79 {strides = array<i32>} : memref<1x2x256xf32, #tpu.memory_space<vmem>>, vector<1x1x256xf32>,
    %c0_76 = arith.constant 0 : index
    %c1_77 = arith.constant 1 : index
    %c0_78 = arith.constant 0 : index
    %80 = vector.load %arg6[%c0_76, %c1_77, %c0_78] : memref<1x2x256xf32, #tpu.memory_space<vmem>>, vector<1x1x256xf32>
    %81 = vector.shape_cast %80 : vector<1x1x256xf32> to vector<1x256xf32>
    %82 = vector.shape_cast %76 : vector<1x256xf32> to vector<1x1x256xf32>
    tpu.vector_store %arg6[%c0_76, %c1_77, %c0_78], %82 {strides = array<i32>} : memref<1x2x256xf32, #tpu.memory_space<vmem>>, vector<1x1x256xf32>,
    return
  }
  func.func @transform_0(%arg0: i32) -> (i32, i32, i32) {
    %c0_i32 = arith.constant 0 : i32
    %c0_i32_0 = arith.constant 0 : i32
    %c0_i32_1 = arith.constant 0 : i32
    return %arg0, %c0_i32, %c0_i32_0 : i32, i32, i32
  }
  func.func @transform_1(%arg0: i32) -> (i32, i32) {
    %c0_i32 = arith.constant 0 : i32
    %c0_i32_0 = arith.constant 0 : i32
    %c0_i32_1 = arith.constant 0 : i32
    return %c0_i32, %c0_i32_0 : i32, i32
  }
  func.func @transform_2(%arg0: i32) -> (i32, i32) {
    %c0_i32 = arith.constant 0 : i32
    %c0_i32_0 = arith.constant 0 : i32
    %c0_i32_1 = arith.constant 0 : i32
    return %c0_i32, %c0_i32_0 : i32, i32
  }
  func.func @transform_3(%arg0: i32) -> (i32, i32) {
    %c0_i32 = arith.constant 0 : i32
    %c0_i32_0 = arith.constant 0 : i32
    %c0_i32_1 = arith.constant 0 : i32
    return %c0_i32, %c0_i32_0 : i32, i32
  }
  func.func @transform_4(%arg0: i32) -> (i32, i32, i32) {
    %c0_i32 = arith.constant 0 : i32
    %c0_i32_0 = arith.constant 0 : i32
    %c0_i32_1 = arith.constant 0 : i32
    return %arg0, %c0_i32, %c0_i32_0 : i32, i32, i32
  }
  func.func @transform_5(%arg0: i32) -> (i32, i32, i32) {
    %c0_i32 = arith.constant 0 : i32
    %c0_i32_0 = arith.constant 0 : i32
    %c0_i32_1 = arith.constant 0 : i32
    return %arg0, %c0_i32, %c0_i32_0 : i32, i32, i32
  }
}

</mosaic_0001>

<bundles_post_ra>
// kernel: res_block_forward.5
= control target key start
LH: loop header
LB: loop body
LE: loop exit
PB: predicated region body
PF: predicated region fallthrough
CT: control target
= control target key end

     0   :  { %9 = vsyncpa [#allocation3], 0  ;;  %s785_s0 = inlined_call_operand.vmem [shape: f32[2,64,256], index: 0, kind: input, shape index: {}]   ;;  %s786_s1 = inlined_call_operand.vmem [shape: f32[2,64,256], index: 1, kind: input, shape index: {}]   ;;  %s787_s2 = inlined_call_operand.vmem [shape: f32[1,256], index: 2, kind: input, shape index: {}]   ;;  %s788_s3 = inlined_call_operand.vmem [shape: f32[1,256], index: 3, kind: input, shape index: {}]   ;;  %s789_s4 = inlined_call_operand.hbm [shape: f32[2,64,256], index: 4, kind: output, shape index: {}]  }
   0x1   :  { %11 = vsyncpa [#allocation3 + $0x1], 0  ;;  %s572_s15 = smov 0   ;;  %s574_s16 = smov 0  }
   0x2   :  { %s576_s17 = smov 0   ;;  %s578_s18 = smov 0  }
   0x3 LB: > { %s593_s19 = sadd.s32 4294967295, %s542_s18   ;;  %s424_s20 = sadd.s32 4294967294, %s542_s18   ;;  %s542_s18 = sphi %s578_s18, %s795_s18   ;;  %s538_s17 = sphi %s576_s17, %s794_s17   ;;  %s534_s16 = sphi %s574_s16, %s793_s16   ;;  %s530_s15 = sphi %s572_s15, %s792_s15  }
   0x4   : > { %s597_s21 = sadd.s32 1, %s542_s18   ;;  %s118_s22 = sadd.s32 1, %s538_s17 }
   0x5   : > { %s115_s23 = ssub.s32 %s542_s18, %s597_s21  ;;  %p128_p0 = scmp.ne.s32.totalorder %s538_s17, %s534_s16 }
   0x6   : > { %p116_p1 = scmp.eq.s32.totalorder %s115_s23, 0  ;;  %p129_p2 = scmp.eq.s32.totalorder %s593_s19, 1 }
   0x7   : > { %p134_p3 = scmp.ne.s32.totalorder %s534_s16, %s530_s15  ;;  %p135_p4 = scmp.eq.s32.totalorder %s424_s20, 1 }
   0x8   : > { %s608_s24 = scalar_select %p116_p1, %s538_s17, %s118_s22  }
   0x9   : > { %p610_p5 = por %p129_p2, %p128_p0  ;;  %p614_p6 = por %p135_p4, %p134_p3 }
   0xa   : > { %p427_p7 = scmp.ge.s32.totalorder %s542_s18, 1  ;;  %p175_p8 = scmp.lt.s32.totalorder %s542_s18, 3 }
   0xc   : > { %p176_p9 = pnand %p427_p7, %p175_p8 }
   0xd   : > { %p206_p10 = scmp.lt.s32.totalorder (!%p176_p9), %s593_s19, 1  ;;  %s203_s6 = sand.u32 (!%p176_p9), 1, %s534_s16  }
   0xe   : > { %179 = sbr.rel (%p176_p9) target bundleno = 57 (0x39), region = 36  ;;  %s651_s14 = sshll.u32 (!%p176_p9), %s203_s6, 7 }
   0xf   : > { %s684_s20 = scalar_lea.vmem (!%p176_p9), [#allocation2], %s651_s14  ;;  %s440_s22 = sshll.u32 (!%p176_p9), %s593_s19, 11 }
  0x10   : > { %s350_s23 = sshll.u32 (!%p176_p9), %s684_s20, 4  ;;  %s736_s28 = scalar_lea.hbm (!%p176_p9), %s789_s4, %s440_s22  ;;  %s738_s23 = int_to_ptr.vmem [resolvable:$true] %s350_s23 }
  0x11   : > { %s745_s29 = scalar_lea.sflag (!%p176_p9), [#allocation3], %s203_s6  ;;  %s482_s30 = scalar_lea.vmem (!%p176_p9), %s738_s23, 2048 }
  0x12   : > { %p483_p11 = scmp.ne.s32.totalorder (!%p176_p9), %s738_s23, %s482_s30  ;;  %s544_s5 = smov (!%p176_p9), [#allocation2]  }
  0x13   : > { %v234_v0 = vlaneseq  ;;  %s207_s27 = scalar_select %p206_p10, %s593_s19, 1  ;;  %v232_v2 = vld [vmem:[%s787_s2] sm:$0x3] }
  0x14   : > { %v260_v3 = vld [vmem:[%s788_s3] sm:$0x3]  ;;  %p484_p12 = pnand %p483_p11, %p610_p5 }
  0x15   : > { %v235_v1 = vshrl.u32 %v234_v0, 7  ;;  %s438_s7 = sshll.u32 %s207_s27, 7 }
  0x16   : > { %s632_s10 = scalar_lea.vmem %s785_s0, %s438_s7  ;;  %s637_s13 = scalar_lea.vmem %s786_s1, %s438_s7 }
  0x17   : > { %v236_v4 = vsub.s32 0, %v235_v1  ;;  %v240_v5 = vsub.s32 1, %v235_v1  ;;  %v216_v10 = vld [vmem:[%s632_s10] sm:$0xff]  ;;  %v217_v11 = vld [vmem:[%s632_s10 + $0x8] sm:$0xff]  ;;  %v218_v15 = vld [vmem:[%s632_s10 + $0x10] sm:$0xff]  ;;  %p485_p13 = pneg %p484_p12  ;;  %s486_s7 = sshll.u32 %s544_s5, 4  ;;  %s487_s7 = int_to_ptr.vmem [resolvable:$false] %s486_s7 }
  0x18   : > { %v288_v13 = vld [vmem:[%s637_s13] sm:$0xff]  ;;  %v289_v16 = vld [vmem:[%s637_s13 + $0x8] sm:$0xff]  ;;  %v219_v18 = vld [vmem:[%s632_s10 + $0x18] sm:$0xff]  ;;  %s488_s8 = scalar_lea.vmem %s487_s7, 4096  ;;  %p489_p0 = scmp.lt.s32.totalorder %s738_s23, %s487_s7 }
  0x19   : > { %v639_v6 = vrot.slane %v232_v2, %v236_v4  ;;  %v641_v7 = vrot.slane %v260_v3, %v236_v4  ;;  %v643_v8 = vrot.slane %v232_v2, %v240_v5  ;;  %v645_v9 = vrot.slane %v260_v3, %v240_v5  ;;  %v220_v19 = vld [vmem:[%s632_s10 + $0x20] sm:$0xff]  ;;  %v290_v22 = vld [vmem:[%s637_s13 + $0x10] sm:$0xff]  ;;  %v291_v24 = vld [vmem:[%s637_s13 + $0x18] sm:$0xff]  ;;  %p490_p1 = scmp.lt.s32.totalorder %s488_s8, %s482_s30 }
  0x1a   : > { %v221_v26 = vld [vmem:[%s632_s10 + $0x28] sm:$0xff]  ;;  %v292_v28 = vld [vmem:[%s637_s13 + $0x20] sm:$0xff]  ;;  %v222_v30 = vld [vmem:[%s632_s10 + $0x30] sm:$0xff] }
  0x1b   : > { %v244_v12 = vmul.f32 %v639_v6, %v216_v10  ;;  %v245_v14 = vmul.f32 %v643_v8, %v217_v11  ;;  %v246_v17 = vmul.f32 %v639_v6, %v218_v15  ;;  %v247_v23 = vmul.f32 %v643_v8, %v219_v18  ;;  %v223_v31 = vld [vmem:[%s632_s10 + $0x38] sm:$0xff]  ;;  %v293_v36 = vld [vmem:[%s637_s13 + $0x28] sm:$0xff]  ;;  %v224_v37 = vld [vmem:[%s632_s10 + $0x40] sm:$0xff]  ;;  %p491_p2 = por %p490_p1, %p489_p0 }
  0x1c   : > { %v248_v25 = vmul.f32 %v639_v6, %v220_v19  ;;  %v249_v29 = vmul.f32 %v643_v8, %v221_v26  ;;  %v250_v40 = vmul.f32 %v639_v6, %v222_v30  ;;  %v294_v41 = vld [vmem:[%s637_s13 + $0x30] sm:$0xff]  ;;  %v251_v42 = vmul.f32 %v643_v8, %v223_v31  ;;  %v225_v43 = vld [vmem:[%s632_s10 + $0x48] sm:$0xff]  ;;  %v295_v47 = vld [vmem:[%s637_s13 + $0x38] sm:$0xff] }
  0x1d   : > { %v272_v20 = vadd.f32 %v641_v7, %v244_v12  ;;  %v273_v21 = vadd.f32 %v645_v9, %v245_v14  ;;  %v274_v27 = vadd.f32 %v641_v7, %v246_v17  ;;  %v275_v34 = vadd.f32 %v645_v9, %v247_v23  ;;  %v226_v44 = vld [vmem:[%s632_s10 + $0x50] sm:$0xff]  ;;  %v296_v49 = vld [vmem:[%s637_s13 + $0x40] sm:$0xff]  ;;  %v227_v51 = vld [vmem:[%s632_s10 + $0x58] sm:$0xff]  ;;  %p492_p3 = pnand %p491_p2, %p485_p13 }
  0x1e   : > { %v276_v35 = vadd.f32 %v641_v7, %v248_v25  ;;  %v277_v39 = vadd.f32 %v645_v9, %v249_v29  ;;  %v252_v48 = vmul.f32 %v639_v6, %v224_v37  ;;  %v253_v50 = vmul.f32 %v643_v8, %v225_v43  ;;  %v297_v55 = vld [vmem:[%s637_s13 + $0x48] sm:$0xff]  ;;  %v228_v57 = vld [vmem:[%s632_s10 + $0x60] sm:$0xff]  ;;  %v298_v61 = vld [vmem:[%s637_s13 + $0x50] sm:$0xff] }
  0x1f   : > { %v304_v32 = vadd.f32 %v288_v13, %v272_v20  ;;  %v305_v33 = vadd.f32 %v289_v16, %v273_v21  ;;  %v306_v38 = vadd.f32 %v290_v22, %v274_v27  ;;  %v307_v45 = vadd.f32 %v291_v24, %v275_v34  ;;  %v229_v58 = vld [vmem:[%s632_s10 + $0x68] sm:$0xff]  ;;  %v230_v0 = vld [vmem:[%s632_s10 + $0x70] sm:$0xff]  ;;  %v299_v4 = vld [vmem:[%s637_s13 + $0x58] sm:$0xff] }
  0x20   : > { %v308_v46 = vadd.f32 %v292_v28, %v276_v35  ;;  %v309_v52 = vadd.f32 %v293_v36, %v277_v39  ;;  %v278_v53 = vadd.f32 %v641_v7, %v250_v40  ;;  %v279_v54 = vadd.f32 %v645_v9, %v251_v42  ;;  %v300_v5 = vld [vmem:[%s637_s13 + $0x60] sm:$0xff]  ;;  %v231_v11 = vld [vmem:[%s632_s10 + $0x78] sm:$0xff]  ;;  %v301_v16 = vld [vmem:[%s637_s13 + $0x68] sm:$0xff] }
  0x21   : > { %320 = vst [vmem:[%s684_s20] sm:$0xff] %v304_v32  ;;  %321 = vst [vmem:[%s684_s20 + $0x8] sm:$0xff] %v305_v33  ;;  %v254_v56 = vmul.f32 %v639_v6, %v226_v44  ;;  %v280_v59 = vadd.f32 %v641_v7, %v252_v48  ;;  %v281_v60 = vadd.f32 %v645_v9, %v253_v50  ;;  %v302_v23 = vld [vmem:[%s637_s13 + $0x70] sm:$0xff]  ;;  %v303_v24 = vld [vmem:[%s637_s13 + $0x78] sm:$0xff] }
  0x22   : > { %322 = vst [vmem:[%s684_s20 + $0x10] sm:$0xff] %v306_v38  ;;  %323 = vst [vmem:[%s684_s20 + $0x18] sm:$0xff] %v307_v45  ;;  %v255_v62 = vmul.f32 %v643_v8, %v227_v51  ;;  %v256_v63 = vmul.f32 %v639_v6, %v228_v57  ;;  %v310_v1 = vadd.f32 %v294_v41, %v278_v53 }
  0x23   : > { %324 = vst [vmem:[%s684_s20 + $0x20] sm:$0xff] %v308_v46  ;;  %325 = vst [vmem:[%s684_s20 + $0x28] sm:$0xff] %v309_v52  ;;  %v311_v2 = vadd.f32 %v295_v47, %v279_v54  ;;  %v282_v3 = vadd.f32 %v641_v7, %v254_v56  ;;  %v257_v10 = vmul.f32 %v643_v8, %v229_v58 }
  0x24   : > { %v312_v12 = vadd.f32 %v296_v49, %v280_v59  ;;  %v313_v13 = vadd.f32 %v297_v55, %v281_v60  ;;  %v283_v14 = vadd.f32 %v645_v9, %v255_v62  ;;  %v284_v15 = vadd.f32 %v641_v7, %v256_v63  ;;  %326 = vst [vmem:[%s684_s20 + $0x30] sm:$0xff] %v310_v1 }
  0x25   : > { %327 = vst [vmem:[%s684_s20 + $0x38] sm:$0xff] %v311_v2  ;;  %v314_v17 = vadd.f32 %v298_v61, %v282_v3  ;;  %v285_v18 = vadd.f32 %v645_v9, %v257_v10  ;;  %v258_v19 = vmul.f32 %v639_v6, %v230_v0  ;;  %v259_v20 = vmul.f32 %v643_v8, %v231_v11 }
  0x26   : > { %328 = vst [vmem:[%s684_s20 + $0x40] sm:$0xff] %v312_v12  ;;  %329 = vst [vmem:[%s684_s20 + $0x48] sm:$0xff] %v313_v13  ;;  %v315_v21 = vadd.f32 %v299_v4, %v283_v14  ;;  %v316_v22 = vadd.f32 %v300_v5, %v284_v15 }
  0x27   : > { %330 = vst [vmem:[%s684_s20 + $0x50] sm:$0xff] %v314_v17  ;;  %v317_v25 = vadd.f32 %v301_v16, %v285_v18  ;;  %v286_v26 = vadd.f32 %v641_v7, %v258_v19  ;;  %v287_v6 = vadd.f32 %v645_v9, %v259_v20 }
  0x28   : > { %331 = vst [vmem:[%s684_s20 + $0x58] sm:$0xff] %v315_v21  ;;  %332 = vst [vmem:[%s684_s20 + $0x60] sm:$0xff] %v316_v22 }
  0x29   : > { %333 = vst [vmem:[%s684_s20 + $0x68] sm:$0xff] %v317_v25  ;;  %v318_v8 = vadd.f32 %v302_v23, %v286_v26  ;;  %v319_v27 = vadd.f32 %v303_v24, %v287_v6 }
  0x2b   : > { %334 = vst [vmem:[%s684_s20 + $0x70] sm:$0xff] %v318_v8  ;;  %335 = vst [vmem:[%s684_s20 + $0x78] sm:$0xff] %v319_v27 }
  0x2c   : > { %495 = shalt.err (!%p492_p3)
}
  0x2d   : > { %s496_s6 = scalar_lea.hbm %s736_s28, 2048  ;;  %s500_s11 = scalar_lea.hbm %s789_s4, 4096 }
  0x2e   : > { %p497_p4 = scmp.ne.s32.totalorder %s736_s28, %s496_s6  ;;  %p501_p9 = scmp.lt.s32.totalorder %s736_s28, %s789_s4 }
  0x2f   : > { %p502_p10 = scmp.lt.s32.totalorder %s500_s11, %s496_s6 }
  0x30   : > { %p498_p7 = pnand %p497_p4, %p610_p5 }
  0x31   : > { %p503_p11 = por %p502_p10, %p501_p9 }
  0x32   : > { %p499_p8 = pneg %p498_p7 }
  0x34   : > { %p504_p12 = pnand %p503_p11, %p499_p8 }
  0x36   : > { %507 = shalt.err (!%p504_p12)
}
  0x37   : > { %s545_s14 = smov 256   ;;  %s546_s20 = smov 16  }
  0x38   : > { %441 = dma.vmem_to_hbm [thread:$0]  (%p610_p5), %s738_s23, 2048, %s736_s28, %s745_s29, %s545_s14, %s545_s14, %s546_s20  }
  0x39 PF: > { %p447_p13 = scmp.ge.s32.totalorder %s542_s18, 2  ;;  %s365_s22 = sand.u32 1, %s530_s15  }
  0x3a   : > { %s366_s19 = scalar_lea.sflag [#allocation3], %s365_s22 }
  0x3b   : > { %p444_p0 = pnand %p447_p13, %p614_p6 }
  0x3d   : > { %p445_p1 = pneg %p444_p0 }
  0x3f   : > { %525 = dma.done.wait (%p445_p1), %s366_s19, 2048  }
  0x40   : > { %527 = vsyncadd (%p445_p1), %s366_s19, 4294965248  ;;  %p14_p2 = scmp.ge.s32.totalorder %s597_s21, 4   ;;  %s792_s15 = smov %s534_s16 }
  0x41   : > { %s793_s16 = smov %s538_s17  ;;  %s794_s17 = smov %s608_s24 }
  0x42   : > { %s795_s18 = smov %s597_s21  ;;  %16 = sbr.rel (!%p14_p2) target bundleno = 3 (0x3), region = 74 }
  0x47   :  { %371 = vsyncpa [#allocation3], 1 }
  0x48   :  { %373 = vsyncpa [#allocation3 + $0x1], 1 }

// kernel: res_block_forward.4
= control target key start
LH: loop header
LB: loop body
LE: loop exit
PB: predicated region body
PF: predicated region fallthrough
CT: control target
= control target key end

     0   :  { %s5135_s18 = smov 0   ;;  %s6846_s0 = inlined_call_operand.vmem [shape: f32[2,64,256], index: 0, kind: input, shape index: {}]   ;;  %s6847_s1 = inlined_call_operand.vmem [shape: f32[1,256], index: 1, kind: input, shape index: {}]   ;;  %s6848_s2 = inlined_call_operand.vmem [shape: f32[1,256], index: 2, kind: input, shape index: {}]   ;;  %s6849_s3 = inlined_call_operand.vmem [shape: bf16[2304,256], index: 3, kind: input, shape index: {}]   ;;  %s6850_s4 = inlined_call_operand.vmem [shape: f32[2,64,256], index: 4, kind: output, shape index: {0}]   ;;  %s6851_s5 = inlined_call_operand.vmem [shape: f32[2,2,256], index: 5, kind: output, shape index: {1}]  }
   0x1 LB: > { %s4199_s19 = sadd.s32 4294967295, %s5101_s18   ;;  %p4203_p0 = scmp.ge.s32.totalorder %s5101_s18, 1  ;;  %s5101_s18 = sphi %s5135_s18, %s16_s18  }
   0x2   : > { %p190_p1 = scmp.lt.s32.totalorder %s5101_s18, 3 }
   0x4   : > { %p191_p2 = pnand %p4203_p0, %p190_p1 }
   0x6   : > { %194 = sbr.rel (%p191_p2) target bundleno = 612 (0x264), region = 36 }
   0xb   : > { %v4658_v0 = vld [vmem:[%s6849_s3 + $0x174] ss:$8 sps:$4 sm:$0xff]   ;;  %v5103_v2 = vmov 0   ;;  %v4662_v3 = vld [vmem:[%s6849_s3 + $0x170] ss:$8 sps:$4 sm:$0xff]   ;;  %p223_p3 = scmp.lt.s32.totalorder %s4199_s19, 1  ;;  %v6852_v37 = vlaneseq }
   0xc   : > { %v4660_v1 = vld [vmem:[%s6849_s3 + $0x74] ss:$8 sps:$4 sm:$0xff]   ;;  %343 = vst [vmem:[#allocation2] sm:$0xff] %v5103_v2  ;;  %344 = vst [vmem:[#allocation2 + $0x40] sm:$0x11] %v5103_v2  ;;  %969 = vmatprep.subr.bf16.mxu0 %v4658_v0  ;;  %vm349_vm2 = vcmask 1040384  }
   0xd   : > { %346 = vst [vmem:[#allocation2 + $0x70] sm:$0xff] %v5103_v2  ;;  %347 = vst [vmem:[#allocation2 + $0x98] sm:$0x11] %v5103_v2  ;;  %v4663_v4 = vld [vmem:[%s6849_s3 + $0x70] ss:$8 sps:$4 sm:$0xff]   ;;  %1242 = vmatprep.subr.bf16.mxu1 %v4660_v1  ;;  %970 = vmatpush1.bf16.msra.mxu0 %v4662_v3  ;;  %s6886_s19 = smov (!%p223_p3, %s4199_s19), 1 }
   0xe   : > { %v4664_v5 = vld [vmem:[%s6849_s3 + $0x164] ss:$8 sps:$4 sm:$0xff]   ;;  %1243 = vmatpush1.bf16.msra.mxu1 %v4663_v4  ;;  %v4668_v7 = vld [vmem:[%s6849_s3 + $0x160] ss:$8 sps:$4 sm:$0xff]   ;;  %v4670_v9 = vld [vmem:[%s6849_s3 + $0x154] ss:$8 sps:$4 sm:$0xff]  }
   0xf   : > { %v4666_v6 = vld [vmem:[%s6849_s3 + $0x64] ss:$8 sps:$4 sm:$0xff]   ;;  %971 = vmatprep.subr.bf16.mxu0 %v4664_v5  ;;  %v4669_v8 = vld [vmem:[%s6849_s3 + $0x60] ss:$8 sps:$4 sm:$0xff]   ;;  %v4672_v10 = vld [vmem:[%s6849_s3 + $0x54] ss:$8 sps:$4 sm:$0xff]  }
  0x10   : > { %1244 = vmatprep.subr.bf16.mxu1 %v4666_v6  ;;  %v4674_v11 = vld [vmem:[%s6849_s3 + $0x150] ss:$8 sps:$4 sm:$0xff]   ;;  %v4676_v13 = vld [vmem:[%s6849_s3 + $0x144] ss:$8 sps:$4 sm:$0xff]   ;;  %v4680_v15 = vld [vmem:[%s6849_s3 + $0x140] ss:$8 sps:$4 sm:$0xff]  }
  0x11   : > { %v4675_v12 = vld [vmem:[%s6849_s3 + $0x50] ss:$8 sps:$4 sm:$0xff]   ;;  %972 = vmatpush1.bf16.msra.mxu0 %v4668_v7  ;;  %v4678_v14 = vld [vmem:[%s6849_s3 + $0x44] ss:$8 sps:$4 sm:$0xff]   ;;  %v4681_v16 = vld [vmem:[%s6849_s3 + $0x40] ss:$8 sps:$4 sm:$0xff]  }
  0x12   : > { %1245 = vmatpush1.bf16.msra.mxu1 %v4669_v8  ;;  %973 = vmatprep.subr.bf16.mxu0 %v4670_v9  ;;  %v4682_v17 = vld [vmem:[%s6849_s3 + $0x134] ss:$8 sps:$4 sm:$0xff]   ;;  %v4686_v19 = vld [vmem:[%s6849_s3 + $0x130] ss:$8 sps:$4 sm:$0xff]   ;;  %v4688_v21 = vld [vmem:[%s6849_s3 + $0x124] ss:$8 sps:$4 sm:$0xff]  }
  0x13   : > { %1246 = vmatprep.subr.bf16.mxu1 %v4672_v10  ;;  %v4684_v18 = vld [vmem:[%s6849_s3 + $0x34] ss:$8 sps:$4 sm:$0xff]   ;;  %v4687_v20 = vld [vmem:[%s6849_s3 + $0x30] ss:$8 sps:$4 sm:$0xff]   ;;  %v4690_v22 = vld [vmem:[%s6849_s3 + $0x24] ss:$8 sps:$4 sm:$0xff]  }
  0x14   : > { %v4692_v23 = vld [vmem:[%s6849_s3 + $0x120] ss:$8 sps:$4 sm:$0xff]   ;;  %v4694_v25 = vld [vmem:[%s6849_s3 + $0x114] ss:$8 sps:$4 sm:$0xff]   ;;  %v4698_v27 = vld [vmem:[%s6849_s3 + $0x110] ss:$8 sps:$4 sm:$0xff]  }
  0x15   : > { %974 = vmatpush1.bf16.msra.mxu0 %v4674_v11  ;;  %v4693_v24 = vld [vmem:[%s6849_s3 + $0x20] ss:$8 sps:$4 sm:$0xff]   ;;  %v4696_v26 = vld [vmem:[%s6849_s3 + $0x14] ss:$8 sps:$4 sm:$0xff]   ;;  %v4699_v28 = vld [vmem:[%s6849_s3 + $0x10] ss:$8 sps:$4 sm:$0xff]  }
  0x16   : > { %1247 = vmatpush1.bf16.msra.mxu1 %v4675_v12  ;;  %975 = vmatprep.subr.bf16.mxu0 %v4676_v13  ;;  %v4700_v29 = vld [vmem:[%s6849_s3 + $0x104] ss:$8 sps:$4 sm:$0xff]   ;;  %v4704_v31 = vld [vmem:[%s6849_s3 + $0x100] ss:$8 sps:$4 sm:$0xff]   ;;  %v4706_v33 = vld [vmem:[%s6849_s3 + $0x1f4] ss:$8 sps:$4 sm:$0xff]  }
  0x17   : > { %1248 = vmatprep.subr.bf16.mxu1 %v4678_v14  ;;  %v4702_v30 = vld [vmem:[%s6849_s3 + $0x4] ss:$8 sps:$4 sm:$0xff]   ;;  %v4705_v32 = vld [vmem:[%s6849_s3] ss:$8 sps:$4 sm:$0xff]   ;;  %v4708_v34 = vld [vmem:[%s6849_s3 + $0xf4] ss:$8 sps:$4 sm:$0xff]  }
  0x18   : > { %v4710_v35 = vld [vmem:[%s6849_s3 + $0x1f0] ss:$8 sps:$4 sm:$0xff]   ;;  %v4712_v38 = vld [vmem:[%s6849_s3 + $0x1e4] ss:$8 sps:$4 sm:$0xff]   ;;  %v4716_v40 = vld [vmem:[%s6849_s3 + $0x1e0] ss:$8 sps:$4 sm:$0xff]  }
  0x19   : > { %976 = vmatpush1.bf16.msra.mxu0 %v4680_v15  ;;  %v4711_v36 = vld [vmem:[%s6849_s3 + $0xf0] ss:$8 sps:$4 sm:$0xff]   ;;  %v4714_v39 = vld [vmem:[%s6849_s3 + $0xe4] ss:$8 sps:$4 sm:$0xff]   ;;  %v5271_v41 = vshrl.u32 %v6852_v37, 7  ;;  %s4605_s8 = sshll.u32 %s6886_s19, 7 }
  0x1a   : > { %1249 = vmatpush1.bf16.msra.mxu1 %v4681_v16  ;;  %977 = vmatprep.subr.bf16.mxu0 %v4682_v17  ;;  %v4717_v42 = vld [vmem:[%s6849_s3 + $0xe0] ss:$8 sps:$4 sm:$0xff]   ;;  %v4718_v43 = vld [vmem:[%s6849_s3 + $0x1d4] ss:$8 sps:$4 sm:$0xff]   ;;  %v4722_v45 = vld [vmem:[%s6849_s3 + $0x1d0] ss:$8 sps:$4 sm:$0xff]   ;;  %s5294_s17 = scalar_lea.vmem %s6846_s0, %s4605_s8  ;;  %s6727_s14 = scalar_lea.vmem %s6850_s4, %s4605_s8 }
  0x1b   : > { %1250 = vmatprep.subr.bf16.mxu1 %v4684_v18  ;;  %6854 = vst [vmem:[#allocation3_spill] sm:$0xff] %v5271_v41  ;;  %v4720_v44 = vld [vmem:[%s6849_s3 + $0xd4] ss:$8 sps:$4 sm:$0xff]   ;;  %v4723_v46 = vld [vmem:[%s6849_s3 + $0xd0] ss:$8 sps:$4 sm:$0xff]   ;;  %v259_v47 = vsub.s32 0, %v5271_v41 }
  0x1c   : > { %v263_v48 = vsub.s32 1, %v5271_v41  ;;  %v4724_v49 = vld [vmem:[%s6849_s3 + $0x1c4] ss:$8 sps:$4 sm:$0xff]   ;;  %vm350_vm0 = vsmask.f32 256  ;;  %vm352_vm3 = vcmask 1044484  }
  0x1d   : > { %978 = vmatpush1.bf16.msra.mxu0 %v4686_v19  ;;  %v4726_v50 = vld [vmem:[%s6849_s3 + $0xc4] ss:$8 sps:$4 sm:$0xff]   ;;  %vm353_vm1 = vsmask.f32 4352  ;;  %v4728_v51 = vld [vmem:[%s6849_s3 + $0x1c0] ss:$8 sps:$4 sm:$0xff]   ;;  %vm351_vm4 = vmand %vm349_vm2, %vm350_vm0 }
  0x1e   : > { %1251 = vmatpush1.bf16.msra.mxu1 %v4687_v20  ;;  %979 = vmatprep.subr.bf16.mxu0 %v4688_v21  ;;  %v4729_v52 = vld [vmem:[%s6849_s3 + $0xc0] ss:$8 sps:$4 sm:$0xff]   ;;  %v4730_v57 = vld [vmem:[%s6849_s3 + $0x1b4] ss:$8 sps:$4 sm:$0xff]   ;;  %vm380_vm5 = vsmask.f32 7938  ;;  %vm354_vm6 = vmand %vm352_vm3, %vm353_vm1 }
  0x1f   : > { %1252 = vmatprep.subr.bf16.mxu1 %v4690_v22  ;;  %v239_v53 = vld [vmem:[%s5294_s17] sm:$0xff]  ;;  %v240_v54 = vld [vmem:[%s5294_s17 + $0x8] sm:$0xff]  ;;  %v356_v61 = vld [vmem:[#allocation2 + $0x30] sm:$0x11]  ;;  %vm382_vm7 = vsmask.f32 7954 }
  0x20   : > { %v255_v55 = vld [vmem:[%s6847_s1] sm:$0x3]  ;;  %v4732_v62 = vld [vmem:[%s6849_s3 + $0xb4] ss:$8 sps:$4 sm:$0xff]   ;;  %v4734_v0 = vld [vmem:[%s6849_s3 + $0x1b0] ss:$8 sps:$4 sm:$0xff]  }
  0x21   : > { %980 = vmatpush1.bf16.msra.mxu0 %v4692_v23  ;;  %v283_v56 = vld [vmem:[%s6848_s2] sm:$0x3]  ;;  %v5321_v58 = vrot.slane %v255_v55, %v259_v47  ;;  %v5323_v59 = vrot.slane %v255_v55, %v263_v48  ;;  %v4735_v1 = vld [vmem:[%s6849_s3 + $0xb0] ss:$8 sps:$4 sm:$0xff]   ;;  %vm5344_vm8 = vmor %vm354_vm6, %vm351_vm4  ;;  %vm529_vm12 = vcmask 1043456   ;;  %vm531_vm13 = vcmask 1047556  }
  0x22   : > { %1253 = vmatpush1.bf16.msra.mxu1 %v4693_v24  ;;  %981 = vmatprep.subr.bf16.mxu0 %v4694_v25  ;;  %v5325_v60 = vrot.slane %v283_v56, %v259_v47  ;;  %v5332_v63 = vrot.slane %v283_v56, %v263_v48  ;;  %v357_v6 = vsel %vm5344_vm8, 0, %v356_v61  ;;  %vm381_vm9 = vmand %vm349_vm2, %vm380_vm5  ;;  %v385_v7 = vld [vmem:[#allocation2 + $0x80] sm:$0x11]  ;;  %v4742_v18 = vld [vmem:[%s6849_s3 + $0x194] ss:$8 sps:$4 sm:$0xff]   ;;  %vm1339_vm4 = vcmask 1042432  }
  0x23   : > { %1254 = vmatprep.subr.bf16.mxu1 %v4696_v26  ;;  %v267_v3 = vmul.f32 %v5321_v58, %v239_v53  ;;  %v268_v4 = vmul.f32 %v5323_v59, %v240_v54  ;;  %v4736_v8 = vld [vmem:[%s6849_s3 + $0x1a4] ss:$8 sps:$4 sm:$0xff]   ;;  %358 = vst [vmem:[#allocation2 + $0x30] sm:$0x11] %v357_v6  ;;  %vm383_vm10 = vmand %vm352_vm3, %vm382_vm7  ;;  %v4740_v16 = vld [vmem:[%s6849_s3 + $0x1a0] ss:$8 sps:$4 sm:$0xff]  }
  0x24   : > { %v4738_v11 = vld [vmem:[%s6849_s3 + $0xa4] ss:$8 sps:$4 sm:$0xff]   ;;  %vm5362_vm11 = vmor %vm383_vm10, %vm381_vm9  ;;  %v4741_v17 = vld [vmem:[%s6849_s3 + $0xa0] ss:$8 sps:$4 sm:$0xff]   ;;  %vm630_vm1 = vsmask.f32 3328 }
  0x25   : > { %982 = vmatpush1.bf16.msra.mxu0 %v4698_v27  ;;  %v295_v9 = vadd.f32 %v5325_v60, %v267_v3  ;;  %v296_v10 = vadd.f32 %v5332_v63, %v268_v4  ;;  %v386_v15 = vsel %vm5362_vm11, 0, %v385_v7  ;;  %v4744_v20 = vld [vmem:[%s6849_s3 + $0x94] ss:$8 sps:$4 sm:$0xff]   ;;  %vm530_vm14 = vmand %vm529_vm12, %vm380_vm5  ;;  %v4746_v23 = vld [vmem:[%s6849_s3 + $0x190] ss:$8 sps:$4 sm:$0xff]   ;;  %vm1340_vm5 = vcmask 1046532  }
  0x26   : > { %1255 = vmatpush1.bf16.msra.mxu1 %v4699_v28  ;;  %983 = vmatprep.subr.bf16.mxu0 %v4700_v29  ;;  %387 = vst [vmem:[#allocation2 + $0x80] sm:$0x11] %v386_v15  ;;  %vm532_vm15 = vmand %vm531_vm13, %vm382_vm7  ;;  %v4747_v24 = vld [vmem:[%s6849_s3 + $0x90] ss:$8 sps:$4 sm:$0xff]   ;;  %v4748_v25 = vld [vmem:[%s6849_s3 + $0x184] ss:$8 sps:$4 sm:$0xff]  }
  0x27   : > { %1256 = vmatprep.subr.bf16.mxu1 %v4702_v30  ;;  %v311_v13 = vmax.f32 %v295_v9, 0.0  ;;  %v312_v14 = vmax.f32 %v296_v10, 0.0  ;;  %v4750_v26 = vld [vmem:[%s6849_s3 + $0x84] ss:$8 sps:$4 sm:$0xff]   ;;  %vm5394_vm0 = vmor %vm532_vm15, %vm530_vm14  ;;  %v636_v30 = vrot.slane %v5103_v2, 4  ;;  %v241_v15 = vld [vmem:[%s5294_s17 + $0x10] sm:$0xff] }
  0x28   : > { %vm631_vm2 = vsmask.f32 7440  ;;  %v4765_v54 = vld [vmem:[%s6849_s3 + $0x364] ss:$8 sps:$4 sm:$0xff]   ;;  %v4754_v6 = vld [vmem:[%s6849_s3 + $0x270] ss:$8 sps:$4 sm:$0xff]   ;;  %vm5785_vm6 = vmor %vm1339_vm4, %vm1340_vm5 }
  0x29   : > { %984 = vmatpush1.bf16.msra.mxu0 %v4704_v31  ;;  %v4608_v19 = vpack.c.bf16 %v312_v14, %v311_v13  ;;  %vm5435_vm3 = vmor %vm630_vm1, %vm631_vm2  ;;  %v4769_v7 = vld [vmem:[%s6849_s3 + $0x350] ss:$8 sps:$4 sm:$0xff]   ;;  %v4762_v9 = vld [vmem:[%s6849_s3 + $0x264] ss:$8 sps:$4 sm:$0xff]   ;;  %s4607_s8 = sshll.u32 %s6886_s19, 2 }
  0x2a   : > { %1257 = vmatpush1.bf16.msra.mxu1 %v4705_v32  ;;  %985 = vmatprep.subr.bf16.mxu0 %v4706_v33  ;;  %v534_v29 = vld [vmem:[#allocation2 + $0x30] sm:$0xff]  ;;  %v4777_v10 = vld [vmem:[%s6849_s3 + $0x344] ss:$8 sps:$4 sm:$0xff]   ;;  %v4775_v14 = vld [vmem:[%s6849_s3 + $0x340] ss:$8 sps:$4 sm:$0xff]   ;;  %s6835_s20 = scalar_lea.vmem %s6851_s5, %s4607_s8 }
  0x2b   : > { %1258 = vmatprep.subr.bf16.mxu1 %v4708_v34  ;;  %v450_v21 = vshrl.u32 %v4608_v19, 16  ;;  %v453_v22 = vshll.u32 %v4608_v19, 16  ;;  %v639_v34 = vrot.slane %v5103_v2, 5  ;;  %v269_v19 = vmul.f32 %v5321_v58, %v241_v15  ;;  %v4897_v28 = vld [vmem:[%s6849_s3 + $0x504] ss:$8 sps:$4 sm:$0xff]  }
  0x2c   : > { %v4957_v12 = vld [vmem:[%s6849_s3 + $0x764] ss:$8 sps:$4 sm:$0xff]   ;;  %v4946_v5 = vld [vmem:[%s6849_s3 + $0x670] ss:$8 sps:$4 sm:$0xff]  }
  0x2d   : > { %986 = vmatpush2.bf16.msra.mxu0 %v4710_v35  ;;  %v452_v27 = vrot.slane %v450_v21, 7  ;;  %v537_v33 = vld [vmem:[#allocation2 + $0x80] sm:$0x11]  ;;  %v640_v47 = vor.u32 %v639_v34, %v636_v30  ;;  %v4783_v30 = vld [vmem:[%s6849_s3 + $0x334] ss:$8 sps:$4 sm:$0xff]  }
  0x2e   : > { %1259 = vmatpush2.bf16.msra.mxu1 %v4711_v36  ;;  %987 = vmatprep.subr.bf16.mxu0 %v4712_v38  ;;  %v4752_v35 = vld [vmem:[%s6849_s3 + $0x180] ss:$8 sps:$4 sm:$0xff]   ;;  %v5058_v55 = vld [vmem:[%s6849_s3 + $0x830] ss:$8 sps:$4 sm:$0xff]  }
  0x2f   : > { %1260 = vmatprep.subr.bf16.mxu1 %v4714_v39  ;;  %v455_v31 = vor.u32 %v453_v22, %v452_v27  ;;  %v456_v32 = vrot.slane %v452_v27, 4  ;;  %v4753_v36 = vld [vmem:[%s6849_s3 + $0x80] ss:$8 sps:$4 sm:$0xff]   ;;  %v388_v27 = vld [vmem:[#allocation2 + $0x90] sm:$0x11] }
  0x30   : > { %v359_v22 = vld [vmem:[#allocation2 + $0x28] sm:$0x11]  ;;  %v389_v34 = vsel %vm5362_vm11, 0, %v388_v27 }
  0x31   : > { %988 = vmatpush2.bf16.msra.mxu0 %v4716_v40  ;;  %v5408_v38 = vsel %vm5394_vm0, %v455_v31, %v534_v29  ;;  %v538_v39 = vsel %vm5344_vm8, %v456_v32, %v537_v33  ;;  %v5412_v40 = vld [vmem:[#allocation2 + $0x40] sm:$0x11]  ;;  %v391_v29 = vld [vmem:[#allocation2 + $0x88] sm:$0x11]  ;;  %v297_v31 = vadd.f32 %v5325_v60, %v269_v19  ;;  %390 = vst [vmem:[#allocation2 + $0x90] sm:$0x11] %v389_v34 }
  0x32   : > { %1261 = vmatpush2.bf16.msra.mxu1 %v4717_v42  ;;  %989 = vmatprep.subr.bf16.mxu0 %v4718_v43  ;;  %v4756_v42 = vld [vmem:[%s6849_s3 + $0x274] ss:$8 sps:$4 sm:$0xff]   ;;  %536 = vst [vmem:[#allocation2 + $0x30] sm:$0xff] %v5408_v38  ;;  %539 = vst [vmem:[#allocation2 + $0x80] sm:$0x11] %v538_v39  ;;  %v648_v43 = vshrl.u32 %v5408_v38, 16 }
  0x33   : > { %1262 = vmatprep.subr.bf16.mxu1 %v4720_v44  ;;  %v651_v44 = vshll.u32 %v5408_v38, 16  ;;  %v643_v48 = vshll.u32 %v5412_v40, 16  ;;  %v392_v39 = vsel %vm5362_vm11, 0, %v391_v29  ;;  %v368_v19 = vld [vmem:[#allocation2 + $0x8] sm:$0x11] }
  0x34   : > { %393 = vst [vmem:[#allocation2 + $0x88] sm:$0x11] %v392_v39 }
  0x35   : > { %990 = vmatpush2.bf16.msra.mxu0 %v4722_v45  ;;  %v4259_v45 = vcombine.high %v5103_v2, %v5408_v38  ;;  %v645_v56 = vrot.slane %v643_v48, 5 }
  0x36   : > { %1263 = vmatpush2.bf16.msra.mxu1 %v4723_v46  ;;  %991 = vmatprep.subr.bf16.mxu0 %v4724_v49  ;;  %v4759_v46 = vld [vmem:[%s6849_s3 + $0x374] ss:$8 sps:$4 sm:$0xff]   ;;  %v650_v49 = vrot.slane %v648_v43, 4  ;;  %v313_v43 = vmax.f32 %v297_v31, 0.0 }
  0x37   : > { %1264 = vmatprep.subr.bf16.mxu1 %v4726_v50  ;;  %v653_v50 = vrot.slane %v651_v44, 5  ;;  %1274 = vmatprep.mubr.bf16.mxu1 %v4259_v45 }
  0x39   : > { %992 = vmatpush2.bf16.msra.mxu0 %v4728_v51  ;;  %v4258_v51 = vcombine.low %v5103_v2, %v5408_v38  ;;  %v654_v53 = vor.u32 %v653_v50, %v650_v49  ;;  %v641_v2 = vrot.slane %v640_v47, 4  ;;  %v5442_v61 = vld [vmem:[#allocation2 + $0x80] sm:$0x11]  ;;  %v4781_v47 = vld [vmem:[%s6849_s3 + $0x330] ss:$8 sps:$4 sm:$0xff]  }
  0x3a   : > { %1265 = vmatpush2.bf16.msra.mxu1 %v4729_v52  ;;  %993 = vmatprep.subr.bf16.mxu0 %v4730_v57  ;;  %v4757_v52 = vld [vmem:[%s6849_s3 + $0x370] ss:$8 sps:$4 sm:$0xff]   ;;  %v4763_v57 = vld [vmem:[%s6849_s3 + $0x360] ss:$8 sps:$4 sm:$0xff]   ;;  %v4789_v49 = vld [vmem:[%s6849_s3 + $0x324] ss:$8 sps:$4 sm:$0xff]  }
  0x3b   : > { %1266 = vmatprep.subr.bf16.mxu1 %v4732_v62  ;;  %v655_v62 = vrot.slane %v654_v53, 4  ;;  %v646_v3 = vsel %vm5435_vm3, %v641_v2, %v645_v56 }
  0x3d   : > { %994 = vmatpush2.bf16.msra.mxu0 %v4734_v0  ;;  %v657_v0 = vshll.u32 %v5442_v61, 16 }
  0x3e   : > { %1267 = vmatpush2.bf16.msra.mxu1 %v4735_v1  ;;  %995 = vmatprep.subr.bf16.mxu0 %v4736_v8  ;;  %v4771_v1 = vld [vmem:[%s6849_s3 + $0x354] ss:$8 sps:$4 sm:$0xff]  }
  0x3f   : > { %1268 = vmatprep.subr.bf16.mxu1 %v4738_v11  ;;  %v659_v4 = vrot.slane %v657_v0, 5  ;;  %v248_v0 = vld [vmem:[%s5294_s17 + $0x48] sm:$0xff] }
  0x41   : > { %996 = vmatpush2.bf16.msra.mxu0 %v4740_v16  ;;  %v660_v8 = vsel %vm5435_vm3, %v655_v62, %v659_v4  ;;  %v242_v16 = vld [vmem:[%s5294_s17 + $0x18] sm:$0xff]  ;;  %v247_v62 = vld [vmem:[%s5294_s17 + $0x40] sm:$0xff] }
  0x42   : > { %1269 = vmatpush2.bf16.msra.mxu1 %v4741_v17  ;;  %997 = vmatprep.subr.bf16.mxu0 %v4742_v18  ;;  %v4218_v11 = vcombine.low %v646_v3, %v660_v8  ;;  %v4219_v13 = vcombine.high %v646_v3, %v660_v8  ;;  %v243_v17 = vld [vmem:[%s5294_s17 + $0x20] sm:$0xff]  ;;  %v244_v18 = vld [vmem:[%s5294_s17 + $0x28] sm:$0xff]  ;;  %v4795_v4 = vld [vmem:[%s6849_s3 + $0x314] ss:$8 sps:$4 sm:$0xff]  }
  0x43   : > { %1270 = vmatprep.subr.bf16.mxu1 %v4744_v20  ;;  %v270_v20 = vmul.f32 %v5323_v59, %v242_v16  ;;  %v271_v21 = vmul.f32 %v5321_v58, %v243_v17  ;;  %v4772_v3 = vld [vmem:[%s6849_s3 + $0x240] ss:$8 sps:$4 sm:$0xff]   ;;  %v276_v16 = vmul.f32 %v5323_v59, %v248_v0 }
  0x44   : > { %1001 = vmatprep.mubr.bf16.mxu0 %v4219_v13 }
  0x45   : > { %998 = vmatpush2.bf16.msra.mxu0 %v4746_v23  ;;  %v362_v23 = vld [vmem:[#allocation2 + $0x48] sm:$0x11]  ;;  %v298_v32 = vadd.f32 %v5332_v63, %v270_v20  ;;  %v299_v33 = vadd.f32 %v5325_v60, %v271_v21  ;;  %v4793_v20 = vld [vmem:[%s6849_s3 + $0x310] ss:$8 sps:$4 sm:$0xff]   ;;  %v304_v31 = vadd.f32 %v5332_v63, %v276_v16 }
  0x46   : > { %1271 = vmatpush2.bf16.msra.mxu1 %v4747_v24  ;;  %999 = vmatprep.subr.bf16.mxu0 %v4748_v25  ;;  %v272_v24 = vmul.f32 %v5323_v59, %v244_v18  ;;  %v360_v25 = vsel %vm5344_vm8, 0, %v359_v22  ;;  %v543_v22 = vld [vmem:[#allocation2 + $0x90] sm:$0x11]  ;;  %v250_v16 = vld [vmem:[%s5294_s17 + $0x58] sm:$0xff] }
  0x47   : > { %1272 = vmatprep.subr.bf16.mxu1 %v4750_v26  ;;  %v363_v26 = vsel %vm5344_vm8, 0, %v362_v23  ;;  %361 = vst [vmem:[#allocation2 + $0x28] sm:$0x11] %v360_v25  ;;  %v314_v44 = vmax.f32 %v298_v32, 0.0  ;;  %v315_v45 = vmax.f32 %v299_v33, 0.0  ;;  %v369_v25 = vsel %vm5344_vm8, 0, %v368_v19 }
  0x48   : > { %364 = vst [vmem:[#allocation2 + $0x48] sm:$0x11] %v363_v26  ;;  %v394_v26 = vld [vmem:[#allocation2 + $0x18] sm:$0x11]  ;;  %370 = vst [vmem:[#allocation2 + $0x8] sm:$0x11] %v369_v25 }
  0x49   : > { %1000 = vmatpush2.bf16.msra.mxu0 %v4752_v35  ;;  %v4760_v35 = vld [vmem:[%s6849_s3 + $0x260] ss:$8 sps:$4 sm:$0xff]   ;;  %v4609_v50 = vpack.c.bf16 %v314_v44, %v313_v43  ;;  %v4801_v33 = vld [vmem:[%s6849_s3 + $0x304] ss:$8 sps:$4 sm:$0xff]   ;;  %v320_v44 = vmax.f32 %v304_v31, 0.0 }
  0x4a   : > { %1273 = vmatpush2.bf16.msra.mxu1 %v4753_v36  ;;  %1598 = vmatprep.subr.bf16.mxu0 %v4756_v42  ;;  %v300_v36 = vadd.f32 %v5332_v63, %v272_v24  ;;  %v4768_v42 = vld [vmem:[%s6849_s3 + $0x254] ss:$8 sps:$4 sm:$0xff]   ;;  %v4790_v25 = vld [vmem:[%s6849_s3 + $0x210] ss:$8 sps:$4 sm:$0xff]  }
  0x4b   : > { %1927 = vmatprep.subr.bf16.mxu1 %v4759_v46  ;;  %v4766_v46 = vld [vmem:[%s6849_s3 + $0x250] ss:$8 sps:$4 sm:$0xff]   ;;  %v458_v2 = vshrl.u32 %v4609_v50, 16  ;;  %v461_v56 = vshll.u32 %v4609_v50, 16 }
  0x4c   : > { %1002 = vmatmul.mubr.bf16.vlgmr.msra.gmra.mxu0 %v4218_v11  ;;  %v316_v48 = vmax.f32 %v300_v36, 0.0  ;;  %v4780_v11 = vld [vmem:[%s6849_s3 + $0x234] ss:$8 sps:$4 sm:$0xff]  }
  0x4d   : > { %1275 = vmatmul.mubr.bf16.vlgmr.msra.gmra.mxu1 %v4258_v51  ;;  %1599 = vmatpush1.bf16.msra.mxu0 %v4754_v6  ;;  %v4774_v51 = vld [vmem:[%s6849_s3 + $0x244] ss:$8 sps:$4 sm:$0xff]   ;;  %v460_v13 = vrot.slane %v458_v2, 7 }
  0x4e   : > { %1928 = vmatpush1.bf16.msra.mxu1 %v4757_v52  ;;  %1600 = vmatprep.subr.bf16.mxu0 %v4762_v9  ;;  %v4787_v52 = vld [vmem:[%s6849_s3 + $0x320] ss:$8 sps:$4 sm:$0xff]   ;;  %v4610_v53 = vpack.c.bf16 %v316_v48, %v315_v45  ;;  %v275_v9 = vmul.f32 %v5321_v58, %v247_v62  ;;  %v395_v45 = vsel %vm5362_vm11, 0, %v394_v26 }
  0x4f   : > { %1929 = vmatprep.subr.bf16.mxu1 %v4765_v54  ;;  %v245_v54 = vld [vmem:[%s5294_s17 + $0x30] sm:$0xff]  ;;  %v546_v15 = vld [vmem:[#allocation2 + $0x48] sm:$0xff]  ;;  %v463_v27 = vor.u32 %v461_v56, %v460_v13  ;;  %v464_v29 = vrot.slane %v460_v13, 4  ;;  %396 = vst [vmem:[#allocation2 + $0x18] sm:$0x11] %v395_v45 }
  0x50   : > { %v466_v6 = vshrl.u32 %v4610_v53, 16  ;;  %v303_v24 = vadd.f32 %v5325_v60, %v275_v9  ;;  %v4799_v62 = vld [vmem:[%s6849_s3 + $0x300] ss:$8 sps:$4 sm:$0xff]  }
  0x51   : > { %1601 = vmatpush1.bf16.msra.mxu0 %v4760_v35  ;;  %v544_v43 = vsel %vm5344_vm8, %v464_v29, %v543_v22  ;;  %v251_v22 = vld [vmem:[%s5294_s17 + $0x60] sm:$0xff] }
  0x52   : > { %1930 = vmatpush1.bf16.msra.mxu1 %v4763_v57  ;;  %1602 = vmatprep.subr.bf16.mxu0 %v4768_v42  ;;  %v246_v57 = vld [vmem:[%s5294_s17 + $0x38] sm:$0xff]  ;;  %v468_v21 = vrot.slane %v466_v6, 7  ;;  %v319_v39 = vmax.f32 %v303_v24, 0.0  ;;  %545 = vst [vmem:[#allocation2 + $0x90] sm:$0x11] %v544_v43  ;;  %v278_v24 = vmul.f32 %v5323_v59, %v250_v16  ;;  %v279_v31 = vmul.f32 %v5321_v58, %v251_v22 }
  0x53   : > { %1931 = vmatprep.subr.bf16.mxu1 %v4771_v1  ;;  %v273_v1 = vmul.f32 %v5321_v58, %v245_v54  ;;  %v274_v8 = vmul.f32 %v5323_v59, %v246_v57  ;;  %v4784_v57 = vld [vmem:[%s6849_s3 + $0x220] ss:$8 sps:$4 sm:$0xff]   ;;  %v4807_v6 = vld [vmem:[%s6849_s3 + $0x3f4] ss:$8 sps:$4 sm:$0xff]  }
  0x54   : > { %v472_v35 = vrot.slane %v468_v21, 4  ;;  %v4612_v9 = vpack.c.bf16 %v320_v44, %v319_v39  ;;  %v5609_v43 = vadd.f32 %v5332_v63, %v278_v24  ;;  %v400_v24 = vld [vmem:[#allocation2 + $0x60] sm:$0x11] }
  0x55   : > { %v301_v17 = vadd.f32 %v5325_v60, %v273_v1  ;;  %1603 = vmatpush1.bf16.msra.mxu0 %v4766_v46  ;;  %v302_v23 = vadd.f32 %v5332_v63, %v274_v8  ;;  %v397_v46 = vld [vmem:[#allocation2 + $0x10] sm:$0x11] }
  0x56   : > { %1932 = vmatpush1.bf16.msra.mxu1 %v4769_v7  ;;  %v469_v7 = vshll.u32 %v4610_v53, 16  ;;  %1604 = vmatprep.subr.bf16.mxu0 %v4774_v51 }
  0x57   : > { %1933 = vmatprep.subr.bf16.mxu1 %v4777_v10  ;;  %v365_v10 = vld [vmem:[#allocation2 + $0x58] sm:$0x11]  ;;  %v317_v32 = vmax.f32 %v301_v17, 0.0  ;;  %v318_v36 = vmax.f32 %v302_v23, 0.0  ;;  %v252_v23 = vld [vmem:[%s5294_s17 + $0x68] sm:$0xff] }
  0x58   : > { %v366_v18 = vsel %vm5344_vm8, 0, %v365_v10  ;;  %v471_v34 = vor.u32 %v469_v7, %v468_v21  ;;  %v249_v10 = vld [vmem:[%s5294_s17 + $0x50] sm:$0xff]  ;;  %v485_v21 = vshll.u32 %v4612_v9, 16 }
  0x59   : > { %367 = vst [vmem:[#allocation2 + $0x58] sm:$0x11] %v366_v18  ;;  %1605 = vmatpush1.bf16.msra.mxu0 %v4772_v3  ;;  %v398_v3 = vsel %vm5362_vm11, 0, %v397_v46  ;;  %v277_v17 = vmul.f32 %v5321_v58, %v249_v10  ;;  %v4805_v18 = vld [vmem:[%s6849_s3 + $0x3f0] ss:$8 sps:$4 sm:$0xff]  }
  0x5a   : > { %1934 = vmatpush1.bf16.msra.mxu1 %v4775_v14  ;;  %v540_v14 = vld [vmem:[#allocation2 + $0x28] sm:$0xff]  ;;  %v5556_v48 = vsel %vm5394_vm0, %v471_v34, %v546_v15  ;;  %1606 = vmatprep.subr.bf16.mxu0 %v4780_v11  ;;  %399 = vst [vmem:[#allocation2 + $0x10] sm:$0x11] %v398_v3  ;;  %v4792_v11 = vld [vmem:[%s6849_s3 + $0x214] ss:$8 sps:$4 sm:$0xff]  }
  0x5b   : > { %1935 = vmatprep.subr.bf16.mxu1 %v4783_v30  ;;  %v549_v30 = vld [vmem:[#allocation2 + $0x88] sm:$0x11]  ;;  %v5544_v42 = vsel %vm5394_vm0, %v463_v27, %v540_v14  ;;  %548 = vst [vmem:[#allocation2 + $0x48] sm:$0xff] %v5556_v48  ;;  %v676_v53 = vshrl.u32 %v5556_v48, 16  ;;  %v679_v54 = vshll.u32 %v5556_v48, 16  ;;  %v5606_v39 = vadd.f32 %v5325_v60, %v277_v17 }
  0x5c   : > { %542 = vst [vmem:[#allocation2 + $0x28] sm:$0xff] %v5544_v42  ;;  %v662_v50 = vshrl.u32 %v5544_v42, 16  ;;  %v665_v51 = vshll.u32 %v5544_v42, 16  ;;  %v4261_v2 = vcombine.high %v5544_v42, %v5556_v48  ;;  %v4260_v56 = vcombine.low %v5544_v42, %v5556_v48  ;;  %v4813_v27 = vld [vmem:[%s6849_s3 + $0x3e4] ss:$8 sps:$4 sm:$0xff]  }
  0x5d   : > { %v678_v7 = vrot.slane %v676_v53, 4  ;;  %v681_v8 = vrot.slane %v679_v54, 5 }
  0x5e   : > { %1936 = vmatpush1.bf16.msra.mxu1 %v4781_v47  ;;  %v4778_v47 = vld [vmem:[%s6849_s3 + $0x230] ss:$8 sps:$4 sm:$0xff]   ;;  %v664_v0 = vrot.slane %v662_v50, 4  ;;  %v667_v1 = vrot.slane %v665_v51, 5  ;;  %1284 = vmatprep.mubr.bf16.mxu1 %v4261_v2  ;;  %v5615_v50 = vadd.f32 %v5325_v60, %v279_v31  ;;  %v4798_v51 = vld [vmem:[%s6849_s3 + $0x204] ss:$8 sps:$4 sm:$0xff]  }
  0x5f   : > { %1937 = vmatprep.subr.bf16.mxu1 %v4789_v49  ;;  %v550_v49 = vsel %vm5344_vm8, %v472_v35, %v549_v30  ;;  %1607 = vmatpush1.bf16.msra.mxu0 %v4778_v47  ;;  %v682_v19 = vor.u32 %v681_v8, %v678_v7  ;;  %v4819_v8 = vld [vmem:[%s6849_s3 + $0x3d4] ss:$8 sps:$4 sm:$0xff]  }
  0x60   : > { %551 = vst [vmem:[#allocation2 + $0x88] sm:$0x11] %v550_v49  ;;  %v668_v13 = vor.u32 %v667_v1, %v664_v0  ;;  %1285 = vmatmul.mubr.bf16.gmra.mxu1 %v4260_v56  ;;  %v552_v30 = vld [vmem:[#allocation2 + $0x58] sm:$0xff]  ;;  %v558_v49 = vld [vmem:[#allocation2 + $0x8] sm:$0xff] }
  0x61   : > { %v683_v34 = vrot.slane %v682_v19, 4  ;;  %v4796_v56 = vld [vmem:[%s6849_s3 + $0x200] ss:$8 sps:$4 sm:$0xff]   ;;  %v561_v3 = vld [vmem:[#allocation2 + $0x10] sm:$0x11] }
  0x62   : > { %1938 = vmatpush1.bf16.msra.mxu1 %v4787_v52  ;;  %v4786_v52 = vld [vmem:[%s6849_s3 + $0x224] ss:$8 sps:$4 sm:$0xff]   ;;  %v669_v26 = vrot.slane %v668_v13, 4  ;;  %v403_v31 = vld [vmem:[#allocation2 + $0x38] sm:$0x11] }
  0x63   : > { %1939 = vmatprep.subr.bf16.mxu1 %v4795_v4  ;;  %v4611_v4 = vpack.c.bf16 %v318_v36, %v317_v32  ;;  %1608 = vmatprep.subr.bf16.mxu0 %v4786_v52  ;;  %v280_v32 = vmul.f32 %v5323_v59, %v252_v23  ;;  %v555_v36 = vld [vmem:[#allocation2 + $0x18] sm:$0x11]  ;;  %v374_v23 = vld [vmem:[#allocation2 + $0x20] sm:$0x11] }
  0x64   : > { %1609 = vmatpush1.bf16.msra.mxu0 %v4784_v57 }
  0x65   : > { %v474_v14 = vshrl.u32 %v4611_v4, 16  ;;  %v477_v15 = vshll.u32 %v4611_v4, 16  ;;  %1610 = vmatprep.subr.bf16.mxu0 %v4792_v11  ;;  %v5622_v2 = vadd.f32 %v5332_v63, %v280_v32  ;;  %v321_v4 = vmax.f32 %v5606_v39, 0.0 }
  0x66   : > { %1940 = vmatpush1.bf16.msra.mxu1 %v4793_v20  ;;  %v482_v20 = vshrl.u32 %v4612_v9, 16 }
  0x67   : > { %1941 = vmatprep.subr.bf16.mxu1 %v4801_v33  ;;  %v476_v29 = vrot.slane %v474_v14, 7  ;;  %v5603_v33 = vld [vmem:[#allocation2 + $0x90] sm:$0x11]  ;;  %v5611_v44 = vld [vmem:[#allocation2 + $0x88] sm:$0x11]  ;;  %v324_v39 = vmax.f32 %v5622_v2, 0.0 }
  0x68   : > { %v484_v35 = vrot.slane %v482_v20, 7  ;;  %v671_v45 = vshll.u32 %v5603_v33, 16  ;;  %v685_v52 = vshll.u32 %v5611_v44, 16  ;;  %1611 = vmatpush1.bf16.msra.mxu0 %v4790_v25  ;;  %v4817_v14 = vld [vmem:[%s6849_s3 + $0x3d0] ss:$8 sps:$4 sm:$0xff]  }
  0x69   : > { %v479_v46 = vor.u32 %v477_v15, %v476_v29  ;;  %v480_v47 = vrot.slane %v476_v29, 4  ;;  %1612 = vmatprep.subr.bf16.mxu0 %v4798_v51  ;;  %v4802_v25 = vld [vmem:[%s6849_s3 + $0x2f0] ss:$8 sps:$4 sm:$0xff]   ;;  %v4823_v51 = vld [vmem:[%s6849_s3 + $0x3c0] ss:$8 sps:$4 sm:$0xff]  }
  0x6a   : > { %1942 = vmatpush1.bf16.msra.mxu1 %v4799_v62  ;;  %v487_v53 = vor.u32 %v485_v21, %v484_v35  ;;  %v488_v54 = vrot.slane %v484_v35, 4  ;;  %v673_v57 = vrot.slane %v671_v45, 5  ;;  %v4811_v62 = vld [vmem:[%s6849_s3 + $0x3e0] ss:$8 sps:$4 sm:$0xff]   ;;  %v687_v7 = vrot.slane %v685_v52, 5 }
  0x6b   : > { %1943 = vmatprep.subr.bf16.mxu1 %v4807_v6  ;;  %v5632_v0 = vsel %vm5394_vm0, %v479_v46, %v552_v30  ;;  %v556_v1 = vsel %vm5344_vm8, %v480_v47, %v555_v36  ;;  %v4804_v6 = vld [vmem:[%s6849_s3 + $0x2f4] ss:$8 sps:$4 sm:$0xff]   ;;  %v322_v35 = vmax.f32 %v5609_v43, 0.0  ;;  %v323_v36 = vmax.f32 %v5615_v50, 0.0  ;;  %v4810_v43 = vld [vmem:[%s6849_s3 + $0x2e4] ss:$8 sps:$4 sm:$0xff]  }
  0x6c   : > { %554 = vst [vmem:[#allocation2 + $0x58] sm:$0xff] %v5632_v0  ;;  %557 = vst [vmem:[#allocation2 + $0x18] sm:$0x11] %v556_v1  ;;  %v5646_v9 = vsel %vm5394_vm0, %v487_v53, %v558_v49  ;;  %v562_v10 = vsel %vm5344_vm8, %v488_v54, %v561_v3  ;;  %v690_v11 = vshrl.u32 %v5632_v0, 16  ;;  %v674_v13 = vsel %vm5435_vm3, %v669_v26, %v673_v57  ;;  %v4808_v2 = vld [vmem:[%s6849_s3 + $0x2e0] ss:$8 sps:$4 sm:$0xff]  }
  0x6d   : > { %560 = vst [vmem:[#allocation2 + $0x8] sm:$0xff] %v5646_v9  ;;  %563 = vst [vmem:[#allocation2 + $0x10] sm:$0x11] %v562_v10  ;;  %v693_v15 = vshll.u32 %v5632_v0, 16  ;;  %v704_v16 = vshrl.u32 %v5646_v9, 16  ;;  %v707_v17 = vshll.u32 %v5646_v9, 16  ;;  %v688_v19 = vsel %vm5435_vm3, %v683_v34, %v687_v7  ;;  %1613 = vmatpush1.bf16.msra.mxu0 %v4796_v56 }
  0x6e   : > { %1944 = vmatpush2.bf16.msra.mxu1 %v4805_v18  ;;  %v371_v18 = vld [vmem:[#allocation2 + $0x68] sm:$0x11]  ;;  %v692_v20 = vrot.slane %v690_v11, 4  ;;  %v4263_v21 = vcombine.high %v5632_v0, %v5646_v9  ;;  %v4262_v22 = vcombine.low %v5632_v0, %v5646_v9  ;;  %v4221_v26 = vcombine.high %v674_v13, %v688_v19  ;;  %1614 = vmatprep.subr.bf16.mxu0 %v4804_v6  ;;  %v4831_v57 = vld [vmem:[%s6849_s3 + $0x3b4] ss:$8 sps:$4 sm:$0xff]  }
  0x6f   : > { %1945 = vmatprep.subr.bf16.mxu1 %v4813_v27  ;;  %v4220_v27 = vcombine.low %v674_v13, %v688_v19  ;;  %v695_v29 = vrot.slane %v693_v15, 5  ;;  %v706_v30 = vrot.slane %v704_v16, 4  ;;  %v709_v32 = vrot.slane %v707_v17, 5  ;;  %v4825_v34 = vld [vmem:[%s6849_s3 + $0x3c4] ss:$8 sps:$4 sm:$0xff]  }
  0x70   : > { %1294 = vmatprep.mubr.bf16.mxu1 %v4263_v21  ;;  %1011 = vmatprep.mubr.bf16.mxu0 %v4221_v26  ;;  %v372_v46 = vsel %vm5344_vm8, 0, %v371_v18  ;;  %v375_v47 = vsel %vm5344_vm8, 0, %v374_v23  ;;  %v401_v49 = vsel %vm5362_vm11, 0, %v400_v24  ;;  %v404_v52 = vsel %vm5362_vm11, 0, %v403_v31  ;;  %v4816_v13 = vld [vmem:[%s6849_s3 + $0x2d4] ss:$8 sps:$4 sm:$0xff]  }
  0x71   : > { %v696_v45 = vor.u32 %v695_v29, %v692_v20  ;;  %1012 = vmatmul.mubr.bf16.gmra.mxu0 %v4220_v27  ;;  %v710_v50 = vor.u32 %v709_v32, %v706_v30  ;;  %373 = vst [vmem:[#allocation2 + $0x68] sm:$0x11] %v372_v46  ;;  %376 = vst [vmem:[#allocation2 + $0x20] sm:$0x11] %v375_v47  ;;  %v4613_v53 = vpack.c.bf16 %v322_v35, %v321_v4  ;;  %v4814_v16 = vld [vmem:[%s6849_s3 + $0x2d0] ss:$8 sps:$4 sm:$0xff]  }
  0x72   : > { %1946 = vmatpush2.bf16.msra.mxu1 %v4811_v62  ;;  %402 = vst [vmem:[#allocation2 + $0x60] sm:$0x11] %v401_v49  ;;  %v4614_v54 = vpack.c.bf16 %v324_v39, %v323_v36  ;;  %405 = vst [vmem:[#allocation2 + $0x38] sm:$0x11] %v404_v52  ;;  %1615 = vmatpush2.bf16.msra.mxu0 %v4802_v25  ;;  %v4829_v18 = vld [vmem:[%s6849_s3 + $0x3b0] ss:$8 sps:$4 sm:$0xff]  }
  0x73   : > { %1947 = vmatprep.subr.bf16.mxu1 %v4819_v8  ;;  %v5692_v56 = vld [vmem:[#allocation2 + $0x18] sm:$0x11]  ;;  %v697_v1 = vrot.slane %v696_v45, 4  ;;  %1295 = vmatmul.mubr.bf16.gmra.mxu1 %v4262_v22  ;;  %v490_v4 = vshrl.u32 %v4613_v53, 16  ;;  %v493_v6 = vshll.u32 %v4613_v53, 16  ;;  %v711_v7 = vrot.slane %v710_v50, 4 }
  0x74   : > { %v5697_v62 = vld [vmem:[#allocation2 + $0x10] sm:$0x11]  ;;  %v699_v3 = vshll.u32 %v5692_v56, 16  ;;  %v498_v10 = vshrl.u32 %v4614_v54, 16  ;;  %v501_v11 = vshll.u32 %v4614_v54, 16  ;;  %1616 = vmatprep.subr.bf16.mxu0 %v4810_v43 }
  0x75   : > { %v713_v8 = vshll.u32 %v5697_v62, 16  ;;  %v492_v15 = vrot.slane %v490_v4, 7  ;;  %v4837_v23 = vld [vmem:[%s6849_s3 + $0x3a4] ss:$8 sps:$4 sm:$0xff]   ;;  %v4820_v45 = vld [vmem:[%s6849_s3 + $0x2c0] ss:$8 sps:$4 sm:$0xff]  }
  0x76   : > { %1948 = vmatpush2.bf16.msra.mxu1 %v4817_v14  ;;  %v701_v14 = vrot.slane %v699_v3, 5  ;;  %v500_v19 = vrot.slane %v498_v10, 7  ;;  %1617 = vmatpush2.bf16.msra.mxu0 %v4808_v2  ;;  %v4835_v50 = vld [vmem:[%s6849_s3 + $0x3a0] ss:$8 sps:$4 sm:$0xff]   ;;  %v4843_v2 = vld [vmem:[%s6849_s3 + $0x394] ss:$8 sps:$4 sm:$0xff]  }
  0x77   : > { %1949 = vmatprep.subr.bf16.mxu1 %v4825_v34  ;;  %v715_v17 = vrot.slane %v713_v8, 5  ;;  %v495_v21 = vor.u32 %v493_v6, %v492_v15  ;;  %v496_v22 = vrot.slane %v492_v15, 4  ;;  %1618 = vmatprep.subr.bf16.mxu0 %v4816_v13  ;;  %v4822_v34 = vld [vmem:[%s6849_s3 + $0x2c4] ss:$8 sps:$4 sm:$0xff]   ;;  %v4841_v4 = vld [vmem:[%s6849_s3 + $0x390] ss:$8 sps:$4 sm:$0xff]   ;;  %v4347_v6 = vcombine.high %v5408_v38, %v5544_v42 }
  0x78   : > { %v702_v20 = vsel %vm5435_vm3, %v697_v1, %v701_v14  ;;  %v503_v25 = vor.u32 %v501_v11, %v500_v19  ;;  %v504_v26 = vrot.slane %v500_v19, 4  ;;  %v564_v27 = vld [vmem:[#allocation2 + $0x68] sm:$0xff]  ;;  %v570_v30 = vld [vmem:[#allocation2 + $0x20] sm:$0xff]  ;;  %v1316_v11 = vld [vmem:[#allocation2 + $0x30] sm:$0xee] }
  0x79   : > { %v716_v24 = vsel %vm5435_vm3, %v711_v7, %v715_v17  ;;  %v567_v29 = vld [vmem:[#allocation2 + $0x60] sm:$0x11]  ;;  %v5722_v35 = vsel %vm5394_vm0, %v495_v21, %v564_v27  ;;  %v573_v39 = vld [vmem:[#allocation2 + $0x38] sm:$0x11]  ;;  %v1315_v10 = vld [vmem:[#allocation2] sm:$0xee] }
  0x7a   : > { %1950 = vmatpush2.bf16.msra.mxu1 %v4823_v51  ;;  %v4223_v31 = vcombine.high %v702_v20, %v716_v24  ;;  %v4222_v32 = vcombine.low %v702_v20, %v716_v24  ;;  %v568_v36 = vsel %vm5344_vm8, %v496_v22, %v567_v29  ;;  %566 = vst [vmem:[#allocation2 + $0x68] sm:$0xff] %v5722_v35  ;;  %v718_v49 = vshrl.u32 %v5722_v35, 16  ;;  %v4826_v14 = vld [vmem:[%s6849_s3 + $0x2b0] ss:$8 sps:$4 sm:$0xff]   ;;  %v4847_v19 = vld [vmem:[%s6849_s3 + $0x380] ss:$8 sps:$4 sm:$0xff]  }
  0x7b   : > { %1951 = vmatprep.subr.bf16.mxu1 %v4831_v57  ;;  %569 = vst [vmem:[#allocation2 + $0x60] sm:$0x11] %v568_v36  ;;  %v5732_v46 = vsel %vm5394_vm0, %v503_v25, %v570_v30  ;;  %v574_v47 = vsel %vm5344_vm8, %v504_v26, %v573_v39  ;;  %v721_v43 = vshll.u32 %v5722_v35, 16  ;;  %1619 = vmatpush2.bf16.msra.mxu0 %v4814_v16  ;;  %v4828_v57 = vld [vmem:[%s6849_s3 + $0x2b4] ss:$8 sps:$4 sm:$0xff]   ;;  %v1344_v17 = vrot.slane %v5412_v40, 5 }
  0x7c   : > { %1021 = vmatprep.mubr.bf16.mxu0 %v4223_v31  ;;  %572 = vst [vmem:[#allocation2 + $0x20] sm:$0xff] %v5732_v46  ;;  %575 = vst [vmem:[#allocation2 + $0x38] sm:$0x11] %v574_v47  ;;  %v732_v51 = vshrl.u32 %v5732_v46, 16  ;;  %v735_v52 = vshll.u32 %v5732_v46, 16  ;;  %v4265_v53 = vcombine.high %v5722_v35, %v5732_v46  ;;  %v4264_v54 = vcombine.low %v5722_v35, %v5732_v46 }
  0x7d   : > { %v720_v1 = vrot.slane %v718_v49, 4  ;;  %v723_v3 = vrot.slane %v721_v43, 5  ;;  %1022 = vmatmul.mubr.bf16.gmra.mxu0 %v4222_v32  ;;  %1620 = vmatprep.subr.bf16.mxu0 %v4822_v34  ;;  %v4849_v16 = vld [vmem:[%s6849_s3 + $0x384] ss:$8 sps:$4 sm:$0xff]   ;;  %v1348_v20 = vrot.slane %v5442_v61, 5  ;;  %v4298_v22 = vrot.slane %v1315_v10, 9 }
  0x7e   : > { %1952 = vmatpush2.bf16.msra.mxu1 %v4829_v18  ;;  %v734_v7 = vrot.slane %v732_v51, 4  ;;  %v737_v8 = vrot.slane %v735_v52, 5  ;;  %1304 = vmatprep.mubr.bf16.mxu1 %v4265_v53  ;;  %v4834_v18 = vld [vmem:[%s6849_s3 + $0x2a4] ss:$8 sps:$4 sm:$0xff]   ;;  %v4832_v26 = vld [vmem:[%s6849_s3 + $0x2a0] ss:$8 sps:$4 sm:$0xff]   ;;  %v4346_v47 = vcombine.low %v5408_v38, %v5544_v42 }
  0x7f   : > { %1953 = vmatprep.subr.bf16.mxu1 %v4837_v23  ;;  %v724_v13 = vor.u32 %v723_v3, %v720_v1  ;;  %1305 = vmatmul.mubr.bf16.gmra.mxu1 %v4264_v54  ;;  %v4299_v23 = vrot.slane %v1316_v11, 9  ;;  %v4855_v30 = vld [vmem:[%s6849_s3 + $0x574] ss:$8 sps:$4 sm:$0xff]   ;;  %v4853_v34 = vld [vmem:[%s6849_s3 + $0x570] ss:$8 sps:$4 sm:$0xff]   ;;  %v5801_v39 = vsel %vm5785_vm6, %v4298_v22, %v1344_v17  ;;  %v1352_v3 = vrot.slane %v5603_v33, 5 }
  0x80   : > { %v738_v15 = vor.u32 %v737_v8, %v734_v7  ;;  %1621 = vmatpush2.bf16.msra.mxu0 %v4820_v45  ;;  %1959 = vmatprep.mubr.bf16.mxu1 %v4347_v6  ;;  %v4840_v32 = vld [vmem:[%s6849_s3 + $0x294] ss:$8 sps:$4 sm:$0xff]   ;;  %v1317_v43 = vld [vmem:[#allocation2 + $0x28] sm:$0xee]  ;;  %v4838_v38 = vld [vmem:[%s6849_s3 + $0x290] ss:$8 sps:$4 sm:$0xff]  }
  0x81   : > { %1622 = vmatprep.subr.bf16.mxu0 %v4828_v57  ;;  %v5777_v40 = vrot.slane %v724_v13, 4  ;;  %v5805_v45 = vsel %vm5785_vm6, %v4299_v23, %v1348_v20  ;;  %v4861_v52 = vld [vmem:[%s6849_s3 + $0x564] ss:$8 sps:$4 sm:$0xff]   ;;  %v4349_v57 = vcombine.high %v5556_v48, %v5632_v0  ;;  %v4300_v1 = vrot.slane %v1317_v43, 9  ;;  %v4844_v7 = vld [vmem:[%s6849_s3 + $0x280] ss:$8 sps:$4 sm:$0xff]  }
  0x82   : > { %1954 = vmatpush2.bf16.msra.mxu1 %v4835_v50  ;;  %v5773_v21 = vld [vmem:[#allocation2 + $0x60] sm:$0x11]  ;;  %v739_v27 = vrot.slane %v738_v15, 4  ;;  %v1318_v50 = vld [vmem:[#allocation2 + $0x48] sm:$0xee]  ;;  %v1356_v6 = vrot.slane %v5611_v44, 5  ;;  %v4306_v23 = vcombine.low %v5801_v39, %v5805_v45  ;;  %v4350_v43 = vcombine.low %v5646_v9, %v5722_v35 }
  0x83   : > { %1955 = vmatprep.subr.bf16.mxu1 %v4843_v2  ;;  %v5775_v24 = vld [vmem:[#allocation2 + $0x38] sm:$0x11]  ;;  %v727_v25 = vshll.u32 %v5773_v21, 16  ;;  %v4846_v42 = vld [vmem:[%s6849_s3 + $0x284] ss:$8 sps:$4 sm:$0xff]   ;;  %v4307_v2 = vcombine.high %v5801_v39, %v5805_v45  ;;  %v5846_v11 = vsel %vm5785_vm6, %v4300_v1, %v1352_v3  ;;  %v253_v17 = vld [vmem:[%s5294_s17 + $0x70] sm:$0xff] }
  0x84   : > { %v741_v29 = vshll.u32 %v5775_v24, 16  ;;  %1623 = vmatpush2.bf16.msra.mxu0 %v4826_v14  ;;  %v4859_v8 = vld [vmem:[%s6849_s3 + $0x560] ss:$8 sps:$4 sm:$0xff]   ;;  %v4852_v10 = vld [vmem:[%s6849_s3 + $0x474] ss:$8 sps:$4 sm:$0xff]   ;;  %v4348_v14 = vcombine.low %v5556_v48, %v5632_v0  ;;  %v281_v20 = vmul.f32 %v5321_v58, %v253_v17 }
  0x85   : > { %v729_v31 = vrot.slane %v727_v25, 5  ;;  %1624 = vmatprep.subr.bf16.mxu0 %v4834_v18  ;;  %v4867_v33 = vld [vmem:[%s6849_s3 + $0x554] ss:$8 sps:$4 sm:$0xff]   ;;  %v4865_v44 = vld [vmem:[%s6849_s3 + $0x550] ss:$8 sps:$4 sm:$0xff]   ;;  %v4351_v18 = vcombine.high %v5646_v9, %v5722_v35 }
  0x86   : > { %1956 = vmatpush2.bf16.msra.mxu1 %v4841_v4  ;;  %v743_v36 = vrot.slane %v741_v29, 5  ;;  %v4301_v4 = vrot.slane %v1318_v50, 9  ;;  %v1319_v15 = vld [vmem:[#allocation2 + $0x58] sm:$0xee]  ;;  %v377_v22 = vld [vmem:[#allocation2 + $0x50] sm:$0x11] }
  0x87   : > { %1957 = vmatprep.subr.bf16.mxu1 %v4849_v16  ;;  %v730_v49 = vsel %vm5435_vm3, %v5777_v40, %v729_v31  ;;  %v1320_v16 = vld [vmem:[#allocation2 + $0x8] sm:$0xee]  ;;  %v4850_v25 = vld [vmem:[%s6849_s3 + $0x470] ss:$8 sps:$4 sm:$0xff]   ;;  %v1360_v29 = vrot.slane %v5692_v56, 5  ;;  %v4302_v31 = vrot.slane %v1319_v15, 9 }
  0x88   : > { %v744_v51 = vsel %vm5435_vm3, %v739_v27, %v743_v36  ;;  %1625 = vmatpush2.bf16.msra.mxu0 %v4832_v26  ;;  %v5850_v13 = vsel %vm5785_vm6, %v4301_v4, %v1356_v6  ;;  %v4873_v48 = vld [vmem:[%s6849_s3 + $0x544] ss:$8 sps:$4 sm:$0xff]   ;;  %v378_v26 = vsel %vm5344_vm8, 0, %v377_v22  ;;  %v4871_v36 = vld [vmem:[%s6849_s3 + $0x540] ss:$8 sps:$4 sm:$0xff]   ;;  %v1372_v4 = vrot.slane %v5775_v24, 5 }
  0x89   : > { %v4225_v53 = vcombine.high %v730_v49, %v744_v51  ;;  %v4224_v54 = vcombine.low %v730_v49, %v744_v51  ;;  %1626 = vmatprep.subr.bf16.mxu0 %v4840_v32  ;;  %v4858_v58 = vld [vmem:[%s6849_s3 + $0x464] ss:$8 sps:$4 sm:$0xff]   ;;  %v4309_v27 = vcombine.high %v5846_v11, %v5850_v13  ;;  %379 = vst [vmem:[#allocation2 + $0x50] sm:$0x11] %v378_v26  ;;  %v1364_v32 = vrot.slane %v5697_v62, 5 }
  0x8a   : > { %1958 = vmatpush2.bf16.msra.mxu1 %v4847_v19  ;;  %v254_v19 = vld [vmem:[%s5294_s17 + $0x78] sm:$0xff]  ;;  %v1361_v45 = vsel %vm5785_vm6, %v4302_v31, %v1360_v29  ;;  %v4870_v9 = vld [vmem:[%s6849_s3 + $0x444] ss:$8 sps:$4 sm:$0xff]   ;;  %v4868_v24 = vld [vmem:[%s6849_s3 + $0x440] ss:$8 sps:$4 sm:$0xff]  }
  0x8b   : > { %2737 = vmatprep.subr.bf16.mxu1 %v4855_v30  ;;  %1031 = vmatprep.mubr.bf16.mxu0 %v4225_v53  ;;  %v282_v0 = vmul.f32 %v5323_v59, %v254_v19  ;;  %v309_v30 = vadd.f32 %v5325_v60, %v281_v20  ;;  %v4303_v59 = vrot.slane %v1320_v16, 9  ;;  %v4856_v60 = vld [vmem:[%s6849_s3 + $0x460] ss:$8 sps:$4 sm:$0xff]   ;;  %v4879_v56 = vld [vmem:[%s6849_s3 + $0x534] ss:$8 sps:$4 sm:$0xff]  }
  0x8c   : > { %1032 = vmatmul.mubr.bf16.gmra.mxu0 %v4224_v54  ;;  %v4877_v49 = vld [vmem:[%s6849_s3 + $0x530] ss:$8 sps:$4 sm:$0xff]   ;;  %v1322_v53 = vld [vmem:[#allocation2 + $0x20] sm:$0xee]  ;;  %v4308_v54 = vcombine.low %v5846_v11, %v5850_v13  ;;  %v4903_v22 = vld [vmem:[%s6849_s3 + $0x5f4] ss:$8 sps:$4 sm:$0xff]  }
  0x8d   : > { %1960 = vmatmul.mubr.bf16.vlgmr.msra.gmra.mxu1 %v4346_v47  ;;  %1627 = vmatpush2.bf16.msra.mxu0 %v4838_v38  ;;  %v325_v39 = vmax.f32 %v309_v30, 0.0  ;;  %v1365_v47 = vsel %vm5785_vm6, %v4303_v59, %v1364_v32  ;;  %v4862_v51 = vld [vmem:[%s6849_s3 + $0x450] ss:$8 sps:$4 sm:$0xff]   ;;  %v4885_v38 = vld [vmem:[%s6849_s3 + $0x524] ss:$8 sps:$4 sm:$0xff]   ;;  %v4305_v3 = vrot.slane %v1322_v53, 9 }
  0x8e   : > { %2738 = vmatpush1.bf16.msra.mxu1 %v4853_v34  ;;  %1630 = vmatprep.mubr.bf16.mxu0 %v4307_v2  ;;  %v310_v34 = vadd.f32 %v5332_v63, %v282_v0  ;;  %v4864_v63 = vld [vmem:[%s6849_s3 + $0x454] ss:$8 sps:$4 sm:$0xff]   ;;  %v4311_v35 = vcombine.high %v1361_v45, %v1365_v47  ;;  %v4310_v17 = vcombine.low %v1361_v45, %v1365_v47  ;;  %v4882_v20 = vld [vmem:[%s6849_s3 + $0x424] ss:$8 sps:$4 sm:$0xff]   ;;  %v4901_v0 = vld [vmem:[%s6849_s3 + $0x5f0] ss:$8 sps:$4 sm:$0xff]  }
  0x8f   : > { %2739 = vmatprep.subr.bf16.mxu1 %v4861_v52  ;;  %1628 = vmatprep.subr.bf16.mxu0 %v4846_v42  ;;  %v1321_v52 = vld [vmem:[#allocation2 + $0x68] sm:$0xee]  ;;  %v1373_v11 = vsel %vm5785_vm6, %v4305_v3, %v1372_v4  ;;  %v2016_v29 = vld [vmem:[#allocation2 + $0x30] sm:$0xff]  ;;  %v2017_v30 = vld [vmem:[#allocation2 + $0x80] sm:$0x11] }
  0x90   : > { %1969 = vmatprep.mubr.bf16.mxu1 %v4349_v57  ;;  %v326_v62 = vmax.f32 %v310_v34, 0.0  ;;  %v1368_v57 = vrot.slane %v5773_v21, 5  ;;  %v4304_v1 = vrot.slane %v1321_v52, 9  ;;  %v4891_v21 = vld [vmem:[%s6849_s3 + $0x514] ss:$8 sps:$4 sm:$0xff]   ;;  %v5977_v31 = vld [vmem:[#allocation2 + $0x28] sm:$0xff] }
  0x91   : > { %1629 = vmatpush2.bf16.msra.mxu0 %v4844_v7  ;;  %v4883_v7 = vld [vmem:[%s6849_s3 + $0x520] ss:$8 sps:$4 sm:$0xff]   ;;  %v4909_v26 = vld [vmem:[%s6849_s3 + $0x5e4] ss:$8 sps:$4 sm:$0xff]   ;;  %v2019_v32 = vld [vmem:[#allocation2 + $0x90] sm:$0x11] }
  0x92   : > { %2740 = vmatpush1.bf16.msra.mxu1 %v4859_v8  ;;  %2368 = vmatprep.subr.bf16.mxu0 %v4852_v10  ;;  %v4615_v50 = vpack.c.bf16 %v326_v62, %v325_v39  ;;  %v576_v8 = vld [vmem:[#allocation2 + $0x50] sm:$0xff]  ;;  %v4907_v59 = vld [vmem:[%s6849_s3 + $0x5e0] ss:$8 sps:$4 sm:$0xff]   ;;  %v2033_v34 = vshrl.u32 %v2016_v29, 16  ;;  %v2042_v39 = vshll.u32 %v2017_v30, 16  ;;  %v2056_v62 = vshll.u32 %v2019_v32, 16 }
  0x93   : > { %2741 = vmatprep.subr.bf16.mxu1 %v4867_v33  ;;  %v4876_v33 = vld [vmem:[%s6849_s3 + $0x434] ss:$8 sps:$4 sm:$0xff]   ;;  %v2458_v45 = vld [vmem:[#allocation2 + $0x28] sm:$0xee]  ;;  %v4913_v4 = vld [vmem:[%s6849_s3 + $0x5d0] ss:$8 sps:$4 sm:$0xff]  }
  0x94   : > { %1631 = vmatmul.mubr.bf16.vlgmr.msra.gmra.mxu0 %v4306_v23  ;;  %v506_v42 = vshrl.u32 %v4615_v50, 16  ;;  %v509_v2 = vshll.u32 %v4615_v50, 16  ;;  %v4880_v23 = vld [vmem:[%s6849_s3 + $0x420] ss:$8 sps:$4 sm:$0xff]  }
  0x95   : > { %1970 = vmatmul.mubr.bf16.gmra.mxu1 %v4348_v14  ;;  %2369 = vmatpush1.bf16.msra.mxu0 %v4850_v25  ;;  %v4889_v14 = vld [vmem:[%s6849_s3 + $0x510] ss:$8 sps:$4 sm:$0xff]   ;;  %v4888_v25 = vld [vmem:[%s6849_s3 + $0x414] ss:$8 sps:$4 sm:$0xff]   ;;  %v4892_v47 = vld [vmem:[%s6849_s3 + $0x400] ss:$8 sps:$4 sm:$0xff]  }
  0x96   : > { %2742 = vmatpush1.bf16.msra.mxu1 %v4865_v44  ;;  %1979 = vmatprep.mubr.bf16.mxu1 %v4351_v18  ;;  %v5913_v6 = vrot.slane %v506_v42, 7  ;;  %v1369_v44 = vsel %vm5785_vm6, %v4304_v1, %v1368_v57  ;;  %v4874_v18 = vld [vmem:[%s6849_s3 + $0x430] ss:$8 sps:$4 sm:$0xff]   ;;  %v2044_v42 = vrot.slane %v2042_v39, 5  ;;  %v2058_v1 = vrot.slane %v2056_v62, 5 }
  0x97   : > { %2743 = vmatprep.subr.bf16.mxu1 %v4873_v48  ;;  %1640 = vmatprep.mubr.bf16.mxu0 %v4309_v27  ;;  %v4313_v19 = vcombine.high %v1369_v44, %v1373_v11  ;;  %v4886_v48 = vld [vmem:[%s6849_s3 + $0x410] ss:$8 sps:$4 sm:$0xff]   ;;  %v4894_v27 = vld [vmem:[%s6849_s3 + $0x404] ss:$8 sps:$4 sm:$0xff]   ;;  %v4924_v39 = vld [vmem:[%s6849_s3 + $0x4b4] ss:$8 sps:$4 sm:$0xff]  }
  0x98   : > { %2370 = vmatprep.subr.bf16.mxu0 %v4858_v58  ;;  %v511_v10 = vor.u32 %v509_v2, %v5913_v6  ;;  %v4312_v58 = vcombine.low %v1369_v44, %v1373_v11  ;;  %v4427_v2 = vrot.slane %v2458_v45, 9  ;;  %v4906_v11 = vld [vmem:[%s6849_s3 + $0x4e4] ss:$8 sps:$4 sm:$0xff]  }
  0x99   : > { %2371 = vmatpush1.bf16.msra.mxu0 %v4856_v60  ;;  %v2047_v60 = vshrl.u32 %v5977_v31, 16  ;;  %v2021_v45 = vld [vmem:[#allocation2 + $0x88] sm:$0x11] }
  0x9a   : > { %2744 = vmatpush1.bf16.msra.mxu1 %v4871_v36  ;;  %2372 = vmatprep.subr.bf16.mxu0 %v4864_v63  ;;  %v5934_v13 = vsel %vm5394_vm0, %v511_v10, %v576_v8  ;;  %v2036_v36 = vshll.u32 %v2016_v29, 16  ;;  %v2457_v63 = vld [vmem:[#allocation2 + $0x30] sm:$0xee]  ;;  %v6067_v29 = vld [vmem:[#allocation2 + $0x8] sm:$0xff] }
  0x9b   : > { %2745 = vmatprep.subr.bf16.mxu1 %v4879_v56  ;;  %578 = vst [vmem:[#allocation2 + $0x50] sm:$0xff] %v5934_v13  ;;  %v4353_v15 = vcombine.high %v5732_v46, %v5934_v13  ;;  %v4352_v16 = vcombine.low %v5732_v46, %v5934_v13  ;;  %v4895_v46 = vld [vmem:[%s6849_s3 + $0x500] ss:$8 sps:$4 sm:$0xff]   ;;  %v2050_v56 = vshll.u32 %v5977_v31, 16  ;;  %v2049_v50 = vrot.slane %v2047_v60, 4 }
  0x9c   : > { %1641 = vmatmul.mubr.bf16.gmra.mxu0 %v4308_v54  ;;  %v4426_v53 = vrot.slane %v2457_v63, 9  ;;  %v2483_v54 = vrot.slane %v2017_v30, 5  ;;  %v4937_v60 = vld [vmem:[%s6849_s3 + $0x590] ss:$8 sps:$4 sm:$0xff]   ;;  %v4945_v63 = vld [vmem:[%s6849_s3 + $0x584] ss:$8 sps:$4 sm:$0xff]  }
  0x9d   : > { %1980 = vmatmul.mubr.bf16.gmra.mxu1 %v4350_v43  ;;  %2373 = vmatpush1.bf16.msra.mxu0 %v4862_v51  ;;  %v2038_v43 = vrot.slane %v2036_v36, 5  ;;  %v4915_v51 = vld [vmem:[%s6849_s3 + $0x5d4] ss:$8 sps:$4 sm:$0xff]   ;;  %v2052_v52 = vrot.slane %v2050_v56, 5 }
  0x9e   : > { %2746 = vmatpush1.bf16.msra.mxu1 %v4877_v49  ;;  %1650 = vmatprep.mubr.bf16.mxu0 %v4311_v35  ;;  %v2035_v49 = vrot.slane %v2033_v34, 4  ;;  %v4900_v35 = vld [vmem:[%s6849_s3 + $0x4f4] ss:$8 sps:$4 sm:$0xff]   ;;  %v5995_v3 = vsel %vm5785_vm6, %v4426_v53, %v2483_v54 }
  0x9f   : > { %2747 = vmatprep.subr.bf16.mxu1 %v4885_v38  ;;  %2374 = vmatprep.subr.bf16.mxu0 %v4870_v9  ;;  %v2487_v9 = vrot.slane %v2019_v32, 5  ;;  %v2053_v57 = vor.u32 %v2052_v52, %v2049_v50  ;;  %v2460_v32 = vld [vmem:[#allocation2 + $0x58] sm:$0xee] }
  0xa0   : > { %1989 = vmatprep.mubr.bf16.mxu1 %v4353_v15  ;;  %v2039_v38 = vor.u32 %v2038_v43, %v2035_v49  ;;  %v4919_v15 = vld [vmem:[%s6849_s3 + $0x5c0] ss:$8 sps:$4 sm:$0xff]   ;;  %v2491_v43 = vrot.slane %v2021_v45, 5  ;;  %v4429_v50 = vrot.slane %v2460_v32, 9  ;;  %v4922_v52 = vld [vmem:[%s6849_s3 + $0x4b0] ss:$8 sps:$4 sm:$0xff]  }
  0xa1   : > { %2375 = vmatpush1.bf16.msra.mxu0 %v4868_v24  ;;  %v6002_v8 = vsel %vm5785_vm6, %v4427_v2, %v2487_v9  ;;  %v6007_v10 = vrot.slane %v2053_v57, 4  ;;  %v4928_v9 = vld [vmem:[%s6849_s3 + $0x4a0] ss:$8 sps:$4 sm:$0xff]   ;;  %v4951_v57 = vld [vmem:[%s6849_s3 + $0x774] ss:$8 sps:$4 sm:$0xff]  }
  0xa2   : > { %2748 = vmatpush1.bf16.msra.mxu1 %v4883_v7  ;;  %2376 = vmatprep.subr.bf16.mxu0 %v4876_v33  ;;  %v2040_v7 = vrot.slane %v2039_v38, 4  ;;  %v4435_v24 = vcombine.high %v5995_v3, %v6002_v8  ;;  %v4898_v33 = vld [vmem:[%s6849_s3 + $0x4f0] ss:$8 sps:$4 sm:$0xff]   ;;  %v4930_v38 = vld [vmem:[%s6849_s3 + $0x4a4] ss:$8 sps:$4 sm:$0xff]  }
  0xa3   : > { %2749 = vmatprep.subr.bf16.mxu1 %v4891_v21  ;;  %v4921_v21 = vld [vmem:[%s6849_s3 + $0x5c4] ss:$8 sps:$4 sm:$0xff]  }
  0xa4   : > { %1651 = vmatmul.mubr.bf16.gmra.mxu0 %v4310_v17  ;;  %v6016_v44 = vsel %vm5435_vm3, %v2040_v7, %v2044_v42  ;;  %v4927_v17 = vld [vmem:[%s6849_s3 + $0x5b4] ss:$8 sps:$4 sm:$0xff]   ;;  %v2070_v7 = vshll.u32 %v2021_v45, 16  ;;  %v4940_v45 = vld [vmem:[%s6849_s3 + $0x480] ss:$8 sps:$4 sm:$0xff]  }
  0xa5   : > { %1990 = vmatmul.mubr.bf16.gmra.mxu1 %v4352_v16  ;;  %2377 = vmatpush1.bf16.msra.mxu0 %v4874_v18  ;;  %v4904_v18 = vld [vmem:[%s6849_s3 + $0x4e0] ss:$8 sps:$4 sm:$0xff]  }
  0xa6   : > { %2750 = vmatpush1.bf16.msra.mxu1 %v4889_v14  ;;  %1660 = vmatprep.mubr.bf16.mxu0 %v4313_v19  ;;  %v6024_v14 = vsel %vm5435_vm3, %v6007_v10, %v2058_v1  ;;  %v406_v1 = vld [vmem:[#allocation2 + $0x78] sm:$0x11] }
  0xa7   : > { %2751 = vmatprep.subr.bf16.mxu1 %v4897_v28  ;;  %2378 = vmatprep.subr.bf16.mxu0 %v4882_v20  ;;  %v4387_v16 = vcombine.high %v6016_v44, %v6024_v14  ;;  %v6034_v28 = vld [vmem:[#allocation2 + $0x48] sm:$0xff]  ;;  %v4912_v20 = vld [vmem:[%s6849_s3 + $0x4d4] ss:$8 sps:$4 sm:$0xff]  }
  0xa8   : > { %2769 = vmatprep.mubr.bf16.mxu1 %v4435_v24  ;;  %v4474_v19 = vcombine.low %v5977_v31, %v6034_v28  ;;  %v2061_v30 = vshrl.u32 %v6034_v28, 16 }
  0xa9   : > { %2379 = vmatpush1.bf16.msra.mxu0 %v4880_v23  ;;  %v4910_v23 = vld [vmem:[%s6849_s3 + $0x4d0] ss:$8 sps:$4 sm:$0xff]  }
  0xaa   : > { %2752 = vmatpush1.bf16.msra.mxu1 %v4895_v46  ;;  %2380 = vmatprep.subr.bf16.mxu0 %v4888_v25  ;;  %v4925_v46 = vld [vmem:[%s6849_s3 + $0x5b0] ss:$8 sps:$4 sm:$0xff]   ;;  %v4918_v25 = vld [vmem:[%s6849_s3 + $0x4c4] ss:$8 sps:$4 sm:$0xff]   ;;  %v2063_v53 = vrot.slane %v2061_v30, 4 }
  0xab   : > { %2753 = vmatprep.subr.bf16.mxu1 %v4903_v22  ;;  %v4933_v22 = vld [vmem:[%s6849_s3 + $0x5a4] ss:$8 sps:$4 sm:$0xff]  }
  0xac   : > { %1661 = vmatmul.mubr.bf16.gmra.mxu0 %v4312_v58  ;;  %v4939_v58 = vld [vmem:[%s6849_s3 + $0x594] ss:$8 sps:$4 sm:$0xff]  }
  0xad   : > { %2381 = vmatpush1.bf16.msra.mxu0 %v4886_v48  ;;  %2400 = vmatprep.mubr.bf16.mxu0 %v4387_v16  ;;  %v4931_v48 = vld [vmem:[%s6849_s3 + $0x5a0] ss:$8 sps:$4 sm:$0xff]   ;;  %v2089_v16 = vshrl.u32 %v6067_v29, 16 }
  0xae   : > { %2754 = vmatpush2.bf16.msra.mxu1 %v4901_v0  ;;  %2382 = vmatprep.subr.bf16.mxu0 %v4894_v27  ;;  %v4916_v0 = vld [vmem:[%s6849_s3 + $0x4c0] ss:$8 sps:$4 sm:$0xff]  }
  0xaf   : > { %2755 = vmatprep.subr.bf16.mxu1 %v4909_v26  ;;  %v6062_v26 = vld [vmem:[#allocation2 + $0x58] sm:$0xff]  ;;  %v2459_v27 = vld [vmem:[#allocation2 + $0x48] sm:$0xee] }
  0xb0   : > { %v4477_v34 = vcombine.high %v6062_v26, %v6067_v29  ;;  %v4476_v36 = vcombine.low %v6062_v26, %v6067_v29  ;;  %v2075_v56 = vshrl.u32 %v6062_v26, 16  ;;  %v2078_v62 = vshll.u32 %v6062_v26, 16  ;;  %v5064_v26 = vld [vmem:[%s6849_s3 + $0x810] ss:$8 sps:$4 sm:$0xff]  }
  0xb1   : > { %2383 = vmatpush1.bf16.msra.mxu0 %v4892_v47  ;;  %v2023_v47 = vld [vmem:[#allocation2 + $0x18] sm:$0x11]  ;;  %v4428_v49 = vrot.slane %v2459_v27, 9 }
  0xb2   : > { %2756 = vmatpush2.bf16.msra.mxu1 %v4907_v59  ;;  %2384 = vmatprep.subr.bf16.mxu0 %v4900_v35  ;;  %v2064_v59 = vshll.u32 %v6034_v28, 16  ;;  %v2077_v42 = vrot.slane %v2075_v56, 4  ;;  %v2080_v2 = vrot.slane %v2078_v62, 5  ;;  %v4943_v35 = vld [vmem:[%s6849_s3 + $0x580] ss:$8 sps:$4 sm:$0xff]  }
  0xb3   : > { %2757 = vmatprep.subr.bf16.mxu1 %v4915_v51  ;;  %v2495_v51 = vrot.slane %v2023_v47, 5  ;;  %v4942_v56 = vld [vmem:[%s6849_s3 + $0x484] ss:$8 sps:$4 sm:$0xff]  }
  0xb4   : > { %v2066_v54 = vrot.slane %v2064_v59, 5 }
  0xb5   : > { %2385 = vmatpush2.bf16.msra.mxu0 %v4898_v33  ;;  %v6110_v24 = vsel %vm5785_vm6, %v4429_v50, %v2495_v51  ;;  %v2461_v33 = vld [vmem:[#allocation2 + $0x8] sm:$0xee]  ;;  %v2134_v50 = vshll.u32 %v5934_v13, 16  ;;  %v4963_v51 = vld [vmem:[%s6849_s3 + $0x754] ss:$8 sps:$4 sm:$0xff]  }
  0xb6   : > { %2758 = vmatpush2.bf16.msra.mxu1 %v4913_v4  ;;  %2386 = vmatprep.subr.bf16.mxu0 %v4906_v11  ;;  %v4936_v4 = vld [vmem:[%s6849_s3 + $0x494] ss:$8 sps:$4 sm:$0xff]   ;;  %v407_v11 = vsel %vm5362_vm11, 0, %v406_v1  ;;  %v4961_v1 = vld [vmem:[%s6849_s3 + $0x750] ss:$8 sps:$4 sm:$0xff]  }
  0xb7   : > { %2759 = vmatprep.subr.bf16.mxu1 %v4921_v21  ;;  %v6106_v21 = vsel %vm5785_vm6, %v4428_v49, %v2491_v43  ;;  %408 = vst [vmem:[#allocation2 + $0x78] sm:$0x11] %v407_v11  ;;  %v6143_v49 = vld [vmem:[#allocation2 + $0x20] sm:$0xff]  ;;  %v2131_v43 = vshrl.u32 %v5934_v13, 16  ;;  %v4948_v13 = vld [vmem:[%s6849_s3 + $0x674] ss:$8 sps:$4 sm:$0xff]  }
  0xb8   : > { %v4969_v11 = vld [vmem:[%s6849_s3 + $0x744] ss:$8 sps:$4 sm:$0xff]  }
  0xb9   : > { %2387 = vmatpush2.bf16.msra.mxu0 %v4904_v18  ;;  %v2462_v18 = vld [vmem:[#allocation2 + $0x68] sm:$0xee] }
  0xba   : > { %2760 = vmatpush2.bf16.msra.mxu1 %v4919_v15  ;;  %2388 = vmatprep.subr.bf16.mxu0 %v4912_v20  ;;  %v2067_v15 = vor.u32 %v2066_v54, %v2063_v53  ;;  %v4434_v20 = vcombine.low %v5995_v3, %v6002_v8  ;;  %v4437_v3 = vcombine.high %v6106_v21, %v6110_v24  ;;  %v2025_v8 = vld [vmem:[#allocation2 + $0x10] sm:$0x11]  ;;  %v4431_v30 = vrot.slane %v2462_v18, 9 }
  0xbb   : > { %2761 = vmatprep.subr.bf16.mxu1 %v4927_v17  ;;  %v2092_v17 = vshll.u32 %v6067_v29, 16  ;;  %v2499_v27 = vrot.slane %v2025_v8, 5 }
  0xbc   : > { %v6130_v32 = vrot.slane %v2067_v15, 4 }
  0xbd   : > { %2389 = vmatpush2.bf16.msra.mxu0 %v4910_v23  ;;  %v2084_v23 = vshll.u32 %v2023_v47, 16  ;;  %v4955_v47 = vld [vmem:[%s6849_s3 + $0x760] ss:$8 sps:$4 sm:$0xff]  }
  0xbe   : > { %2762 = vmatpush2.bf16.msra.mxu1 %v4925_v46  ;;  %2390 = vmatprep.subr.bf16.mxu0 %v4918_v25  ;;  %v4949_v46 = vld [vmem:[%s6849_s3 + $0x770] ss:$8 sps:$4 sm:$0xff]   ;;  %v512_v25 = vrot.slane %v5913_v6, 4  ;;  %v2091_v6 = vrot.slane %v2089_v16, 4  ;;  %v2133_v16 = vrot.slane %v2131_v43, 4 }
  0xbf   : > { %2763 = vmatprep.subr.bf16.mxu1 %v4933_v22  ;;  %v2081_v22 = vor.u32 %v2080_v2, %v2077_v42 }
  0xc1   : > { %2391 = vmatpush2.bf16.msra.mxu0 %v4916_v0  ;;  %v2027_v0 = vld [vmem:[#allocation2 + $0x60] sm:$0x11]  ;;  %v6135_v62 = vrot.slane %v2081_v22, 4 }
  0xc2   : > { %2764 = vmatpush2.bf16.msra.mxu1 %v4931_v48  ;;  %2392 = vmatprep.subr.bf16.mxu0 %v4924_v39  ;;  %v4934_v48 = vld [vmem:[%s6849_s3 + $0x490] ss:$8 sps:$4 sm:$0xff]   ;;  %v2503_v59 = vrot.slane %v2027_v0, 5  ;;  %v2072_v39 = vrot.slane %v2070_v7, 5  ;;  %v2117_v7 = vshrl.u32 %v6143_v49, 16 }
  0xc3   : > { %2765 = vmatprep.subr.bf16.mxu1 %v4939_v58  ;;  %v4430_v58 = vrot.slane %v2461_v33, 9  ;;  %v2120_v33 = vshll.u32 %v6143_v49, 16 }
  0xc4   : > { %v6156_v54 = vsel %vm5785_vm6, %v4431_v30, %v2503_v59  ;;  %v6164_v42 = vsel %vm5435_vm3, %v6130_v32, %v2072_v39  ;;  %v4952_v30 = vld [vmem:[%s6849_s3 + $0x660] ss:$8 sps:$4 sm:$0xff]  }
  0xc5   : > { %2393 = vmatpush2.bf16.msra.mxu0 %v4922_v52  ;;  %v2098_v52 = vshll.u32 %v2025_v8, 16  ;;  %v6152_v53 = vsel %vm5785_vm6, %v4430_v58, %v2499_v27  ;;  %v4967_v8 = vld [vmem:[%s6849_s3 + $0x740] ss:$8 sps:$4 sm:$0xff]  }
  0xc6   : > { %2766 = vmatpush2.bf16.msra.mxu1 %v4937_v60  ;;  %2394 = vmatprep.subr.bf16.mxu0 %v4930_v38  ;;  %v2094_v60 = vrot.slane %v2092_v17, 5  ;;  %v579_v38 = vld [vmem:[#allocation2 + $0x78] sm:$0x11]  ;;  %v4439_v15 = vcombine.high %v6152_v53, %v6156_v54  ;;  %v2463_v17 = vld [vmem:[#allocation2 + $0x20] sm:$0xee] }
  0xc7   : > { %2767 = vmatprep.subr.bf16.mxu1 %v4945_v63  ;;  %v2086_v63 = vrot.slane %v2084_v23, 5  ;;  %v2100_v18 = vrot.slane %v2098_v52, 5  ;;  %v4981_v52 = vld [vmem:[%s6849_s3 + $0x724] ss:$8 sps:$4 sm:$0xff]  }
  0xc8   : > { %v2095_v2 = vor.u32 %v2094_v60, %v2091_v6  ;;  %v4438_v6 = vcombine.low %v6152_v53, %v6156_v54  ;;  %v4958_v54 = vld [vmem:[%s6849_s3 + $0x650] ss:$8 sps:$4 sm:$0xff]  }
  0xc9   : > { %2395 = vmatpush2.bf16.msra.mxu0 %v4928_v9  ;;  %v2112_v9 = vshll.u32 %v2027_v0, 16  ;;  %v4975_v0 = vld [vmem:[%s6849_s3 + $0x734] ss:$8 sps:$4 sm:$0xff]  }
  0xca   : > { %2768 = vmatpush2.bf16.msra.mxu1 %v4943_v35  ;;  %2396 = vmatprep.subr.bf16.mxu0 %v4936_v4  ;;  %v580_v35 = vsel %vm5344_vm8, %v512_v25, %v579_v38  ;;  %v4436_v4 = vcombine.low %v6106_v21, %v6110_v24  ;;  %v4386_v21 = vcombine.low %v6016_v44, %v6024_v14  ;;  %v4954_v24 = vld [vmem:[%s6849_s3 + $0x664] ss:$8 sps:$4 sm:$0xff]   ;;  %v6195_v22 = vrot.slane %v2095_v2, 4  ;;  %v2464_v25 = vld [vmem:[#allocation2 + $0x50] sm:$0xee] }
  0xcb   : > { %3508 = vmatprep.subr.bf16.mxu1 %v4951_v57  ;;  %v6171_v57 = vsel %vm5435_vm3, %v6135_v62, %v2086_v63  ;;  %581 = vst [vmem:[#allocation2 + $0x78] sm:$0x11] %v580_v35  ;;  %v2114_v23 = vrot.slane %v2112_v9, 5  ;;  %v2122_v44 = vrot.slane %v2120_v33, 5  ;;  %v4432_v14 = vrot.slane %v2463_v17, 9 }
  0xcc   : > { %v4433_v27 = vrot.slane %v2464_v25, 9  ;;  %v2101_v59 = vsel %vm5435_vm3, %v6195_v22, %v2100_v18  ;;  %v4960_v63 = vld [vmem:[%s6849_s3 + $0x654] ss:$8 sps:$4 sm:$0xff]   ;;  %v6262_v18 = vld [vmem:[#allocation2 + $0x88] sm:$0x11] }
  0xcd   : > { %2770 = vmatmul.mubr.bf16.vlgmr.msra.gmra.mxu1 %v4434_v20  ;;  %2397 = vmatpush2.bf16.msra.mxu0 %v4934_v48  ;;  %v2029_v20 = vld [vmem:[#allocation2 + $0x38] sm:$0x11]  ;;  %v2119_v48 = vrot.slane %v2117_v7, 4  ;;  %v2115_v39 = vsel %vm5435_vm3, %v5777_v40, %v2114_v23  ;;  %v4964_v7 = vld [vmem:[%s6849_s3 + $0x640] ss:$8 sps:$4 sm:$0xff]   ;;  %v3196_v23 = vshll.u32 %v6262_v18, 16 }
  0xce   : > { %3509 = vmatpush1.bf16.msra.mxu1 %v4949_v46  ;;  %2779 = vmatprep.mubr.bf16.mxu1 %v4437_v3  ;;  %v2136_v46 = vrot.slane %v2134_v50, 5  ;;  %v2507_v3 = vrot.slane %v2029_v20, 5  ;;  %v4973_v40 = vld [vmem:[%s6849_s3 + $0x730] ss:$8 sps:$4 sm:$0xff]   ;;  %v4391_v38 = vcombine.high %v2101_v59, %v2115_v39  ;;  %v4972_v33 = vld [vmem:[%s6849_s3 + $0x634] ss:$8 sps:$4 sm:$0xff]   ;;  %v4390_v17 = vcombine.low %v2101_v59, %v2115_v39 }
  0xcf   : > { %3510 = vmatprep.subr.bf16.mxu1 %v4957_v12  ;;  %2398 = vmatprep.subr.bf16.mxu0 %v4942_v56  ;;  %v4389_v12 = vcombine.high %v6164_v42, %v6171_v57  ;;  %v2126_v56 = vshll.u32 %v2029_v20, 16  ;;  %v4970_v20 = vld [vmem:[%s6849_s3 + $0x630] ss:$8 sps:$4 sm:$0xff]   ;;  %v4978_v25 = vld [vmem:[%s6849_s3 + $0x624] ss:$8 sps:$4 sm:$0xff]  }
  0xd0   : > { %v2137_v58 = vor.u32 %v2136_v46, %v2133_v16  ;;  %v2508_v43 = vsel %vm5785_vm6, %v4432_v14, %v2507_v3  ;;  %v4985_v16 = vld [vmem:[%s6849_s3 + $0x710] ss:$8 sps:$4 sm:$0xff]   ;;  %v3198_v14 = vrot.slane %v3196_v23, 5  ;;  %v4999_v3 = vld [vmem:[%s6849_s3 + $0x7f4] ss:$8 sps:$4 sm:$0xff]  }
  0xd1   : > { %2399 = vmatpush2.bf16.msra.mxu0 %v4940_v45  ;;  %v2123_v45 = vor.u32 %v2122_v44, %v2119_v48  ;;  %v2128_v35 = vrot.slane %v2126_v56, 5  ;;  %v4991_v48 = vld [vmem:[%s6849_s3 + $0x700] ss:$8 sps:$4 sm:$0xff]   ;;  %v4997_v59 = vld [vmem:[%s6849_s3 + $0x7f0] ss:$8 sps:$4 sm:$0xff]  }
  0xd2   : > { %3511 = vmatpush1.bf16.msra.mxu1 %v4955_v47  ;;  %3067 = vmatprep.subr.bf16.mxu0 %v4948_v13  ;;  %v2031_v60 = vld [vmem:[#allocation2 + $0x78] sm:$0x11]  ;;  %v2138_v13 = vrot.slane %v2137_v58, 4  ;;  %v6289_v58 = vsel %vm5435_vm3, %v6130_v32, %v3198_v14  ;;  %v5005_v32 = vld [vmem:[%s6849_s3 + $0x7e4] ss:$8 sps:$4 sm:$0xff]  }
  0xd3   : > { %3512 = vmatprep.subr.bf16.mxu1 %v4963_v51  ;;  %v2140_v47 = vshll.u32 %v2031_v60, 16  ;;  %v2511_v50 = vrot.slane %v2031_v60, 5  ;;  %v4388_v51 = vcombine.low %v6164_v42, %v6171_v57  ;;  %v4966_v42 = vld [vmem:[%s6849_s3 + $0x644] ss:$8 sps:$4 sm:$0xff]   ;;  %v6235_v9 = vrot.slane %v2123_v45, 4 }
  0xd4   : > { %2401 = vmatmul.mubr.bf16.vlgmr.msra.gmra.mxu0 %v4386_v21  ;;  %v4993_v21 = vld [vmem:[%s6849_s3 + $0x704] ss:$8 sps:$4 sm:$0xff]   ;;  %v4982_v39 = vld [vmem:[%s6849_s3 + $0x610] ss:$8 sps:$4 sm:$0xff]   ;;  %v5003_v56 = vld [vmem:[%s6849_s3 + $0x7e0] ss:$8 sps:$4 sm:$0xff]  }
  0xd5   : > { %2780 = vmatmul.mubr.bf16.gmra.mxu1 %v4436_v4  ;;  %3068 = vmatpush1.bf16.msra.mxu0 %v4946_v5  ;;  %v2512_v53 = vsel %vm5785_vm6, %v4433_v27, %v2511_v50  ;;  %v2142_v57 = vrot.slane %v2140_v47, 5  ;;  %v4987_v4 = vld [vmem:[%s6849_s3 + $0x714] ss:$8 sps:$4 sm:$0xff]   ;;  %v2129_v5 = vsel %vm5435_vm3, %v6235_v9, %v2128_v35  ;;  %v4990_v60 = vld [vmem:[%s6849_s3 + $0x604] ss:$8 sps:$4 sm:$0xff]  }
  0xd6   : > { %3513 = vmatpush1.bf16.msra.mxu1 %v4961_v1  ;;  %2789 = vmatprep.mubr.bf16.mxu1 %v4439_v15  ;;  %v4441_v2 = vcombine.high %v2508_v43, %v2512_v53  ;;  %v4979_v1 = vld [vmem:[%s6849_s3 + $0x720] ss:$8 sps:$4 sm:$0xff]   ;;  %v4440_v15 = vcombine.low %v2508_v43, %v2512_v53  ;;  %v4984_v27 = vld [vmem:[%s6849_s3 + $0x614] ss:$8 sps:$4 sm:$0xff]   ;;  %v5009_v43 = vld [vmem:[%s6849_s3 + $0x7d0] ss:$8 sps:$4 sm:$0xff]  }
  0xd7   : > { %3514 = vmatprep.subr.bf16.mxu1 %v4969_v11  ;;  %2410 = vmatprep.mubr.bf16.mxu0 %v4389_v12  ;;  %v2143_v11 = vsel %vm5435_vm3, %v2138_v13, %v2142_v57  ;;  %v4988_v45 = vld [vmem:[%s6849_s3 + $0x600] ss:$8 sps:$4 sm:$0xff]   ;;  %v4996_v47 = vld [vmem:[%s6849_s3 + $0x6f4] ss:$8 sps:$4 sm:$0xff]   ;;  %v5017_v50 = vld [vmem:[%s6849_s3 + $0x7c4] ss:$8 sps:$4 sm:$0xff]  }
  0xd8   : > { %3069 = vmatprep.subr.bf16.mxu0 %v4954_v24  ;;  %v6260_v24 = vld [vmem:[#allocation2 + $0x90] sm:$0x11]  ;;  %v4393_v46 = vcombine.high %v2129_v5, %v2143_v11  ;;  %v3161_v35 = vld [vmem:[#allocation2 + $0x18] sm:$0x11]  ;;  %v5014_v57 = vld [vmem:[%s6849_s3 + $0x6c4] ss:$8 sps:$4 sm:$0xff]  }
  0xd9   : > { %3070 = vmatpush1.bf16.msra.mxu0 %v4952_v30  ;;  %v3182_v12 = vshll.u32 %v6260_v24, 16  ;;  %v5023_v53 = vld [vmem:[%s6849_s3 + $0x7b4] ss:$8 sps:$4 sm:$0xff]   ;;  %v5021_v13 = vld [vmem:[%s6849_s3 + $0x7b0] ss:$8 sps:$4 sm:$0xff]  }
  0xda   : > { %3515 = vmatpush1.bf16.msra.mxu1 %v4967_v8  ;;  %3071 = vmatprep.subr.bf16.mxu0 %v4960_v63  ;;  %v4976_v8 = vld [vmem:[%s6849_s3 + $0x620] ss:$8 sps:$4 sm:$0xff]   ;;  %v5011_v63 = vld [vmem:[%s6849_s3 + $0x7d4] ss:$8 sps:$4 sm:$0xff]  }
  0xdb   : > { %3516 = vmatprep.subr.bf16.mxu1 %v4975_v0  ;;  %v3184_v44 = vrot.slane %v3182_v12, 5  ;;  %v3600_v14 = vld [vmem:[#allocation2 + $0x8] sm:$0xee] }
  0xdc   : > { %2411 = vmatmul.mubr.bf16.gmra.mxu0 %v4388_v51  ;;  %v5002_v51 = vld [vmem:[%s6849_s3 + $0x6e4] ss:$8 sps:$4 sm:$0xff]  }
  0xdd   : > { %2790 = vmatmul.mubr.bf16.gmra.mxu1 %v4438_v6  ;;  %3072 = vmatpush1.bf16.msra.mxu0 %v4958_v54  ;;  %v6284_v0 = vsel %vm5435_vm3, %v6007_v10, %v3184_v44  ;;  %v4392_v10 = vcombine.low %v2129_v5, %v2143_v11  ;;  %v4475_v6 = vcombine.high %v5977_v31, %v6034_v28  ;;  %v5000_v54 = vld [vmem:[%s6849_s3 + $0x6e0] ss:$8 sps:$4 sm:$0xff]   ;;  %v5035_v5 = vld [vmem:[%s6849_s3 + $0x794] ss:$8 sps:$4 sm:$0xff]   ;;  %v3210_v11 = vshll.u32 %v3161_v35, 16 }
  0xde   : > { %3517 = vmatpush1.bf16.msra.mxu1 %v4973_v40  ;;  %2799 = vmatprep.mubr.bf16.mxu1 %v4441_v2  ;;  %v4515_v30 = vcombine.high %v6284_v0, %v6289_v58  ;;  %v4994_v40 = vld [vmem:[%s6849_s3 + $0x6f0] ss:$8 sps:$4 sm:$0xff]   ;;  %v5012_v44 = vld [vmem:[%s6849_s3 + $0x6c0] ss:$8 sps:$4 sm:$0xff]  }
  0xdf   : > { %3518 = vmatprep.subr.bf16.mxu1 %v4981_v52  ;;  %2420 = vmatprep.mubr.bf16.mxu0 %v4391_v38  ;;  %v5015_v52 = vld [vmem:[%s6849_s3 + $0x7c0] ss:$8 sps:$4 sm:$0xff]   ;;  %v5008_v38 = vld [vmem:[%s6849_s3 + $0x6d4] ss:$8 sps:$4 sm:$0xff]   ;;  %v5006_v2 = vld [vmem:[%s6849_s3 + $0x6d0] ss:$8 sps:$4 sm:$0xff]  }
  0xe0   : > { %3073 = vmatprep.subr.bf16.mxu0 %v4966_v42  ;;  %v5029_v42 = vld [vmem:[%s6849_s3 + $0x7a4] ss:$8 sps:$4 sm:$0xff]  }
  0xe1   : > { %3074 = vmatpush1.bf16.msra.mxu0 %v4964_v7  ;;  %v6361_v7 = vld [vmem:[#allocation2 + $0x68] sm:$0xff]  ;;  %v3602_v28 = vld [vmem:[#allocation2 + $0x20] sm:$0xee] }
  0xe2   : > { %3519 = vmatpush1.bf16.msra.mxu1 %v4979_v1  ;;  %3075 = vmatprep.subr.bf16.mxu0 %v4972_v33  ;;  %v3163_v1 = vld [vmem:[#allocation2 + $0x10] sm:$0x11]  ;;  %v3623_v33 = vrot.slane %v6260_v24, 5  ;;  %v3229_v12 = vshrl.u32 %v6361_v7, 16  ;;  %v3232_v23 = vshll.u32 %v6361_v7, 16 }
  0xe3   : > { %3520 = vmatprep.subr.bf16.mxu1 %v4987_v4  ;;  %v5027_v4 = vld [vmem:[%s6849_s3 + $0x7a0] ss:$8 sps:$4 sm:$0xff]  }
  0xe4   : > { %2421 = vmatmul.mubr.bf16.gmra.mxu0 %v4390_v17  ;;  %v3224_v17 = vshll.u32 %v3163_v1, 16  ;;  %v3601_v31 = vld [vmem:[#allocation2 + $0x68] sm:$0xee] }
  0xe5   : > { %2800 = vmatmul.mubr.bf16.gmra.mxu1 %v4440_v15  ;;  %3076 = vmatpush1.bf16.msra.mxu0 %v4970_v20  ;;  %v3597_v15 = vld [vmem:[#allocation2 + $0x28] sm:$0xee] }
  0xe6   : > { %3521 = vmatpush1.bf16.msra.mxu1 %v4985_v16  ;;  %2430 = vmatprep.mubr.bf16.mxu0 %v4393_v46  ;;  %v3627_v16 = vrot.slane %v6262_v18, 5  ;;  %v4554_v20 = vrot.slane %v3597_v15, 9  ;;  %v3631_v46 = vrot.slane %v3161_v35, 5  ;;  %v5032_v15 = vld [vmem:[%s6849_s3 + $0x694] ss:$8 sps:$4 sm:$0xff]  }
  0xe7   : > { %3522 = vmatprep.subr.bf16.mxu1 %v4993_v21  ;;  %3077 = vmatprep.subr.bf16.mxu0 %v4978_v25  ;;  %v3598_v21 = vld [vmem:[#allocation2 + $0x48] sm:$0xee]  ;;  %v3599_v25 = vld [vmem:[#allocation2 + $0x58] sm:$0xee] }
  0xe8   : > { %3540 = vmatprep.mubr.bf16.mxu1 %v4515_v30  ;;  %v4555_v24 = vrot.slane %v3598_v21, 9  ;;  %v6375_v18 = vsel %vm5785_vm6, %v4554_v20, %v3623_v33  ;;  %v5042_v21 = vld [vmem:[%s6849_s3 + $0x870] ss:$8 sps:$4 sm:$0xff]   ;;  %v5047_v20 = vld [vmem:[%s6849_s3 + $0x864] ss:$8 sps:$4 sm:$0xff]  }
  0xe9   : > { %3078 = vmatpush1.bf16.msra.mxu0 %v4976_v8  ;;  %v5020_v8 = vld [vmem:[%s6849_s3 + $0x6b4] ss:$8 sps:$4 sm:$0xff]  }
  0xea   : > { %3523 = vmatpush1.bf16.msra.mxu1 %v4991_v48  ;;  %3079 = vmatprep.subr.bf16.mxu0 %v4984_v27  ;;  %v3635_v48 = vrot.slane %v3163_v1, 5  ;;  %v3212_v27 = vrot.slane %v3210_v11, 5  ;;  %v6382_v30 = vsel %vm5785_vm6, %v4555_v24, %v3627_v16  ;;  %v4514_v16 = vcombine.low %v6284_v0, %v6289_v58  ;;  %v5030_v58 = vld [vmem:[%s6849_s3 + $0x690] ss:$8 sps:$4 sm:$0xff]  }
  0xeb   : > { %3524 = vmatprep.subr.bf16.mxu1 %v4999_v3  ;;  %v4556_v3 = vrot.slane %v3599_v25, 9 }
  0xec   : > { %2431 = vmatmul.mubr.bf16.gmra.mxu0 %v4392_v10  ;;  %v5033_v10 = vld [vmem:[%s6849_s3 + $0x790] ss:$8 sps:$4 sm:$0xff]  }
  0xed   : > { %3080 = vmatpush1.bf16.msra.mxu0 %v4982_v39  ;;  %3099 = vmatprep.mubr.bf16.mxu0 %v4475_v6  ;;  %v4562_v39 = vcombine.low %v6375_v18, %v6382_v30  ;;  %v4563_v6 = vcombine.high %v6375_v18, %v6382_v30 }
  0xee   : > { %3525 = vmatpush2.bf16.msra.mxu1 %v4997_v59  ;;  %3081 = vmatprep.subr.bf16.mxu0 %v4990_v60  ;;  %v4557_v59 = vrot.slane %v3600_v14, 9  ;;  %v6393_v60 = vsel %vm5785_vm6, %v4556_v3, %v3631_v46  ;;  %v6457_v14 = vld [vmem:[#allocation2 + $0x98] sm:$0x11]  ;;  %v5038_v3 = vld [vmem:[%s6849_s3 + $0x684] ss:$8 sps:$4 sm:$0xff]  }
  0xef   : > { %3526 = vmatprep.subr.bf16.mxu1 %v5005_v32  ;;  %v3226_v32 = vrot.slane %v3224_v17, 5 }
  0xf1   : > { %3082 = vmatpush1.bf16.msra.mxu0 %v4988_v45  ;;  %v3231_v45 = vrot.slane %v3229_v12, 4  ;;  %v3227_v35 = vsel %vm5435_vm3, %v6195_v22, %v3226_v32  ;;  %v5024_v22 = vld [vmem:[%s6849_s3 + $0x6a0] ss:$8 sps:$4 sm:$0xff]   ;;  %v5052_v32 = vld [vmem:[%s6849_s3 + $0x854] ss:$8 sps:$4 sm:$0xff]  }
  0xf2   : > { %3527 = vmatpush2.bf16.msra.mxu1 %v5003_v56  ;;  %3083 = vmatprep.subr.bf16.mxu0 %v4996_v47  ;;  %v5041_v56 = vld [vmem:[%s6849_s3 + $0x784] ss:$8 sps:$4 sm:$0xff]   ;;  %v3234_v47 = vrot.slane %v3232_v23, 5 }
  0xf3   : > { %3528 = vmatprep.subr.bf16.mxu1 %v5011_v63  ;;  %v6398_v63 = vld [vmem:[#allocation2 + $0x60] sm:$0x11] }
  0xf4   : > { %v3235_v33 = vor.u32 %v3234_v47, %v3231_v45 }
  0xf5   : > { %3084 = vmatpush2.bf16.msra.mxu0 %v4994_v40  ;;  %v6407_v40 = vld [vmem:[#allocation2 + $0x38] sm:$0x11] }
  0xf6   : > { %3529 = vmatpush2.bf16.msra.mxu1 %v5009_v43  ;;  %3085 = vmatprep.subr.bf16.mxu0 %v5002_v51  ;;  %v6402_v43 = vsel %vm5785_vm6, %v4557_v59, %v3635_v48  ;;  %v6409_v51 = vld [vmem:[#allocation2 + $0x50] sm:$0xff]  ;;  %v3236_v24 = vrot.slane %v3235_v33, 4  ;;  %v6452_v48 = vld [vmem:[#allocation2 + $0x78] sm:$0x11] }
  0xf7   : > { %3530 = vmatprep.subr.bf16.mxu1 %v5017_v50  ;;  %v5018_v50 = vld [vmem:[%s6849_s3 + $0x6b0] ss:$8 sps:$4 sm:$0xff]   ;;  %v3257_v11 = vshrl.u32 %v6409_v51, 16 }
  0xf9   : > { %3086 = vmatpush2.bf16.msra.mxu0 %v5000_v54  ;;  %v5026_v54 = vld [vmem:[%s6849_s3 + $0x6a4] ss:$8 sps:$4 sm:$0xff]  }
  0xfa   : > { %3531 = vmatpush2.bf16.msra.mxu1 %v5015_v52  ;;  %3087 = vmatprep.subr.bf16.mxu0 %v5008_v38  ;;  %v4565_v52 = vcombine.high %v6393_v60, %v6402_v43  ;;  %v6418_v38 = vld [vmem:[#allocation2] sm:$0xff] }
  0xfb   : > { %3532 = vmatprep.subr.bf16.mxu1 %v5023_v53  ;;  %v4564_v53 = vcombine.low %v6393_v60, %v6402_v43  ;;  %v3274_v1 = vshll.u32 %v6418_v38, 16 }
  0xfd   : > { %3088 = vmatpush2.bf16.msra.mxu0 %v5006_v2  ;;  %v5039_v2 = vld [vmem:[%s6849_s3 + $0x780] ss:$8 sps:$4 sm:$0xff]   ;;  %v3276_v23 = vrot.slane %v3274_v1, 5 }
  0xfe   : > { %3533 = vmatpush2.bf16.msra.mxu1 %v5021_v13  ;;  %3089 = vmatprep.subr.bf16.mxu0 %v5014_v57  ;;  %v3271_v13 = vshrl.u32 %v6418_v38, 16  ;;  %v3238_v57 = vshll.u32 %v6398_v63, 16 }
  0xff   : > { %3534 = vmatprep.subr.bf16.mxu1 %v5029_v42  ;;  %v3213_v42 = vsel %vm5435_vm3, %v6135_v62, %v3212_v27  ;;  %v3260_v62 = vshll.u32 %v6409_v51, 16  ;;  %v3266_v27 = vshll.u32 %v6452_v48, 16 }
 0x100   : > { %v3273_v17 = vrot.slane %v3271_v13, 4  ;;  %v4517_v46 = vcombine.high %v3213_v42, %v3227_v35  ;;  %v3240_v12 = vrot.slane %v3238_v57, 5  ;;  %v4516_v13 = vcombine.low %v3213_v42, %v3227_v35  ;;  %v5053_v42 = vld [vmem:[%s6849_s3 + $0x840] ss:$8 sps:$4 sm:$0xff]  }
 0x101   : > { %3090 = vmatpush2.bf16.msra.mxu0 %v5012_v44  ;;  %v3259_v44 = vrot.slane %v3257_v11, 4  ;;  %v3262_v0 = vrot.slane %v3260_v62, 5 }
 0x102   : > { %3535 = vmatpush2.bf16.msra.mxu1 %v5027_v4  ;;  %3091 = vmatprep.subr.bf16.mxu0 %v5020_v8  ;;  %v5044_v4 = vld [vmem:[%s6849_s3 + $0x874] ss:$8 sps:$4 sm:$0xff]   ;;  %v5045_v8 = vld [vmem:[%s6849_s3 + $0x860] ss:$8 sps:$4 sm:$0xff]   ;;  %v3277_v59 = vor.u32 %v3276_v23, %v3273_v17 }
 0x103   : > { %3536 = vmatprep.subr.bf16.mxu1 %v5035_v5  ;;  %v3252_v5 = vshll.u32 %v6407_v40, 16  ;;  %v3263_v47 = vor.u32 %v3262_v0, %v3259_v44  ;;  %v3639_v44 = vrot.slane %v6398_v63, 5  ;;  %v3643_v0 = vrot.slane %v6407_v40, 5  ;;  %v5066_v63 = vld [vmem:[%s6849_s3 + $0x814] ss:$8 sps:$4 sm:$0xff]  }
 0x104   : > { %v3278_v11 = vrot.slane %v3277_v59, 4 }
 0x105   : > { %3092 = vmatpush2.bf16.msra.mxu0 %v5018_v50  ;;  %v3254_v25 = vrot.slane %v3252_v5, 5  ;;  %v3280_v50 = vshll.u32 %v6457_v14, 16  ;;  %v3264_v33 = vrot.slane %v3263_v47, 4  ;;  %v3268_v5 = vrot.slane %v3266_v27, 5  ;;  %v5067_v47 = vld [vmem:[%s6849_s3 + $0x800] ss:$8 sps:$4 sm:$0xff]  }
 0x106   : > { %3537 = vmatpush2.bf16.msra.mxu1 %v5033_v10  ;;  %3093 = vmatprep.subr.bf16.mxu0 %v5026_v54  ;;  %v5036_v54 = vld [vmem:[%s6849_s3 + $0x680] ss:$8 sps:$4 sm:$0xff]  }
 0x107   : > { %3538 = vmatprep.subr.bf16.mxu1 %v5041_v56  ;;  %v3241_v56 = vsel %vm5435_vm3, %v3236_v24, %v3240_v12  ;;  %v3255_v45 = vsel %vm5435_vm3, %v6235_v9, %v3254_v25  ;;  %v5055_v9 = vld [vmem:[%s6849_s3 + $0x844] ss:$8 sps:$4 sm:$0xff]   ;;  %v3282_v62 = vrot.slane %v3280_v50, 5  ;;  %v5070_v50 = vld [vmem:[%s6849_s3 + $0x8f0] ss:$8 sps:$4 sm:$0xff]  }
 0x108   : > { %v4519_v57 = vcombine.high %v3241_v56, %v3255_v45 }
 0x109   : > { %3094 = vmatpush2.bf16.msra.mxu0 %v5024_v22 }
 0x10a   : > { %3539 = vmatpush2.bf16.msra.mxu1 %v5039_v2  ;;  %3095 = vmatprep.subr.bf16.mxu0 %v5032_v15  ;;  %v5050_v2 = vld [vmem:[%s6849_s3 + $0x850] ss:$8 sps:$4 sm:$0xff]   ;;  %v5060_v15 = vld [vmem:[%s6849_s3 + $0x834] ss:$8 sps:$4 sm:$0xff]  }
 0x10b   : > { %4616 = vmatprep.subr.bf16.mxu1 %v5044_v4 }
 0x10c   : > { %v1003_v35 = vpop.f32.mrf.mxu0 }
 0x10d   : > { %3541 = vmatmul.mubr.bf16.vlgmr.msra.gmra.mxu1 %v4514_v16  ;;  %v1276_v10 = vpop.f32.mrf.mxu1  ;;  %3096 = vmatpush2.bf16.msra.mxu0 %v5030_v58  ;;  %v3283_v16 = vsel %vm5435_vm3, %v3278_v11, %v3282_v62 }
 0x10e   : > { %4632 = vmatpush1.bf16.msra.mxu1 %v5042_v21  ;;  %3550 = vmatprep.mubr.bf16.mxu1 %v4517_v46  ;;  %v6497_v17 = vadd.f32 %v1276_v10, %v1003_v35  ;;  %v4518_v46 = vcombine.low %v3241_v56, %v3255_v45  ;;  %v5061_v10 = vld [vmem:[%s6849_s3 + $0x820] ss:$8 sps:$4 sm:$0xff]   ;;  %v5069_v56 = vld [vmem:[%s6849_s3 + $0x804] ss:$8 sps:$4 sm:$0xff]   ;;  %v4481_v45 = vcombine.high %v6409_v51, %v6418_v38  ;;  %v5084_v35 = vld [vmem:[%s6849_s3 + $0x8b4] ss:$8 sps:$4 sm:$0xff]  }
 0x10f   : > { %4617 = vmatprep.subr.bf16.mxu1 %v5047_v20  ;;  %3097 = vmatprep.subr.bf16.mxu0 %v5038_v3  ;;  %v1278_v1 = vpop.f32.mrf.mxu1  ;;  %v4479_v3 = vcombine.high %v6361_v7, %v6143_v49 }
 0x111   : > { %3098 = vmatpush2.bf16.msra.mxu0 %v5036_v54  ;;  %v1280_v22 = vpop.f32.mrf.mxu1  ;;  %v4480_v54 = vcombine.low %v6409_v51, %v6418_v38  ;;  %v5078_v51 = vld [vmem:[%s6849_s3 + $0x8d4] ss:$8 sps:$4 sm:$0xff]   ;;  %v5076_v38 = vld [vmem:[%s6849_s3 + $0x8d0] ss:$8 sps:$4 sm:$0xff]  }
 0x112   : > { %4633 = vmatpush1.bf16.msra.mxu1 %v5045_v8  ;;  %3877 = vmatprep.subr.bf16.mxu0 %v5044_v4  ;;  %v3269_v4 = vsel %vm5435_vm3, %v3264_v33, %v3268_v5  ;;  %v5081_v33 = vld [vmem:[%s6849_s3 + $0x8c4] ss:$8 sps:$4 sm:$0xff]  }
 0x113   : > { %4618 = vmatprep.subr.bf16.mxu1 %v5052_v32  ;;  %v4521_v23 = vcombine.high %v3269_v4, %v3283_v16  ;;  %v1282_v25 = vpop.f32.mrf.mxu1 }
 0x114   : > { %3100 = vmatmul.mubr.bf16.vlgmr.msra.gmra.mxu0 %v4474_v19  ;;  %v1005_v19 = vpop.f32.mrf.mxu0 }
 0x115   : > { %3551 = vmatmul.mubr.bf16.gmra.mxu1 %v4516_v13  ;;  %3878 = vmatpush1.bf16.msra.mxu0 %v5042_v21  ;;  %v6502_v12 = vadd.f32 %v1278_v1, %v1005_v19  ;;  %v4558_v21 = vrot.slane %v3601_v31, 9  ;;  %v5075_v13 = vld [vmem:[%s6849_s3 + $0x8e4] ss:$8 sps:$4 sm:$0xff]   ;;  %v5082_v31 = vld [vmem:[%s6849_s3 + $0x8b0] ss:$8 sps:$4 sm:$0xff]  }
 0x116   : > { %4634 = vmatpush1.bf16.msra.mxu1 %v5050_v2  ;;  %3560 = vmatprep.mubr.bf16.mxu1 %v4519_v57  ;;  %v1007_v24 = vpop.f32.mrf.mxu0  ;;  %v5073_v57 = vld [vmem:[%s6849_s3 + $0x8e0] ss:$8 sps:$4 sm:$0xff]  }
 0x117   : > { %4619 = vmatprep.subr.bf16.mxu1 %v5055_v9  ;;  %3109 = vmatprep.mubr.bf16.mxu0 %v4477_v34  ;;  %v5063_v34 = vld [vmem:[%s6849_s3 + $0x824] ss:$8 sps:$4 sm:$0xff]   ;;  %v6512_v58 = vadd.f32 %v1280_v22, %v1007_v24  ;;  %v6529_v40 = vsel %vm5785_vm6, %v4558_v21, %v3639_v44  ;;  %v3604_v21 = vld [vmem:[#allocation2 + $0x70] sm:$0xee] }
 0x118   : > { %3879 = vmatprep.subr.bf16.mxu0 %v5047_v20  ;;  %v4559_v20 = vrot.slane %v3602_v28, 9  ;;  %v1009_v27 = vpop.f32.mrf.mxu0 }
 0x119   : > { %3880 = vmatpush1.bf16.msra.mxu0 %v5045_v8  ;;  %v6516_v59 = vadd.f32 %v1282_v25, %v1009_v27  ;;  %v5090_v25 = vld [vmem:[%s6849_s3 + $0x894] ss:$8 sps:$4 sm:$0xff]  }
 0x11a   : > { %4635 = vmatpush1.bf16.msra.mxu1 %v5053_v42  ;;  %3881 = vmatprep.subr.bf16.mxu0 %v5052_v32  ;;  %v6533_v8 = vsel %vm5785_vm6, %v4559_v20, %v3643_v0  ;;  %v4520_v32 = vcombine.low %v3269_v4, %v3283_v16  ;;  %v5088_v0 = vld [vmem:[%s6849_s3 + $0x890] ss:$8 sps:$4 sm:$0xff]  }
 0x11b   : > { %4620 = vmatprep.subr.bf16.mxu1 %v5060_v15  ;;  %v4567_v29 = vcombine.high %v6529_v40, %v6533_v8 }
 0x11c   : > { %3110 = vmatmul.mubr.bf16.gmra.mxu0 %v4476_v36  ;;  %v4478_v36 = vcombine.low %v6361_v7, %v6143_v49  ;;  %v5072_v49 = vld [vmem:[%s6849_s3 + $0x8f4] ss:$8 sps:$4 sm:$0xff]  }
 0x11d   : > { %3561 = vmatmul.mubr.bf16.gmra.mxu1 %v4518_v46  ;;  %3882 = vmatpush1.bf16.msra.mxu0 %v5050_v2  ;;  %v5087_v46 = vld [vmem:[%s6849_s3 + $0x8a4] ss:$8 sps:$4 sm:$0xff]  }
 0x11e   : > { %4636 = vmatpush1.bf16.msra.mxu1 %v5058_v55  ;;  %3570 = vmatprep.mubr.bf16.mxu1 %v4521_v23  ;;  %v5085_v23 = vld [vmem:[%s6849_s3 + $0x8a0] ss:$8 sps:$4 sm:$0xff]  }
 0x11f   : > { %4621 = vmatprep.subr.bf16.mxu1 %v5063_v34  ;;  %3119 = vmatprep.mubr.bf16.mxu0 %v4479_v3 }
 0x120   : > { %3883 = vmatprep.subr.bf16.mxu0 %v5055_v9  ;;  %v1286_v7 = vpop.f32.mrf.mxu1 }
 0x121   : > { %3884 = vmatpush1.bf16.msra.mxu0 %v5053_v42 }
 0x122   : > { %4637 = vmatpush1.bf16.msra.mxu1 %v5061_v10  ;;  %3885 = vmatprep.subr.bf16.mxu0 %v5060_v15  ;;  %v1288_v2 = vpop.f32.mrf.mxu1 }
 0x123   : > { %4622 = vmatprep.subr.bf16.mxu1 %v5066_v63 }
 0x124   : > { %3120 = vmatmul.mubr.bf16.gmra.mxu0 %v4478_v36  ;;  %v1290_v1 = vpop.f32.mrf.mxu1 }
 0x125   : > { %3571 = vmatmul.mubr.bf16.gmra.mxu1 %v4520_v32  ;;  %3886 = vmatpush1.bf16.msra.mxu0 %v5058_v55  ;;  %v3647_v32 = vrot.slane %v6452_v48, 5 }
 0x126   : > { %4638 = vmatpush1.bf16.msra.mxu1 %v5064_v26  ;;  %3929 = vmatprep.mubr.bf16.mxu1 %v4567_v29  ;;  %v1292_v9 = vpop.f32.mrf.mxu1  ;;  %v3651_v29 = vrot.slane %v6457_v14, 5 }
 0x127   : > { %4623 = vmatprep.subr.bf16.mxu1 %v5069_v56  ;;  %3129 = vmatprep.mubr.bf16.mxu0 %v4481_v45 }
 0x128   : > { %3887 = vmatprep.subr.bf16.mxu0 %v5063_v34  ;;  %v3603_v34 = vld [vmem:[#allocation2 + $0x50] sm:$0xee] }
 0x129   : > { %3888 = vmatpush1.bf16.msra.mxu0 %v5061_v10  ;;  %v5093_v10 = vld [vmem:[%s6849_s3 + $0x884] ss:$8 sps:$4 sm:$0xff]  }
 0x12a   : > { %4639 = vmatpush1.bf16.msra.mxu1 %v5067_v47  ;;  %3889 = vmatprep.subr.bf16.mxu0 %v5066_v63  ;;  %v4560_v63 = vrot.slane %v3603_v34, 9 }
 0x12b   : > { %4624 = vmatprep.subr.bf16.mxu1 %v5072_v49 }
 0x12c   : > { %3130 = vmatmul.mubr.bf16.gmra.mxu0 %v4480_v54  ;;  %v3648_v48 = vsel %vm5785_vm6, %v4560_v63, %v3647_v32 }
 0x12d   : > { %3890 = vmatpush1.bf16.msra.mxu0 %v5064_v26  ;;  %3909 = vmatprep.mubr.bf16.mxu0 %v4563_v6  ;;  %v5079_v6 = vld [vmem:[%s6849_s3 + $0x8c0] ss:$8 sps:$4 sm:$0xff]   ;;  %v4561_v26 = vrot.slane %v3604_v21, 9 }
 0x12e   : > { %4640 = vmatpush2.bf16.msra.mxu1 %v5070_v50  ;;  %3891 = vmatprep.subr.bf16.mxu0 %v5069_v56 }
 0x12f   : > { %4625 = vmatprep.subr.bf16.mxu1 %v5075_v13  ;;  %v3652_v14 = vsel %vm5785_vm6, %v4561_v26, %v3651_v29 }
 0x131   : > { %3892 = vmatpush1.bf16.msra.mxu0 %v5067_v47  ;;  %v1013_v5 = vpop.f32.mrf.mxu0 }
 0x132   : > { %4641 = vmatpush2.bf16.msra.mxu1 %v5073_v57  ;;  %3893 = vmatprep.subr.bf16.mxu0 %v5072_v49  ;;  %v6576_v11 = vadd.f32 %v1286_v7, %v1013_v5  ;;  %v5091_v49 = vld [vmem:[%s6849_s3 + $0x880] ss:$8 sps:$4 sm:$0xff]   ;;  %v4568_v5 = vcombine.low %v3648_v48, %v3652_v14 }
 0x133   : > { %4626 = vmatprep.subr.bf16.mxu1 %v5078_v51  ;;  %v1015_v62 = vpop.f32.mrf.mxu0  ;;  %v1296_v42 = vpop.f32.mrf.mxu1 }
 0x134   : > { %v6584_v22 = vadd.f32 %v1288_v2, %v1015_v62  ;;  %v4569_v2 = vcombine.high %v3648_v48, %v3652_v14 }
 0x135   : > { %3894 = vmatpush2.bf16.msra.mxu0 %v5070_v50  ;;  %v1017_v15 = vpop.f32.mrf.mxu0  ;;  %v1298_v4 = vpop.f32.mrf.mxu1 }
 0x136   : > { %4642 = vmatpush2.bf16.msra.mxu1 %v5076_v38  ;;  %3895 = vmatprep.subr.bf16.mxu0 %v5075_v13  ;;  %v6586_v16 = vadd.f32 %v1290_v1, %v1017_v15  ;;  %v4566_v13 = vcombine.low %v6529_v40, %v6533_v8 }
 0x137   : > { %4627 = vmatprep.subr.bf16.mxu1 %v5081_v33  ;;  %v1019_v28 = vpop.f32.mrf.mxu0  ;;  %v1300_v19 = vpop.f32.mrf.mxu1 }
 0x138   : > { %v6594_v55 = vadd.f32 %v1292_v9, %v1019_v28 }
 0x139   : > { %3896 = vmatpush2.bf16.msra.mxu0 %v5073_v57  ;;  %v1302_v24 = vpop.f32.mrf.mxu1 }
 0x13a   : > { %4643 = vmatpush2.bf16.msra.mxu1 %v5079_v6  ;;  %3897 = vmatprep.subr.bf16.mxu0 %v5078_v51 }
 0x13b   : > { %4628 = vmatprep.subr.bf16.mxu1 %v5084_v35 }
 0x13d   : > { %3898 = vmatpush2.bf16.msra.mxu0 %v5076_v38  ;;  %v1023_v44 = vpop.f32.mrf.mxu0 }
 0x13e   : > { %4644 = vmatpush2.bf16.msra.mxu1 %v5082_v31  ;;  %3899 = vmatprep.subr.bf16.mxu0 %v5081_v33  ;;  %v6602_v20 = vadd.f32 %v1296_v42, %v1023_v44 }
 0x13f   : > { %4629 = vmatprep.subr.bf16.mxu1 %v5087_v46  ;;  %v1025_v3 = vpop.f32.mrf.mxu0  ;;  %v1306_v27 = vpop.f32.mrf.mxu1 }
 0x140   : > { %v6612_v36 = vadd.f32 %v1298_v4, %v1025_v3 }
 0x141   : > { %3900 = vmatpush2.bf16.msra.mxu0 %v5079_v6  ;;  %v1027_v56 = vpop.f32.mrf.mxu0  ;;  %v1308_v45 = vpop.f32.mrf.mxu1 }
 0x142   : > { %4645 = vmatpush2.bf16.msra.mxu1 %v5085_v23  ;;  %3901 = vmatprep.subr.bf16.mxu0 %v5084_v35  ;;  %v6614_v47 = vadd.f32 %v1300_v19, %v1027_v56 }
 0x143   : > { %4630 = vmatprep.subr.bf16.mxu1 %v5090_v25  ;;  %v1029_v7 = vpop.f32.mrf.mxu0  ;;  %v1310_v50 = vpop.f32.mrf.mxu1 }
 0x144   : > { %v6623_v54 = vadd.f32 %v1302_v24, %v1029_v7 }
 0x145   : > { %3902 = vmatpush2.bf16.msra.mxu0 %v5082_v31  ;;  %v1312_v57 = vpop.f32.mrf.mxu1 }
 0x146   : > { %4646 = vmatpush2.bf16.msra.mxu1 %v5088_v0  ;;  %3903 = vmatprep.subr.bf16.mxu0 %v5087_v46 }
 0x147   : > { %4631 = vmatprep.subr.bf16.mxu1 %v5093_v10 }
 0x149   : > { %3904 = vmatpush2.bf16.msra.mxu0 %v5085_v23 }
 0x14a   : > { %4647 = vmatpush2.bf16.msra.mxu1 %v5091_v49  ;;  %3905 = vmatprep.subr.bf16.mxu0 %v5090_v25 }
 0x14c   : > { %v1033_v51 = vpop.f32.mrf.mxu0 }
 0x14d   : > { %3930 = vmatmul.mubr.bf16.vlgmr.msra.gmra.mxu1 %v4566_v13  ;;  %v1961_v1 = vpop.f32.mrf.mxu1  ;;  %v6627_v9 = vadd.f32 %v1306_v27, %v1033_v51  ;;  %3906 = vmatpush2.bf16.msra.mxu0 %v5088_v0 }
 0x14e   : > { %3939 = vmatprep.mubr.bf16.mxu1 %v4569_v2  ;;  %v1035_v61 = vpop.f32.mrf.mxu0  ;;  %3907 = vmatprep.subr.bf16.mxu0 %v5093_v10 }
 0x14f   : > { %v1963_v38 = vpop.f32.mrf.mxu1  ;;  %v1309_v6 = vadd.f32 %v1308_v45, %v1035_v61 }
 0x150   : > { %v1037_v62 = vpop.f32.mrf.mxu0 }
 0x151   : > { %v1965_v33 = vpop.f32.mrf.mxu1  ;;  %v1311_v8 = vadd.f32 %v1310_v50, %v1037_v62  ;;  %3908 = vmatpush2.bf16.msra.mxu0 %v5091_v49 }
 0x152   : > { %v1039_v42 = vpop.f32.mrf.mxu0 }
 0x153   : > { %v1967_v40 = vpop.f32.mrf.mxu1  ;;  %v1313_v15 = vadd.f32 %v1312_v57, %v1039_v42 }
 0x154   : > { %v1632_v4 = vpop.f32.mrf.mxu0  ;;  %3910 = vmatmul.mubr.bf16.vlgmr.msra.gmra.mxu0 %v4562_v39 }
 0x155   : > { %3940 = vmatmul.mubr.bf16.gmra.mxu1 %v4568_v5  ;;  %v1971_v35 = vpop.f32.mrf.mxu1  ;;  %v1671_v28 = vadd.f32 %v1632_v4, %v6497_v17  ;;  %3919 = vmatprep.mubr.bf16.mxu0 %v4565_v52 }
 0x156   : > { %v1634_v19 = vpop.f32.mrf.mxu0 }
 0x157   : > { %v1973_v31 = vpop.f32.mrf.mxu1  ;;  %v1672_v23 = vadd.f32 %v1634_v19, %v6502_v12  ;;  %v2000_v24 = vadd.f32 %v1961_v1, %v1671_v28 }
 0x158   : > { %v1636_v25 = vpop.f32.mrf.mxu0 }
 0x159   : > { %v1975_v46 = vpop.f32.mrf.mxu1  ;;  %v1673_v21 = vadd.f32 %v1636_v25, %v6512_v58  ;;  %v2001_v44 = vadd.f32 %v1963_v38, %v1672_v23 }
 0x15a   : > { %v1638_v0 = vpop.f32.mrf.mxu0 }
 0x15b   : > { %v1977_v34 = vpop.f32.mrf.mxu1  ;;  %v1674_v30 = vadd.f32 %v1638_v0, %v6516_v59  ;;  %v2002_v39 = vadd.f32 %v1965_v33, %v1673_v21 }
 0x15c   : > { %v1642_v17 = vpop.f32.mrf.mxu0  ;;  %3920 = vmatmul.mubr.bf16.gmra.mxu0 %v4564_v53 }
 0x15d   : > { %v1981_v18 = vpop.f32.mrf.mxu1  ;;  %v1675_v3 = vadd.f32 %v1642_v17, %v6576_v11  ;;  %v2003_v12 = vadd.f32 %v1967_v40, %v1674_v30 }
 0x15e   : > { %v1644_v27 = vpop.f32.mrf.mxu0 }
 0x15f   : > { %v1983_v52 = vpop.f32.mrf.mxu1  ;;  %v1676_v63 = vadd.f32 %v1644_v27, %v6584_v22  ;;  %v2004_v58 = vadd.f32 %v1971_v35, %v1675_v3 }
 0x160   : > { %v1646_v32 = vpop.f32.mrf.mxu0 }
 0x161   : > { %v1985_v10 = vpop.f32.mrf.mxu1  ;;  %v1677_v26 = vadd.f32 %v1646_v32, %v6586_v16  ;;  %v2005_v29 = vadd.f32 %v1973_v31, %v1676_v63 }
 0x162   : > { %v1648_v59 = vpop.f32.mrf.mxu0 }
 0x163   : > { %v1987_v56 = vpop.f32.mrf.mxu1  ;;  %v1678_v45 = vadd.f32 %v1648_v59, %v6594_v55  ;;  %v2006_v49 = vadd.f32 %v1975_v46, %v1677_v26 }
 0x164   : > { %v1652_v60 = vpop.f32.mrf.mxu0 }
 0x165   : > { %v1679_v43 = vadd.f32 %v1652_v60, %v6602_v20  ;;  %v2007_v53 = vadd.f32 %v1977_v34, %v1678_v45  ;;  %v1991_v7 = vpop.f32.mrf.mxu1 }
 0x166   : > { %v1654_v11 = vpop.f32.mrf.mxu0 }
 0x167   : > { %v1680_v50 = vadd.f32 %v1654_v11, %v6612_v36  ;;  %v6648_v48 = vadd.f32 %v1981_v18, %v1679_v43  ;;  %v1993_v2 = vpop.f32.mrf.mxu1 }
 0x168   : > { %v1656_v22 = vpop.f32.mrf.mxu0 }
 0x169   : > { %v1681_v14 = vadd.f32 %v1656_v22, %v6614_v47  ;;  %v6651_v16 = vadd.f32 %v1983_v52, %v1680_v50  ;;  %v1995_v36 = vpop.f32.mrf.mxu1 }
 0x16a   : > { %v1658_v13 = vpop.f32.mrf.mxu0 }
 0x16b   : > { %v1682_v55 = vadd.f32 %v1658_v13, %v6623_v54  ;;  %v6654_v57 = vadd.f32 %v1985_v10, %v1681_v14  ;;  %v1997_v42 = vpop.f32.mrf.mxu1 }
 0x16c   : > { %v1662_v1 = vpop.f32.mrf.mxu0 }
 0x16d   : > { %v1683_v20 = vadd.f32 %v1662_v1, %v6627_v9  ;;  %v6657_v51 = vadd.f32 %v1987_v56, %v1682_v55 }
 0x16e   : > { %v1664_v38 = vpop.f32.mrf.mxu0 }
 0x16f   : > { %v1684_v61 = vadd.f32 %v1664_v38, %v1309_v6  ;;  %v6659_v33 = vadd.f32 %v1991_v7, %v1683_v20 }
 0x170   : > { %v1666_v5 = vpop.f32.mrf.mxu0 }
 0x171   : > { %v1685_v47 = vadd.f32 %v1666_v5, %v1311_v8  ;;  %v6661_v62 = vadd.f32 %v1993_v2, %v1684_v61 }
 0x172   : > { %v1668_v40 = vpop.f32.mrf.mxu0 }
 0x173   : > { %v1686_v35 = vadd.f32 %v1668_v40, %v1313_v15  ;;  %v6663_v54 = vadd.f32 %v1995_v36, %v1685_v47 }
 0x175   : > { %v6665_v4 = vadd.f32 %v1997_v42, %v1686_v35 }
 0x18d   : > { %v2771_v31 = vpop.f32.mrf.mxu1 }
 0x18f   : > { %v2773_v9 = vpop.f32.mrf.mxu1 }
 0x191   : > { %v2775_v28 = vpop.f32.mrf.mxu1 }
 0x193   : > { %v2777_v19 = vpop.f32.mrf.mxu1 }
 0x194   : > { %v2402_v46 = vpop.f32.mrf.mxu0 }
 0x195   : > { %v2441_v23 = vadd.f32 %v2402_v46, %v2000_v24  ;;  %v2781_v25 = vpop.f32.mrf.mxu1 }
 0x196   : > { %v2404_v6 = vpop.f32.mrf.mxu0 }
 0x197   : > { %v2442_v34 = vadd.f32 %v2404_v6, %v2001_v44  ;;  %v6667_v21 = vadd.f32 %v2771_v31, %v2441_v23  ;;  %v2783_v30 = vpop.f32.mrf.mxu1 }
 0x198   : > { %v2406_v8 = vpop.f32.mrf.mxu0 }
 0x199   : > { %v2443_v0 = vadd.f32 %v2406_v8, %v2002_v39  ;;  %v6669_v18 = vadd.f32 %v2773_v9, %v2442_v34  ;;  %v2785_v24 = vpop.f32.mrf.mxu1 }
 0x19a   : > { %v2408_v15 = vpop.f32.mrf.mxu0 }
 0x19b   : > { %v2444_v17 = vadd.f32 %v2408_v15, %v2003_v12  ;;  %v6671_v52 = vadd.f32 %v2775_v28, %v2443_v0  ;;  %v2787_v45 = vpop.f32.mrf.mxu1 }
 0x19c   : > { %v2412_v3 = vpop.f32.mrf.mxu0 }
 0x19d   : > { %v2445_v27 = vadd.f32 %v2412_v3, %v2004_v58  ;;  %v6673_v10 = vadd.f32 %v2777_v19, %v2444_v17  ;;  %v2791_v11 = vpop.f32.mrf.mxu1 }
 0x19e   : > { %v2414_v63 = vpop.f32.mrf.mxu0 }
 0x19f   : > { %v2446_v32 = vadd.f32 %v2414_v63, %v2005_v29  ;;  %v6675_v26 = vadd.f32 %v2781_v25, %v2445_v27  ;;  %v2793_v58 = vpop.f32.mrf.mxu1 }
 0x1a0   : > { %v2416_v44 = vpop.f32.mrf.mxu0 }
 0x1a1   : > { %v2447_v59 = vadd.f32 %v2416_v44, %v2006_v49  ;;  %v6677_v56 = vadd.f32 %v2783_v30, %v2446_v32  ;;  %v2795_v50 = vpop.f32.mrf.mxu1 }
 0x1a2   : > { %v2418_v39 = vpop.f32.mrf.mxu0 }
 0x1a3   : > { %v2448_v60 = vadd.f32 %v2418_v39, %v2007_v53  ;;  %v6679_v43 = vadd.f32 %v2785_v24, %v2447_v59  ;;  %v2797_v14 = vpop.f32.mrf.mxu1 }
 0x1a4   : > { %v2422_v7 = vpop.f32.mrf.mxu0 }
 0x1a5   : > { %6865 = vst [vmem:[#allocation4_spill] sm:$0xff] %v6679_v43  ;;  %v6681_v12 = vadd.f32 %v2787_v45, %v2448_v60  ;;  %v2801_v13 = vpop.f32.mrf.mxu1  ;;  %v2449_v32 = vadd.f32 %v2422_v7, %v6648_v48 }
 0x1a6   : > { %v2424_v22 = vpop.f32.mrf.mxu0 }
 0x1a7   : > { %6866 = vst [vmem:[#allocation5_spill] sm:$0xff] %v6681_v12  ;;  %v2803_v55 = vpop.f32.mrf.mxu1  ;;  %v2450_v39 = vadd.f32 %v2424_v22, %v6651_v16  ;;  %v2818_v45 = vadd.f32 %v2791_v11, %v2449_v32 }
 0x1a8   : > { %v2426_v29 = vpop.f32.mrf.mxu0 }
 0x1a9   : > { %v6683_v1 = vpop.f32.mrf.mxu1  ;;  %v2451_v60 = vadd.f32 %v2426_v29, %v6654_v57 }
 0x1aa   : > { %v2428_v2 = vpop.f32.mrf.mxu0 }
 0x1ab   : > { %v6685_v38 = vpop.f32.mrf.mxu1  ;;  %v2820_v12 = vadd.f32 %v2795_v50, %v2451_v60 }
 0x1ac   : > { %v2432_v49 = vpop.f32.mrf.mxu0 }
 0x1ae   : > { %v2434_v20 = vpop.f32.mrf.mxu0 }
 0x1af   : > { %v2454_v48 = vadd.f32 %v2434_v20, %v6661_v62 }
 0x1b0   : > { %v2436_v36 = vpop.f32.mrf.mxu0 }
 0x1b1   : > { %v2455_v57 = vadd.f32 %v2436_v36, %v6663_v54  ;;  %v2823_v22 = vadd.f32 %v2803_v55, %v2454_v48 }
 0x1b2   : > { %v2438_v5 = vpop.f32.mrf.mxu0 }
 0x1b3   : > { %v2824_v20 = vadd.f32 %v6683_v1, %v2455_v57 }
 0x1cd   : > { %v6687_v53 = vpop.f32.mrf.mxu1 }
 0x1cf   : > { %v6689_v61 = vpop.f32.mrf.mxu1 }
 0x1d1   : > { %v6691_v40 = vpop.f32.mrf.mxu1 }
 0x1d3   : > { %v6693_v35 = vpop.f32.mrf.mxu1 }
 0x1d4   : > { %v3101_v47 = vpop.f32.mrf.mxu0 }
 0x1d5   : > { %v6697_v9 = vpop.f32.mrf.mxu1  ;;  %v3140_v36 = vadd.f32 %v3101_v47, %v6667_v21 }
 0x1d6   : > { %v3103_v42 = vpop.f32.mrf.mxu0  ;;  %6867 = vst [vmem:[#allocation6_spill] sm:$0xff] %v6697_v9 }
 0x1d7   : > { %v6701_v19 = vpop.f32.mrf.mxu1 }
 0x1d8   : > { %v6695_v31 = vpop.f32.mrf.mxu0  ;;  %6868 = vst [vmem:[#allocation7_spill] sm:$0xff] %v6701_v19  ;;  %v2453_v19 = vadd.f32 %v2432_v49, %v6659_v33 }
 0x1d9   : > { %v6705_v23 = vpop.f32.mrf.mxu1  ;;  %v3142_v21 = vadd.f32 %v6695_v31, %v6671_v52 }
 0x1da   : > { %v6699_v28 = vpop.f32.mrf.mxu0  ;;  %6869 = vst [vmem:[#allocation8_spill] sm:$0xff] %v6705_v23  ;;  %v2452_v23 = vadd.f32 %v2428_v2, %v6657_v51 }
 0x1db   : > { %v6709_v25 = vpop.f32.mrf.mxu1  ;;  %v3583_v31 = vadd.f32 %v6691_v40, %v3142_v21 }
 0x1dc   : > { %v6703_v46 = vpop.f32.mrf.mxu0  ;;  %6870 = vst [vmem:[#allocation9_spill] sm:$0xff] %v6709_v25  ;;  %v2819_v25 = vadd.f32 %v2793_v58, %v2450_v39  ;;  %v2821_v9 = vadd.f32 %v2797_v14, %v2452_v23  ;;  %v2822_v58 = vadd.f32 %v2801_v13, %v2453_v19 }
 0x1dd   : > { %v3562_v8 = vpop.f32.mrf.mxu1 }
 0x1de   : > { %v6707_v6 = vpop.f32.mrf.mxu0 }
 0x1df   : > { %v3564_v15 = vpop.f32.mrf.mxu1 }
 0x1e0   : > { %v6711_v34 = vpop.f32.mrf.mxu0 }
 0x1e1   : > { %6871 = vst [vmem:[#allocation10_spill] sm:$0xff] %v6711_v34  ;;  %v3566_v17 = vpop.f32.mrf.mxu1 }
 0x1e2   : > { %v6713_v0 = vpop.f32.mrf.mxu0 }
 0x1e3   : > { %6872 = vst [vmem:[#allocation11_spill] sm:$0xff] %v6713_v0  ;;  %v3568_v27 = vpop.f32.mrf.mxu1 }
 0x1e4   : > { %v3121_v30 = vpop.f32.mrf.mxu0 }
 0x1e5   : > { %v3572_v24 = vpop.f32.mrf.mxu1  ;;  %v3148_v0 = vadd.f32 %v3121_v30, %v2818_v45  ;;  %v6874_v45 = vld [vmem:[#allocation4_spill] sm:$0xff] }
 0x1e6   : > { %v3123_v3 = vpop.f32.mrf.mxu0 }
 0x1e7   : > { %v3574_v59 = vpop.f32.mrf.mxu1  ;;  %v3149_v34 = vadd.f32 %v3123_v3, %v2819_v25  ;;  %v3589_v16 = vadd.f32 %v3562_v8, %v3148_v0  ;;  %v3581_v8 = vadd.f32 %v6687_v53, %v3140_v36 }
 0x1e8   : > { %v3125_v63 = vpop.f32.mrf.mxu0  ;;  %v6875_v60 = vld [vmem:[#allocation10_spill] sm:$0xff] }
 0x1e9   : > { %v3576_v41 = vpop.f32.mrf.mxu1  ;;  %v3150_v11 = vadd.f32 %v3125_v63, %v2820_v12  ;;  %v3590_v33 = vadd.f32 %v3564_v15, %v3149_v34  ;;  %v2456_v12 = vadd.f32 %v2438_v5, %v6665_v4  ;;  %v3141_v4 = vadd.f32 %v3103_v42, %v6669_v18 }
 0x1ea   : > { %v3127_v44 = vpop.f32.mrf.mxu0  ;;  %v3146_v48 = vadd.f32 %v6875_v60, %v6874_v45  ;;  %v6878_v57 = vld [vmem:[#allocation11_spill] sm:$0xff] }
 0x1eb   : > { %v3578_v43 = vpop.f32.mrf.mxu1  ;;  %v3151_v50 = vadd.f32 %v3127_v44, %v2821_v9  ;;  %v3591_v54 = vadd.f32 %v3566_v17, %v3150_v11  ;;  %v2825_v23 = vadd.f32 %v6685_v38, %v2456_v12  ;;  %v3582_v38 = vadd.f32 %v6689_v61, %v3141_v4  ;;  %v6877_v11 = vld [vmem:[#allocation5_spill] sm:$0xff] }
 0x1ec   : > { %v3131_v37 = vpop.f32.mrf.mxu0  ;;  %v3143_v17 = vadd.f32 %v6699_v28, %v6673_v10  ;;  %v3144_v61 = vadd.f32 %v6703_v46, %v6675_v26  ;;  %v3145_v44 = vadd.f32 %v6707_v6, %v6677_v56  ;;  %v6876_v6 = vld [vmem:[#allocation7_spill] sm:$0xff] }
 0x1ed   : > { %v3152_v2 = vadd.f32 %v3131_v37, %v2822_v58  ;;  %v3592_v9 = vadd.f32 %v3568_v27, %v3151_v50 }
 0x1ee   : > { %v3133_v7 = vpop.f32.mrf.mxu0  ;;  %v3584_v40 = vadd.f32 %v6693_v35, %v3143_v17 }
 0x1ef   : > { %v3153_v19 = vadd.f32 %v3133_v7, %v2823_v22  ;;  %v3593_v25 = vadd.f32 %v3572_v24, %v3152_v2  ;;  %v6879_v22 = vld [vmem:[#allocation8_spill] sm:$0xff]  ;;  %v6880_v2 = vld [vmem:[#allocation9_spill] sm:$0xff] }
 0x1f0   : > { %v3135_v14 = vpop.f32.mrf.mxu0 }
 0x1f1   : > { %v3154_v34 = vadd.f32 %v3135_v14, %v2824_v20  ;;  %v3594_v0 = vadd.f32 %v3574_v59, %v3153_v19  ;;  %v6873_v59 = vld [vmem:[#allocation6_spill] sm:$0xff]  ;;  %v3587_v14 = vadd.f32 %v6879_v22, %v3146_v48 }
 0x1f2   : > { %v3137_v37 = vpop.f32.mrf.mxu0  ;;  %v3585_v39 = vadd.f32 %v6873_v59, %v3144_v61  ;;  %v5104_v61 = vmov 1966171168  }
 0x1f3   : > { %v3155_v15 = vadd.f32 %v3137_v37, %v2825_v23  ;;  %v3595_v3 = vadd.f32 %v3576_v41, %v3154_v34 }
 0x1f5   : > { %v3596_v24 = vadd.f32 %v3578_v43, %v3155_v15 }
 0x20d   : > { %v3931_v51 = vpop.f32.mrf.mxu1 }
 0x20e   : > { %v6729_v62 = vadd.f32 %v3931_v51, %v3589_v16  ;;  %v3586_v16 = vadd.f32 %v6876_v6, %v3145_v44  ;;  %v3147_v51 = vadd.f32 %v6878_v57, %v6877_v11 }
 0x20f   : > { %v3933_v29 = vpop.f32.mrf.mxu1 }
 0x210   : > { %3974 = vst [vmem:[%s6727_s14 + $0x40] sm:$0xff] %v6729_v62  ;;  %v6734_v49 = vadd.f32 %v3933_v29, %v3590_v33  ;;  %v3588_v20 = vadd.f32 %v6880_v2, %v3147_v51 }
 0x211   : > { %v3935_v13 = vpop.f32.mrf.mxu1 }
 0x212   : > { %3975 = vst [vmem:[%s6727_s14 + $0x48] sm:$0xff] %v6734_v49  ;;  %v6740_v55 = vadd.f32 %v3935_v13, %v3591_v54 }
 0x213   : > { %v3937_v5 = vpop.f32.mrf.mxu1 }
 0x214   : > { %3976 = vst [vmem:[%s6727_s14 + $0x50] sm:$0xff] %v6740_v55  ;;  %v6746_v1 = vadd.f32 %v3937_v5, %v3592_v9  ;;  %v3911_v42 = vpop.f32.mrf.mxu0 }
 0x215   : > { %v3941_v47 = vpop.f32.mrf.mxu1  ;;  %v6758_v52 = vadd.f32 %v3911_v42, %v3581_v8 }
 0x216   : > { %3977 = vst [vmem:[%s6727_s14 + $0x58] sm:$0xff] %v6746_v1  ;;  %v6753_v18 = vadd.f32 %v3941_v47, %v3593_v25  ;;  %v3913_v27 = vpop.f32.mrf.mxu0 }
 0x217   : > { %v3943_v30 = vpop.f32.mrf.mxu1  ;;  %3966 = vst [vmem:[%s6727_s14] sm:$0xff] %v6758_v52  ;;  %v6769_v41 = vadd.f32 %v3913_v27, %v3582_v38 }
 0x218   : > { %3978 = vst [vmem:[%s6727_s14 + $0x60] sm:$0xff] %v6753_v18  ;;  %v6762_v53 = vadd.f32 %v3943_v30, %v3594_v0  ;;  %v3915_v28 = vpop.f32.mrf.mxu0 }
 0x219   : > { %v3945_v63 = vpop.f32.mrf.mxu1  ;;  %3967 = vst [vmem:[%s6727_s14 + $0x8] sm:$0xff] %v6769_v41  ;;  %v3952_v26 = vadd.f32 %v3915_v28, %v3583_v31 }
 0x21a   : > { %3979 = vst [vmem:[%s6727_s14 + $0x68] sm:$0xff] %v6762_v53  ;;  %v6773_v10 = vadd.f32 %v3945_v63, %v3595_v3  ;;  %v3917_v46 = vpop.f32.mrf.mxu0 }
 0x21b   : > { %v3947_v32 = vpop.f32.mrf.mxu1  ;;  %3968 = vst [vmem:[%s6727_s14 + $0x10] sm:$0xff] %v3952_v26  ;;  %v3982_v35 = vadd.f32 %v3952_v26, %v6758_v52  ;;  %v6789_v7 = vadd.f32 %v3917_v46, %v3584_v40 }
 0x21c   : > { %3980 = vst [vmem:[%s6727_s14 + $0x70] sm:$0xff] %v6773_v10  ;;  %v6782_v43 = vadd.f32 %v3947_v32, %v3596_v24  ;;  %v3921_v56 = vpop.f32.mrf.mxu0  ;;  %v4072_v24 = vunpack.c.l.s4 %v5104_v61 }
 0x21d   : > { %3969 = vst [vmem:[%s6727_s14 + $0x18] sm:$0xff] %v6789_v7  ;;  %v3995_v58 = vadd.f32 %v6789_v7, %v6769_v41  ;;  %v3954_v33 = vadd.f32 %v3921_v56, %v3585_v39 }
 0x21e   : > { %3981 = vst [vmem:[%s6727_s14 + $0x78] sm:$0xff] %v6782_v43  ;;  %v3923_v50 = vpop.f32.mrf.mxu0  ;;  %v4073_v46 = vunpack.c.0.s8 %v4072_v24 }
 0x21f   : > { %3970 = vst [vmem:[%s6727_s14 + $0x20] sm:$0xff] %v3954_v33  ;;  %v3983_v29 = vadd.f32 %v3982_v35, %v3954_v33  ;;  %v3955_v12 = vadd.f32 %v3923_v50, %v3586_v16 }
 0x220   : > { %v3925_v54 = vpop.f32.mrf.mxu0 }
 0x221   : > { %3971 = vst [vmem:[%s6727_s14 + $0x28] sm:$0xff] %v3955_v12  ;;  %v3996_v13 = vadd.f32 %v3995_v58, %v3955_v12  ;;  %v3956_v36 = vadd.f32 %v3925_v54, %v3587_v14 }
 0x222   : > { %v3927_v9 = vpop.f32.mrf.mxu0 }
 0x223   : > { %3972 = vst [vmem:[%s6727_s14 + $0x30] sm:$0xff] %v3956_v36  ;;  %v3984_v19 = vadd.f32 %v3983_v29, %v3956_v36  ;;  %v3957_v4 = vadd.f32 %v3927_v9, %v3588_v20 }
 0x225   : > { %v3985_v37 = vadd.f32 %v3984_v19, %v6729_v62  ;;  %3973 = vst [vmem:[%s6727_s14 + $0x38] sm:$0xff] %v3957_v4  ;;  %v3997_v5 = vadd.f32 %v3996_v13, %v3957_v4 }
 0x227   : > { %v3986_v23 = vadd.f32 %v3985_v37, %v6740_v55  ;;  %v3998_v25 = vadd.f32 %v3997_v5, %v6734_v49 }
 0x229   : > { %v3987_v34 = vadd.f32 %v3986_v23, %v6753_v18  ;;  %v3999_v21 = vadd.f32 %v3998_v25, %v6746_v1 }
 0x22b   : > { %v3988_v47 = vadd.f32 %v3987_v34, %v6773_v10  ;;  %v4000_v8 = vadd.f32 %v3999_v21, %v6762_v53 }
 0x22d   : > { %v3989_v0 = vrot.slane %v3988_v47, 4  ;;  %v4001_v15 = vadd.f32 %v4000_v8, %v6782_v43 }
 0x22f   : > { %v3990_v38 = vadd.f32 %v3989_v0, %v3988_v47  ;;  %v4002_v42 = vrot.slane %v4001_v15, 4 }
 0x231   : > { %v3991_v30 = vrot.slane %v3990_v38, 2  ;;  %v4003_v17 = vadd.f32 %v4002_v42, %v4001_v15 }
 0x233   : > { %v3992_v3 = vadd.f32 %v3991_v30, %v3990_v38  ;;  %v4004_v31 = vrot.slane %v4003_v17, 2 }
 0x235   : > { %v3993_v27 = vrot.slane %v3992_v3, 1  ;;  %v4005_v63 = vadd.f32 %v4004_v31, %v4003_v17 }
 0x237   : > { %v3994_v28 = vadd.f32 %v3993_v27, %v3992_v3  ;;  %v4006_v32 = vrot.slane %v4005_v63, 1 }
 0x239   : > { %v4008_v40 = vmul.f32 0.015625, %v3994_v28  ;;  %v4007_v44 = vadd.f32 %v4006_v32, %v4005_v63 }
 0x23b   : > { %v4010_v59 = vsub.f32 %v6758_v52, %v4008_v40  ;;  %v4012_v39 = vsub.f32 %v3952_v26, %v4008_v40  ;;  %v4014_v45 = vsub.f32 %v3954_v33, %v4008_v40  ;;  %v4016_v60 = vsub.f32 %v3956_v36, %v4008_v40  ;;  %v6881_v26 = vld [vmem:[#allocation3_spill] sm:$0xff] }
 0x23c   : > { %v4018_v48 = vsub.f32 %v6729_v62, %v4008_v40  ;;  %v4020_v35 = vsub.f32 %v6740_v55, %v4008_v40  ;;  %v4022_v56 = vsub.f32 %v6753_v18, %v4008_v40  ;;  %v4024_v6 = vsub.f32 %v6773_v10, %v4008_v40 }
 0x23d   : > { %v4026_v16 = vmul.f32 %v4010_v59, %v4010_v59  ;;  %v4028_v11 = vmul.f32 %v4012_v39, %v4012_v39  ;;  %v4030_v57 = vmul.f32 %v4014_v45, %v4014_v45  ;;  %v4009_v58 = vmul.f32 0.015625, %v4007_v44 }
 0x23e   : > { %v4070_v50 = vcombine.low %v3994_v28, %v4007_v44  ;;  %v4032_v22 = vmul.f32 %v4016_v60, %v4016_v60  ;;  %v4034_v52 = vmul.f32 %v4018_v48, %v4018_v48  ;;  %v4076_v33 = vsub.s32 %v4073_v46, %v6881_v26 }
 0x23f   : > { %v4042_v51 = vadd.f32 %v4028_v11, %v4026_v16  ;;  %v4011_v62 = vsub.f32 %v6769_v41, %v4009_v58  ;;  %v4013_v55 = vsub.f32 %v6789_v7, %v4009_v58  ;;  %v4015_v29 = vsub.f32 %v3955_v12, %v4009_v58 }
 0x240   : > { %v4017_v18 = vsub.f32 %v3957_v4, %v4009_v58  ;;  %v4019_v10 = vsub.f32 %v6734_v49, %v4009_v58  ;;  %v4021_v54 = vsub.f32 %v6746_v1, %v4009_v58  ;;  %v4023_v2 = vsub.f32 %v6762_v53, %v4009_v58 }
 0x241   : > { %v4043_v14 = vadd.f32 %v4042_v51, %v4030_v57  ;;  %v4025_v13 = vsub.f32 %v6782_v43, %v4009_v58  ;;  %v4027_v36 = vmul.f32 %v4011_v62, %v4011_v62  ;;  %v4029_v9 = vmul.f32 %v4013_v55, %v4013_v55 }
 0x242   : > { %v4036_v19 = vmul.f32 %v4020_v35, %v4020_v35  ;;  %v4031_v5 = vmul.f32 %v4015_v29, %v4015_v29  ;;  %v4077_v23 = vrot.slane %v4070_v50, %v4076_v33  ;;  %v6882_v7 = vlaneseq }
 0x243   : > { %v4044_v20 = vadd.f32 %v4043_v14, %v4032_v22  ;;  %v4055_v41 = vadd.f32 %v4029_v9, %v4027_v36  ;;  %v4038_v49 = vmul.f32 %v4022_v56, %v4022_v56  ;;  %v4033_v53 = vmul.f32 %v4017_v18, %v4017_v18 }
 0x244   : > { %vm6828_vm7 = vcmp.lt.s32.totalorder %v6882_v7, 256  ;;  %v4084_v4 = vrot.slane %v4077_v23, %v4076_v33  ;;  %v4040_v25 = vmul.f32 %v4024_v6, %v4024_v6  ;;  %v4035_v21 = vmul.f32 %v4019_v10, %v4019_v10 }
 0x245   : > { %v4045_v37 = vadd.f32 %v4044_v20, %v4034_v52  ;;  %v4056_v43 = vadd.f32 %v4055_v41, %v4031_v5  ;;  %v4037_v0 = vmul.f32 %v4021_v54, %v4021_v54  ;;  %v4039_v42 = vmul.f32 %v4023_v2, %v4023_v2 }
 0x246   : > { %4090 = vst.msk [vmem:[%s6835_s20] ss:$2 sm:$0x3] %vm6828_vm7, %v4084_v4  ;;  %v4041_v3 = vmul.f32 %v4025_v13, %v4025_v13 }
 0x247   : > { %v4046_v1 = vadd.f32 %v4045_v37, %v4036_v19  ;;  %v4057_v47 = vadd.f32 %v4056_v43, %v4033_v53 }
 0x249   : > { %v4047_v34 = vadd.f32 %v4046_v1, %v4038_v49  ;;  %v4058_v15 = vadd.f32 %v4057_v47, %v4035_v21 }
 0x24b   : > { %v4048_v8 = vadd.f32 %v4047_v34, %v4040_v25  ;;  %v4059_v30 = vadd.f32 %v4058_v15, %v4037_v0 }
 0x24d   : > { %v4049_v38 = vrot.slane %v4048_v8, 4  ;;  %v4060_v31 = vadd.f32 %v4059_v30, %v4039_v42 }
 0x24f   : > { %v4050_v17 = vadd.f32 %v4049_v38, %v4048_v8  ;;  %v4061_v63 = vadd.f32 %v4060_v31, %v4041_v3 }
 0x251   : > { %v4051_v27 = vrot.slane %v4050_v17, 2  ;;  %v4062_v61 = vrot.slane %v4061_v63, 4 }
 0x253   : > { %v4052_v24 = vadd.f32 %v4051_v27, %v4050_v17  ;;  %v4063_v28 = vadd.f32 %v4062_v61, %v4061_v63 }
 0x255   : > { %v4064_v32 = vrot.slane %v4063_v28, 2  ;;  %v4053_v40 = vrot.slane %v4052_v24, 1 }
 0x257   : > { %v4065_v44 = vadd.f32 %v4064_v32, %v4063_v28  ;;  %v4054_v59 = vadd.f32 %v4053_v40, %v4052_v24 }
 0x259   : > { %v4066_v46 = vrot.slane %v4065_v44, 1 }
 0x25b   : > { %v4067_v39 = vadd.f32 %v4066_v46, %v4065_v44 }
 0x25d   : > { %v4093_v45 = vcombine.low %v4054_v59, %v4067_v39 }
 0x25f   : > { %v4100_v60 = vrot.slane %v4093_v45, %v4076_v33 }
 0x261   : > { %v4107_v48 = vrot.slane %v4100_v60, %v4076_v33 }
 0x263   : > { %4602 = vst.msk [vmem:[%s6835_s20 + $0x1] ss:$2 sm:$0x3] %vm6828_vm7, %v4107_v48 }
 0x264 PF: > { %s16_s18 = sadd.s32 1, %s5101_s18  }
 0x265   : > { %p13_p4 = scmp.ge.s32.totalorder %s16_s18, 4  }
 0x267   :  { %15 = sbr.rel (!%p13_p4) target bundleno = 1 (0x1), region = 82 }

// kernel: res_block_forward.3
= control target key start
LH: loop header
LB: loop body
LE: loop exit
PB: predicated region body
PF: predicated region fallthrough
CT: control target
= control target key end

     0   :  { %9 = vsyncpa [#allocation4], 0  ;;  %s6188_s0 = inlined_call_operand.hbm [shape: f32[2,8,8,256], index: 0, kind: input, shape index: {}]   ;;  %s6189_s1 = inlined_call_operand.hbm [shape: bf16[2304,256], index: 1, kind: input, shape index: {}]   ;;  %s6190_s2 = inlined_call_operand.vmem [shape: f32[2,64,256], index: 2, kind: output, shape index: {0}]   ;;  %s6191_s3 = inlined_call_operand.vmem [shape: f32[2,2,256], index: 3, kind: output, shape index: {1}]  }
   0x1   :  { %11 = vsyncpa [#allocation4 + $0x1], 0 }
   0x2   :  { %12 = vsyncpa [#allocation6], 0  ;;  %s5197_s12 = smov 0   ;;  %s5199_s13 = smov 0  }
   0x3   :  { %s5201_s14 = smov 0   ;;  %s5203_s15 = smov 0  }
   0x4 LB: > { %s5216_s16 = sadd.s32 4294967295, %s5167_s15   ;;  %p38_p0 = scmp.ne.s32.totalorder %s5159_s13, %s5155_s12  ;;  %s5167_s15 = sphi %s5203_s15, %s6262_s15   ;;  %s5163_s14 = sphi %s5201_s14, %s6261_s14   ;;  %s5159_s13 = sphi %s5199_s13, %s6260_s13   ;;  %s5155_s12 = sphi %s5197_s12, %s6259_s12  }
   0x5   : > { %p6192_p1 = scmp.eq.s32.totalorder %s5216_s16, 0  ;;  %p4131_p2 = scmp.ge.s32.totalorder %s5167_s15, 1 }
   0x6   : > { %p122_p3 = scmp.lt.s32.totalorder %s5167_s15, 3  ;;  %s5169_s19 = smov [#allocation5]  }
   0x7   : > { %p5224_p4 = por %p6192_p1, %p38_p0  ;;  %s134_s20 = sshll.u32 %s5169_s19, 4  ;;  %s135_s20 = int_to_ptr.vmem [resolvable:$true] %s134_s20 }
   0x8   : > { %p5228_p5 = pnand %p4131_p2, %p122_p3  ;;  %s5241_s22 = sadd.s32 1, %s5167_s15  }
   0x9   : > { %s6195_s17 = scalar_select %p5224_p4, 1, 0 }
   0xa   : > { %s6196_s18 = scalar_select %p5228_p5, 1, 0 }
   0xb   : > { %p4588_p6 = pneg %p5228_p5  ;;  %s25_s23 = sadd.s32 1, %s5163_s14 }
   0xc   : > { %s22_s24 = ssub.s32 %s5167_s15, %s5241_s22  ;;  %s5086_s25 = scalar_lea.vmem %s135_s20, 36864 }
   0xd   : > { %p5236_p7 = pnand %p4588_p6, %p6192_p1  ;;  %p5087_p9 = scmp.ne.s32.totalorder %s135_s20, %s5086_s25 }
   0xe   : > { %p5094_p12 = scmp.lt.s32.totalorder %s135_s20, %s135_s20  ;;  %p5095_p13 = scmp.lt.s32.totalorder %s5086_s25, %s5086_s25 }
   0xf   : > { %p5077_p8 = pneg %p5236_p7 }
  0x10   : > { %p5096_p0 = por %p5095_p13, %p5094_p12 }
  0x11   : > { %p5089_p10 = pnand %p5087_p9, %p5077_p8 }
  0x13   : > { %p5090_p11 = pneg %p5089_p10 }
  0x15   : > { %p5097_p2 = pnand %p5096_p0, %p5090_p11 }
  0x17   : > { %5100 = shalt.err (!%p5097_p2)
}
  0x18   : > { %s5170_s26 = smov 128   ;;  %s5171_s27 = smov 8  }
  0x19   : > { %4591 = dma.hbm_to_vmem [thread:$0]  (!%p5236_p7), %s6189_s1, 36864, %s135_s20, [#allocation6], %s5170_s26, %s5170_s26, %s5171_s27  }
  0x1a   : > { %p23_p3 = scmp.eq.s32.totalorder %s22_s24, 0  ;;  %p32_p6 = scmp.ne.s32.totalorder %s5163_s14, %s5159_s13 }
  0x1b   : > { %p33_p8 = scmp.eq.s32.totalorder %s5167_s15, 0  ;;  %p4597_p9 = scmp.lt.s32.totalorder %s5167_s15, 2 }
  0x1c   : > { %s5258_s30 = scalar_select %p23_p3, %s5163_s14, %s25_s23  }
  0x1d   : > { %p34_p10 = por %p33_p8, %p32_p6  ;;  %s148_s4 = sand.u32 1, %s5163_s14  }
  0x1e   : > { %s4134_s5 = sshll.u32 %s148_s4, 7  ;;  %s4539_s6 = sshll.u32 %s5167_s15, 11 }
  0x1f   : > { %s5265_s9 = scalar_lea.hbm %s6188_s0, %s4539_s6  ;;  %s152_s10 = scalar_lea.vmem [#allocation3], %s4134_s5 }
  0x20   : > { %s159_s11 = sshll.u32 %s152_s10, 4  ;;  %p5269_p7 = pnand %p4597_p9, %p34_p10  ;;  %s5267_s11 = int_to_ptr.vmem [resolvable:$true] %s159_s11 }
  0x21   : > { %s5273_s19 = scalar_lea.sflag [#allocation4], %s148_s4  ;;  %s5101_s15 = scalar_lea.hbm %s5265_s9, 2048 }
  0x22   : > { %p5102_p11 = scmp.ne.s32.totalorder %s5265_s9, %s5101_s15  ;;  %p5103_p12 = pneg %p5269_p7 }
  0x23   : > { %s5106_s23 = scalar_lea.hbm %s6188_s0, 4096  ;;  %p5107_p2 = scmp.lt.s32.totalorder %s5265_s9, %s6188_s0 }
  0x24   : > { %p5104_p13 = pnand %p5103_p12, %p5102_p11  ;;  %p5108_p3 = scmp.lt.s32.totalorder %s5106_s23, %s5101_s15 }
  0x26   : > { %p5105_p0 = pneg %p5104_p13  ;;  %p5109_p6 = por %p5108_p3, %p5107_p2 }
  0x28   : > { %p5110_p8 = pnand %p5109_p6, %p5105_p0 }
  0x2a   : > { %5113 = shalt.err (!%p5110_p8)
}
  0x2b   : > { %s5114_s26 = scalar_lea.vmem %s5267_s11, 2048  ;;  %s5172_s27 = smov [#allocation3]  }
  0x2c   : > { %p5115_p9 = scmp.ne.s32.totalorder %s5267_s11, %s5114_s26  ;;  %s5119_s28 = sshll.u32 %s5172_s27, 4  ;;  %s5120_s28 = int_to_ptr.vmem [resolvable:$false] %s5119_s28 }
  0x2d   : > { %s5121_s29 = scalar_lea.vmem %s5120_s28, 4096  ;;  %p5122_p13 = scmp.lt.s32.totalorder %s5267_s11, %s5120_s28 }
  0x2e   : > { %p5117_p10 = pnand %p5115_p9, %p5103_p12  ;;  %p5123_p1 = scmp.lt.s32.totalorder %s5121_s29, %s5114_s26 }
  0x30   : > { %p5118_p11 = pneg %p5117_p10  ;;  %p5124_p4 = por %p5123_p1, %p5122_p13 }
  0x32   : > { %p5125_p5 = pnand %p5124_p4, %p5118_p11 }
  0x34   : > { %5128 = shalt.err (!%p5125_p5)
}
  0x35   : > { %s5173_s4 = smov 256   ;;  %s5174_s5 = smov 16  }
  0x36   : > { %4595 = dma.hbm_to_vmem [thread:$0]  (!%p5269_p7), %s5265_s9, 2048, %s5267_s11, %s5273_s19, %s5173_s4, %s5173_s4, %s5174_s5  }
  0x37   : > { %p6199_p12 = scmp.ne.s32.totalorder %s6196_s18, 0 }
  0x39   : > { %171 = sbr.rel (%p6199_p12) target bundleno = 662 (0x296), region = 28 }
  0x3e   : > { %s173_s6 = sand.u32 1, %s5159_s13   ;;  %p6200_p1 = scmp.ne.s32.totalorder %s6195_s17, 0 }
  0x3f   : > { %s4138_s7 = sshll.u32 %s173_s6, 7  ;;  %s174_s8 = scalar_lea.sflag [#allocation4], %s173_s6 }
  0x40   : > { %s5297_s10 = scalar_lea.vmem [#allocation3], %s4138_s7 }
  0x41   : > { %5146 = dma.done.wait (%p6200_p1), %s174_s8, 2048  }
  0x42   : > { %5148 = vsyncadd (%p6200_p1), %s174_s8, 4294965248  ;;  %p6201_p4 = scmp.eq.s32.totalorder %s5216_s16, 0 }
  0x44   : > { %5150 = dma.done.wait (%p6201_p4), [#allocation6], 36864   ;;  %p6202_p5 = pmov %p6201_p4 }
  0x45   : > { %v5175_v0 = vmov 0   ;;  %v4638_v1 = vld [vmem:[#allocation5 + $0x174] ss:$8 sps:$4 sm:$0xff]   ;;  %v4642_v3 = vld [vmem:[#allocation5 + $0x170] ss:$8 sps:$4 sm:$0xff]   ;;  %vm258_vm1 = vcmask 1040384  }
  0x46   : > { %5152 = vsyncadd (%p6202_p5), [#allocation6], 4294930432  ;;  %252 = vst [vmem:[#allocation2] sm:$0xff] %v5175_v0  ;;  %v4640_v2 = vld [vmem:[#allocation5 + $0x74] ss:$8 sps:$4 sm:$0xff]   ;;  %878 = vmatprep.subr.bf16.mxu0 %v4638_v1  ;;  %vm261_vm5 = vcmask 1044484  }
  0x47   : > { %253 = vst [vmem:[#allocation2 + $0x40] sm:$0x11] %v5175_v0  ;;  %255 = vst [vmem:[#allocation2 + $0x70] sm:$0xff] %v5175_v0  ;;  %v4643_v4 = vld [vmem:[#allocation5 + $0x70] ss:$8 sps:$4 sm:$0xff]   ;;  %1151 = vmatprep.subr.bf16.mxu1 %v4640_v2  ;;  %879 = vmatpush1.bf16.msra.mxu0 %v4642_v3  ;;  %v220_v53 = vld [vmem:[%s5297_s10] sm:$0xff] }
  0x48   : > { %256 = vst [vmem:[#allocation2 + $0x98] sm:$0x11] %v5175_v0  ;;  %v4644_v5 = vld [vmem:[#allocation5 + $0x164] ss:$8 sps:$4 sm:$0xff]   ;;  %1152 = vmatpush1.bf16.msra.mxu1 %v4643_v4  ;;  %v4648_v7 = vld [vmem:[#allocation5 + $0x160] ss:$8 sps:$4 sm:$0xff]  }
  0x49   : > { %v4646_v6 = vld [vmem:[#allocation5 + $0x64] ss:$8 sps:$4 sm:$0xff]   ;;  %880 = vmatprep.subr.bf16.mxu0 %v4644_v5  ;;  %v4649_v8 = vld [vmem:[#allocation5 + $0x60] ss:$8 sps:$4 sm:$0xff]   ;;  %v4650_v9 = vld [vmem:[#allocation5 + $0x154] ss:$8 sps:$4 sm:$0xff]  }
  0x4a   : > { %1153 = vmatprep.subr.bf16.mxu1 %v4646_v6  ;;  %v4652_v10 = vld [vmem:[#allocation5 + $0x54] ss:$8 sps:$4 sm:$0xff]   ;;  %v4654_v11 = vld [vmem:[#allocation5 + $0x150] ss:$8 sps:$4 sm:$0xff]   ;;  %v4656_v13 = vld [vmem:[#allocation5 + $0x144] ss:$8 sps:$4 sm:$0xff]  }
  0x4b   : > { %v4655_v12 = vld [vmem:[#allocation5 + $0x50] ss:$8 sps:$4 sm:$0xff]   ;;  %881 = vmatpush1.bf16.msra.mxu0 %v4648_v7  ;;  %v4658_v14 = vld [vmem:[#allocation5 + $0x44] ss:$8 sps:$4 sm:$0xff]   ;;  %v4660_v15 = vld [vmem:[#allocation5 + $0x140] ss:$8 sps:$4 sm:$0xff]  }
  0x4c   : > { %1154 = vmatpush1.bf16.msra.mxu1 %v4649_v8  ;;  %882 = vmatprep.subr.bf16.mxu0 %v4650_v9  ;;  %v4661_v16 = vld [vmem:[#allocation5 + $0x40] ss:$8 sps:$4 sm:$0xff]   ;;  %v4662_v17 = vld [vmem:[#allocation5 + $0x134] ss:$8 sps:$4 sm:$0xff]   ;;  %v4666_v19 = vld [vmem:[#allocation5 + $0x130] ss:$8 sps:$4 sm:$0xff]  }
  0x4d   : > { %1155 = vmatprep.subr.bf16.mxu1 %v4652_v10  ;;  %v4664_v18 = vld [vmem:[#allocation5 + $0x34] ss:$8 sps:$4 sm:$0xff]   ;;  %v4667_v20 = vld [vmem:[#allocation5 + $0x30] ss:$8 sps:$4 sm:$0xff]   ;;  %v4668_v21 = vld [vmem:[#allocation5 + $0x124] ss:$8 sps:$4 sm:$0xff]  }
  0x4e   : > { %v4670_v22 = vld [vmem:[#allocation5 + $0x24] ss:$8 sps:$4 sm:$0xff]   ;;  %v4672_v23 = vld [vmem:[#allocation5 + $0x120] ss:$8 sps:$4 sm:$0xff]   ;;  %v4674_v25 = vld [vmem:[#allocation5 + $0x114] ss:$8 sps:$4 sm:$0xff]  }
  0x4f   : > { %883 = vmatpush1.bf16.msra.mxu0 %v4654_v11  ;;  %v4673_v24 = vld [vmem:[#allocation5 + $0x20] ss:$8 sps:$4 sm:$0xff]   ;;  %v4676_v26 = vld [vmem:[#allocation5 + $0x14] ss:$8 sps:$4 sm:$0xff]   ;;  %v4678_v27 = vld [vmem:[#allocation5 + $0x110] ss:$8 sps:$4 sm:$0xff]  }
  0x50   : > { %1156 = vmatpush1.bf16.msra.mxu1 %v4655_v12  ;;  %884 = vmatprep.subr.bf16.mxu0 %v4656_v13  ;;  %v4679_v28 = vld [vmem:[#allocation5 + $0x10] ss:$8 sps:$4 sm:$0xff]   ;;  %v4680_v29 = vld [vmem:[#allocation5 + $0x104] ss:$8 sps:$4 sm:$0xff]   ;;  %vm259_vm0 = vsmask.f32 256 }
  0x51   : > { %1157 = vmatprep.subr.bf16.mxu1 %v4658_v14  ;;  %v4682_v30 = vld [vmem:[#allocation5 + $0x4] ss:$8 sps:$4 sm:$0xff]   ;;  %vm262_vm2 = vsmask.f32 4352  ;;  %v4684_v31 = vld [vmem:[#allocation5 + $0x100] ss:$8 sps:$4 sm:$0xff]   ;;  %vm5312_vm3 = vmand %vm258_vm1, %vm259_vm0 }
  0x52   : > { %vm289_vm4 = vsmask.f32 7938  ;;  %v4685_v33 = vld [vmem:[#allocation5] ss:$8 sps:$4 sm:$0xff]   ;;  %v4686_v34 = vld [vmem:[#allocation5 + $0x1f4] ss:$8 sps:$4 sm:$0xff]   ;;  %vm5316_vm6 = vmand %vm261_vm5, %vm262_vm2 }
  0x53   : > { %885 = vmatpush1.bf16.msra.mxu0 %v4660_v15  ;;  %v4688_v35 = vld [vmem:[#allocation5 + $0xf4] ss:$8 sps:$4 sm:$0xff]   ;;  %v4690_v37 = vld [vmem:[#allocation5 + $0x1f0] ss:$8 sps:$4 sm:$0xff]   ;;  %vm5322_vm7 = vmand %vm258_vm1, %vm289_vm4  ;;  %vm291_vm8 = vsmask.f32 7954 }
  0x54   : > { %1158 = vmatpush1.bf16.msra.mxu1 %v4661_v16  ;;  %886 = vmatprep.subr.bf16.mxu0 %v4662_v17  ;;  %v4691_v38 = vld [vmem:[#allocation5 + $0xf0] ss:$8 sps:$4 sm:$0xff]   ;;  %v4692_v40 = vld [vmem:[#allocation5 + $0x1e4] ss:$8 sps:$4 sm:$0xff]   ;;  %vm292_vm9 = vmand %vm261_vm5, %vm291_vm8  ;;  %vm438_vm12 = vcmask 1043456   ;;  %vm440_vm13 = vcmask 1047556  }
  0x55   : > { %1159 = vmatprep.subr.bf16.mxu1 %v4664_v18  ;;  %v4694_v41 = vld [vmem:[#allocation5 + $0xe4] ss:$8 sps:$4 sm:$0xff]   ;;  %v4696_v42 = vld [vmem:[#allocation5 + $0x1e0] ss:$8 sps:$4 sm:$0xff]   ;;  %v4698_v44 = vld [vmem:[#allocation5 + $0x1d4] ss:$8 sps:$4 sm:$0xff]  }
  0x56   : > { %v4697_v43 = vld [vmem:[#allocation5 + $0xe0] ss:$8 sps:$4 sm:$0xff]   ;;  %v4700_v45 = vld [vmem:[#allocation5 + $0xd4] ss:$8 sps:$4 sm:$0xff]   ;;  %vm5331_vm10 = vmor %vm5316_vm6, %vm5312_vm3  ;;  %v545_v14 = vrot.slane %v5175_v0, 4  ;;  %v548_v18 = vrot.slane %v5175_v0, 5 }
  0x57   : > { %887 = vmatpush1.bf16.msra.mxu0 %v4666_v19  ;;  %v4702_v47 = vld [vmem:[#allocation5 + $0x1d0] ss:$8 sps:$4 sm:$0xff]   ;;  %vm5337_vm11 = vmor %vm292_vm9, %vm5322_vm7  ;;  %v4704_v50 = vld [vmem:[#allocation5 + $0x1c4] ss:$8 sps:$4 sm:$0xff]   ;;  %vm539_vm1 = vsmask.f32 3328 }
  0x58   : > { %1160 = vmatpush1.bf16.msra.mxu1 %v4667_v20  ;;  %888 = vmatprep.subr.bf16.mxu0 %v4668_v21  ;;  %v4703_v48 = vld [vmem:[#allocation5 + $0xd0] ss:$8 sps:$4 sm:$0xff]   ;;  %v4706_v51 = vld [vmem:[#allocation5 + $0xc4] ss:$8 sps:$4 sm:$0xff]   ;;  %v4708_v52 = vld [vmem:[#allocation5 + $0x1c0] ss:$8 sps:$4 sm:$0xff]  }
  0x59   : > { %1161 = vmatprep.subr.bf16.mxu1 %v4670_v22  ;;  %v221_v54 = vld [vmem:[%s5297_s10 + $0x8] sm:$0xff]  ;;  %v265_v55 = vld [vmem:[#allocation2 + $0x30] sm:$0x11]  ;;  %v294_v56 = vld [vmem:[#allocation2 + $0x80] sm:$0x11]  ;;  %vm1249_vm5 = vcmask 1046532  }
  0x5a   : > { %v4709_v57 = vld [vmem:[#allocation5 + $0xc0] ss:$8 sps:$4 sm:$0xff]   ;;  %v266_v58 = vsel %vm5331_vm10, 0, %v265_v55  ;;  %v295_v59 = vsel %vm5337_vm11, 0, %v294_v56  ;;  %v4542_v60 = vpack.c.bf16 %v221_v54, %v220_v53  ;;  %v4710_v61 = vld [vmem:[#allocation5 + $0x1b4] ss:$8 sps:$4 sm:$0xff]   ;;  %vm5349_vm14 = vmand %vm438_vm12, %vm289_vm4 }
  0x5b   : > { %889 = vmatpush1.bf16.msra.mxu0 %v4672_v23  ;;  %v4712_v62 = vld [vmem:[#allocation5 + $0xb4] ss:$8 sps:$4 sm:$0xff]   ;;  %267 = vst [vmem:[#allocation2 + $0x30] sm:$0x11] %v266_v58  ;;  %296 = vst [vmem:[#allocation2 + $0x80] sm:$0x11] %v295_v59 }
  0x5c   : > { %1162 = vmatpush1.bf16.msra.mxu1 %v4673_v24  ;;  %890 = vmatprep.subr.bf16.mxu0 %v4674_v25  ;;  %v359_v63 = vshrl.u32 %v4542_v60, 16  ;;  %v362_v1 = vshll.u32 %v4542_v60, 16  ;;  %v4714_v3 = vld [vmem:[#allocation5 + $0x1b0] ss:$8 sps:$4 sm:$0xff]   ;;  %vm441_vm15 = vmand %vm440_vm13, %vm291_vm8  ;;  %v4716_v6 = vld [vmem:[#allocation5 + $0x1a4] ss:$8 sps:$4 sm:$0xff]  }
  0x5d   : > { %1163 = vmatprep.subr.bf16.mxu1 %v4676_v26  ;;  %v4715_v4 = vld [vmem:[#allocation5 + $0xb0] ss:$8 sps:$4 sm:$0xff]   ;;  %v4718_v7 = vld [vmem:[#allocation5 + $0xa4] ss:$8 sps:$4 sm:$0xff]   ;;  %v4720_v8 = vld [vmem:[#allocation5 + $0x1a0] ss:$8 sps:$4 sm:$0xff]  }
  0x5e   : > { %v361_v5 = vrot.slane %v359_v63, 7  ;;  %v4721_v9 = vld [vmem:[#allocation5 + $0xa0] ss:$8 sps:$4 sm:$0xff]   ;;  %vm5356_vm0 = vmor %vm441_vm15, %vm5349_vm14  ;;  %v4722_v13 = vld [vmem:[#allocation5 + $0x194] ss:$8 sps:$4 sm:$0xff]   ;;  %vm1248_vm4 = vcmask 1042432  }
  0x5f   : > { %891 = vmatpush1.bf16.msra.mxu0 %v4678_v27  ;;  %v4724_v15 = vld [vmem:[#allocation5 + $0x94] ss:$8 sps:$4 sm:$0xff]   ;;  %v5368_v21 = vld [vmem:[#allocation2 + $0x40] sm:$0x11]  ;;  %vm540_vm2 = vsmask.f32 7440  ;;  %v549_v27 = vor.u32 %v548_v18, %v545_v14  ;;  %vm5530_vm6 = vmor %vm1248_vm4, %vm1249_vm5 }
  0x60   : > { %1164 = vmatpush1.bf16.msra.mxu1 %v4679_v28  ;;  %892 = vmatprep.subr.bf16.mxu0 %v4680_v29  ;;  %v364_v10 = vor.u32 %v362_v1, %v361_v5  ;;  %v365_v11 = vrot.slane %v361_v5, 4  ;;  %v4726_v25 = vld [vmem:[#allocation5 + $0x190] ss:$8 sps:$4 sm:$0xff]   ;;  %v552_v28 = vshll.u32 %v5368_v21, 16  ;;  %v4730_v32 = vld [vmem:[#allocation5 + $0x84] ss:$8 sps:$4 sm:$0xff]   ;;  %vm5378_vm3 = vmor %vm539_vm1, %vm540_vm2 }
  0x61   : > { %1165 = vmatprep.subr.bf16.mxu1 %v4682_v30  ;;  %v4727_v26 = vld [vmem:[#allocation5 + $0x90] ss:$8 sps:$4 sm:$0xff]   ;;  %v4736_v36 = vld [vmem:[#allocation5 + $0x274] ss:$8 sps:$4 sm:$0xff]   ;;  %v4743_v55 = vld [vmem:[#allocation5 + $0x360] ss:$8 sps:$4 sm:$0xff]  }
  0x62   : > { %v443_v16 = vld [vmem:[#allocation2 + $0x30] sm:$0xff]  ;;  %v446_v17 = vld [vmem:[#allocation2 + $0x80] sm:$0x11]  ;;  %v554_v39 = vrot.slane %v552_v28, 5  ;;  %v225_v1 = vld [vmem:[%s5297_s10 + $0x28] sm:$0xff]  ;;  %p209_p7 = scmp.lt.s32.totalorder %s5216_s16, 1 }
  0x63   : > { %893 = vmatpush1.bf16.msra.mxu0 %v4684_v31  ;;  %v5364_v19 = vsel %vm5356_vm0, %v364_v10, %v443_v16  ;;  %v447_v20 = vsel %vm5331_vm10, %v365_v11, %v446_v17  ;;  %v4728_v31 = vld [vmem:[#allocation5 + $0x184] ss:$8 sps:$4 sm:$0xff]   ;;  %v4740_v56 = vld [vmem:[#allocation5 + $0x260] ss:$8 sps:$4 sm:$0xff]   ;;  %v4748_v58 = vld [vmem:[#allocation5 + $0x254] ss:$8 sps:$4 sm:$0xff]  }
  0x64   : > { %1166 = vmatpush1.bf16.msra.mxu1 %v4685_v33  ;;  %894 = vmatprep.subr.bf16.mxu0 %v4686_v34  ;;  %445 = vst [vmem:[#allocation2 + $0x30] sm:$0xff] %v5364_v19  ;;  %448 = vst [vmem:[#allocation2 + $0x80] sm:$0x11] %v447_v20  ;;  %v557_v22 = vshrl.u32 %v5364_v19, 16  ;;  %v560_v23 = vshll.u32 %v5364_v19, 16  ;;  %v4193_v24 = vcombine.high %v5175_v0, %v5364_v19  ;;  %v224_v63 = vld [vmem:[%s5297_s10 + $0x20] sm:$0xff] }
  0x65   : > { %1167 = vmatprep.subr.bf16.mxu1 %v4688_v35  ;;  %v4732_v33 = vld [vmem:[#allocation5 + $0x180] ss:$8 sps:$4 sm:$0xff]   ;;  %v4749_v59 = vld [vmem:[#allocation5 + $0x350] ss:$8 sps:$4 sm:$0xff]   ;;  %v4757_v60 = vld [vmem:[#allocation5 + $0x344] ss:$8 sps:$4 sm:$0xff]  }
  0x66   : > { %v559_v29 = vrot.slane %v557_v22, 4  ;;  %v562_v30 = vrot.slane %v560_v23, 5  ;;  %1183 = vmatprep.mubr.bf16.mxu1 %v4193_v24  ;;  %v4733_v35 = vld [vmem:[#allocation5 + $0x80] ss:$8 sps:$4 sm:$0xff]   ;;  %v4754_v16 = vld [vmem:[#allocation5 + $0x244] ss:$8 sps:$4 sm:$0xff]  }
  0x67   : > { %895 = vmatpush2.bf16.msra.mxu0 %v4690_v37  ;;  %v268_v2 = vld [vmem:[#allocation2 + $0x28] sm:$0x11]  ;;  %v4763_v24 = vld [vmem:[#allocation5 + $0x334] ss:$8 sps:$4 sm:$0xff]   ;;  %s6264_s16 = smov (!%p209_p7, %s5216_s16), 1 }
  0x68   : > { %1168 = vmatpush2.bf16.msra.mxu1 %v4691_v38  ;;  %896 = vmatprep.subr.bf16.mxu0 %v4692_v40  ;;  %v563_v34 = vor.u32 %v562_v30, %v559_v29  ;;  %v550_v38 = vrot.slane %v549_v27, 4  ;;  %v4739_v40 = vld [vmem:[#allocation5 + $0x374] ss:$8 sps:$4 sm:$0xff]   ;;  %v269_v5 = vsel %vm5331_vm10, 0, %v268_v2  ;;  %v4755_v20 = vld [vmem:[#allocation5 + $0x340] ss:$8 sps:$4 sm:$0xff]  }
  0x69   : > { %1169 = vmatprep.subr.bf16.mxu1 %v4694_v41  ;;  %270 = vst [vmem:[#allocation2 + $0x28] sm:$0x11] %v269_v5  ;;  %v4752_v23 = vld [vmem:[#allocation5 + $0x240] ss:$8 sps:$4 sm:$0xff]   ;;  %v4761_v27 = vld [vmem:[#allocation5 + $0x330] ss:$8 sps:$4 sm:$0xff]  }
  0x6a   : > { %v4769_v29 = vld [vmem:[#allocation5 + $0x324] ss:$8 sps:$4 sm:$0xff]   ;;  %v4764_v5 = vld [vmem:[#allocation5 + $0x220] ss:$8 sps:$4 sm:$0xff]   ;;  %s4540_s17 = sshll.u32 %s6264_s16, 7  ;;  %s4541_s12 = sshll.u32 %s6264_s16, 2 }
  0x6b   : > { %897 = vmatpush2.bf16.msra.mxu0 %v4696_v42  ;;  %v5382_v41 = vld [vmem:[#allocation2 + $0x80] sm:$0x11]  ;;  %v564_v42 = vrot.slane %v563_v34, 4  ;;  %v227_v34 = vld [vmem:[%s5297_s10 + $0x38] sm:$0xff]  ;;  %s6053_s11 = scalar_lea.vmem %s6190_s2, %s4540_s17  ;;  %s6167_s20 = scalar_lea.vmem %s6191_s3, %s4541_s12 }
  0x6c   : > { %1170 = vmatpush2.bf16.msra.mxu1 %v4697_v43  ;;  %898 = vmatprep.subr.bf16.mxu0 %v4698_v44  ;;  %v566_v43 = vshll.u32 %v5382_v41, 16  ;;  %v4192_v44 = vcombine.low %v5175_v0, %v5364_v19  ;;  %v4742_v0 = vld [vmem:[#allocation5 + $0x264] ss:$8 sps:$4 sm:$0xff]  }
  0x6d   : > { %1171 = vmatprep.subr.bf16.mxu1 %v4700_v45  ;;  %v555_v45 = vsel %vm5378_vm3, %v550_v38, %v554_v39 }
  0x6f   : > { %899 = vmatpush2.bf16.msra.mxu0 %v4702_v47  ;;  %v568_v47 = vrot.slane %v566_v43, 5  ;;  %v4767_v43 = vld [vmem:[#allocation5 + $0x320] ss:$8 sps:$4 sm:$0xff]  }
  0x70   : > { %1172 = vmatpush2.bf16.msra.mxu1 %v4703_v48  ;;  %900 = vmatprep.subr.bf16.mxu0 %v4704_v50  ;;  %v4737_v48 = vld [vmem:[#allocation5 + $0x370] ss:$8 sps:$4 sm:$0xff]   ;;  %v4745_v50 = vld [vmem:[#allocation5 + $0x364] ss:$8 sps:$4 sm:$0xff]  }
  0x71   : > { %1173 = vmatprep.subr.bf16.mxu1 %v4706_v51  ;;  %v569_v51 = vsel %vm5378_vm3, %v564_v42, %v568_v47  ;;  %v449_v38 = vld [vmem:[#allocation2 + $0x28] sm:$0xff] }
  0x72   : > { %v4152_v53 = vcombine.low %v555_v45, %v569_v51  ;;  %v4153_v54 = vcombine.high %v555_v45, %v569_v51  ;;  %v4766_v42 = vld [vmem:[#allocation5 + $0x224] ss:$8 sps:$4 sm:$0xff]  }
  0x73   : > { %901 = vmatpush2.bf16.msra.mxu0 %v4708_v52  ;;  %v4734_v52 = vld [vmem:[#allocation5 + $0x270] ss:$8 sps:$4 sm:$0xff]  }
  0x74   : > { %1174 = vmatpush2.bf16.msra.mxu1 %v4709_v57  ;;  %902 = vmatprep.subr.bf16.mxu0 %v4710_v61  ;;  %v4751_v57 = vld [vmem:[#allocation5 + $0x354] ss:$8 sps:$4 sm:$0xff]  }
  0x75   : > { %1175 = vmatprep.subr.bf16.mxu1 %v4712_v62  ;;  %910 = vmatprep.mubr.bf16.mxu0 %v4153_v54  ;;  %v222_v61 = vld [vmem:[%s5297_s10 + $0x10] sm:$0xff]  ;;  %v223_v62 = vld [vmem:[%s5297_s10 + $0x18] sm:$0xff] }
  0x77   : > { %903 = vmatpush2.bf16.msra.mxu0 %v4714_v3  ;;  %v271_v3 = vld [vmem:[#allocation2 + $0x48] sm:$0x11] }
  0x78   : > { %1176 = vmatpush2.bf16.msra.mxu1 %v4715_v4  ;;  %904 = vmatprep.subr.bf16.mxu0 %v4716_v6  ;;  %v4543_v4 = vpack.c.bf16 %v223_v62, %v222_v61  ;;  %v272_v6 = vsel %vm5331_vm10, 0, %v271_v3  ;;  %v306_v62 = vld [vmem:[#allocation2 + $0x10] sm:$0x11] }
  0x79   : > { %1177 = vmatprep.subr.bf16.mxu1 %v4718_v7  ;;  %v297_v7 = vld [vmem:[#allocation2 + $0x90] sm:$0x11]  ;;  %273 = vst [vmem:[#allocation2 + $0x48] sm:$0x11] %v272_v6 }
  0x7a   : > { %v298_v10 = vsel %vm5337_vm11, 0, %v297_v7  ;;  %v370_v14 = vshll.u32 %v4543_v4, 16 }
  0x7b   : > { %905 = vmatpush2.bf16.msra.mxu0 %v4720_v8  ;;  %v300_v8 = vld [vmem:[#allocation2 + $0x88] sm:$0x11]  ;;  %299 = vst [vmem:[#allocation2 + $0x90] sm:$0x11] %v298_v10 }
  0x7c   : > { %1178 = vmatpush2.bf16.msra.mxu1 %v4721_v9  ;;  %906 = vmatprep.subr.bf16.mxu0 %v4722_v13  ;;  %v4544_v9 = vpack.c.bf16 %v225_v1, %v224_v63  ;;  %v301_v11 = vsel %vm5337_vm11, 0, %v300_v8  ;;  %v367_v13 = vshrl.u32 %v4543_v4, 16  ;;  %v4775_v63 = vld [vmem:[#allocation5 + $0x314] ss:$8 sps:$4 sm:$0xff]  }
  0x7d   : > { %1179 = vmatprep.subr.bf16.mxu1 %v4724_v15  ;;  %v4746_v15 = vld [vmem:[#allocation5 + $0x250] ss:$8 sps:$4 sm:$0xff]   ;;  %302 = vst [vmem:[#allocation2 + $0x88] sm:$0x11] %v301_v11 }
  0x7e   : > { %v375_v17 = vshrl.u32 %v4544_v9, 16  ;;  %v378_v18 = vshll.u32 %v4544_v9, 16  ;;  %v369_v22 = vrot.slane %v367_v13, 7  ;;  %v307_v9 = vsel %vm5337_vm11, 0, %v306_v62  ;;  %v232_v62 = vld [vmem:[%s5297_s10 + $0x60] sm:$0xff] }
  0x7f   : > { %907 = vmatpush2.bf16.msra.mxu0 %v4726_v25  ;;  %308 = vst [vmem:[#allocation2 + $0x10] sm:$0x11] %v307_v9 }
  0x80   : > { %1180 = vmatpush2.bf16.msra.mxu1 %v4727_v26  ;;  %908 = vmatprep.subr.bf16.mxu0 %v4728_v31  ;;  %v377_v25 = vrot.slane %v375_v17, 7  ;;  %v4760_v26 = vld [vmem:[#allocation5 + $0x234] ss:$8 sps:$4 sm:$0xff]   ;;  %v372_v28 = vor.u32 %v370_v14, %v369_v22  ;;  %v373_v30 = vrot.slane %v369_v22, 4  ;;  %v455_v39 = vld [vmem:[#allocation2 + $0x48] sm:$0xff] }
  0x81   : > { %1181 = vmatprep.subr.bf16.mxu1 %v4730_v32  ;;  %v4772_v14 = vld [vmem:[#allocation5 + $0x214] ss:$8 sps:$4 sm:$0xff]   ;;  %v4781_v22 = vld [vmem:[#allocation5 + $0x304] ss:$8 sps:$4 sm:$0xff]  }
  0x82   : > { %v380_v31 = vor.u32 %v378_v18, %v377_v25  ;;  %v381_v32 = vrot.slane %v377_v25, 4  ;;  %v452_v45 = vld [vmem:[#allocation2 + $0x90] sm:$0x11]  ;;  %v4778_v25 = vld [vmem:[#allocation5 + $0x204] ss:$8 sps:$4 sm:$0xff]  }
  0x83   : > { %909 = vmatpush2.bf16.msra.mxu0 %v4732_v33  ;;  %v226_v33 = vld [vmem:[%s5297_s10 + $0x30] sm:$0xff] }
  0x84   : > { %1182 = vmatpush2.bf16.msra.mxu1 %v4733_v35  ;;  %1507 = vmatprep.subr.bf16.mxu0 %v4736_v36  ;;  %v228_v35 = vld [vmem:[%s5297_s10 + $0x40] sm:$0xff]  ;;  %v4758_v36 = vld [vmem:[#allocation5 + $0x230] ss:$8 sps:$4 sm:$0xff]   ;;  %v5413_v47 = vsel %vm5356_vm0, %v380_v31, %v455_v39  ;;  %v4545_v51 = vpack.c.bf16 %v227_v34, %v226_v33 }
  0x85   : > { %1836 = vmatprep.subr.bf16.mxu1 %v4739_v40  ;;  %v229_v40 = vld [vmem:[%s5297_s10 + $0x48] sm:$0xff]  ;;  %457 = vst [vmem:[#allocation2 + $0x48] sm:$0xff] %v5413_v47  ;;  %v231_v39 = vld [vmem:[%s5297_s10 + $0x58] sm:$0xff] }
  0x86   : > { %911 = vmatmul.mubr.bf16.vlgmr.msra.gmra.mxu0 %v4152_v53  ;;  %v453_v53 = vsel %vm5331_vm10, %v373_v30, %v452_v45  ;;  %v383_v10 = vshrl.u32 %v4545_v51, 16  ;;  %v386_v11 = vshll.u32 %v4545_v51, 16  ;;  %v4785_v51 = vld [vmem:[#allocation5 + $0x3f0] ss:$8 sps:$4 sm:$0xff]  }
  0x87   : > { %1184 = vmatmul.mubr.bf16.vlgmr.msra.gmra.mxu1 %v4192_v44  ;;  %1508 = vmatpush1.bf16.msra.mxu0 %v4734_v52  ;;  %v5409_v44 = vsel %vm5356_vm0, %v372_v28, %v449_v38  ;;  %v4546_v52 = vpack.c.bf16 %v229_v40, %v228_v35  ;;  %454 = vst [vmem:[#allocation2 + $0x90] sm:$0x11] %v453_v53  ;;  %v230_v38 = vld [vmem:[%s5297_s10 + $0x50] sm:$0xff]  ;;  %v4776_v40 = vld [vmem:[#allocation5 + $0x200] ss:$8 sps:$4 sm:$0xff]  }
  0x88   : > { %1837 = vmatpush1.bf16.msra.mxu1 %v4737_v48  ;;  %1509 = vmatprep.subr.bf16.mxu0 %v4742_v0  ;;  %v458_v48 = vld [vmem:[#allocation2 + $0x88] sm:$0x11]  ;;  %451 = vst [vmem:[#allocation2 + $0x28] sm:$0xff] %v5409_v44  ;;  %v571_v0 = vshrl.u32 %v5409_v44, 16  ;;  %v4194_v61 = vcombine.low %v5409_v44, %v5413_v47 }
  0x89   : > { %1838 = vmatprep.subr.bf16.mxu1 %v4745_v50  ;;  %v274_v50 = vld [vmem:[#allocation2 + $0x58] sm:$0x11]  ;;  %v459_v54 = vsel %vm5331_vm10, %v381_v32, %v458_v48  ;;  %v391_v13 = vshrl.u32 %v4546_v52, 16  ;;  %v394_v18 = vshll.u32 %v4546_v52, 16  ;;  %v5445_v48 = vpack.c.bf16 %v231_v39, %v230_v38 }
  0x8a   : > { %460 = vst [vmem:[#allocation2 + $0x88] sm:$0x11] %v459_v54  ;;  %v573_v1 = vrot.slane %v571_v0, 4  ;;  %v275_v3 = vsel %vm5331_vm10, 0, %v274_v50  ;;  %v4784_v50 = vld [vmem:[#allocation5 + $0x2f4] ss:$8 sps:$4 sm:$0xff]  }
  0x8b   : > { %1510 = vmatpush1.bf16.msra.mxu0 %v4740_v56  ;;  %v277_v56 = vld [vmem:[#allocation2 + $0x8] sm:$0x11]  ;;  %276 = vst [vmem:[#allocation2 + $0x58] sm:$0x11] %v275_v3 }
  0x8c   : > { %1839 = vmatpush1.bf16.msra.mxu1 %v4743_v55  ;;  %1511 = vmatprep.subr.bf16.mxu0 %v4748_v58  ;;  %v574_v55 = vshll.u32 %v5409_v44, 16  ;;  %v585_v58 = vshrl.u32 %v5413_v47, 16  ;;  %v278_v4 = vsel %vm5331_vm10, 0, %v277_v56  ;;  %v470_v56 = vld [vmem:[#allocation2 + $0x10] sm:$0x11] }
  0x8d   : > { %1840 = vmatprep.subr.bf16.mxu1 %v4751_v57  ;;  %v303_v57 = vld [vmem:[#allocation2 + $0x18] sm:$0x11]  ;;  %279 = vst [vmem:[#allocation2 + $0x8] sm:$0x11] %v278_v4 }
  0x8e   : > { %v576_v2 = vrot.slane %v574_v55, 5  ;;  %v587_v6 = vrot.slane %v585_v58, 4  ;;  %v304_v8 = vsel %vm5337_vm11, 0, %v303_v57  ;;  %v4793_v57 = vld [vmem:[#allocation5 + $0x3e4] ss:$8 sps:$4 sm:$0xff]  }
  0x8f   : > { %1512 = vmatpush1.bf16.msra.mxu0 %v4746_v15  ;;  %305 = vst [vmem:[#allocation2 + $0x18] sm:$0x11] %v304_v8  ;;  %v4773_v15 = vld [vmem:[#allocation5 + $0x310] ss:$8 sps:$4 sm:$0xff]  }
  0x90   : > { %1841 = vmatpush1.bf16.msra.mxu1 %v4749_v59  ;;  %1513 = vmatprep.subr.bf16.mxu0 %v4754_v16  ;;  %v588_v59 = vshll.u32 %v5413_v47, 16  ;;  %v577_v16 = vor.u32 %v576_v2, %v573_v1  ;;  %v280_v1 = vld [vmem:[#allocation2 + $0x68] sm:$0x11] }
  0x91   : > { %1842 = vmatprep.subr.bf16.mxu1 %v4757_v60  ;;  %v4195_v60 = vcombine.high %v5409_v44, %v5413_v47  ;;  %v5439_v28 = vld [vmem:[#allocation2 + $0x88] sm:$0x11] }
  0x92   : > { %v590_v7 = vrot.slane %v588_v59, 5  ;;  %v578_v33 = vrot.slane %v577_v16, 4 }
  0x93   : > { %1514 = vmatpush1.bf16.msra.mxu0 %v4752_v23  ;;  %1193 = vmatprep.mubr.bf16.mxu1 %v4195_v60  ;;  %v385_v23 = vrot.slane %v383_v10, 7 }
  0x94   : > { %1843 = vmatpush1.bf16.msra.mxu1 %v4755_v20  ;;  %1515 = vmatprep.subr.bf16.mxu0 %v4760_v26  ;;  %v591_v17 = vor.u32 %v590_v7, %v587_v6  ;;  %v4770_v20 = vld [vmem:[#allocation5 + $0x210] ss:$8 sps:$4 sm:$0xff]   ;;  %v4779_v26 = vld [vmem:[#allocation5 + $0x300] ss:$8 sps:$4 sm:$0xff]  }
  0x95   : > { %1844 = vmatprep.subr.bf16.mxu1 %v4763_v24  ;;  %1194 = vmatmul.mubr.bf16.gmra.mxu1 %v4194_v61  ;;  %v393_v24 = vrot.slane %v391_v13, 7  ;;  %v389_v30 = vrot.slane %v385_v23, 4  ;;  %v467_v45 = vld [vmem:[#allocation2 + $0x8] sm:$0xff]  ;;  %v283_v6 = vld [vmem:[#allocation2 + $0x20] sm:$0x11] }
  0x96   : > { %v592_v35 = vrot.slane %v591_v17, 4  ;;  %v464_v0 = vld [vmem:[#allocation2 + $0x18] sm:$0x11]  ;;  %v309_v7 = vld [vmem:[#allocation2 + $0x60] sm:$0x11] }
  0x97   : > { %1516 = vmatpush1.bf16.msra.mxu0 %v4758_v36  ;;  %v396_v31 = vor.u32 %v394_v18, %v393_v24  ;;  %v397_v32 = vrot.slane %v393_v24, 4  ;;  %v594_v36 = vshll.u32 %v5439_v28, 16  ;;  %v465_v58 = vsel %vm5331_vm10, %v389_v30, %v464_v0  ;;  %v312_v13 = vld [vmem:[#allocation2 + $0x38] sm:$0x11]  ;;  %v4805_v0 = vld [vmem:[#allocation5 + $0x3c4] ss:$8 sps:$4 sm:$0xff]  }
  0x98   : > { %1845 = vmatpush1.bf16.msra.mxu1 %v4761_v27  ;;  %1517 = vmatprep.subr.bf16.mxu0 %v4766_v42  ;;  %v5437_v27 = vld [vmem:[#allocation2 + $0x90] sm:$0x11]  ;;  %466 = vst [vmem:[#allocation2 + $0x18] sm:$0x11] %v465_v58  ;;  %v284_v24 = vsel %vm5331_vm10, 0, %v283_v6  ;;  %v313_v30 = vsel %vm5337_vm11, 0, %v312_v13 }
  0x99   : > { %1846 = vmatprep.subr.bf16.mxu1 %v4769_v29  ;;  %v388_v29 = vor.u32 %v386_v11, %v385_v23  ;;  %v580_v34 = vshll.u32 %v5437_v27, 16  ;;  %v4787_v42 = vld [vmem:[#allocation5 + $0x3f4] ss:$8 sps:$4 sm:$0xff]   ;;  %v596_v53 = vrot.slane %v594_v36, 5  ;;  %v5453_v55 = vsel %vm5356_vm0, %v396_v31, %v467_v45  ;;  %285 = vst [vmem:[#allocation2 + $0x20] sm:$0x11] %v284_v24 }
  0x9a   : > { %469 = vst [vmem:[#allocation2 + $0x8] sm:$0xff] %v5453_v55  ;;  %v471_v59 = vsel %vm5331_vm10, %v397_v32, %v470_v56  ;;  %v613_v4 = vshrl.u32 %v5453_v55, 16  ;;  %v281_v23 = vsel %vm5331_vm10, 0, %v280_v1  ;;  %v399_v32 = vshrl.u32 %v5445_v48, 16  ;;  %314 = vst [vmem:[#allocation2 + $0x38] sm:$0x11] %v313_v30 }
  0x9b   : > { %1518 = vmatpush1.bf16.msra.mxu0 %v4764_v5  ;;  %v582_v52 = vrot.slane %v580_v34, 5  ;;  %v597_v3 = vsel %vm5378_vm3, %v592_v35, %v596_v53  ;;  %472 = vst [vmem:[#allocation2 + $0x10] sm:$0x11] %v471_v59  ;;  %v616_v5 = vshll.u32 %v5453_v55, 16  ;;  %282 = vst [vmem:[#allocation2 + $0x68] sm:$0x11] %v281_v23 }
  0x9c   : > { %1847 = vmatpush1.bf16.msra.mxu1 %v4767_v43  ;;  %1519 = vmatprep.subr.bf16.mxu0 %v4772_v14  ;;  %v461_v43 = vld [vmem:[#allocation2 + $0x58] sm:$0xff]  ;;  %v402_v35 = vshll.u32 %v5445_v48, 16  ;;  %v401_v38 = vrot.slane %v399_v32, 7 }
  0x9d   : > { %1848 = vmatprep.subr.bf16.mxu1 %v4775_v63  ;;  %v5449_v54 = vsel %vm5356_vm0, %v388_v29, %v461_v43  ;;  %v233_v63 = vld [vmem:[%s5297_s10 + $0x68] sm:$0xff]  ;;  %v583_v2 = vsel %vm5378_vm3, %v578_v33, %v582_v52  ;;  %v4782_v14 = vld [vmem:[#allocation5 + $0x2f0] ss:$8 sps:$4 sm:$0xff]   ;;  %v618_v16 = vrot.slane %v616_v5, 5  ;;  %v4799_v34 = vld [vmem:[#allocation5 + $0x3d4] ss:$8 sps:$4 sm:$0xff]  }
  0x9e   : > { %463 = vst [vmem:[#allocation2 + $0x58] sm:$0xff] %v5449_v54  ;;  %v599_v60 = vshrl.u32 %v5449_v54, 16  ;;  %v602_v61 = vshll.u32 %v5449_v54, 16  ;;  %v4155_v8 = vcombine.high %v583_v2, %v597_v3  ;;  %v4154_v9 = vcombine.low %v583_v2, %v597_v3  ;;  %v4788_v33 = vld [vmem:[#allocation5 + $0x2e0] ss:$8 sps:$4 sm:$0xff]  }
  0x9f   : > { %1520 = vmatpush1.bf16.msra.mxu0 %v4770_v20  ;;  %v4197_v17 = vcombine.high %v5449_v54, %v5453_v55  ;;  %v4196_v18 = vcombine.low %v5449_v54, %v5453_v55  ;;  %v4790_v20 = vld [vmem:[#allocation5 + $0x2e4] ss:$8 sps:$4 sm:$0xff]   ;;  %v4548_v31 = vpack.c.bf16 %v233_v63, %v232_v62  ;;  %v4796_v36 = vld [vmem:[#allocation5 + $0x2d4] ss:$8 sps:$4 sm:$0xff]   ;;  %v404_v53 = vor.u32 %v402_v35, %v401_v38  ;;  %v4794_v58 = vld [vmem:[#allocation5 + $0x2d0] ss:$8 sps:$4 sm:$0xff]  }
  0xa0   : > { %1849 = vmatpush1.bf16.msra.mxu1 %v4773_v15  ;;  %1521 = vmatprep.subr.bf16.mxu0 %v4778_v25  ;;  %v601_v10 = vrot.slane %v599_v60, 4  ;;  %v604_v11 = vrot.slane %v602_v61, 5  ;;  %v615_v15 = vrot.slane %v613_v4, 4  ;;  %v310_v25 = vsel %vm5337_vm11, 0, %v309_v7  ;;  %v479_v2 = vld [vmem:[#allocation2 + $0x20] sm:$0xff] }
  0xa1   : > { %1850 = vmatprep.subr.bf16.mxu1 %v4781_v22  ;;  %920 = vmatprep.mubr.bf16.mxu0 %v4155_v8  ;;  %311 = vst [vmem:[#allocation2 + $0x60] sm:$0x11] %v310_v25  ;;  %v407_v39 = vshrl.u32 %v4548_v31, 16  ;;  %v410_v45 = vshll.u32 %v4548_v31, 16  ;;  %v405_v56 = vrot.slane %v401_v38, 4 }
  0xa2   : > { %v605_v22 = vor.u32 %v604_v11, %v601_v10  ;;  %v619_v29 = vor.u32 %v618_v16, %v615_v15  ;;  %921 = vmatmul.mubr.bf16.gmra.mxu0 %v4154_v9  ;;  %1203 = vmatprep.mubr.bf16.mxu1 %v4197_v17  ;;  %v473_v63 = vld [vmem:[#allocation2 + $0x68] sm:$0xff]  ;;  %v482_v7 = vld [vmem:[#allocation2 + $0x38] sm:$0x11]  ;;  %v1224_v35 = vld [vmem:[#allocation2] sm:$0xee] }
  0xa3   : > { %1522 = vmatpush1.bf16.msra.mxu0 %v4776_v40  ;;  %v5485_v40 = vld [vmem:[#allocation2 + $0x18] sm:$0x11]  ;;  %1204 = vmatmul.mubr.bf16.gmra.mxu1 %v4196_v18  ;;  %v4802_v5 = vld [vmem:[#allocation5 + $0x2c4] ss:$8 sps:$4 sm:$0xff]   ;;  %v5497_v6 = vsel %vm5356_vm0, %v404_v53, %v473_v63  ;;  %v4800_v10 = vld [vmem:[#allocation5 + $0x2c0] ss:$8 sps:$4 sm:$0xff]  }
  0xa4   : > { %1851 = vmatpush1.bf16.msra.mxu1 %v4779_v26  ;;  %1523 = vmatprep.subr.bf16.mxu0 %v4784_v50  ;;  %v4791_v26 = vld [vmem:[#allocation5 + $0x3e0] ss:$8 sps:$4 sm:$0xff]   ;;  %v606_v43 = vrot.slane %v605_v22, 4  ;;  %v4797_v50 = vld [vmem:[#allocation5 + $0x3d0] ss:$8 sps:$4 sm:$0xff]   ;;  %v620_v52 = vrot.slane %v619_v29, 4 }
  0xa5   : > { %1852 = vmatprep.subr.bf16.mxu1 %v4787_v42  ;;  %v5487_v42 = vld [vmem:[#allocation2 + $0x10] sm:$0x11]  ;;  %v4803_v11 = vld [vmem:[#allocation5 + $0x3c0] ss:$8 sps:$4 sm:$0xff]   ;;  %475 = vst [vmem:[#allocation2 + $0x68] sm:$0xff] %v5497_v6  ;;  %v627_v17 = vshrl.u32 %v5497_v6, 16 }
  0xa6   : > { %v622_v48 = vshll.u32 %v5487_v42, 16  ;;  %v4811_v15 = vld [vmem:[#allocation5 + $0x3b4] ss:$8 sps:$4 sm:$0xff]   ;;  %v630_v18 = vshll.u32 %v5497_v6, 16  ;;  %v4809_v29 = vld [vmem:[#allocation5 + $0x3b0] ss:$8 sps:$4 sm:$0xff]  }
  0xa7   : > { %1524 = vmatpush2.bf16.msra.mxu0 %v4782_v14  ;;  %v4808_v22 = vld [vmem:[#allocation5 + $0x2b4] ss:$8 sps:$4 sm:$0xff]   ;;  %v629_v30 = vrot.slane %v627_v17, 4 }
  0xa8   : > { %1853 = vmatpush2.bf16.msra.mxu1 %v4785_v51  ;;  %1525 = vmatprep.subr.bf16.mxu0 %v4790_v20  ;;  %v608_v51 = vshll.u32 %v5485_v40, 16  ;;  %v624_v60 = vrot.slane %v622_v48, 5  ;;  %v476_v1 = vld [vmem:[#allocation2 + $0x60] sm:$0x11]  ;;  %v632_v31 = vrot.slane %v630_v18, 5  ;;  %v1261_v18 = vrot.slane %v5437_v27, 5 }
  0xa9   : > { %1854 = vmatprep.subr.bf16.mxu1 %v4793_v57  ;;  %v409_v57 = vrot.slane %v407_v39, 7  ;;  %v477_v13 = vsel %vm5331_vm10, %v405_v56, %v476_v1  ;;  %v1225_v38 = vld [vmem:[#allocation2 + $0x30] sm:$0xee]  ;;  %v4841_v27 = vld [vmem:[#allocation5 + $0x564] ss:$8 sps:$4 sm:$0xff]  }
  0xaa   : > { %v610_v59 = vrot.slane %v608_v51, 5  ;;  %v625_v4 = vsel %vm5378_vm3, %v620_v52, %v624_v60  ;;  %478 = vst [vmem:[#allocation2 + $0x60] sm:$0x11] %v477_v13  ;;  %v4806_v39 = vld [vmem:[#allocation5 + $0x2b0] ss:$8 sps:$4 sm:$0xff]   ;;  %v1257_v51 = vrot.slane %v5382_v41, 5 }
  0xab   : > { %1526 = vmatpush2.bf16.msra.mxu0 %v4788_v33  ;;  %v412_v61 = vor.u32 %v410_v45, %v409_v57  ;;  %v413_v62 = vrot.slane %v409_v57, 4  ;;  %v4814_v45 = vld [vmem:[#allocation5 + $0x2a4] ss:$8 sps:$4 sm:$0xff]   ;;  %v4815_v52 = vld [vmem:[#allocation5 + $0x3a0] ss:$8 sps:$4 sm:$0xff]   ;;  %v4233_v56 = vrot.slane %v1225_v38, 9 }
  0xac   : > { %1855 = vmatpush2.bf16.msra.mxu1 %v4791_v26  ;;  %1527 = vmatprep.subr.bf16.mxu0 %v4796_v36  ;;  %v611_v3 = vsel %vm5378_vm3, %v606_v43, %v610_v59  ;;  %v4281_v26 = vcombine.high %v5364_v19, %v5409_v44  ;;  %v633_v36 = vor.u32 %v632_v31, %v629_v30  ;;  %v4823_v53 = vld [vmem:[#allocation5 + $0x394] ss:$8 sps:$4 sm:$0xff]   ;;  %v4833_v31 = vld [vmem:[#allocation5 + $0x570] ss:$8 sps:$4 sm:$0xff]   ;;  %v4839_v38 = vld [vmem:[#allocation5 + $0x560] ss:$8 sps:$4 sm:$0xff]  }
  0xad   : > { %1856 = vmatprep.subr.bf16.mxu1 %v4799_v34  ;;  %v4157_v8 = vcombine.high %v611_v3, %v625_v4  ;;  %v4156_v9 = vcombine.low %v611_v3, %v625_v4  ;;  %v5504_v14 = vsel %vm5356_vm0, %v412_v61, %v479_v2  ;;  %v483_v16 = vsel %vm5331_vm10, %v413_v62, %v482_v7  ;;  %v4817_v34 = vld [vmem:[#allocation5 + $0x3a4] ss:$8 sps:$4 sm:$0xff]   ;;  %v4812_v61 = vld [vmem:[#allocation5 + $0x2a0] ss:$8 sps:$4 sm:$0xff]   ;;  %v4820_v63 = vld [vmem:[#allocation5 + $0x294] ss:$8 sps:$4 sm:$0xff]  }
  0xae   : > { %481 = vst [vmem:[#allocation2 + $0x20] sm:$0xff] %v5504_v14  ;;  %v641_v20 = vshrl.u32 %v5504_v14, 16  ;;  %484 = vst [vmem:[#allocation2 + $0x38] sm:$0x11] %v483_v16  ;;  %v644_v23 = vshll.u32 %v5504_v14, 16  ;;  %v4199_v24 = vcombine.high %v5497_v6, %v5504_v14  ;;  %v4198_v25 = vcombine.low %v5497_v6, %v5504_v14 }
  0xaf   : > { %1528 = vmatpush2.bf16.msra.mxu0 %v4794_v58  ;;  %930 = vmatprep.mubr.bf16.mxu0 %v4157_v8  ;;  %v5525_v58 = vrot.slane %v633_v36, 4  ;;  %v4821_v2 = vld [vmem:[#allocation5 + $0x390] ss:$8 sps:$4 sm:$0xff]   ;;  %v1258_v4 = vsel %vm5530_vm6, %v4233_v56, %v1257_v51  ;;  %v4829_v7 = vld [vmem:[#allocation5 + $0x384] ss:$8 sps:$4 sm:$0xff]  }
  0xb0   : > { %1857 = vmatpush2.bf16.msra.mxu1 %v4797_v50  ;;  %931 = vmatmul.mubr.bf16.gmra.mxu0 %v4156_v9  ;;  %v643_v32 = vrot.slane %v641_v20, 4  ;;  %v646_v33 = vrot.slane %v644_v23, 5  ;;  %v1253_v50 = vrot.slane %v5368_v21, 5  ;;  %v1226_v8 = vld [vmem:[#allocation2 + $0x28] sm:$0xee]  ;;  %v235_v51 = vld [vmem:[%s5297_s10 + $0x78] sm:$0xff] }
  0xb1   : > { %1858 = vmatprep.subr.bf16.mxu1 %v4805_v0  ;;  %1529 = vmatprep.subr.bf16.mxu0 %v4802_v5  ;;  %v5521_v48 = vld [vmem:[#allocation2 + $0x60] sm:$0x11]  ;;  %v4232_v0 = vrot.slane %v1224_v35, 9  ;;  %v1227_v9 = vld [vmem:[#allocation2 + $0x48] sm:$0xee] }
  0xb2   : > { %1213 = vmatprep.mubr.bf16.mxu1 %v4199_v24  ;;  %v647_v43 = vor.u32 %v646_v33, %v643_v32  ;;  %v636_v59 = vshll.u32 %v5521_v48, 16  ;;  %v4826_v16 = vld [vmem:[#allocation5 + $0x284] ss:$8 sps:$4 sm:$0xff]   ;;  %v4827_v20 = vld [vmem:[#allocation5 + $0x380] ss:$8 sps:$4 sm:$0xff]   ;;  %v4235_v23 = vrot.slane %v1227_v9, 9 }
  0xb3   : > { %1214 = vmatmul.mubr.bf16.gmra.mxu1 %v4198_v25  ;;  %1530 = vmatpush2.bf16.msra.mxu0 %v4800_v10  ;;  %v1254_v3 = vsel %vm5530_vm6, %v4232_v0, %v1253_v50  ;;  %v1265_v24 = vrot.slane %v5439_v28, 5  ;;  %v4835_v25 = vld [vmem:[#allocation5 + $0x574] ss:$8 sps:$4 sm:$0xff]   ;;  %v4830_v33 = vld [vmem:[#allocation5 + $0x470] ss:$8 sps:$4 sm:$0xff]  }
  0xb4   : > { %1859 = vmatpush2.bf16.msra.mxu1 %v4803_v11  ;;  %1868 = vmatprep.mubr.bf16.mxu1 %v4281_v26  ;;  %v648_v41 = vrot.slane %v647_v43, 4  ;;  %v638_v62 = vrot.slane %v636_v59, 5  ;;  %v4241_v17 = vcombine.high %v1254_v3, %v1258_v4  ;;  %v4824_v26 = vld [vmem:[#allocation5 + $0x280] ss:$8 sps:$4 sm:$0xff]   ;;  %v4832_v30 = vld [vmem:[#allocation5 + $0x474] ss:$8 sps:$4 sm:$0xff]   ;;  %v4240_v35 = vcombine.low %v1254_v3, %v1258_v4 }
  0xb5   : > { %1860 = vmatprep.subr.bf16.mxu1 %v4811_v15  ;;  %1531 = vmatprep.subr.bf16.mxu0 %v4808_v22  ;;  %v5523_v57 = vld [vmem:[#allocation2 + $0x38] sm:$0x11]  ;;  %v4234_v22 = vrot.slane %v1226_v8, 9  ;;  %v5554_v28 = vsel %vm5530_vm6, %v4235_v23, %v1265_v24  ;;  %v4838_v36 = vld [vmem:[#allocation5 + $0x464] ss:$8 sps:$4 sm:$0xff]   ;;  %v1269_v43 = vrot.slane %v5485_v40, 5 }
  0xb6   : > { %v650_v60 = vshll.u32 %v5523_v57, 16  ;;  %v639_v5 = vsel %vm5378_vm3, %v5525_v58, %v638_v62  ;;  %v4818_v15 = vld [vmem:[#allocation5 + $0x290] ss:$8 sps:$4 sm:$0xff]   ;;  %v4844_v40 = vld [vmem:[#allocation5 + $0x454] ss:$8 sps:$4 sm:$0xff]  }
  0xb7   : > { %1532 = vmatpush2.bf16.msra.mxu0 %v4806_v39  ;;  %v5550_v32 = vsel %vm5530_vm6, %v4234_v22, %v1261_v18  ;;  %v234_v50 = vld [vmem:[%s5297_s10 + $0x70] sm:$0xff]  ;;  %v1231_v8 = vld [vmem:[#allocation2 + $0x20] sm:$0xee]  ;;  %v1936_v49 = vld [vmem:[#allocation2 + $0x60] sm:$0x11] }
  0xb8   : > { %1861 = vmatpush2.bf16.msra.mxu1 %v4809_v29  ;;  %1533 = vmatprep.subr.bf16.mxu0 %v4814_v45  ;;  %v652_v1 = vrot.slane %v650_v60, 5  ;;  %v4280_v29 = vcombine.low %v5364_v19, %v5409_v44  ;;  %v4283_v19 = vcombine.high %v5413_v47, %v5449_v54  ;;  %v1228_v44 = vld [vmem:[#allocation2 + $0x58] sm:$0xee]  ;;  %v4243_v39 = vcombine.high %v5550_v32, %v5554_v28  ;;  %v4836_v60 = vld [vmem:[#allocation5 + $0x460] ss:$8 sps:$4 sm:$0xff]  }
  0xb9   : > { %1862 = vmatprep.subr.bf16.mxu1 %v4817_v34  ;;  %v1229_v34 = vld [vmem:[#allocation2 + $0x8] sm:$0xee]  ;;  %v1273_v45 = vrot.slane %v5487_v42, 5  ;;  %v4549_v59 = vpack.c.bf16 %v235_v51, %v234_v50  ;;  %v4845_v62 = vld [vmem:[#allocation5 + $0x550] ss:$8 sps:$4 sm:$0xff]   ;;  %v4239_v18 = vrot.slane %v1231_v8, 9 }
  0xba   : > { %v653_v10 = vsel %vm5378_vm3, %v648_v41, %v652_v1  ;;  %v4237_v0 = vrot.slane %v1229_v34, 9  ;;  %v4847_v41 = vld [vmem:[#allocation5 + $0x554] ss:$8 sps:$4 sm:$0xff]   ;;  %v4853_v1 = vld [vmem:[#allocation5 + $0x544] ss:$8 sps:$4 sm:$0xff]  }
  0xbb   : > { %1534 = vmatpush2.bf16.msra.mxu0 %v4812_v61  ;;  %v4159_v11 = vcombine.high %v639_v5, %v653_v10  ;;  %v4158_v13 = vcombine.low %v639_v5, %v653_v10  ;;  %v415_v61 = vshrl.u32 %v4549_v59, 16  ;;  %v418_v42 = vshll.u32 %v4549_v59, 16  ;;  %v4850_v10 = vld [vmem:[#allocation5 + $0x444] ss:$8 sps:$4 sm:$0xff]   ;;  %v4859_v22 = vld [vmem:[#allocation5 + $0x534] ss:$8 sps:$4 sm:$0xff]  }
  0xbc   : > { %1863 = vmatpush2.bf16.msra.mxu1 %v4815_v52  ;;  %1535 = vmatprep.subr.bf16.mxu0 %v4820_v63  ;;  %v286_v52 = vld [vmem:[#allocation2 + $0x50] sm:$0x11]  ;;  %v4282_v63 = vcombine.low %v5413_v47, %v5449_v54  ;;  %v1274_v3 = vsel %vm5530_vm6, %v4237_v0, %v1273_v45  ;;  %v4285_v5 = vcombine.high %v5453_v55, %v5497_v6  ;;  %v4872_v51 = vld [vmem:[#allocation5 + $0x400] ss:$8 sps:$4 sm:$0xff]   ;;  %v1938_v46 = vld [vmem:[#allocation2 + $0x38] sm:$0x11] }
  0xbd   : > { %1864 = vmatprep.subr.bf16.mxu1 %v4823_v53  ;;  %940 = vmatprep.mubr.bf16.mxu0 %v4159_v11  ;;  %v4236_v53 = vrot.slane %v1228_v44, 9  ;;  %v287_v56 = vsel %vm5331_vm10, 0, %v286_v52  ;;  %v5572_v4 = vrot.slane %v415_v61, 7  ;;  %v4242_v47 = vcombine.low %v5550_v32, %v5554_v28  ;;  %v4842_v54 = vld [vmem:[#allocation5 + $0x450] ss:$8 sps:$4 sm:$0xff]  }
  0xbe   : > { %941 = vmatmul.mubr.bf16.gmra.mxu0 %v4158_v13  ;;  %288 = vst [vmem:[#allocation2 + $0x50] sm:$0x11] %v287_v56  ;;  %v1277_v13 = vrot.slane %v5521_v48, 5  ;;  %v4848_v48 = vld [vmem:[#allocation5 + $0x440] ss:$8 sps:$4 sm:$0xff]   ;;  %v1925_v50 = vld [vmem:[#allocation2 + $0x30] sm:$0xff] }
  0xbf   : > { %1536 = vmatpush2.bf16.msra.mxu0 %v4818_v15  ;;  %1539 = vmatprep.mubr.bf16.mxu0 %v4241_v17  ;;  %v420_v9 = vor.u32 %v418_v42, %v5572_v4  ;;  %v1281_v15 = vrot.slane %v5523_v57, 5  ;;  %v4284_v57 = vcombine.low %v5453_v55, %v5497_v6  ;;  %v4856_v24 = vld [vmem:[#allocation5 + $0x434] ss:$8 sps:$4 sm:$0xff]   ;;  %v4862_v6 = vld [vmem:[#allocation5 + $0x424] ss:$8 sps:$4 sm:$0xff]   ;;  %v1942_v0 = vshrl.u32 %v1925_v50, 16 }
  0xc0   : > { %1865 = vmatpush2.bf16.msra.mxu1 %v4821_v2  ;;  %1537 = vmatprep.subr.bf16.mxu0 %v4826_v16  ;;  %v1270_v2 = vsel %vm5530_vm6, %v4236_v53, %v1269_v43  ;;  %v4851_v16 = vld [vmem:[#allocation5 + $0x540] ss:$8 sps:$4 sm:$0xff]   ;;  %v4871_v28 = vld [vmem:[#allocation5 + $0x514] ss:$8 sps:$4 sm:$0xff]   ;;  %v4869_v34 = vld [vmem:[#allocation5 + $0x510] ss:$8 sps:$4 sm:$0xff]  }
  0xc1   : > { %1866 = vmatprep.subr.bf16.mxu1 %v4829_v7  ;;  %v1230_v7 = vld [vmem:[#allocation2 + $0x68] sm:$0xee]  ;;  %v4245_v11 = vcombine.high %v1270_v2, %v1274_v3  ;;  %v1282_v12 = vsel %vm5530_vm6, %v4239_v18, %v1281_v15  ;;  %v4868_v44 = vld [vmem:[#allocation5 + $0x414] ss:$8 sps:$4 sm:$0xff]   ;;  %v1926_v52 = vld [vmem:[#allocation2 + $0x80] sm:$0x11] }
  0xc2   : > { %v4238_v17 = vrot.slane %v1230_v7, 9  ;;  %v4863_v32 = vld [vmem:[#allocation5 + $0x520] ss:$8 sps:$4 sm:$0xff]   ;;  %v4883_v45 = vld [vmem:[#allocation5 + $0x5f4] ss:$8 sps:$4 sm:$0xff]  }
  0xc3   : > { %1538 = vmatpush2.bf16.msra.mxu0 %v4824_v26  ;;  %v4875_v43 = vld [vmem:[#allocation5 + $0x500] ss:$8 sps:$4 sm:$0xff]   ;;  %v1928_v53 = vld [vmem:[#allocation2 + $0x90] sm:$0x11]  ;;  %v2366_v42 = vld [vmem:[#allocation2 + $0x30] sm:$0xee] }
  0xc4   : > { %1867 = vmatpush2.bf16.msra.mxu1 %v4827_v20  ;;  %2277 = vmatprep.subr.bf16.mxu0 %v4832_v30  ;;  %v1278_v26 = vsel %vm5530_vm6, %v4238_v17, %v1277_v13  ;;  %v4880_v56 = vld [vmem:[#allocation5 + $0x4f4] ss:$8 sps:$4 sm:$0xff]   ;;  %v4881_v59 = vld [vmem:[#allocation5 + $0x5f0] ss:$8 sps:$4 sm:$0xff]  }
  0xc5   : > { %2646 = vmatprep.subr.bf16.mxu1 %v4835_v25  ;;  %v485_v20 = vld [vmem:[#allocation2 + $0x50] sm:$0xff]  ;;  %v4247_v55 = vcombine.high %v1278_v26, %v1282_v12 }
  0xc6   : > { %1540 = vmatmul.mubr.bf16.vlgmr.msra.gmra.mxu0 %v4240_v35  ;;  %v5583_v23 = vsel %vm5356_vm0, %v420_v9, %v485_v20  ;;  %v4857_v25 = vld [vmem:[#allocation5 + $0x530] ss:$8 sps:$4 sm:$0xff]   ;;  %v4877_v35 = vld [vmem:[#allocation5 + $0x504] ss:$8 sps:$4 sm:$0xff]  }
  0xc7   : > { %1869 = vmatmul.mubr.bf16.vlgmr.msra.gmra.mxu1 %v4280_v29  ;;  %2278 = vmatpush1.bf16.msra.mxu0 %v4830_v33  ;;  %487 = vst [vmem:[#allocation2 + $0x50] sm:$0xff] %v5583_v23  ;;  %v4865_v29 = vld [vmem:[#allocation5 + $0x524] ss:$8 sps:$4 sm:$0xff]   ;;  %v4287_v30 = vcombine.high %v5504_v14, %v5583_v23  ;;  %v4860_v33 = vld [vmem:[#allocation5 + $0x420] ss:$8 sps:$4 sm:$0xff]  }
  0xc8   : > { %2647 = vmatpush1.bf16.msra.mxu1 %v4833_v31  ;;  %1878 = vmatprep.mubr.bf16.mxu1 %v4283_v19  ;;  %v4244_v31 = vcombine.low %v1270_v2, %v1274_v3  ;;  %v4286_v19 = vcombine.low %v5504_v14, %v5583_v23  ;;  %v5596_v14 = vld [vmem:[#allocation2 + $0x28] sm:$0xff]  ;;  %v4360_v2 = vrot.slane %v2366_v42, 9  ;;  %v2392_v3 = vrot.slane %v1926_v52, 5  ;;  %v4878_v17 = vld [vmem:[#allocation5 + $0x4f0] ss:$8 sps:$4 sm:$0xff]  }
  0xc9   : > { %2648 = vmatprep.subr.bf16.mxu1 %v4841_v27  ;;  %1549 = vmatprep.mubr.bf16.mxu0 %v4243_v39  ;;  %v4854_v27 = vld [vmem:[#allocation5 + $0x430] ss:$8 sps:$4 sm:$0xff]   ;;  %v4874_v39 = vld [vmem:[#allocation5 + $0x404] ss:$8 sps:$4 sm:$0xff]   ;;  %v1959_v61 = vshll.u32 %v5596_v14, 16 }
  0xca   : > { %2279 = vmatprep.subr.bf16.mxu0 %v4838_v36  ;;  %v4246_v36 = vcombine.low %v1278_v26, %v1282_v12  ;;  %v4886_v20 = vld [vmem:[#allocation5 + $0x4e4] ss:$8 sps:$4 sm:$0xff]   ;;  %v4884_v26 = vld [vmem:[#allocation5 + $0x4e0] ss:$8 sps:$4 sm:$0xff]  }
  0xcb   : > { %2280 = vmatpush1.bf16.msra.mxu0 %v4836_v60  ;;  %v1951_v60 = vshll.u32 %v1926_v52, 16  ;;  %v1961_v8 = vrot.slane %v1959_v61, 5  ;;  %v5633_v52 = vld [vmem:[#allocation2 + $0x8] sm:$0xff] }
  0xcc   : > { %2649 = vmatpush1.bf16.msra.mxu1 %v4839_v38  ;;  %2281 = vmatprep.subr.bf16.mxu0 %v4844_v40  ;;  %v4866_v38 = vld [vmem:[#allocation5 + $0x410] ss:$8 sps:$4 sm:$0xff]   ;;  %v1956_v40 = vshrl.u32 %v5596_v14, 16  ;;  %v4911_v42 = vld [vmem:[#allocation5 + $0x5a0] ss:$8 sps:$4 sm:$0xff]  }
  0xcd   : > { %2650 = vmatprep.subr.bf16.mxu1 %v4847_v41  ;;  %v1945_v41 = vshll.u32 %v1925_v50, 16  ;;  %v1953_v13 = vrot.slane %v1951_v60, 5  ;;  %v4905_v50 = vld [vmem:[#allocation5 + $0x5b0] ss:$8 sps:$4 sm:$0xff]  }
  0xce   : > { %1550 = vmatmul.mubr.bf16.gmra.mxu0 %v4242_v47  ;;  %v1958_v7 = vrot.slane %v1956_v40, 4  ;;  %v4889_v47 = vld [vmem:[#allocation5 + $0x5e4] ss:$8 sps:$4 sm:$0xff]  }
  0xcf   : > { %1879 = vmatmul.mubr.bf16.gmra.mxu1 %v4282_v63  ;;  %2282 = vmatpush1.bf16.msra.mxu0 %v4842_v54  ;;  %v1965_v63 = vshll.u32 %v1928_v53, 16  ;;  %v5602_v54 = vsel %vm5530_vm6, %v4360_v2, %v2392_v3  ;;  %v4919_v2 = vld [vmem:[#allocation5 + $0x594] ss:$8 sps:$4 sm:$0xff]  }
  0xd0   : > { %2651 = vmatpush1.bf16.msra.mxu1 %v4845_v62  ;;  %1888 = vmatprep.mubr.bf16.mxu1 %v4285_v5  ;;  %v1944_v62 = vrot.slane %v1942_v0, 4  ;;  %v1947_v5 = vrot.slane %v1945_v41, 5  ;;  %v1962_v15 = vor.u32 %v1961_v8, %v1958_v7  ;;  %v4916_v3 = vld [vmem:[#allocation5 + $0x494] ss:$8 sps:$4 sm:$0xff]  }
  0xd1   : > { %2652 = vmatprep.subr.bf16.mxu1 %v4853_v1  ;;  %1559 = vmatprep.mubr.bf16.mxu0 %v4245_v11  ;;  %v2367_v1 = vld [vmem:[#allocation2 + $0x28] sm:$0xee] }
  0xd2   : > { %2283 = vmatprep.subr.bf16.mxu0 %v4850_v10  ;;  %v4361_v9 = vrot.slane %v2367_v1, 9  ;;  %v2396_v10 = vrot.slane %v1928_v53, 5  ;;  %v1948_v11 = vor.u32 %v1947_v5, %v1944_v62  ;;  %v4902_v53 = vld [vmem:[#allocation5 + $0x4b0] ss:$8 sps:$4 sm:$0xff]   ;;  %v1930_v62 = vld [vmem:[#allocation2 + $0x88] sm:$0x11] }
  0xd3   : > { %2284 = vmatpush1.bf16.msra.mxu0 %v4848_v48  ;;  %v4908_v1 = vld [vmem:[#allocation5 + $0x4a0] ss:$8 sps:$4 sm:$0xff]   ;;  %v2040_v5 = vshrl.u32 %v5583_v23, 16  ;;  %v1979_v8 = vshll.u32 %v1930_v62, 16 }
  0xd4   : > { %2653 = vmatpush1.bf16.msra.mxu1 %v4851_v16  ;;  %2285 = vmatprep.subr.bf16.mxu0 %v4856_v24  ;;  %v1967_v16 = vrot.slane %v1965_v63, 5  ;;  %v5606_v18 = vsel %vm5530_vm6, %v4361_v9, %v2396_v10  ;;  %v1949_v48 = vrot.slane %v1948_v11, 4  ;;  %v1932_v63 = vld [vmem:[#allocation2 + $0x18] sm:$0x11]  ;;  %v2368_v10 = vld [vmem:[#allocation2 + $0x48] sm:$0xee] }
  0xd5   : > { %2654 = vmatprep.subr.bf16.mxu1 %v4859_v22  ;;  %v4887_v22 = vld [vmem:[#allocation5 + $0x5e0] ss:$8 sps:$4 sm:$0xff]   ;;  %v4369_v24 = vcombine.high %v5602_v54, %v5606_v18  ;;  %v1993_v9 = vshll.u32 %v1932_v63, 16  ;;  %v2369_v11 = vld [vmem:[#allocation2 + $0x58] sm:$0xee] }
  0xd6   : > { %1560 = vmatmul.mubr.bf16.gmra.mxu0 %v4244_v31  ;;  %v5614_v12 = vsel %vm5378_vm3, %v1949_v48, %v1953_v13  ;;  %v4893_v31 = vld [vmem:[#allocation5 + $0x5d0] ss:$8 sps:$4 sm:$0xff]  }
  0xd7   : > { %1889 = vmatmul.mubr.bf16.gmra.mxu1 %v4284_v57  ;;  %2286 = vmatpush1.bf16.msra.mxu0 %v4854_v27  ;;  %v5608_v57 = vrot.slane %v1962_v15, 4  ;;  %v4917_v13 = vld [vmem:[#allocation5 + $0x590] ss:$8 sps:$4 sm:$0xff]   ;;  %v1998_v15 = vshrl.u32 %v5633_v52, 16 }
  0xd8   : > { %2655 = vmatpush1.bf16.msra.mxu1 %v4857_v25  ;;  %1898 = vmatprep.mubr.bf16.mxu1 %v4287_v30  ;;  %v4895_v25 = vld [vmem:[#allocation5 + $0x5d4] ss:$8 sps:$4 sm:$0xff]  }
  0xd9   : > { %2656 = vmatprep.subr.bf16.mxu1 %v4865_v29  ;;  %1569 = vmatprep.mubr.bf16.mxu0 %v4247_v55  ;;  %v5619_v29 = vsel %vm5378_vm3, %v5608_v57, %v1967_v16  ;;  %v4892_v30 = vld [vmem:[#allocation5 + $0x4d4] ss:$8 sps:$4 sm:$0xff]   ;;  %v5623_v55 = vld [vmem:[#allocation2 + $0x48] sm:$0xff]  ;;  %v2001_v16 = vshll.u32 %v5633_v52, 16 }
  0xda   : > { %2287 = vmatprep.subr.bf16.mxu0 %v4862_v6  ;;  %v4321_v27 = vcombine.high %v5614_v12, %v5619_v29  ;;  %v4901_v6 = vld [vmem:[#allocation5 + $0x5c4] ss:$8 sps:$4 sm:$0xff]  }
  0xdb   : > { %2288 = vmatpush1.bf16.msra.mxu0 %v4860_v33  ;;  %v4898_v33 = vld [vmem:[#allocation5 + $0x4c4] ss:$8 sps:$4 sm:$0xff]  }
  0xdc   : > { %2657 = vmatpush1.bf16.msra.mxu1 %v4863_v32  ;;  %2289 = vmatprep.subr.bf16.mxu0 %v4868_v44  ;;  %v4408_v32 = vcombine.low %v5596_v14, %v5623_v55  ;;  %v5627_v44 = vld [vmem:[#allocation2 + $0x58] sm:$0xff] }
  0xdd   : > { %2658 = vmatprep.subr.bf16.mxu1 %v4871_v28  ;;  %v4890_v28 = vld [vmem:[#allocation5 + $0x4d0] ss:$8 sps:$4 sm:$0xff]   ;;  %v4411_v0 = vcombine.high %v5627_v44, %v5633_v52 }
  0xde   : > { %1570 = vmatmul.mubr.bf16.gmra.mxu0 %v4246_v36  ;;  %v4904_v36 = vld [vmem:[#allocation5 + $0x4b4] ss:$8 sps:$4 sm:$0xff]  }
  0xdf   : > { %1899 = vmatmul.mubr.bf16.gmra.mxu1 %v4286_v19  ;;  %2290 = vmatpush1.bf16.msra.mxu0 %v4866_v38  ;;  %v4899_v19 = vld [vmem:[#allocation5 + $0x5c0] ss:$8 sps:$4 sm:$0xff]   ;;  %v1970_v38 = vshrl.u32 %v5623_v55, 16 }
  0xe0   : > { %2659 = vmatpush1.bf16.msra.mxu1 %v4869_v34  ;;  %2291 = vmatprep.subr.bf16.mxu0 %v4874_v39  ;;  %v4907_v34 = vld [vmem:[#allocation5 + $0x5b4] ss:$8 sps:$4 sm:$0xff]   ;;  %v1973_v39 = vshll.u32 %v5623_v55, 16 }
  0xe1   : > { %2660 = vmatprep.subr.bf16.mxu1 %v4877_v35  ;;  %2678 = vmatprep.mubr.bf16.mxu1 %v4369_v24  ;;  %v4896_v35 = vld [vmem:[#allocation5 + $0x4c0] ss:$8 sps:$4 sm:$0xff]   ;;  %v1972_v41 = vrot.slane %v1970_v38, 4  ;;  %v2043_v24 = vshll.u32 %v5583_v23, 16  ;;  %v2000_v23 = vrot.slane %v1998_v15, 4  ;;  %v2003_v38 = vrot.slane %v2001_v16, 5 }
  0xe2   : > { %2309 = vmatprep.mubr.bf16.mxu0 %v4321_v27  ;;  %v1975_v60 = vrot.slane %v1973_v39, 5  ;;  %v4363_v27 = vrot.slane %v2369_v11, 9  ;;  %v421_v39 = vrot.slane %v5572_v4, 4  ;;  %v4368_v4 = vcombine.low %v5602_v54, %v5606_v18 }
  0xe3   : > { %2292 = vmatpush1.bf16.msra.mxu0 %v4872_v51  ;;  %v4913_v51 = vld [vmem:[#allocation5 + $0x5a4] ss:$8 sps:$4 sm:$0xff]   ;;  %v4320_v18 = vcombine.low %v5614_v12, %v5619_v29  ;;  %v2412_v15 = vrot.slane %v1936_v49, 5  ;;  %v4943_v29 = vld [vmem:[#allocation5 + $0x754] ss:$8 sps:$4 sm:$0xff]  }
  0xe4   : > { %2661 = vmatpush1.bf16.msra.mxu1 %v4875_v43  ;;  %2293 = vmatprep.subr.bf16.mxu0 %v4880_v56  ;;  %v1984_v43 = vshrl.u32 %v5627_v44, 16  ;;  %v4410_v56 = vcombine.low %v5627_v44, %v5633_v52  ;;  %v1976_v7 = vor.u32 %v1975_v60, %v1972_v41  ;;  %v2370_v41 = vld [vmem:[#allocation2 + $0x8] sm:$0xee]  ;;  %v5662_v60 = vrot.slane %v2043_v24, 5 }
  0xe5   : > { %2662 = vmatprep.subr.bf16.mxu1 %v4883_v45  ;;  %v1987_v45 = vshll.u32 %v5627_v44, 16  ;;  %v5043_v44 = vld [vmem:[#allocation5 + $0x824] ss:$8 sps:$4 sm:$0xff]  }
  0xe6   : > { %v1986_v40 = vrot.slane %v1984_v43, 4  ;;  %v4920_v43 = vld [vmem:[#allocation5 + $0x480] ss:$8 sps:$4 sm:$0xff]  }
  0xe7   : > { %2294 = vmatpush2.bf16.msra.mxu0 %v4878_v17  ;;  %v1989_v61 = vrot.slane %v1987_v45, 5  ;;  %v315_v17 = vld [vmem:[#allocation2 + $0x78] sm:$0x11]  ;;  %v5650_v45 = vld [vmem:[#allocation2 + $0x20] sm:$0xff] }
  0xe8   : > { %2663 = vmatpush2.bf16.msra.mxu1 %v4881_v59  ;;  %2295 = vmatprep.subr.bf16.mxu0 %v4886_v20  ;;  %v4910_v59 = vld [vmem:[#allocation5 + $0x4a4] ss:$8 sps:$4 sm:$0xff]   ;;  %v4914_v20 = vld [vmem:[#allocation5 + $0x490] ss:$8 sps:$4 sm:$0xff]   ;;  %v316_v48 = vsel %vm5337_vm11, 0, %v315_v17  ;;  %v2029_v54 = vshll.u32 %v5650_v45, 16 }
  0xe9   : > { %2664 = vmatprep.subr.bf16.mxu1 %v4889_v47  ;;  %v1990_v47 = vor.u32 %v1989_v61, %v1986_v40  ;;  %317 = vst [vmem:[#allocation2 + $0x78] sm:$0x11] %v316_v48  ;;  %v4935_v17 = vld [vmem:[#allocation5 + $0x760] ss:$8 sps:$4 sm:$0xff]  }
  0xeb   : > { %2296 = vmatpush2.bf16.msra.mxu0 %v4884_v26  ;;  %v4923_v26 = vld [vmem:[#allocation5 + $0x580] ss:$8 sps:$4 sm:$0xff]  }
  0xec   : > { %2665 = vmatpush2.bf16.msra.mxu1 %v4887_v22  ;;  %2297 = vmatprep.subr.bf16.mxu0 %v4892_v30  ;;  %v4925_v22 = vld [vmem:[#allocation5 + $0x584] ss:$8 sps:$4 sm:$0xff]   ;;  %v4362_v30 = vrot.slane %v2368_v10, 9 }
  0xed   : > { %2666 = vmatprep.subr.bf16.mxu1 %v4895_v25  ;;  %v4922_v25 = vld [vmem:[#allocation5 + $0x484] ss:$8 sps:$4 sm:$0xff]  }
  0xee   : > { %v4934_v10 = vld [vmem:[#allocation5 + $0x664] ss:$8 sps:$4 sm:$0xff]  }
  0xef   : > { %2298 = vmatpush2.bf16.msra.mxu0 %v4890_v28  ;;  %v4931_v28 = vld [vmem:[#allocation5 + $0x774] ss:$8 sps:$4 sm:$0xff]  }
  0xf0   : > { %2667 = vmatpush2.bf16.msra.mxu1 %v4893_v31  ;;  %2299 = vmatprep.subr.bf16.mxu0 %v4898_v33  ;;  %v2400_v31 = vrot.slane %v1930_v62, 5  ;;  %v5645_v33 = vrot.slane %v1976_v7, 4  ;;  %v2371_v62 = vld [vmem:[#allocation2 + $0x68] sm:$0xee] }
  0xf1   : > { %2668 = vmatprep.subr.bf16.mxu1 %v4901_v6  ;;  %v2404_v6 = vrot.slane %v1932_v63, 5  ;;  %v4929_v63 = vld [vmem:[#allocation5 + $0x770] ss:$8 sps:$4 sm:$0xff]   ;;  %v4937_v7 = vld [vmem:[#allocation5 + $0x764] ss:$8 sps:$4 sm:$0xff]  }
  0xf3   : > { %2300 = vmatpush2.bf16.msra.mxu0 %v4896_v35  ;;  %v1995_v35 = vrot.slane %v1993_v9, 5  ;;  %v488_v9 = vld [vmem:[#allocation2 + $0x78] sm:$0x11] }
  0xf4   : > { %2669 = vmatpush2.bf16.msra.mxu1 %v4899_v19  ;;  %2301 = vmatprep.subr.bf16.mxu0 %v4904_v36  ;;  %v1981_v19 = vrot.slane %v1979_v8, 5  ;;  %v1934_v36 = vld [vmem:[#allocation2 + $0x10] sm:$0x11]  ;;  %v489_v16 = vsel %vm5331_vm10, %v421_v39, %v488_v9  ;;  %v2035_v39 = vshll.u32 %v1938_v46, 16 }
  0xf5   : > { %2670 = vmatprep.subr.bf16.mxu1 %v4907_v34  ;;  %v5647_v34 = vrot.slane %v1990_v47, 4  ;;  %v4364_v47 = vrot.slane %v2370_v41, 9  ;;  %v2408_v11 = vrot.slane %v1934_v36, 5  ;;  %490 = vst [vmem:[#allocation2 + $0x78] sm:$0x11] %v489_v16 }
  0xf6   : > { %v5669_v40 = vsel %vm5378_vm3, %v5645_v33, %v1981_v19  ;;  %v2373_v19 = vld [vmem:[#allocation2 + $0x50] sm:$0xee] }
  0xf7   : > { %2302 = vmatpush2.bf16.msra.mxu0 %v4902_v53  ;;  %v5656_v53 = vsel %vm5530_vm6, %v4362_v30, %v2400_v31  ;;  %v5674_v61 = vsel %vm5378_vm3, %v5647_v34, %v1995_v35  ;;  %v2409_v30 = vsel %vm5530_vm6, %v4364_v47, %v2408_v11  ;;  %v4940_v35 = vld [vmem:[#allocation5 + $0x654] ss:$8 sps:$4 sm:$0xff]   ;;  %v4953_v9 = vld [vmem:[#allocation5 + $0x730] ss:$8 sps:$4 sm:$0xff]  }
  0xf8   : > { %2671 = vmatpush2.bf16.msra.mxu1 %v4905_v50  ;;  %2303 = vmatprep.subr.bf16.mxu0 %v4910_v59  ;;  %v5652_v50 = vrot.slane %v2040_v5, 4  ;;  %v5660_v59 = vsel %vm5530_vm6, %v4363_v27, %v2404_v6  ;;  %v4926_v5 = vld [vmem:[#allocation5 + $0x670] ss:$8 sps:$4 sm:$0xff]   ;;  %v4323_v12 = vcombine.high %v5669_v40, %v5674_v61 }
  0xf9   : > { %2672 = vmatprep.subr.bf16.mxu1 %v4913_v51  ;;  %v4928_v51 = vld [vmem:[#allocation5 + $0x674] ss:$8 sps:$4 sm:$0xff]   ;;  %v4371_v8 = vcombine.high %v5656_v53, %v5660_v59  ;;  %v4370_v27 = vcombine.low %v5656_v53, %v5660_v59  ;;  %v4322_v53 = vcombine.low %v5669_v40, %v5674_v61 }
  0xfa   : > { %v2046_v6 = vor.u32 %v5662_v60, %v5652_v50  ;;  %v2416_v60 = vrot.slane %v1938_v46, 5 }
  0xfb   : > { %2304 = vmatpush2.bf16.msra.mxu0 %v4908_v1  ;;  %v2004_v1 = vor.u32 %v2003_v38, %v2000_v23 }
  0xfc   : > { %2673 = vmatpush2.bf16.msra.mxu1 %v4911_v42  ;;  %2305 = vmatprep.subr.bf16.mxu0 %v4916_v3  ;;  %v2007_v42 = vshll.u32 %v1934_v36, 16  ;;  %v2026_v3 = vshrl.u32 %v5650_v45, 16  ;;  %v4941_v36 = vld [vmem:[#allocation5 + $0x750] ss:$8 sps:$4 sm:$0xff]  }
  0xfd   : > { %2674 = vmatprep.subr.bf16.mxu1 %v4919_v2  ;;  %v2021_v2 = vshll.u32 %v1936_v49, 16  ;;  %v1940_v59 = vld [vmem:[#allocation2 + $0x78] sm:$0x11] }
  0xfe   : > { %v2028_v24 = vrot.slane %v2026_v3, 4  ;;  %v2037_v3 = vrot.slane %v2035_v39, 5  ;;  %v4409_v39 = vcombine.high %v5596_v14, %v5623_v55  ;;  %v5030_v14 = vld [vmem:[#allocation5 + $0x850] ss:$8 sps:$4 sm:$0xff]  }
  0xff   : > { %2306 = vmatpush2.bf16.msra.mxu0 %v4914_v20  ;;  %v2009_v20 = vrot.slane %v2007_v42, 5  ;;  %v2023_v48 = vrot.slane %v2021_v2, 5  ;;  %v4946_v42 = vld [vmem:[#allocation5 + $0x644] ss:$8 sps:$4 sm:$0xff]  }
 0x100   : > { %2675 = vmatpush2.bf16.msra.mxu1 %v4917_v13  ;;  %2307 = vmatprep.subr.bf16.mxu0 %v4922_v25  ;;  %v4365_v13 = vrot.slane %v2371_v62, 9  ;;  %v2031_v25 = vrot.slane %v2029_v54, 5  ;;  %v2047_v54 = vrot.slane %v2046_v6, 4  ;;  %v4965_v6 = vld [vmem:[#allocation5 + $0x710] ss:$8 sps:$4 sm:$0xff]  }
 0x101   : > { %2676 = vmatprep.subr.bf16.mxu1 %v4925_v22  ;;  %v5686_v22 = vrot.slane %v2004_v1, 4  ;;  %v2024_v23 = vsel %vm5378_vm3, %v5525_v58, %v2023_v48  ;;  %v2420_v1 = vrot.slane %v1940_v59, 5  ;;  %v4947_v58 = vld [vmem:[#allocation5 + $0x740] ss:$8 sps:$4 sm:$0xff]   ;;  %v4967_v48 = vld [vmem:[#allocation5 + $0x714] ss:$8 sps:$4 sm:$0xff]  }
 0x102   : > { %v2413_v31 = vsel %vm5530_vm6, %v4365_v13, %v2412_v15  ;;  %v2032_v38 = vor.u32 %v2031_v25, %v2028_v24  ;;  %v4961_v13 = vld [vmem:[#allocation5 + $0x724] ss:$8 sps:$4 sm:$0xff]   ;;  %v5715_v24 = vld [vmem:[#allocation2 + $0x90] sm:$0x11] }
 0x103   : > { %2308 = vmatpush2.bf16.msra.mxu0 %v4920_v43  ;;  %v2010_v49 = vsel %vm5378_vm3, %v5686_v22, %v2009_v20  ;;  %v4938_v43 = vld [vmem:[#allocation5 + $0x650] ss:$8 sps:$4 sm:$0xff]   ;;  %v4373_v50 = vcombine.high %v2409_v30, %v2413_v31  ;;  %v4372_v47 = vcombine.low %v2409_v30, %v2413_v31  ;;  %v4959_v20 = vld [vmem:[#allocation5 + $0x720] ss:$8 sps:$4 sm:$0xff]   ;;  %v3091_v46 = vshll.u32 %v5715_v24, 16 }
 0x104   : > { %2677 = vmatpush2.bf16.msra.mxu1 %v4923_v26  ;;  %2976 = vmatprep.subr.bf16.mxu0 %v4928_v51  ;;  %v4932_v26 = vld [vmem:[#allocation5 + $0x660] ss:$8 sps:$4 sm:$0xff]   ;;  %v4949_v51 = vld [vmem:[#allocation5 + $0x744] ss:$8 sps:$4 sm:$0xff]   ;;  %v4325_v62 = vcombine.high %v2010_v49, %v2024_v23  ;;  %v5704_v2 = vrot.slane %v2032_v38, 4  ;;  %v4324_v16 = vcombine.low %v2010_v49, %v2024_v23 }
 0x105   : > { %3417 = vmatprep.subr.bf16.mxu1 %v4931_v28  ;;  %v2372_v28 = vld [vmem:[#allocation2 + $0x20] sm:$0xee]  ;;  %v5717_v25 = vld [vmem:[#allocation2 + $0x88] sm:$0x11]  ;;  %v4962_v38 = vld [vmem:[#allocation5 + $0x610] ss:$8 sps:$4 sm:$0xff]  }
 0x106   : > { %2310 = vmatmul.mubr.bf16.vlgmr.msra.gmra.mxu0 %v4320_v18  ;;  %v4366_v41 = vrot.slane %v2372_v28, 9  ;;  %v4955_v18 = vld [vmem:[#allocation5 + $0x734] ss:$8 sps:$4 sm:$0xff]   ;;  %v4956_v30 = vld [vmem:[#allocation5 + $0x620] ss:$8 sps:$4 sm:$0xff]   ;;  %v3093_v28 = vrot.slane %v3091_v46, 5 }
 0x107   : > { %2679 = vmatmul.mubr.bf16.vlgmr.msra.gmra.mxu1 %v4368_v4  ;;  %2977 = vmatpush1.bf16.msra.mxu0 %v4926_v5  ;;  %v4367_v4 = vrot.slane %v2373_v19, 9 }
 0x108   : > { %3418 = vmatpush1.bf16.msra.mxu1 %v4929_v63  ;;  %2688 = vmatprep.mubr.bf16.mxu1 %v4371_v8  ;;  %v2049_v63 = vshll.u32 %v1940_v59, 16  ;;  %v2417_v61 = vsel %vm5530_vm6, %v4366_v41, %v2416_v60  ;;  %v4952_v8 = vld [vmem:[#allocation5 + $0x634] ss:$8 sps:$4 sm:$0xff]   ;;  %v5724_v49 = vsel %vm5378_vm3, %v5608_v57, %v3093_v28  ;;  %v4977_v59 = vld [vmem:[#allocation5 + $0x7f0] ss:$8 sps:$4 sm:$0xff]  }
 0x109   : > { %3419 = vmatprep.subr.bf16.mxu1 %v4937_v7  ;;  %2319 = vmatprep.mubr.bf16.mxu0 %v4323_v12  ;;  %v2421_v5 = vsel %vm5530_vm6, %v4367_v4, %v2420_v1  ;;  %v4944_v7 = vld [vmem:[#allocation5 + $0x640] ss:$8 sps:$4 sm:$0xff]   ;;  %v4958_v12 = vld [vmem:[#allocation5 + $0x624] ss:$8 sps:$4 sm:$0xff]   ;;  %v4979_v57 = vld [vmem:[#allocation5 + $0x7f4] ss:$8 sps:$4 sm:$0xff]  }
 0x10a   : > { %2978 = vmatprep.subr.bf16.mxu0 %v4934_v10  ;;  %v2051_v40 = vrot.slane %v2049_v63, 5  ;;  %v2038_v10 = vsel %vm5378_vm3, %v5704_v2, %v2037_v3  ;;  %v4375_v15 = vcombine.high %v2417_v61, %v2421_v5  ;;  %v4374_v31 = vcombine.low %v2417_v61, %v2421_v5  ;;  %v4985_v41 = vld [vmem:[#allocation5 + $0x7e4] ss:$8 sps:$4 sm:$0xff]   ;;  %v4974_v60 = vld [vmem:[#allocation5 + $0x6f0] ss:$8 sps:$4 sm:$0xff]  }
 0x10b   : > { %2979 = vmatpush1.bf16.msra.mxu0 %v4932_v26  ;;  %v3105_v26 = vshll.u32 %v5717_v25, 16  ;;  %v4982_v4 = vld [vmem:[#allocation5 + $0x6e4] ss:$8 sps:$4 sm:$0xff]   ;;  %v4980_v63 = vld [vmem:[#allocation5 + $0x6e0] ss:$8 sps:$4 sm:$0xff]  }
 0x10c   : > { %3420 = vmatpush1.bf16.msra.mxu1 %v4935_v17  ;;  %2980 = vmatprep.subr.bf16.mxu0 %v4940_v35  ;;  %v2052_v11 = vsel %vm5378_vm3, %v2047_v54, %v2051_v40  ;;  %v4950_v17 = vld [vmem:[#allocation5 + $0x630] ss:$8 sps:$4 sm:$0xff]   ;;  %v4973_v35 = vld [vmem:[#allocation5 + $0x704] ss:$8 sps:$4 sm:$0xff]   ;;  %v4988_v1 = vld [vmem:[#allocation5 + $0x6d4] ss:$8 sps:$4 sm:$0xff]  }
 0x10d   : > { %3421 = vmatprep.subr.bf16.mxu1 %v4943_v29  ;;  %v4327_v29 = vcombine.high %v2038_v10, %v2052_v11  ;;  %v3107_v19 = vrot.slane %v3105_v26, 5  ;;  %v4997_v3 = vld [vmem:[#allocation5 + $0x7c4] ss:$8 sps:$4 sm:$0xff]   ;;  %v4986_v54 = vld [vmem:[#allocation5 + $0x6d0] ss:$8 sps:$4 sm:$0xff]  }
 0x10e   : > { %2320 = vmatmul.mubr.bf16.gmra.mxu0 %v4322_v53  ;;  %v4976_v53 = vld [vmem:[#allocation5 + $0x6f4] ss:$8 sps:$4 sm:$0xff]   ;;  %v4995_v40 = vld [vmem:[#allocation5 + $0x7c0] ss:$8 sps:$4 sm:$0xff]  }
 0x10f   : > { %2689 = vmatmul.mubr.bf16.gmra.mxu1 %v4370_v27  ;;  %2981 = vmatpush1.bf16.msra.mxu0 %v4938_v43  ;;  %v4964_v27 = vld [vmem:[#allocation5 + $0x614] ss:$8 sps:$4 sm:$0xff]   ;;  %v5729_v23 = vsel %vm5378_vm3, %v5645_v33, %v3107_v19  ;;  %v4968_v33 = vld [vmem:[#allocation5 + $0x600] ss:$8 sps:$4 sm:$0xff]  }
 0x110   : > { %3422 = vmatpush1.bf16.msra.mxu1 %v4941_v36  ;;  %2698 = vmatprep.mubr.bf16.mxu1 %v4373_v50  ;;  %v4326_v36 = vcombine.low %v2038_v10, %v2052_v11  ;;  %v4449_v43 = vcombine.high %v5724_v49, %v5729_v23  ;;  %v4971_v50 = vld [vmem:[#allocation5 + $0x700] ss:$8 sps:$4 sm:$0xff]   ;;  %v5003_v5 = vld [vmem:[#allocation5 + $0x7b4] ss:$8 sps:$4 sm:$0xff]  }
 0x111   : > { %3423 = vmatprep.subr.bf16.mxu1 %v4949_v51  ;;  %2329 = vmatprep.mubr.bf16.mxu0 %v4325_v62  ;;  %v4970_v51 = vld [vmem:[#allocation5 + $0x604] ss:$8 sps:$4 sm:$0xff]   ;;  %v4991_v62 = vld [vmem:[#allocation5 + $0x7d4] ss:$8 sps:$4 sm:$0xff]   ;;  %v4992_v61 = vld [vmem:[#allocation5 + $0x6c0] ss:$8 sps:$4 sm:$0xff]  }
 0x112   : > { %2982 = vmatprep.subr.bf16.mxu0 %v4946_v42  ;;  %v4983_v42 = vld [vmem:[#allocation5 + $0x7e0] ss:$8 sps:$4 sm:$0xff]   ;;  %v3070_v10 = vld [vmem:[#allocation2 + $0x18] sm:$0x11] }
 0x113   : > { %2983 = vmatpush1.bf16.msra.mxu0 %v4944_v7  ;;  %v5000_v7 = vld [vmem:[#allocation5 + $0x6b4] ss:$8 sps:$4 sm:$0xff]   ;;  %v3506_v11 = vld [vmem:[#allocation2 + $0x28] sm:$0xee] }
 0x114   : > { %3424 = vmatpush1.bf16.msra.mxu1 %v4947_v58  ;;  %2984 = vmatprep.subr.bf16.mxu0 %v4952_v8  ;;  %v4989_v58 = vld [vmem:[#allocation5 + $0x7d0] ss:$8 sps:$4 sm:$0xff]   ;;  %v5007_v28 = vld [vmem:[#allocation5 + $0x7a0] ss:$8 sps:$4 sm:$0xff]  }
 0x115   : > { %3425 = vmatprep.subr.bf16.mxu1 %v4955_v18  ;;  %v4994_v18 = vld [vmem:[#allocation5 + $0x6c4] ss:$8 sps:$4 sm:$0xff]   ;;  %v5001_v8 = vld [vmem:[#allocation5 + $0x7b0] ss:$8 sps:$4 sm:$0xff]  }
 0x116   : > { %2330 = vmatmul.mubr.bf16.gmra.mxu0 %v4324_v16  ;;  %v3507_v16 = vld [vmem:[#allocation2 + $0x48] sm:$0xee] }
 0x117   : > { %2699 = vmatmul.mubr.bf16.gmra.mxu1 %v4372_v47  ;;  %2985 = vmatpush1.bf16.msra.mxu0 %v4950_v17  ;;  %v3532_v47 = vrot.slane %v5715_v24, 5  ;;  %v4488_v17 = vrot.slane %v3506_v11, 9  ;;  %v3509_v24 = vld [vmem:[#allocation2 + $0x8] sm:$0xee] }
 0x118   : > { %3426 = vmatpush1.bf16.msra.mxu1 %v4953_v9  ;;  %2708 = vmatprep.mubr.bf16.mxu1 %v4375_v15  ;;  %v5009_v9 = vld [vmem:[#allocation5 + $0x7a4] ss:$8 sps:$4 sm:$0xff]   ;;  %v3072_v15 = vld [vmem:[#allocation2 + $0x10] sm:$0x11] }
 0x119   : > { %3427 = vmatprep.subr.bf16.mxu1 %v4961_v13  ;;  %2339 = vmatprep.mubr.bf16.mxu0 %v4327_v29  ;;  %v3536_v13 = vrot.slane %v5717_v25, 5  ;;  %v3508_v29 = vld [vmem:[#allocation2 + $0x58] sm:$0xee]  ;;  %v5739_v46 = vsel %vm5530_vm6, %v4488_v17, %v3532_v47 }
 0x11a   : > { %2986 = vmatprep.subr.bf16.mxu0 %v4958_v12  ;;  %v4489_v12 = vrot.slane %v3507_v16, 9  ;;  %v4490_v26 = vrot.slane %v3508_v29, 9  ;;  %v5027_v29 = vld [vmem:[#allocation5 + $0x864] ss:$8 sps:$4 sm:$0xff]  }
 0x11b   : > { %2987 = vmatpush1.bf16.msra.mxu0 %v4956_v30  ;;  %v4998_v30 = vld [vmem:[#allocation5 + $0x6b0] ss:$8 sps:$4 sm:$0xff]  }
 0x11c   : > { %3428 = vmatpush1.bf16.msra.mxu1 %v4959_v20  ;;  %2988 = vmatprep.subr.bf16.mxu0 %v4964_v27  ;;  %v3540_v20 = vrot.slane %v3070_v10, 5  ;;  %v5745_v25 = vsel %vm5530_vm6, %v4489_v12, %v3536_v13  ;;  %v4491_v27 = vrot.slane %v3509_v24, 9  ;;  %v5016_v12 = vld [vmem:[#allocation5 + $0x680] ss:$8 sps:$4 sm:$0xff]  }
 0x11d   : > { %3429 = vmatprep.subr.bf16.mxu1 %v4967_v48  ;;  %v3544_v48 = vrot.slane %v3072_v15, 5  ;;  %v4496_v19 = vcombine.low %v5739_v46, %v5745_v25 }
 0x11e   : > { %2340 = vmatmul.mubr.bf16.gmra.mxu0 %v4326_v36  ;;  %v5015_v36 = vld [vmem:[#allocation5 + $0x794] ss:$8 sps:$4 sm:$0xff]  }
 0x11f   : > { %2709 = vmatmul.mubr.bf16.gmra.mxu1 %v4374_v31  ;;  %2989 = vmatpush1.bf16.msra.mxu0 %v4962_v38  ;;  %v5741_v31 = vld [vmem:[#allocation2 + $0x68] sm:$0xff]  ;;  %v3119_v38 = vshll.u32 %v3070_v10, 16 }
 0x120   : > { %3430 = vmatpush1.bf16.msra.mxu1 %v4965_v6  ;;  %3449 = vmatprep.mubr.bf16.mxu1 %v4449_v43  ;;  %v5006_v6 = vld [vmem:[#allocation5 + $0x6a4] ss:$8 sps:$4 sm:$0xff]   ;;  %v5753_v43 = vsel %vm5530_vm6, %v4490_v26, %v3540_v20 }
 0x121   : > { %3431 = vmatprep.subr.bf16.mxu1 %v4973_v35  ;;  %3008 = vmatprep.mubr.bf16.mxu0 %v4409_v39  ;;  %v4497_v35 = vcombine.high %v5739_v46, %v5745_v25  ;;  %v3133_v39 = vshll.u32 %v3072_v15, 16 }
 0x122   : > { %2990 = vmatprep.subr.bf16.mxu0 %v4970_v51  ;;  %v5757_v51 = vsel %vm5530_vm6, %v4491_v27, %v3544_v48 }
 0x123   : > { %2991 = vmatpush1.bf16.msra.mxu0 %v4968_v33  ;;  %v4499_v33 = vcombine.high %v5753_v43, %v5757_v51 }
 0x124   : > { %3432 = vmatpush1.bf16.msra.mxu1 %v4971_v50  ;;  %2992 = vmatprep.subr.bf16.mxu0 %v4976_v53  ;;  %v3138_v50 = vshrl.u32 %v5741_v31, 16  ;;  %v4498_v53 = vcombine.low %v5753_v43, %v5757_v51 }
 0x125   : > { %3433 = vmatprep.subr.bf16.mxu1 %v4979_v57  ;;  %v3141_v57 = vshll.u32 %v5741_v31, 16 }
 0x127   : > { %2993 = vmatpush2.bf16.msra.mxu0 %v4974_v60  ;;  %v5013_v60 = vld [vmem:[#allocation5 + $0x790] ss:$8 sps:$4 sm:$0xff]  }
 0x128   : > { %3434 = vmatpush2.bf16.msra.mxu1 %v4977_v59  ;;  %2994 = vmatprep.subr.bf16.mxu0 %v4982_v4  ;;  %v5004_v59 = vld [vmem:[#allocation5 + $0x6a0] ss:$8 sps:$4 sm:$0xff]   ;;  %v5021_v4 = vld [vmem:[#allocation5 + $0x784] ss:$8 sps:$4 sm:$0xff]  }
 0x129   : > { %3435 = vmatprep.subr.bf16.mxu1 %v4985_v41  ;;  %v5012_v41 = vld [vmem:[#allocation5 + $0x694] ss:$8 sps:$4 sm:$0xff]  }
 0x12b   : > { %2995 = vmatpush2.bf16.msra.mxu0 %v4980_v63  ;;  %v5765_v63 = vld [vmem:[#allocation2 + $0x38] sm:$0x11] }
 0x12c   : > { %3436 = vmatpush2.bf16.msra.mxu1 %v4983_v42  ;;  %2996 = vmatprep.subr.bf16.mxu0 %v4988_v1  ;;  %v3121_v42 = vrot.slane %v3119_v38, 5  ;;  %v3140_v1 = vrot.slane %v3138_v50, 4  ;;  %v3161_v10 = vshll.u32 %v5765_v63, 16  ;;  %v3552_v37 = vrot.slane %v5765_v63, 5 }
 0x12d   : > { %3437 = vmatprep.subr.bf16.mxu1 %v4991_v62  ;;  %v3135_v62 = vrot.slane %v3133_v39, 5  ;;  %v5025_v39 = vld [vmem:[#allocation5 + $0x860] ss:$8 sps:$4 sm:$0xff]  }
 0x12e   : > { %v5777_v47 = vsel %vm5378_vm3, %v5647_v34, %v3121_v42  ;;  %v4448_v34 = vcombine.low %v5724_v49, %v5729_v23  ;;  %v3163_v48 = vrot.slane %v3161_v10, 5  ;;  %v5795_v49 = vld [vmem:[#allocation2 + $0x98] sm:$0x11] }
 0x12f   : > { %2997 = vmatpush2.bf16.msra.mxu0 %v4986_v54  ;;  %v5767_v54 = vld [vmem:[#allocation2 + $0x60] sm:$0x11] }
 0x130   : > { %3438 = vmatpush2.bf16.msra.mxu1 %v4989_v58  ;;  %2998 = vmatprep.subr.bf16.mxu0 %v4994_v18  ;;  %v3143_v58 = vrot.slane %v3141_v57, 5  ;;  %v5769_v18 = vld [vmem:[#allocation2 + $0x50] sm:$0xff]  ;;  %v3147_v15 = vshll.u32 %v5767_v54, 16 }
 0x131   : > { %3439 = vmatprep.subr.bf16.mxu1 %v4997_v3  ;;  %v5010_v3 = vld [vmem:[#allocation5 + $0x690] ss:$8 sps:$4 sm:$0xff]   ;;  %v3166_v16 = vshrl.u32 %v5769_v18, 16  ;;  %v3169_v17 = vshll.u32 %v5769_v18, 16  ;;  %v5032_v57 = vld [vmem:[#allocation5 + $0x854] ss:$8 sps:$4 sm:$0xff]  }
 0x132   : > { %v3144_v13 = vor.u32 %v3143_v58, %v3140_v1  ;;  %v3189_v58 = vshll.u32 %v5795_v49, 16 }
 0x133   : > { %2999 = vmatpush2.bf16.msra.mxu0 %v4992_v61  ;;  %v5019_v61 = vld [vmem:[#allocation5 + $0x780] ss:$8 sps:$4 sm:$0xff]   ;;  %v3171_v38 = vrot.slane %v3169_v17, 5  ;;  %v5040_v17 = vld [vmem:[#allocation5 + $0x834] ss:$8 sps:$4 sm:$0xff]  }
 0x134   : > { %3440 = vmatpush2.bf16.msra.mxu1 %v4995_v40  ;;  %3000 = vmatprep.subr.bf16.mxu0 %v5000_v7  ;;  %v5018_v40 = vld [vmem:[#allocation5 + $0x684] ss:$8 sps:$4 sm:$0xff]   ;;  %v3145_v27 = vrot.slane %v3144_v13, 4 }
 0x135   : > { %3441 = vmatprep.subr.bf16.mxu1 %v5003_v5  ;;  %v5771_v5 = vld [vmem:[#allocation2] sm:$0xff] }
 0x136   : > { %v3180_v7 = vshrl.u32 %v5771_v5, 16  ;;  %v3183_v11 = vshll.u32 %v5771_v5, 16 }
 0x137   : > { %3001 = vmatpush2.bf16.msra.mxu0 %v4998_v30 }
 0x138   : > { %3442 = vmatpush2.bf16.msra.mxu1 %v5001_v8  ;;  %3002 = vmatprep.subr.bf16.mxu0 %v5006_v6  ;;  %v5024_v8 = vld [vmem:[#allocation5 + $0x874] ss:$8 sps:$4 sm:$0xff]   ;;  %v3182_v24 = vrot.slane %v3180_v7, 4  ;;  %v3185_v26 = vrot.slane %v3183_v11, 5  ;;  %v3149_v6 = vrot.slane %v3147_v15, 5  ;;  %v3191_v15 = vrot.slane %v3189_v58, 5 }
 0x139   : > { %3443 = vmatprep.subr.bf16.mxu1 %v5009_v9  ;;  %v5782_v9 = vsel %vm5378_vm3, %v5686_v22, %v3135_v62  ;;  %v5022_v22 = vld [vmem:[#allocation5 + $0x870] ss:$8 sps:$4 sm:$0xff]  }
 0x13a   : > { %v4451_v20 = vcombine.high %v5777_v47, %v5782_v9  ;;  %v3150_v62 = vsel %vm5378_vm3, %v3145_v27, %v3149_v6  ;;  %v4415_v27 = vcombine.high %v5769_v18, %v5771_v5  ;;  %v5041_v6 = vld [vmem:[#allocation5 + $0x820] ss:$8 sps:$4 sm:$0xff]  }
 0x13b   : > { %3003 = vmatpush2.bf16.msra.mxu0 %v5004_v59  ;;  %v3164_v59 = vsel %vm5378_vm3, %v5704_v2, %v3163_v48  ;;  %v4450_v2 = vcombine.low %v5777_v47, %v5782_v9  ;;  %v4413_v47 = vcombine.high %v5741_v31, %v5650_v45  ;;  %v5038_v48 = vld [vmem:[#allocation5 + $0x830] ss:$8 sps:$4 sm:$0xff]  }
 0x13c   : > { %3444 = vmatpush2.bf16.msra.mxu1 %v5007_v28  ;;  %3004 = vmatprep.subr.bf16.mxu0 %v5012_v41  ;;  %v5793_v28 = vld [vmem:[#allocation2 + $0x78] sm:$0x11]  ;;  %v4453_v7 = vcombine.high %v3150_v62, %v3164_v59 }
 0x13d   : > { %3445 = vmatprep.subr.bf16.mxu1 %v5015_v36  ;;  %v3168_v36 = vrot.slane %v3166_v16, 4  ;;  %v3175_v41 = vshll.u32 %v5793_v28, 16  ;;  %v5033_v16 = vld [vmem:[#allocation5 + $0x840] ss:$8 sps:$4 sm:$0xff]  }
 0x13f   : > { %3005 = vmatpush2.bf16.msra.mxu0 %v5010_v3  ;;  %v3172_v1 = vor.u32 %v3171_v38, %v3168_v36  ;;  %v3177_v13 = vrot.slane %v3175_v41, 5  ;;  %v5046_v36 = vld [vmem:[#allocation5 + $0x814] ss:$8 sps:$4 sm:$0xff]   ;;  %v5044_v38 = vld [vmem:[#allocation5 + $0x810] ss:$8 sps:$4 sm:$0xff]  }
 0x140   : > { %3446 = vmatpush2.bf16.msra.mxu1 %v5013_v60  ;;  %3006 = vmatprep.subr.bf16.mxu0 %v5018_v40  ;;  %v3186_v60 = vor.u32 %v3185_v26, %v3182_v24  ;;  %v4412_v24 = vcombine.low %v5741_v31, %v5650_v45  ;;  %v3548_v26 = vrot.slane %v5767_v54, 5  ;;  %v5052_v41 = vld [vmem:[#allocation5 + $0x8f4] ss:$8 sps:$4 sm:$0xff]  }
 0x141   : > { %3447 = vmatprep.subr.bf16.mxu1 %v5021_v4  ;;  %v3173_v11 = vrot.slane %v3172_v1, 4  ;;  %v5053_v1 = vld [vmem:[#allocation5 + $0x8e0] ss:$8 sps:$4 sm:$0xff]  }
 0x143   : > { %3007 = vmatpush2.bf16.msra.mxu0 %v5016_v12  ;;  %v3178_v12 = vsel %vm5378_vm3, %v3173_v11, %v3177_v13 }
 0x144   : > { %3448 = vmatpush2.bf16.msra.mxu1 %v5019_v61  ;;  %3786 = vmatprep.subr.bf16.mxu0 %v5024_v8  ;;  %v5035_v61 = vld [vmem:[#allocation5 + $0x844] ss:$8 sps:$4 sm:$0xff]  }
 0x145   : > { %4550 = vmatprep.subr.bf16.mxu1 %v5024_v8  ;;  %v3187_v8 = vrot.slane %v3186_v60, 4 }
 0x146   : > { %v912_v50 = vpop.f32.mrf.mxu0  ;;  %3009 = vmatmul.mubr.bf16.vlgmr.msra.gmra.mxu0 %v4408_v32 }
 0x147   : > { %v1185_v30 = vpop.f32.mrf.mxu1  ;;  %3450 = vmatmul.mubr.bf16.vlgmr.msra.gmra.mxu1 %v4448_v34  ;;  %3787 = vmatpush1.bf16.msra.mxu0 %v5022_v22  ;;  %v3192_v34 = vsel %vm5378_vm3, %v3187_v8, %v3191_v15  ;;  %v5059_v15 = vld [vmem:[#allocation5 + $0x8c0] ss:$8 sps:$4 sm:$0xff]  }
 0x148   : > { %4566 = vmatpush1.bf16.msra.mxu1 %v5022_v22  ;;  %3459 = vmatprep.mubr.bf16.mxu1 %v4451_v20  ;;  %v5801_v4 = vadd.f32 %v1185_v30, %v912_v50  ;;  %v914_v3 = vpop.f32.mrf.mxu0  ;;  %v4452_v22 = vcombine.low %v3150_v62, %v3164_v59  ;;  %v3511_v20 = vld [vmem:[#allocation2 + $0x20] sm:$0xee]  ;;  %v4455_v52 = vcombine.high %v3178_v12, %v3192_v34 }
 0x149   : > { %v1187_v23 = vpop.f32.mrf.mxu1  ;;  %4551 = vmatprep.subr.bf16.mxu1 %v5027_v29  ;;  %3018 = vmatprep.mubr.bf16.mxu0 %v4411_v0  ;;  %v4493_v30 = vrot.slane %v3511_v20, 9  ;;  %v4454_v54 = vcombine.low %v3178_v12, %v3192_v34  ;;  %v4414_v50 = vcombine.low %v5769_v18, %v5771_v5  ;;  %v5047_v59 = vld [vmem:[#allocation5 + $0x800] ss:$8 sps:$4 sm:$0xff]   ;;  %v5055_v18 = vld [vmem:[#allocation5 + $0x8e4] ss:$8 sps:$4 sm:$0xff]  }
 0x14a   : > { %v5814_v40 = vadd.f32 %v1187_v23, %v914_v3  ;;  %3788 = vmatprep.subr.bf16.mxu0 %v5027_v29  ;;  %v916_v55 = vpop.f32.mrf.mxu0  ;;  %v3510_v29 = vld [vmem:[#allocation2 + $0x68] sm:$0xee]  ;;  %v5058_v3 = vld [vmem:[#allocation5 + $0x8d4] ss:$8 sps:$4 sm:$0xff]   ;;  %v5062_v12 = vld [vmem:[#allocation5 + $0x8b0] ss:$8 sps:$4 sm:$0xff]  }
 0x14b   : > { %v1189_v42 = vpop.f32.mrf.mxu1  ;;  %3789 = vmatpush1.bf16.msra.mxu0 %v5025_v39  ;;  %v5841_v63 = vsel %vm5530_vm6, %v4493_v30, %v3552_v37  ;;  %v5049_v23 = vld [vmem:[#allocation5 + $0x804] ss:$8 sps:$4 sm:$0xff]   ;;  %v3512_v37 = vld [vmem:[#allocation2 + $0x50] sm:$0xee] }
 0x14c   : > { %4567 = vmatpush1.bf16.msra.mxu1 %v5025_v39  ;;  %v5816_v10 = vadd.f32 %v1189_v42, %v916_v55  ;;  %v918_v0 = vpop.f32.mrf.mxu0  ;;  %3790 = vmatprep.subr.bf16.mxu0 %v5032_v57  ;;  %v5050_v42 = vld [vmem:[#allocation5 + $0x8f0] ss:$8 sps:$4 sm:$0xff]  }
 0x14d   : > { %v1191_v32 = vpop.f32.mrf.mxu1  ;;  %4552 = vmatprep.subr.bf16.mxu1 %v5032_v57 }
 0x14e   : > { %v5820_v9 = vadd.f32 %v1191_v32, %v918_v0  ;;  %3019 = vmatmul.mubr.bf16.gmra.mxu0 %v4410_v56  ;;  %v4492_v56 = vrot.slane %v3510_v29, 9  ;;  %v5056_v32 = vld [vmem:[#allocation5 + $0x8d0] ss:$8 sps:$4 sm:$0xff]   ;;  %v5067_v29 = vld [vmem:[#allocation5 + $0x8a4] ss:$8 sps:$4 sm:$0xff]  }
 0x14f   : > { %3460 = vmatmul.mubr.bf16.gmra.mxu1 %v4450_v2  ;;  %3791 = vmatpush1.bf16.msra.mxu0 %v5030_v14 }
 0x150   : > { %4568 = vmatpush1.bf16.msra.mxu1 %v5030_v14  ;;  %3469 = vmatprep.mubr.bf16.mxu1 %v4453_v7  ;;  %v5837_v31 = vsel %vm5530_vm6, %v4492_v56, %v3548_v26  ;;  %v5061_v7 = vld [vmem:[#allocation5 + $0x8c4] ss:$8 sps:$4 sm:$0xff]   ;;  %v5070_v26 = vld [vmem:[#allocation5 + $0x894] ss:$8 sps:$4 sm:$0xff]  }
 0x151   : > { %4553 = vmatprep.subr.bf16.mxu1 %v5035_v61  ;;  %3028 = vmatprep.mubr.bf16.mxu0 %v4413_v47  ;;  %v4501_v39 = vcombine.high %v5837_v31, %v5841_v63  ;;  %v5064_v47 = vld [vmem:[#allocation5 + $0x8b4] ss:$8 sps:$4 sm:$0xff]  }
 0x152   : > { %3792 = vmatprep.subr.bf16.mxu0 %v5035_v61 }
 0x153   : > { %3793 = vmatpush1.bf16.msra.mxu0 %v5033_v16 }
 0x154   : > { %4569 = vmatpush1.bf16.msra.mxu1 %v5033_v16  ;;  %3794 = vmatprep.subr.bf16.mxu0 %v5040_v17 }
 0x155   : > { %4554 = vmatprep.subr.bf16.mxu1 %v5040_v17  ;;  %v1195_v45 = vpop.f32.mrf.mxu1 }
 0x156   : > { %3029 = vmatmul.mubr.bf16.gmra.mxu0 %v4412_v24 }
 0x157   : > { %3470 = vmatmul.mubr.bf16.gmra.mxu1 %v4452_v22  ;;  %3795 = vmatpush1.bf16.msra.mxu0 %v5038_v48  ;;  %v1197_v57 = vpop.f32.mrf.mxu1 }
 0x158   : > { %4570 = vmatpush1.bf16.msra.mxu1 %v5038_v48  ;;  %3479 = vmatprep.mubr.bf16.mxu1 %v4455_v52 }
 0x159   : > { %4555 = vmatprep.subr.bf16.mxu1 %v5043_v44  ;;  %3038 = vmatprep.mubr.bf16.mxu0 %v4415_v27  ;;  %v1199_v60 = vpop.f32.mrf.mxu1  ;;  %v3513_v27 = vld [vmem:[#allocation2 + $0x70] sm:$0xee] }
 0x15a   : > { %3796 = vmatprep.subr.bf16.mxu0 %v5043_v44  ;;  %v5065_v44 = vld [vmem:[#allocation5 + $0x8a0] ss:$8 sps:$4 sm:$0xff]  }
 0x15b   : > { %3797 = vmatpush1.bf16.msra.mxu0 %v5041_v6  ;;  %v1201_v5 = vpop.f32.mrf.mxu1 }
 0x15c   : > { %4571 = vmatpush1.bf16.msra.mxu1 %v5041_v6  ;;  %3798 = vmatprep.subr.bf16.mxu0 %v5046_v36  ;;  %v5068_v6 = vld [vmem:[#allocation5 + $0x890] ss:$8 sps:$4 sm:$0xff]  }
 0x15d   : > { %4556 = vmatprep.subr.bf16.mxu1 %v5046_v36 }
 0x15e   : > { %3039 = vmatmul.mubr.bf16.gmra.mxu0 %v4414_v50  ;;  %v5071_v50 = vld [vmem:[#allocation5 + $0x880] ss:$8 sps:$4 sm:$0xff]  }
 0x15f   : > { %3480 = vmatmul.mubr.bf16.gmra.mxu1 %v4454_v54  ;;  %3799 = vmatpush1.bf16.msra.mxu0 %v5044_v38  ;;  %v4494_v54 = vrot.slane %v3512_v37, 9 }
 0x160   : > { %4572 = vmatpush1.bf16.msra.mxu1 %v5044_v38  ;;  %3838 = vmatprep.mubr.bf16.mxu1 %v4501_v39  ;;  %v3556_v38 = vrot.slane %v5793_v28, 5  ;;  %v3560_v39 = vrot.slane %v5795_v49, 5  ;;  %v4500_v28 = vcombine.low %v5837_v31, %v5841_v63 }
 0x161   : > { %4557 = vmatprep.subr.bf16.mxu1 %v5049_v23  ;;  %3818 = vmatprep.mubr.bf16.mxu0 %v4497_v35 }
 0x162   : > { %3800 = vmatprep.subr.bf16.mxu0 %v5049_v23  ;;  %v922_v62 = vpop.f32.mrf.mxu0  ;;  %v4495_v23 = vrot.slane %v3513_v27, 9 }
 0x163   : > { %3801 = vmatpush1.bf16.msra.mxu0 %v5047_v59  ;;  %v5850_v58 = vadd.f32 %v1195_v45, %v922_v62  ;;  %v1205_v14 = vpop.f32.mrf.mxu1  ;;  %v5073_v45 = vld [vmem:[#allocation5 + $0x884] ss:$8 sps:$4 sm:$0xff]  }
 0x164   : > { %4573 = vmatpush1.bf16.msra.mxu1 %v5047_v59  ;;  %3802 = vmatprep.subr.bf16.mxu0 %v5052_v41  ;;  %v924_v2 = vpop.f32.mrf.mxu0  ;;  %v3557_v59 = vsel %vm5530_vm6, %v4494_v54, %v3556_v38 }
 0x165   : > { %4558 = vmatprep.subr.bf16.mxu1 %v5052_v41  ;;  %v5852_v55 = vadd.f32 %v1197_v57, %v924_v2  ;;  %v1207_v8 = vpop.f32.mrf.mxu1  ;;  %v3561_v41 = vsel %vm5530_vm6, %v4495_v23, %v3560_v39 }
 0x166   : > { %v926_v35 = vpop.f32.mrf.mxu0 }
 0x167   : > { %3803 = vmatpush2.bf16.msra.mxu0 %v5050_v42  ;;  %v5854_v61 = vadd.f32 %v1199_v60, %v926_v35  ;;  %v1209_v0 = vpop.f32.mrf.mxu1 }
 0x168   : > { %4574 = vmatpush2.bf16.msra.mxu1 %v5050_v42  ;;  %3804 = vmatprep.subr.bf16.mxu0 %v5055_v18  ;;  %v928_v11 = vpop.f32.mrf.mxu0 }
 0x169   : > { %4559 = vmatprep.subr.bf16.mxu1 %v5055_v18  ;;  %v5856_v13 = vadd.f32 %v1201_v5, %v928_v11  ;;  %v1211_v22 = vpop.f32.mrf.mxu1  ;;  %v4503_v18 = vcombine.high %v3557_v59, %v3561_v41 }
 0x16b   : > { %3805 = vmatpush2.bf16.msra.mxu0 %v5053_v1 }
 0x16c   : > { %4575 = vmatpush2.bf16.msra.mxu1 %v5053_v1  ;;  %3806 = vmatprep.subr.bf16.mxu0 %v5058_v3 }
 0x16d   : > { %4560 = vmatprep.subr.bf16.mxu1 %v5058_v3 }
 0x16f   : > { %3807 = vmatpush2.bf16.msra.mxu0 %v5056_v32 }
 0x170   : > { %4576 = vmatpush2.bf16.msra.mxu1 %v5056_v32  ;;  %v932_v16 = vpop.f32.mrf.mxu0  ;;  %3808 = vmatprep.subr.bf16.mxu0 %v5061_v7 }
 0x171   : > { %4561 = vmatprep.subr.bf16.mxu1 %v5061_v7  ;;  %v5858_v17 = vadd.f32 %v1205_v14, %v932_v16  ;;  %v4502_v7 = vcombine.low %v3557_v59, %v3561_v41 }
 0x172   : > { %v934_v34 = vpop.f32.mrf.mxu0 }
 0x173   : > { %v5860_v20 = vadd.f32 %v1207_v8, %v934_v34  ;;  %3809 = vmatpush2.bf16.msra.mxu0 %v5059_v15  ;;  %v1215_v56 = vpop.f32.mrf.mxu1 }
 0x174   : > { %4577 = vmatpush2.bf16.msra.mxu1 %v5059_v15  ;;  %v936_v48 = vpop.f32.mrf.mxu0  ;;  %3810 = vmatprep.subr.bf16.mxu0 %v5064_v47 }
 0x175   : > { %4562 = vmatprep.subr.bf16.mxu1 %v5064_v47  ;;  %v5862_v24 = vadd.f32 %v1209_v0, %v936_v48  ;;  %v1217_v36 = vpop.f32.mrf.mxu1 }
 0x176   : > { %v938_v52 = vpop.f32.mrf.mxu0 }
 0x177   : > { %v5864_v30 = vadd.f32 %v1211_v22, %v938_v52  ;;  %3811 = vmatpush2.bf16.msra.mxu0 %v5062_v12  ;;  %v1219_v57 = vpop.f32.mrf.mxu1 }
 0x178   : > { %4578 = vmatpush2.bf16.msra.mxu1 %v5062_v12  ;;  %3812 = vmatprep.subr.bf16.mxu0 %v5067_v29 }
 0x179   : > { %4563 = vmatprep.subr.bf16.mxu1 %v5067_v29  ;;  %v1221_v62 = vpop.f32.mrf.mxu1 }
 0x17b   : > { %3813 = vmatpush2.bf16.msra.mxu0 %v5065_v44 }
 0x17c   : > { %4579 = vmatpush2.bf16.msra.mxu1 %v5065_v44  ;;  %3814 = vmatprep.subr.bf16.mxu0 %v5070_v26 }
 0x17d   : > { %4564 = vmatprep.subr.bf16.mxu1 %v5070_v26 }
 0x17e   : > { %v942_v60 = vpop.f32.mrf.mxu0 }
 0x17f   : > { %v5872_v42 = vadd.f32 %v1215_v56, %v942_v60  ;;  %3815 = vmatpush2.bf16.msra.mxu0 %v5068_v6 }
 0x180   : > { %4580 = vmatpush2.bf16.msra.mxu1 %v5068_v6  ;;  %v944_v49 = vpop.f32.mrf.mxu0  ;;  %3816 = vmatprep.subr.bf16.mxu0 %v5073_v45 }
 0x181   : > { %4565 = vmatprep.subr.bf16.mxu1 %v5073_v45  ;;  %v5876_v5 = vadd.f32 %v1217_v36, %v944_v49 }
 0x182   : > { %v946_v1 = vpop.f32.mrf.mxu0 }
 0x183   : > { %v5878_v3 = vadd.f32 %v1219_v57, %v946_v1  ;;  %3817 = vmatpush2.bf16.msra.mxu0 %v5071_v50 }
 0x184   : > { %4581 = vmatpush2.bf16.msra.mxu1 %v5071_v50  ;;  %v948_v2 = vpop.f32.mrf.mxu0 }
 0x185   : > { %v5880_v14 = vadd.f32 %v1221_v62, %v948_v2 }
 0x186   : > { %v1541_v32 = vpop.f32.mrf.mxu0  ;;  %3819 = vmatmul.mubr.bf16.vlgmr.msra.gmra.mxu0 %v4496_v19 }
 0x187   : > { %3839 = vmatmul.mubr.bf16.vlgmr.msra.gmra.mxu1 %v4500_v28  ;;  %v1870_v21 = vpop.f32.mrf.mxu1  ;;  %v1580_v31 = vadd.f32 %v1541_v32, %v5801_v4  ;;  %3828 = vmatprep.mubr.bf16.mxu0 %v4499_v33 }
 0x188   : > { %3848 = vmatprep.mubr.bf16.mxu1 %v4503_v18  ;;  %v1543_v8 = vpop.f32.mrf.mxu0 }
 0x189   : > { %v1872_v35 = vpop.f32.mrf.mxu1  ;;  %v1581_v11 = vadd.f32 %v1543_v8, %v5814_v40  ;;  %v5890_v15 = vadd.f32 %v1870_v21, %v1580_v31 }
 0x18a   : > { %v1545_v47 = vpop.f32.mrf.mxu0 }
 0x18b   : > { %v1874_v63 = vpop.f32.mrf.mxu1  ;;  %v1582_v16 = vadd.f32 %v1545_v47, %v5816_v10  ;;  %v5893_v12 = vadd.f32 %v1872_v35, %v1581_v11 }
 0x18c   : > { %v1547_v25 = vpop.f32.mrf.mxu0 }
 0x18d   : > { %v1876_v0 = vpop.f32.mrf.mxu1  ;;  %v1583_v19 = vadd.f32 %v1547_v25, %v5820_v9  ;;  %v5896_v4 = vadd.f32 %v1874_v63, %v1582_v16 }
 0x18e   : > { %v1551_v34 = vpop.f32.mrf.mxu0  ;;  %3829 = vmatmul.mubr.bf16.gmra.mxu0 %v4498_v53 }
 0x18f   : > { %3849 = vmatmul.mubr.bf16.gmra.mxu1 %v4502_v7  ;;  %v1880_v46 = vpop.f32.mrf.mxu1  ;;  %v1584_v40 = vadd.f32 %v1551_v34, %v5850_v58  ;;  %v5902_v22 = vadd.f32 %v1876_v0, %v1583_v19 }
 0x190   : > { %v1553_v29 = vpop.f32.mrf.mxu0 }
 0x191   : > { %v1882_v33 = vpop.f32.mrf.mxu1  ;;  %v1585_v48 = vadd.f32 %v1553_v29, %v5852_v55  ;;  %v5905_v44 = vadd.f32 %v1880_v46, %v1584_v40 }
 0x192   : > { %v1555_v9 = vpop.f32.mrf.mxu0 }
 0x193   : > { %v1884_v10 = vpop.f32.mrf.mxu1  ;;  %v1586_v56 = vadd.f32 %v1555_v9, %v5854_v61  ;;  %v5908_v26 = vadd.f32 %v1882_v33, %v1585_v48 }
 0x194   : > { %v1557_v27 = vpop.f32.mrf.mxu0 }
 0x195   : > { %v1886_v52 = vpop.f32.mrf.mxu1  ;;  %v1587_v43 = vadd.f32 %v1557_v27, %v5856_v13  ;;  %v5911_v51 = vadd.f32 %v1884_v10, %v1586_v56 }
 0x196   : > { %v1561_v58 = vpop.f32.mrf.mxu0 }
 0x197   : > { %v1890_v37 = vpop.f32.mrf.mxu1  ;;  %v1588_v6 = vadd.f32 %v1561_v58, %v5858_v17  ;;  %v5914_v36 = vadd.f32 %v1886_v52, %v1587_v43 }
 0x198   : > { %v1563_v45 = vpop.f32.mrf.mxu0 }
 0x199   : > { %v1892_v53 = vpop.f32.mrf.mxu1  ;;  %v1589_v54 = vadd.f32 %v1563_v45, %v5860_v20  ;;  %v5917_v38 = vadd.f32 %v1890_v37, %v1588_v6 }
 0x19a   : > { %v1565_v23 = vpop.f32.mrf.mxu0 }
 0x19b   : > { %v1894_v55 = vpop.f32.mrf.mxu1  ;;  %v1590_v39 = vadd.f32 %v1565_v23, %v5862_v24  ;;  %v5920_v50 = vadd.f32 %v1892_v53, %v1589_v54 }
 0x19c   : > { %v1567_v57 = vpop.f32.mrf.mxu0 }
 0x19d   : > { %v1896_v61 = vpop.f32.mrf.mxu1  ;;  %v1591_v59 = vadd.f32 %v1567_v57, %v5864_v30  ;;  %v5923_v41 = vadd.f32 %v1894_v55, %v1590_v39 }
 0x19e   : > { %v1571_v60 = vpop.f32.mrf.mxu0 }
 0x19f   : > { %v1900_v13 = vpop.f32.mrf.mxu1  ;;  %v1592_v28 = vadd.f32 %v1571_v60, %v5872_v42  ;;  %v5926_v49 = vadd.f32 %v1896_v61, %v1591_v59 }
 0x1a0   : > { %v1573_v20 = vpop.f32.mrf.mxu0 }
 0x1a1   : > { %v1902_v17 = vpop.f32.mrf.mxu1  ;;  %v1593_v62 = vadd.f32 %v1573_v20, %v5876_v5  ;;  %v5929_v1 = vadd.f32 %v1900_v13, %v1592_v28 }
 0x1a2   : > { %v1575_v24 = vpop.f32.mrf.mxu0 }
 0x1a3   : > { %v1904_v18 = vpop.f32.mrf.mxu1  ;;  %v1594_v21 = vadd.f32 %v1575_v24, %v5878_v3  ;;  %v5932_v2 = vadd.f32 %v1902_v17, %v1593_v62 }
 0x1a4   : > { %v1577_v30 = vpop.f32.mrf.mxu0 }
 0x1a5   : > { %v1906_v35 = vpop.f32.mrf.mxu1  ;;  %v1595_v32 = vadd.f32 %v1577_v30, %v5880_v14  ;;  %v5935_v31 = vadd.f32 %v1904_v18, %v1594_v21 }
 0x1a7   : > { %v5937_v42 = vadd.f32 %v1906_v35, %v1595_v32 }
 0x1c6   : > { %v2311_v7 = vpop.f32.mrf.mxu0 }
 0x1c7   : > { %v5939_v63 = vpop.f32.mrf.mxu1 }
 0x1c8   : > { %v5943_v5 = vpop.f32.mrf.mxu0 }
 0x1c9   : > { %v5941_v8 = vpop.f32.mrf.mxu1 }
 0x1ca   : > { %v5947_v3 = vpop.f32.mrf.mxu0 }
 0x1cb   : > { %v5945_v11 = vpop.f32.mrf.mxu1 }
 0x1cc   : > { %v5951_v47 = vpop.f32.mrf.mxu0 }
 0x1cd   : > { %v5949_v0 = vpop.f32.mrf.mxu1 }
 0x1ce   : > { %v5955_v16 = vpop.f32.mrf.mxu0 }
 0x1cf   : > { %v5953_v14 = vpop.f32.mrf.mxu1 }
 0x1d0   : > { %v5959_v25 = vpop.f32.mrf.mxu0 }
 0x1d1   : > { %v5957_v46 = vpop.f32.mrf.mxu1 }
 0x1d2   : > { %6221 = vst [vmem:[#allocation9_spill] sm:$0xff] %v5957_v46  ;;  %v5963_v33 = vpop.f32.mrf.mxu0 }
 0x1d3   : > { %v5961_v19 = vpop.f32.mrf.mxu1 }
 0x1d4   : > { %6222 = vst [vmem:[#allocation10_spill] sm:$0xff] %v5961_v19  ;;  %v5967_v40 = vpop.f32.mrf.mxu0 }
 0x1d5   : > { %v5965_v34 = vpop.f32.mrf.mxu1 }
 0x1d6   : > { %6223 = vst [vmem:[#allocation11_spill] sm:$0xff] %v5965_v34  ;;  %v2331_v29 = vpop.f32.mrf.mxu0 }
 0x1d7   : > { %v2700_v10 = vpop.f32.mrf.mxu1 }
 0x1d8   : > { %v2333_v52 = vpop.f32.mrf.mxu0 }
 0x1d9   : > { %v2702_v48 = vpop.f32.mrf.mxu1 }
 0x1da   : > { %v2335_v56 = vpop.f32.mrf.mxu0 }
 0x1db   : > { %v2704_v9 = vpop.f32.mrf.mxu1 }
 0x1dc   : > { %v2337_v27 = vpop.f32.mrf.mxu0 }
 0x1dd   : > { %v5969_v37 = vpop.f32.mrf.mxu1 }
 0x1de   : > { %v2341_v53 = vpop.f32.mrf.mxu0 }
 0x1df   : > { %v5971_v43 = vpop.f32.mrf.mxu1 }
 0x1e0   : > { %v2343_v6 = vpop.f32.mrf.mxu0 }
 0x1e1   : > { %v5973_v58 = vpop.f32.mrf.mxu1 }
 0x1e2   : > { %v5977_v45 = vpop.f32.mrf.mxu0 }
 0x1e3   : > { %v5975_v55 = vpop.f32.mrf.mxu1 }
 0x1e4   : > { %6224 = vst [vmem:[#allocation12_spill] sm:$0xff] %v5975_v55  ;;  %v5983_v23 = vpop.f32.mrf.mxu0 }
 0x1e5   : > { %v5979_v54 = vpop.f32.mrf.mxu1 }
 0x1e6   : > { %6225 = vst [vmem:[#allocation13_spill] sm:$0xff] %v5979_v54 }
 0x206   : > { %v3010_v39 = vpop.f32.mrf.mxu0 }
 0x207   : > { %v5981_v61 = vpop.f32.mrf.mxu1 }
 0x208   : > { %v3012_v57 = vpop.f32.mrf.mxu0 }
 0x209   : > { %v5985_v13 = vpop.f32.mrf.mxu1 }
 0x20a   : > { %6226 = vst [vmem:[#allocation14_spill] sm:$0xff] %v5985_v13  ;;  %v5989_v17 = vpop.f32.mrf.mxu0 }
 0x20b   : > { %v5987_v59 = vpop.f32.mrf.mxu1 }
 0x20c   : > { %6227 = vst [vmem:[#allocation15_spill] sm:$0xff] %v5987_v59  ;;  %v5993_v28 = vpop.f32.mrf.mxu0 }
 0x20d   : > { %v5991_v60 = vpop.f32.mrf.mxu1  ;;  %6229 = vst [vmem:[#allocation17_spill] sm:$0xff] %v5993_v28  ;;  %v2360_v28 = vadd.f32 %v2335_v56, %v5923_v41  ;;  %v2362_v56 = vadd.f32 %v2341_v53, %v5929_v1  ;;  %v2355_v1 = vadd.f32 %v5959_v25, %v5908_v26  ;;  %v2356_v26 = vadd.f32 %v5963_v33, %v5911_v51 }
 0x20e   : > { %6228 = vst [vmem:[#allocation16_spill] sm:$0xff] %v5991_v60  ;;  %v5997_v18 = vpop.f32.mrf.mxu0  ;;  %v2357_v51 = vadd.f32 %v5967_v40, %v5914_v36 }
 0x20f   : > { %v5995_v20 = vpop.f32.mrf.mxu1  ;;  %6231 = vst [vmem:[#allocation19_spill] sm:$0xff] %v5997_v18 }
 0x210   : > { %6230 = vst [vmem:[#allocation18_spill] sm:$0xff] %v5995_v20  ;;  %v6001_v24 = vpop.f32.mrf.mxu0 }
 0x211   : > { %v5999_v62 = vpop.f32.mrf.mxu1  ;;  %6233 = vst [vmem:[#allocation21_spill] sm:$0xff] %v6001_v24  ;;  %v6239_v33 = vld [vmem:[#allocation14_spill] sm:$0xff] }
 0x212   : > { %6232 = vst [vmem:[#allocation20_spill] sm:$0xff] %v5999_v62  ;;  %v6005_v30 = vpop.f32.mrf.mxu0 }
 0x213   : > { %v6003_v21 = vpop.f32.mrf.mxu1  ;;  %6235 = vst [vmem:[#allocation23_spill] sm:$0xff] %v6005_v30  ;;  %v6243_v40 = vld [vmem:[#allocation15_spill] sm:$0xff] }
 0x214   : > { %6234 = vst [vmem:[#allocation22_spill] sm:$0xff] %v6003_v21  ;;  %v6009_v32 = vpop.f32.mrf.mxu0  ;;  %v2358_v21 = vadd.f32 %v2331_v29, %v5917_v38  ;;  %v2352_v38 = vadd.f32 %v5947_v3, %v5896_v4 }
 0x215   : > { %v6007_v35 = vpop.f32.mrf.mxu1  ;;  %6237 = vst [vmem:[#allocation25_spill] sm:$0xff] %v6009_v32  ;;  %v2350_v32 = vadd.f32 %v2311_v7, %v5890_v15  ;;  %v2361_v15 = vadd.f32 %v2337_v27, %v5926_v49 }
 0x216   : > { %6236 = vst [vmem:[#allocation24_spill] sm:$0xff] %v6007_v35  ;;  %v3030_v60 = vpop.f32.mrf.mxu0  ;;  %v2359_v35 = vadd.f32 %v2333_v52, %v5920_v50  ;;  %v2727_v55 = vadd.f32 %v2700_v10, %v2358_v21  ;;  %v2353_v50 = vadd.f32 %v5951_v47, %v5902_v22  ;;  %v2354_v10 = vadd.f32 %v5955_v16, %v5905_v44 }
 0x217   : > { %v3471_v34 = vpop.f32.mrf.mxu1  ;;  %v2719_v41 = vadd.f32 %v5939_v63, %v2350_v32  ;;  %v2721_v3 = vadd.f32 %v5945_v11, %v2352_v38  ;;  %v2363_v22 = vadd.f32 %v2343_v6, %v5932_v2  ;;  %v2364_v11 = vadd.f32 %v5977_v45, %v5935_v31 }
 0x218   : > { %v3032_v20 = vpop.f32.mrf.mxu0  ;;  %v2728_v52 = vadd.f32 %v2702_v48, %v2359_v35  ;;  %v3057_v7 = vadd.f32 %v3030_v60, %v2727_v55  ;;  %v2722_v63 = vadd.f32 %v5949_v0, %v2353_v50  ;;  %v2730_v48 = vadd.f32 %v5969_v37, %v2361_v15  ;;  %v6245_v50 = vld [vmem:[#allocation13_spill] sm:$0xff] }
 0x219   : > { %v3473_v19 = vpop.f32.mrf.mxu1  ;;  %v3049_v47 = vadd.f32 %v3010_v39, %v2719_v41  ;;  %v2365_v55 = vadd.f32 %v5983_v23, %v5937_v42 }
 0x21a   : > { %v3034_v18 = vpop.f32.mrf.mxu0  ;;  %v3498_v44 = vadd.f32 %v3471_v34, %v3057_v7 }
 0x21b   : > { %v3475_v54 = vpop.f32.mrf.mxu1  ;;  %v3490_v25 = vadd.f32 %v5981_v61, %v3049_v47  ;;  %v6240_v61 = vld [vmem:[#allocation17_spill] sm:$0xff] }
 0x21c   : > { %v3036_v62 = vpop.f32.mrf.mxu0 }
 0x21d   : > { %v6011_v59 = vpop.f32.mrf.mxu1  ;;  %v3060_v34 = vadd.f32 %v3036_v62, %v2730_v48 }
 0x21e   : > { %v3040_v46 = vpop.f32.mrf.mxu0 }
 0x21f   : > { %v6013_v24 = vpop.f32.mrf.mxu1 }
 0x220   : > { %6238 = vst [vmem:[#allocation26_spill] sm:$0xff] %v6013_v24  ;;  %v3042_v13 = vpop.f32.mrf.mxu0  ;;  %v2351_v24 = vadd.f32 %v5943_v5, %v5893_v12  ;;  %v2729_v12 = vadd.f32 %v2704_v9, %v2360_v28  ;;  %v3058_v5 = vadd.f32 %v3032_v20, %v2728_v52  ;;  %v2723_v9 = vadd.f32 %v5953_v14, %v2354_v10  ;;  %v6241_v28 = vld [vmem:[#allocation12_spill] sm:$0xff]  ;;  %v6247_v10 = vld [vmem:[#allocation10_spill] sm:$0xff] }
 0x221   : > { %v6017_v30 = vpop.f32.mrf.mxu1  ;;  %v2732_v14 = vadd.f32 %v5973_v58, %v2363_v22  ;;  %v2733_v42 = vadd.f32 %v6241_v28, %v2364_v11 }
 0x222   : > { %v3044_v21 = vpop.f32.mrf.mxu0  ;;  %v2720_v4 = vadd.f32 %v5941_v8, %v2351_v24  ;;  %v3059_v16 = vadd.f32 %v3034_v18, %v2729_v12  ;;  %v2731_v8 = vadd.f32 %v5971_v43, %v2362_v56  ;;  %v3499_v0 = vadd.f32 %v3473_v19, %v3058_v5  ;;  %v6242_v18 = vld [vmem:[#allocation9_spill] sm:$0xff]  ;;  %v6244_v24 = vld [vmem:[#allocation19_spill] sm:$0xff]  ;;  %v6248_v12 = vld [vmem:[#allocation16_spill] sm:$0xff] }
 0x223   : > { %v6029_v29 = vpop.f32.mrf.mxu1  ;;  %v3051_v43 = vadd.f32 %v5989_v17, %v2721_v3  ;;  %v2724_v36 = vadd.f32 %v6242_v18, %v2355_v1  ;;  %v3053_v35 = vadd.f32 %v6244_v24, %v2723_v9  ;;  %v3063_v15 = vadd.f32 %v3044_v21, %v2733_v42  ;;  %v6251_v9 = vld [vmem:[#allocation18_spill] sm:$0xff] }
 0x224   : > { %v3050_v27 = vadd.f32 %v3012_v57, %v2720_v4  ;;  %v3046_v37 = vpop.f32.mrf.mxu0  ;;  %v3500_v31 = vadd.f32 %v3475_v54, %v3059_v16  ;;  %v3061_v19 = vadd.f32 %v3040_v46, %v2731_v8  ;;  %v3052_v57 = vadd.f32 %v6240_v61, %v2722_v63  ;;  %v6249_v4 = vld [vmem:[#allocation21_spill] sm:$0xff]  ;;  %v6250_v63 = vld [vmem:[#allocation11_spill] sm:$0xff] }
 0x225   : > { %v6042_v49 = vpop.f32.mrf.mxu1  ;;  %v3501_v46 = vadd.f32 %v6011_v59, %v3060_v34  ;;  %v3062_v54 = vadd.f32 %v3042_v13, %v2732_v14  ;;  %v3492_v62 = vadd.f32 %v6243_v40, %v3051_v43  ;;  %v2734_v59 = vadd.f32 %v6245_v50, %v2365_v55  ;;  %v6253_v14 = vld [vmem:[#allocation20_spill] sm:$0xff]  ;;  %v6254_v43 = vld [vmem:[#allocation25_spill] sm:$0xff] }
 0x226   : > { %v3491_v58 = vadd.f32 %v6239_v33, %v3050_v27  ;;  %v2725_v56 = vadd.f32 %v6247_v10, %v2356_v26  ;;  %v3493_v5 = vadd.f32 %v6248_v12, %v3052_v57  ;;  %v3054_v3 = vadd.f32 %v6249_v4, %v2724_v36  ;;  %v6252_v27 = vld [vmem:[#allocation23_spill] sm:$0xff]  ;;  %v6255_v33 = vld [vmem:[#allocation22_spill] sm:$0xff] }
 0x227   : > { %v6246_v13 = vld [vmem:[#allocation26_spill] sm:$0xff]  ;;  %v2726_v21 = vadd.f32 %v6250_v63, %v2357_v51  ;;  %v3503_v48 = vadd.f32 %v6017_v30, %v3062_v54  ;;  %v3494_v8 = vadd.f32 %v6251_v9, %v3053_v35  ;;  %v3504_v34 = vadd.f32 %v6029_v29, %v3063_v15 }
 0x228   : > { %v3502_v52 = vadd.f32 %v6246_v13, %v3061_v19 }
 0x246   : > { %v3820_v45 = vpop.f32.mrf.mxu0 }
 0x247   : > { %v3840_v2 = vpop.f32.mrf.mxu1  ;;  %v6074_v17 = vadd.f32 %v3820_v45, %v3490_v25  ;;  %v3495_v25 = vadd.f32 %v6253_v14, %v3054_v3 }
 0x248   : > { %v6057_v53 = vadd.f32 %v3840_v2, %v3498_v44  ;;  %v3822_v23 = vpop.f32.mrf.mxu0  ;;  %v3064_v44 = vadd.f32 %v3046_v37, %v2734_v59  ;;  %v3055_v2 = vadd.f32 %v6252_v27, %v2725_v56 }
 0x249   : > { %v3842_v6 = vpop.f32.mrf.mxu1  ;;  %3875 = vst [vmem:[%s6053_s11] sm:$0xff] %v6074_v17  ;;  %v6087_v32 = vadd.f32 %v3822_v23, %v3491_v58 }
 0x24a   : > { %3883 = vst [vmem:[%s6053_s11 + $0x40] sm:$0xff] %v6057_v53  ;;  %v6068_v39 = vadd.f32 %v3842_v6, %v3499_v0  ;;  %v3824_v7 = vpop.f32.mrf.mxu0  ;;  %v3056_v6 = vadd.f32 %v6254_v43, %v2726_v21  ;;  %v3505_v29 = vadd.f32 %v6042_v49, %v3064_v44  ;;  %v3496_v58 = vadd.f32 %v6255_v33, %v3055_v2 }
 0x24b   : > { %v3844_v60 = vpop.f32.mrf.mxu1  ;;  %3876 = vst [vmem:[%s6053_s11 + $0x8] sm:$0xff] %v6087_v32  ;;  %v6100_v22 = vadd.f32 %v3824_v7, %v3492_v62  ;;  %v5176_v21 = vmov 1966171168   ;;  %v3983_v44 = vlaneseq }
 0x24c   : > { %3884 = vst [vmem:[%s6053_s11 + $0x48] sm:$0xff] %v6068_v39  ;;  %v6080_v20 = vadd.f32 %v3844_v60, %v3500_v31  ;;  %v3826_v16 = vpop.f32.mrf.mxu0 }
 0x24d   : > { %v3846_v38 = vpop.f32.mrf.mxu1  ;;  %3877 = vst [vmem:[%s6053_s11 + $0x10] sm:$0xff] %v6100_v22  ;;  %v3891_v11 = vadd.f32 %v6100_v22, %v6074_v17  ;;  %v6114_v0 = vadd.f32 %v3826_v16, %v3493_v5  ;;  %vm6160_vm7 = vcmp.lt.s32.totalorder %v3983_v44, 256 }
 0x24e   : > { %3885 = vst [vmem:[%s6053_s11 + $0x50] sm:$0xff] %v6080_v20  ;;  %v6093_v41 = vadd.f32 %v3846_v38, %v3501_v46  ;;  %v3830_v37 = vpop.f32.mrf.mxu0  ;;  %v6256_v46 = vld [vmem:[#allocation24_spill] sm:$0xff] }
 0x24f   : > { %v3850_v47 = vpop.f32.mrf.mxu1  ;;  %3878 = vst [vmem:[%s6053_s11 + $0x18] sm:$0xff] %v6114_v0  ;;  %v3904_v55 = vadd.f32 %v6114_v0, %v6087_v32  ;;  %v3863_v31 = vadd.f32 %v3830_v37, %v3494_v8  ;;  %v3497_v54 = vadd.f32 %v6256_v46, %v3056_v6 }
 0x250   : > { %3886 = vst [vmem:[%s6053_s11 + $0x58] sm:$0xff] %v6093_v41  ;;  %v6106_v1 = vadd.f32 %v3850_v47, %v3502_v52  ;;  %v3832_v45 = vpop.f32.mrf.mxu0 }
 0x251   : > { %v3852_v30 = vpop.f32.mrf.mxu1  ;;  %3879 = vst [vmem:[%s6053_s11 + $0x20] sm:$0xff] %v3863_v31  ;;  %v3892_v61 = vadd.f32 %v3891_v11, %v3863_v31  ;;  %v3864_v57 = vadd.f32 %v3832_v45, %v3495_v25  ;;  %v3984_v11 = vshrl.u32 %v3983_v44, 7 }
 0x252   : > { %3887 = vst [vmem:[%s6053_s11 + $0x60] sm:$0xff] %v6106_v1  ;;  %v6119_v26 = vadd.f32 %v3852_v30, %v3503_v48  ;;  %v3834_v28 = vpop.f32.mrf.mxu0  ;;  %v3981_v48 = vunpack.c.l.s4 %v5176_v21 }
 0x253   : > { %v3854_v19 = vpop.f32.mrf.mxu1  ;;  %3880 = vst [vmem:[%s6053_s11 + $0x28] sm:$0xff] %v3864_v57  ;;  %v3905_v49 = vadd.f32 %v3904_v55, %v3864_v57  ;;  %v3865_v23 = vadd.f32 %v3834_v28, %v3496_v58 }
 0x254   : > { %3888 = vst [vmem:[%s6053_s11 + $0x68] sm:$0xff] %v6119_v26  ;;  %v3873_v51 = vadd.f32 %v3854_v19, %v3504_v34  ;;  %v3836_v18 = vpop.f32.mrf.mxu0  ;;  %v3982_v2 = vunpack.c.0.s8 %v3981_v48 }
 0x255   : > { %v3856_v60 = vpop.f32.mrf.mxu1  ;;  %3881 = vst [vmem:[%s6053_s11 + $0x30] sm:$0xff] %v3865_v23  ;;  %v3893_v36 = vadd.f32 %v3892_v61, %v3865_v23  ;;  %v3866_v40 = vadd.f32 %v3836_v18, %v3497_v54 }
 0x256   : > { %3889 = vst [vmem:[%s6053_s11 + $0x70] sm:$0xff] %v3873_v51  ;;  %v6133_v42 = vadd.f32 %v3856_v60, %v3505_v29  ;;  %v3985_v28 = vsub.s32 %v3982_v2, %v3984_v11 }
 0x257   : > { %v3894_v62 = vadd.f32 %v3893_v36, %v6057_v53  ;;  %3882 = vst [vmem:[%s6053_s11 + $0x38] sm:$0xff] %v3866_v40  ;;  %v3906_v24 = vadd.f32 %v3905_v49, %v3866_v40 }
 0x258   : > { %3890 = vst [vmem:[%s6053_s11 + $0x78] sm:$0xff] %v6133_v42 }
 0x259   : > { %v3895_v35 = vadd.f32 %v3894_v62, %v6080_v20  ;;  %v3907_v38 = vadd.f32 %v3906_v24, %v6068_v39 }
 0x25b   : > { %v3896_v50 = vadd.f32 %v3895_v35, %v6106_v1  ;;  %v3908_v59 = vadd.f32 %v3907_v38, %v6093_v41 }
 0x25d   : > { %v3897_v13 = vadd.f32 %v3896_v50, %v3873_v51  ;;  %v3909_v52 = vadd.f32 %v3908_v59, %v6119_v26 }
 0x25f   : > { %v3898_v15 = vrot.slane %v3897_v13, 4  ;;  %v3910_v7 = vadd.f32 %v3909_v52, %v6133_v42 }
 0x261   : > { %v3899_v10 = vadd.f32 %v3898_v15, %v3897_v13  ;;  %v3911_v56 = vrot.slane %v3910_v7, 4 }
 0x263   : > { %v3900_v12 = vrot.slane %v3899_v10, 2  ;;  %v3912_v5 = vadd.f32 %v3911_v56, %v3910_v7 }
 0x265   : > { %v3901_v4 = vadd.f32 %v3900_v12, %v3899_v10  ;;  %v3913_v3 = vrot.slane %v3912_v5, 2 }
 0x267   : > { %v3902_v47 = vrot.slane %v3901_v4, 1  ;;  %v3914_v63 = vadd.f32 %v3913_v3, %v3912_v5 }
 0x269   : > { %v3903_v16 = vadd.f32 %v3902_v47, %v3901_v4  ;;  %v3915_v9 = vrot.slane %v3914_v63, 1 }
 0x26b   : > { %v3917_v8 = vmul.f32 0.015625, %v3903_v16  ;;  %v3916_v27 = vadd.f32 %v3915_v9, %v3914_v63 }
 0x26d   : > { %v3919_v30 = vsub.f32 %v6074_v17, %v3917_v8  ;;  %v3921_v34 = vsub.f32 %v6100_v22, %v3917_v8  ;;  %v3923_v37 = vsub.f32 %v3863_v31, %v3917_v8  ;;  %v3925_v14 = vsub.f32 %v3865_v23, %v3917_v8 }
 0x26e   : > { %v3927_v25 = vsub.f32 %v6057_v53, %v3917_v8  ;;  %v3929_v43 = vsub.f32 %v6080_v20, %v3917_v8  ;;  %v3931_v6 = vsub.f32 %v6106_v1, %v3917_v8  ;;  %v3933_v55 = vsub.f32 %v3873_v51, %v3917_v8 }
 0x26f   : > { %v3935_v19 = vmul.f32 %v3919_v30, %v3919_v30  ;;  %v3937_v29 = vmul.f32 %v3921_v34, %v3921_v34  ;;  %v3939_v45 = vmul.f32 %v3923_v37, %v3923_v37  ;;  %v3918_v58 = vmul.f32 0.015625, %v3916_v27 }
 0x270   : > { %v3979_v61 = vcombine.low %v3903_v16, %v3916_v27  ;;  %v3941_v60 = vmul.f32 %v3925_v14, %v3925_v14  ;;  %v3943_v17 = vmul.f32 %v3927_v25, %v3927_v25  ;;  %v3945_v62 = vmul.f32 %v3929_v43, %v3929_v43 }
 0x271   : > { %v3951_v33 = vadd.f32 %v3937_v29, %v3935_v19  ;;  %v3920_v31 = vsub.f32 %v6087_v32, %v3918_v58  ;;  %v3922_v53 = vsub.f32 %v6114_v0, %v3918_v58  ;;  %v3924_v46 = vsub.f32 %v3864_v57, %v3918_v58 }
 0x272   : > { %v3926_v20 = vsub.f32 %v3866_v40, %v3918_v58  ;;  %v3928_v1 = vsub.f32 %v6068_v39, %v3918_v58  ;;  %v3930_v51 = vsub.f32 %v6093_v41, %v3918_v58  ;;  %v3932_v54 = vsub.f32 %v6119_v26, %v3918_v58 }
 0x273   : > { %v3952_v22 = vadd.f32 %v3951_v33, %v3939_v45  ;;  %v3934_v23 = vsub.f32 %v6133_v42, %v3918_v58  ;;  %v3936_v18 = vmul.f32 %v3920_v31, %v3920_v31  ;;  %v3938_v36 = vmul.f32 %v3922_v53, %v3922_v53 }
 0x274   : > { %v3940_v35 = vmul.f32 %v3924_v46, %v3924_v46  ;;  %v3986_v38 = vrot.slane %v3979_v61, %v3985_v28  ;;  %v3947_v39 = vmul.f32 %v3931_v6, %v3931_v6  ;;  %v3942_v41 = vmul.f32 %v3926_v20, %v3926_v20 }
 0x275   : > { %v3953_v49 = vadd.f32 %v3952_v22, %v3941_v60  ;;  %v3964_v32 = vadd.f32 %v3938_v36, %v3936_v18  ;;  %v3949_v40 = vmul.f32 %v3933_v55, %v3933_v55  ;;  %v3944_v59 = vmul.f32 %v3928_v1, %v3928_v1 }
 0x276   : > { %v3993_v42 = vrot.slane %v3986_v38, %v3985_v28  ;;  %v3946_v15 = vmul.f32 %v3930_v51, %v3930_v51  ;;  %v3948_v56 = vmul.f32 %v3932_v54, %v3932_v54  ;;  %v3950_v4 = vmul.f32 %v3934_v23, %v3934_v23 }
 0x277   : > { %v3954_v24 = vadd.f32 %v3953_v49, %v3943_v17  ;;  %v3965_v26 = vadd.f32 %v3964_v32, %v3940_v35 }
 0x278   : > { %3999 = vst.msk [vmem:[%s6167_s20] ss:$2 sm:$0x3] %vm6160_vm7, %v3993_v42 }
 0x279   : > { %v3955_v57 = vadd.f32 %v3954_v24, %v3945_v62  ;;  %v3966_v13 = vadd.f32 %v3965_v26, %v3942_v41 }
 0x27b   : > { %v3956_v50 = vadd.f32 %v3955_v57, %v3947_v39  ;;  %v3967_v7 = vadd.f32 %v3966_v13, %v3944_v59 }
 0x27d   : > { %v3957_v52 = vadd.f32 %v3956_v50, %v3949_v40  ;;  %v3968_v12 = vadd.f32 %v3967_v7, %v3946_v15 }
 0x27f   : > { %v3958_v10 = vrot.slane %v3957_v52, 4  ;;  %v3969_v3 = vadd.f32 %v3968_v12, %v3948_v56 }
 0x281   : > { %v3959_v5 = vadd.f32 %v3958_v10, %v3957_v52  ;;  %v3970_v63 = vadd.f32 %v3969_v3, %v3950_v4 }
 0x283   : > { %v3960_v47 = vrot.slane %v3959_v5, 2  ;;  %v3971_v21 = vrot.slane %v3970_v63, 4 }
 0x285   : > { %v3961_v48 = vadd.f32 %v3960_v47, %v3959_v5  ;;  %v3972_v44 = vadd.f32 %v3971_v21, %v3970_v63 }
 0x287   : > { %v3973_v16 = vrot.slane %v3972_v44, 2  ;;  %v3962_v9 = vrot.slane %v3961_v48, 1 }
 0x289   : > { %v3974_v8 = vadd.f32 %v3973_v16, %v3972_v44  ;;  %v3963_v2 = vadd.f32 %v3962_v9, %v3961_v48 }
 0x28b   : > { %v3975_v27 = vrot.slane %v3974_v8, 1 }
 0x28d   : > { %v3976_v11 = vadd.f32 %v3975_v27, %v3974_v8 }
 0x28f   : > { %v4002_v30 = vcombine.low %v3963_v2, %v3976_v11 }
 0x291   : > { %v4009_v34 = vrot.slane %v4002_v30, %v3985_v28 }
 0x293   : > { %v4016_v37 = vrot.slane %v4009_v34, %v3985_v28 }
 0x295   : > { %4536 = vst.msk [vmem:[%s6167_s20 + $0x1] ss:$2 sm:$0x3] %vm6160_vm7, %v4016_v37 }
 0x296 PF: > { %p15_p0 = scmp.ge.s32.totalorder %s5241_s22, 4   ;;  %s6259_s12 = smov %s5159_s13 }
 0x297   : > { %s6260_s13 = smov %s5163_s14  ;;  %s6261_s14 = smov %s5258_s30 }
 0x298   : > { %s6262_s15 = smov %s5241_s22  ;;  %17 = sbr.rel (!%p15_p0) target bundleno = 4 (0x4), region = 88 }
 0x29d   :  { %4057 = vsyncpa [#allocation4], 1 }
 0x29e   :  { %4059 = vsyncpa [#allocation4 + $0x1], 1 }
 0x29f   :  { %4060 = vsyncpa [#allocation6], 1 }

</bundles_post_ra>
